<compile_context>
chip_gen: v7x
topology: tpu7x:2x2x1
jax: 0.10.0
libtpu: 0.0.40
codegen_flags: <defaults>
</compile_context>

<pallas_src>
import functools

import jax
import jax.numpy as jnp
from jax.experimental import pallas as pl
from jax.experimental.pallas import tpu as pltpu

LN_EPS = 1e-6
NEG_BIG = 1e9


def _layer_norm(x, gamma, beta, eps=LN_EPS):
    mu = jnp.mean(x, axis=-1, keepdims=True)
    var = jnp.mean((x - mu) ** 2, axis=-1, keepdims=True)
    return (x - mu) * jax.lax.rsqrt(var + eps) * gamma + beta


# ----------------------------------------------------------------------------
# Generation-aware VMEM budgeting / tiling helpers
# ----------------------------------------------------------------------------
def _tpu_budget():
    """Return (vmem_capacity_bytes, dual_tensorcore_hint) with safe fallbacks."""
    cap = 128 << 20
    dual_tc = False
    try:
        info = pltpu.get_tpu_info()
        cap = int(getattr(info, "vmem_capacity_bytes", cap))
        # v7x exposes ~64 MiB VMEM per TensorCore and has 2 TCs per chip;
        # v5e / v6e expose 128 MiB with a single TC.
        dual_tc = cap <= (80 << 20)
    except Exception:
        pass
    return cap, dual_tc


def _encoder_row_bytes(S, E, F, T):
    """Rough per-batch-row VMEM bytes for the fused encoder kernel."""
    b = S * E * 4                       # f32 activation scratch (resident)
    b += S * E * 2                      # bf16 head-output lane-slot scratch
    b += 2 * S * max(T, 1) * E * 2      # double-buffered bf16 input block
    b += 2 * (S + S) * 4                # keep_col / keep_row blocks
    b += S * 3 * E * 6                  # qkv: f32 matmul result + bf16 copy
    b += 2 * S * S * 4                  # per-head score / prob f32 temporaries
    b += S * max(F, 2 * E) * 4          # FFN / residual f32 temporaries
    return b


def _choose_bt(B, per_row, fixed_bytes, budget, *, force_two_steps):
    avail = max(budget - fixed_bytes, per_row)
    bt = int(max(min(B, avail // per_row), 1))
    if force_two_steps and B > 1:
        bt = min(bt, max(B // 2, 1))
    while B % bt:
        bt -= 1
    return max(int(bt), 1)


# ----------------------------------------------------------------------------
# Fused SetEncoder stack (all L layers) + masked mean-pool epilogue.
#   grid = (num_row_blocks [parallel], L [arbitrary])
#   The (Bt, S, E) activation block stays resident in a f32 VMEM scratch across
#   all layers; when pool_prologue is set the x input is (Bt, S, T, E) pad-masked
#   embeddings and the tag-level mean over T is done at l == 0.
# ----------------------------------------------------------------------------
def _fused_encoder_kernel(
    x_ref, keep_col_ref, keep_row_ref,
    wqkv_ref, bqkv_ref, wo_ref, bo_ref, w1_ref, b1_ref, w2_ref, b2_ref, ln_ref,
    pool_ref,
    x_scr, o_scr,
    *, num_heads, num_layers, pool_prologue, weights_resident,
):
    l = pl.program_id(1)
    Bt, S, E = x_scr.shape
    H = num_heads
    Dh = E // H
    scale = 1.0 / float(Dh) ** 0.5
    # Resident weights: (L, ...) refs indexed dynamically with the layer id.
    wl = l if weights_resident else 0

    @pl.when(l == 0)
    def _():
        if pool_prologue:
            x4 = x_ref[...].astype(jnp.float32)              # (Bt, S, T, E), pre-masked
            x_scr[...] = jnp.sum(x4, axis=2) * (1.0 / x4.shape[2])
        else:
            x_scr[...] = x_ref[...].astype(jnp.float32)

    keep_col = keep_col_ref[...]                             # (Bt, S, 1) f32
    keep_row = keep_row_ref[...]                             # (Bt, 1, S) f32
    # additive bias: 0 where both positions are kept, -1e9 otherwise (kept f32)
    bias = (keep_col * keep_row - 1.0) * NEG_BIG             # (Bt, S, S)

    x2 = x_scr[...].reshape(Bt * S, E)                       # f32

    # Fused QKV projection: one (Bt*S, E) x (E, 3E) bf16 matmul, f32 accumulate,
    # result materialized in bf16 (largest temporary halved per review).
    qkv = jnp.dot(x2.astype(jnp.bfloat16), wqkv_ref[wl],
                  preferred_element_type=jnp.float32) + bqkv_ref[wl]
    qkv = qkv.astype(jnp.bfloat16).reshape(Bt, S, 3 * E)

    # TODO(synk): head slots are Dh-wide lane slices (not 128-aligned when
    #             Dh < 128); padding each slot to 128 lanes would trade VMEM for
    #             less XLU work.
    for h in range(H):
        q_h = qkv[:, :, h * Dh:(h + 1) * Dh]
        k_h = qkv[:, :, E + h * Dh:E + (h + 1) * Dh]
        v_h = qkv[:, :, 2 * E + h * Dh:2 * E + (h + 1) * Dh]
        s = jnp.einsum('bqd,bkd->bqk', q_h, k_h,
                       preferred_element_type=jnp.float32) * scale + bias
        s = s - jnp.max(s, axis=-1, keepdims=True)
        # TODO(synk): exp kept in f32 on all generations (bf16 exp is a
        #             v6e/v7x-only micro-opt; unsafe on v5e).
        p = jnp.exp(s)
        p = p * pl.reciprocal(jnp.sum(p, axis=-1, keepdims=True), approx=True)
        o_h = jnp.einsum('bqk,bkd->bqd', p.astype(jnp.bfloat16), v_h,
                         preferred_element_type=jnp.float32)
        # write this head into its static Dh-lane slot of the bf16 scratch
        o_scr[:, :, h * Dh:(h + 1) * Dh] = o_h.astype(jnp.bfloat16)

    # ONE full-contraction (Bt*S, E) x (E, E) output projection matmul.
    attn2 = jnp.dot(o_scr[...].reshape(Bt * S, E), wo_ref[wl],
                    preferred_element_type=jnp.float32) + bo_ref[wl]

    ln = ln_ref[wl]                                          # (4, E): g1, b1, g2, b2
    h1 = _layer_norm(x2 + attn2, ln[0:1, :], ln[1:2, :])
    ff = jnp.dot(h1.astype(jnp.bfloat16), w1_ref[wl],
                 preferred_element_type=jnp.float32) + b1_ref[wl]
    ff = jnp.maximum(ff, 0.0)
    ff = jnp.dot(ff.astype(jnp.bfloat16), w2_ref[wl],
                 preferred_element_type=jnp.float32) + b2_ref[wl]
    x_new = _layer_norm(h1 + ff, ln[2:3, :], ln[3:4, :])
    x_scr[...] = x_new.reshape(Bt, S, E)

    # Epilogue on the last layer: masked mean over the set axis (divide by S,
    # matching torch.mean over zeroed pad rows).
    @pl.when(l == num_layers - 1)
    def _():
        pooled = jnp.sum(keep_col * x_scr[...], axis=1, keepdims=True)
        pool_ref[...] = (pooled * (1.0 / S)).astype(pool_ref.dtype)


def fused_set_encoder_pool(x, keep, enc, *, num_heads, out_dtype=jnp.float32):
    """Run the full encoder stack; return pooled (B, E).

    x: (B, S, E) activations, or (B, S, T, E) pad-masked embeddings whose mean
       over T is fused into the l==0 prologue.
    keep: (B, S) keep flags (1 = real element, 0 = pad).
    """
    pool_prologue = (x.ndim == 4)
    if pool_prologue:
        B, S, T, E = x.shape
    else:
        B, S, E = x.shape
        T = 0
    L = enc["w_qkv"].shape[0]
    F = enc["w1"].shape[2]

    # Generation-aware VMEM budgeting (v7x: 64 MiB/TC, 2 TCs; v5e/v6e: 128 MiB).
    cap, dual_tc = _tpu_budget()
    vmem_limit = int(min(cap * 3 // 4, 100 << 20))
    budget = int(vmem_limit * 0.8)

    wbytes_total = sum(int(v.size) * v.dtype.itemsize for v in enc.values())
    wbytes_layer = wbytes_total // L
    resident = 2 * wbytes_total <= budget // 3       # double-buffered full-L blocks
    fixed_bytes = 2 * wbytes_total if resident else 3 * wbytes_layer

    per_row = _encoder_row_bytes(S, E, F, T)
    bt = _choose_bt(B, per_row, fixed_bytes, budget, force_two_steps=dual_tc)

    keep_c = keep.reshape(B, S, 1).astype(jnp.float32)
    keep_r = keep.reshape(B, 1, S).astype(jnp.float32)

    if resident:
        # Weights DMA'd once per row block: full-L blocks, constant index map,
        # dynamic [l] indexing inside the kernel.
        def w_spec(a, big=False):
            return pl.BlockSpec(tuple(a.shape), lambda b, l: (0,) * a.ndim)
    else:
        # Per-layer blocks; deeper buffering on the large weights to hide the
        # per-layer fetch when bt is small.
        def w_spec(a, big=False):
            shp = (1,) + tuple(a.shape[1:])
            imap = lambda b, l: (l,) + (0,) * (a.ndim - 1)
            if big:
                return pl.BlockSpec(shp, imap, pipeline_mode=pl.Buffered(3))
            return pl.BlockSpec(shp, imap)

    if pool_prologue:
        x_spec = pl.BlockSpec((bt, S, T, E), lambda b, l: (b, 0, 0, 0))
    else:
        x_spec = pl.BlockSpec((bt, S, E), lambda b, l: (b, 0, 0))

    in_specs = [
        x_spec,
        pl.BlockSpec((bt, S, 1), lambda b, l: (b, 0, 0)),
        pl.BlockSpec((bt, 1, S), lambda b, l: (b, 0, 0)),
    ]
    w_names = ("w_qkv", "b_qkv", "w_o", "b_o", "w1", "b1", "w2", "b2", "ln")
    big = {"w_qkv", "w1", "w2"}
    in_specs += [w_spec(enc[n], big=(n in big)) for n in w_names]

    kernel = functools.partial(
        _fused_encoder_kernel, num_heads=num_heads, num_layers=L,
        pool_prologue=pool_prologue, weights_resident=resident)

    out = pl.pallas_call(
        kernel,
        out_shape=jax.ShapeDtypeStruct((B, 1, E), out_dtype),
        grid=(B // bt, L),
        in_specs=in_specs,
        out_specs=pl.BlockSpec((bt, 1, E), lambda b, l: (b, 0, 0)),
        scratch_shapes=[pltpu.VMEM((bt, S, E), jnp.float32),    # resident activations
                        pltpu.VMEM((bt, S, E), jnp.bfloat16)],  # head-output lane slots
        compiler_params=pltpu.CompilerParams(
            dimension_semantics=("parallel", "arbitrary"),
            vmem_limit_bytes=vmem_limit),
    )(x.astype(jnp.bfloat16), keep_c, keep_r, *[enc[n] for n in w_names])
    return out[:, 0, :]


# ----------------------------------------------------------------------------
# Full forward (mirrors TagPredictor.forward)
# ----------------------------------------------------------------------------
def tag_predictor_forward(params, question_by_tag_ids, tag_ids, num_heads):
    N, A, Q, T = question_by_tag_ids.shape
    emb_table = params["tag_embedding"]
    E = emb_table.shape[1]
    tPAD = emb_table.shape[0] - 1

    tag_mask = (question_by_tag_ids == tPAD).astype(jnp.float32)            # (N,A,Q,T)
    question_mask = (jnp.sum(tag_mask, -1) == T).astype(jnp.float32)        # (N,A,Q)
    answerer_mask = (jnp.sum(question_mask, -1) == Q).astype(jnp.float32)   # (N,A)

    # Embedding gather (data-dependent lookup) stays in XLA; the pad-mask
    # multiply fuses with it.  The tag-level mean over T is fused into the l==0
    # prologue of the question-level encoder kernel (removes the old pool kernel).
    emb = jnp.take(emb_table, question_by_tag_ids.reshape(-1), axis=0)
    emb = emb.reshape(N * A, Q, T, E)
    tag_keep = (1.0 - tag_mask).reshape(N * A, Q, T, 1)
    x = (tag_keep * emb).astype(jnp.bfloat16)                               # (N*A,Q,T,E)

    # Question-level encoder stack fused with tag pool (prologue) and the mean
    # over questions (epilogue); intermediate pooled activations kept in bf16.
    q_keep = (1.0 - question_mask).reshape(N * A, Q)
    x = fused_set_encoder_pool(x, q_keep, params["question_encoder"],
                               num_heads=num_heads, out_dtype=jnp.bfloat16)  # (N*A, E)

    # Answerer-level stack: the reference forward reuses question_encoder here
    # (not answerer_encoder); reproduced faithfully.  Fused with the mean over A.
    a_keep = 1.0 - answerer_mask                                             # (N, A)
    x = x.reshape(N, A, E)
    x = fused_set_encoder_pool(x, a_keep, params["question_encoder"],
                               num_heads=num_heads, out_dtype=jnp.float32)   # (N, E)

    # Final LayerNorm (eps=1e-6) + candidate-tag scoring: tiny (N, C) op with
    # C < 128 lanes -> left to XLA per the perf review.
    normed = _layer_norm(x, params["norm_gamma"], params["norm_beta"])
    C = tag_ids.shape[1]
    tag_emb = jnp.take(emb_table, tag_ids.reshape(-1), axis=0).reshape(N, C, E)
    logits = jnp.einsum('nce,ne->nc', tag_emb, normed)
    return logits                                                            # (N, C)


# ----------------------------------------------------------------------------
# Deterministic parameter init (shapes follow TagPredictor.__init__), weights
# stacked per layer and stored as bf16; biases / LN params stay f32.
# ----------------------------------------------------------------------------
def init_params(key, num_tag, E, F, num_layers):
    k_emb, k_q, k_a = jax.random.split(key, 3)

    def make_encoder(key):
        wqkv, bqkv, wo, bo, w1, b1, w2, b2, ln = ([] for _ in range(9))
        for kl in jax.random.split(key, num_layers):
            ks = jax.random.split(kl, 6)

            def w(kk, shape):
                return jax.random.normal(kk, shape, jnp.float32) * 0.05

            wqkv.append(jnp.concatenate(
                [w(ks[0], (E, E)), w(ks[1], (E, E)), w(ks[2], (E, E))], axis=1))
            bqkv.append(jnp.zeros((1, 3 * E), jnp.float32))
            wo.append(w(ks[3], (E, E)))
            bo.append(jnp.zeros((1, E), jnp.float32))
            w1.append(w(ks[4], (E, F)))
            b1.append(jnp.zeros((1, F), jnp.float32))
            w2.append(w(ks[5], (F, E)))
            b2.append(jnp.zeros((1, E), jnp.float32))
            ln.append(jnp.stack([jnp.ones((E,)), jnp.zeros((E,)),
                                 jnp.ones((E,)), jnp.zeros((E,))]))          # (4, E)

        stack = lambda xs: jnp.stack(xs, axis=0)
        return dict(
            w_qkv=stack(wqkv).astype(jnp.bfloat16),   # (L, E, 3E)
            b_qkv=stack(bqkv),                        # (L, 1, 3E)
            w_o=stack(wo).astype(jnp.bfloat16),       # (L, E, E)
            b_o=stack(bo),                            # (L, 1, E)
            w1=stack(w1).astype(jnp.bfloat16),        # (L, E, F)
            b1=stack(b1),                             # (L, 1, F)
            w2=stack(w2).astype(jnp.bfloat16),        # (L, F, E)
            b2=stack(b2),                             # (L, 1, E)
            ln=stack(ln).astype(jnp.float32),         # (L, 4, E)
        )

    return dict(
        tag_embedding=jax.random.normal(k_emb, (num_tag + 1, E), jnp.float32) * 0.1,
        question_encoder=make_encoder(k_q),
        # answerer_encoder exists in __init__ but is unused by the reference forward.
        answerer_encoder=make_encoder(k_a),
        norm_gamma=jnp.ones((1, E), jnp.float32),
        norm_beta=jnp.zeros((1, E), jnp.float32),
        # output_layer (Linear(E, 1)) exists in __init__ but is unused in forward.
    )


if __name__ == "__main__":
    # Small shapes consistent with the module's forward:
    #   question_by_tag_ids: (N, A, Q, T), tag_ids: (N, C)
    N, A, Q, T = 2, 4, 8, 4
    E, H, F = 32, 4, 64
    num_tag, C = 10, 6
    num_hidden_layers = 2

    key = jax.random.PRNGKey(0)
    k_ids, k_tags, k_params = jax.random.split(key, 3)

    # ids in [0, num_tag]; value == num_tag is the PAD index.
    question_by_tag_ids = jax.random.randint(k_ids, (N, A, Q, T), 0, num_tag + 1)
    tag_ids = jax.random.randint(k_tags, (N, C), 0, num_tag)

    params = init_params(k_params, num_tag, E, F, num_hidden_layers)

    fwd = jax.jit(functools.partial(tag_predictor_forward, num_heads=H))
    logits = fwd(params, question_by_tag_ids, tag_ids)
    logits = jax.block_until_ready(logits)
    assert logits.shape == (N, C), logits.shape
    assert bool(jnp.all(jnp.isfinite(logits)))
    print("KERNEL_OK")
</pallas_src>

<mosaic_0001>
module attributes {stable_mosaic.version = 11 : i64} {
  func.func @_fused_encoder_kernel(%arg0: i32, %arg1: i32, %arg2: memref<8x8x4x32xbf16, #tpu.memory_space<vmem>>, %arg3: memref<8x8x1xf32, #tpu.memory_space<vmem>>, %arg4: memref<8x1x8xf32, #tpu.memory_space<vmem>>, %arg5: memref<2x32x96xbf16, #tpu.memory_space<vmem>>, %arg6: memref<2x1x96xf32, #tpu.memory_space<vmem>>, %arg7: memref<2x32x32xbf16, #tpu.memory_space<vmem>>, %arg8: memref<2x1x32xf32, #tpu.memory_space<vmem>>, %arg9: memref<2x32x64xbf16, #tpu.memory_space<vmem>>, %arg10: memref<2x1x64xf32, #tpu.memory_space<vmem>>, %arg11: memref<2x64x32xbf16, #tpu.memory_space<vmem>>, %arg12: memref<2x1x32xf32, #tpu.memory_space<vmem>>, %arg13: memref<2x4x32xf32, #tpu.memory_space<vmem>>, %arg14: memref<8x1x32xbf16, #tpu.memory_space<vmem>>, %arg15: memref<8x8x32xf32, #tpu.memory_space<vmem>>, %arg16: memref<8x8x32xbf16, #tpu.memory_space<vmem>>) attributes {dimension_semantics = [#tpu.dimension_semantics<parallel>, #tpu.dimension_semantics<arbitrary>], iteration_bounds = array<i64: 1, 2>, scalar_prefetch = 0 : i64, scratch_operands = 2 : i64, tpu.core_type = #tpu.core_type<tc>, window_params = [{transform_indices = @transform_0, window_bounds = array<i64: 8, 8, 4, 32>}, {transform_indices = @transform_1, window_bounds = array<i64: 8, 8, 1>}, {transform_indices = @transform_2, window_bounds = array<i64: 8, 1, 8>}, {pipeline_mode = #tpu.pipeline_mode<synchronous>, transform_indices = @transform_3, window_bounds = array<i64: 2, 32, 96>}, {pipeline_mode = #tpu.pipeline_mode<synchronous>, transform_indices = @transform_4, window_bounds = array<i64: 2, 1, 96>}, {pipeline_mode = #tpu.pipeline_mode<synchronous>, transform_indices = @transform_5, window_bounds = array<i64: 2, 32, 32>}, {pipeline_mode = #tpu.pipeline_mode<synchronous>, transform_indices = @transform_6, window_bounds = array<i64: 2, 1, 32>}, {pipeline_mode = #tpu.pipeline_mode<synchronous>, transform_indices = @transform_7, window_bounds = array<i64: 2, 32, 64>}, {pipeline_mode = #tpu.pipeline_mode<synchronous>, transform_indices = @transform_8, window_bounds = array<i64: 2, 1, 64>}, {pipeline_mode = #tpu.pipeline_mode<synchronous>, transform_indices = @transform_9, window_bounds = array<i64: 2, 64, 32>}, {pipeline_mode = #tpu.pipeline_mode<synchronous>, transform_indices = @transform_10, window_bounds = array<i64: 2, 1, 32>}, {pipeline_mode = #tpu.pipeline_mode<synchronous>, transform_indices = @transform_11, window_bounds = array<i64: 2, 4, 32>}, {transform_indices = @transform_12, window_bounds = array<i64: 8, 1, 32>}]} {
    %c0_i32 = arith.constant 0 : i32
    %0 = arith.cmpi eq, %arg1, %c0_i32 : i32
    %1 = arith.extui %0 : i1 to i32
    %c0_i32_0 = arith.constant 0 : i32
    %2 = arith.cmpi ne, %1, %c0_i32_0 : i32
    scf.if %2 {
      %c0_79 = arith.constant 0 : index
      %c0_80 = arith.constant 0 : index
      %c0_81 = arith.constant 0 : index
      %c0_82 = arith.constant 0 : index
      %201 = vector.load %arg2[%c0_79, %c0_80, %c0_81, %c0_82] : memref<8x8x4x32xbf16, #tpu.memory_space<vmem>>, vector<8x8x4x32xbf16>
      %202 = arith.extf %201 : vector<8x8x4x32xbf16> to vector<8x8x4x32xf32>
      %cst_83 = arith.constant dense<0.000000e+00> : vector<8x8x32xf32>
      %203 = vector.multi_reduction <add>, %202, %cst_83 [2] : vector<8x8x4x32xf32> to vector<8x8x32xf32>
      %cst_84 = arith.constant 2.500000e-01 : f32
      %204 = vector.broadcast %cst_84 : f32 to vector<8x8x32xf32>
      %205 = arith.mulf %203, %204 : vector<8x8x32xf32>
      %c0_85 = arith.constant 0 : index
      %c0_86 = arith.constant 0 : index
      %c0_87 = arith.constant 0 : index
      %206 = vector.load %arg15[%c0_85, %c0_86, %c0_87] : memref<8x8x32xf32, #tpu.memory_space<vmem>>, vector<8x8x32xf32>
      tpu.vector_store %arg15[%c0_85, %c0_86, %c0_87], %205 {strides = array<i32>} : memref<8x8x32xf32, #tpu.memory_space<vmem>>, vector<8x8x32xf32>,
    } else {
    }
    %c0 = arith.constant 0 : index
    %c0_1 = arith.constant 0 : index
    %c0_2 = arith.constant 0 : index
    %3 = vector.load %arg3[%c0, %c0_1, %c0_2] : memref<8x8x1xf32, #tpu.memory_space<vmem>>, vector<8x8x1xf32>
    %c0_3 = arith.constant 0 : index
    %c0_4 = arith.constant 0 : index
    %c0_5 = arith.constant 0 : index
    %4 = vector.load %arg4[%c0_3, %c0_4, %c0_5] : memref<8x1x8xf32, #tpu.memory_space<vmem>>, vector<8x1x8xf32>
    %5 = vector.broadcast %3 : vector<8x8x1xf32> to vector<8x8x8xf32>
    %6 = vector.broadcast %4 : vector<8x1x8xf32> to vector<8x8x8xf32>
    %7 = arith.mulf %5, %6 : vector<8x8x8xf32>
    %cst = arith.constant 1.000000e+00 : f32
    %8 = vector.broadcast %cst : f32 to vector<8x8x8xf32>
    %9 = arith.subf %7, %8 : vector<8x8x8xf32>
    %cst_6 = arith.constant 1.000000e+09 : f32
    %10 = vector.broadcast %cst_6 : f32 to vector<8x8x8xf32>
    %11 = arith.mulf %9, %10 : vector<8x8x8xf32>
    %c0_7 = arith.constant 0 : index
    %c0_8 = arith.constant 0 : index
    %c0_9 = arith.constant 0 : index
    %12 = vector.load %arg15[%c0_7, %c0_8, %c0_9] : memref<8x8x32xf32, #tpu.memory_space<vmem>>, vector<8x8x32xf32>
    %13 = vector.shape_cast %12 : vector<8x8x32xf32> to vector<64x32xf32>
    %14 = arith.truncf %13 : vector<64x32xf32> to vector<64x32xbf16>
    %15 = arith.index_cast %arg1 : i32 to index
    %c0_10 = arith.constant 0 : index
    %c0_11 = arith.constant 0 : index
    %16 = vector.load %arg5[%15, %c0_10, %c0_11] : memref<2x32x96xbf16, #tpu.memory_space<vmem>>, vector<1x32x96xbf16>
    %17 = vector.shape_cast %16 : vector<1x32x96xbf16> to vector<32x96xbf16>
    %cst_12 = arith.constant dense<0.000000e+00> : vector<64x96xf32>
    %18 = tpu.matmul %14, %17, %cst_12 {dimension_numbers = #tpu.dot_dimension_numbers<[1], [0], [0], [1], [0, 0, 1, 1], [], []>} : vector<64x32xbf16>, vector<32x96xbf16>, vector<64x96xf32> -> vector<64x96xf32>
    %19 = arith.index_cast %arg1 : i32 to index
    %c0_13 = arith.constant 0 : index
    %c0_14 = arith.constant 0 : index
    %20 = vector.load %arg6[%19, %c0_13, %c0_14] : memref<2x1x96xf32, #tpu.memory_space<vmem>>, vector<1x1x96xf32>
    %21 = vector.shape_cast %20 : vector<1x1x96xf32> to vector<1x96xf32>
    %22 = vector.broadcast %21 : vector<1x96xf32> to vector<64x96xf32>
    %23 = arith.addf %18, %22 : vector<64x96xf32>
    %24 = arith.truncf %23 : vector<64x96xf32> to vector<64x96xbf16>
    %25 = vector.shape_cast %24 : vector<64x96xbf16> to vector<8x8x96xbf16>
    %26 = vector.extract_strided_slice %25 {offsets = [0, 0, 0], sizes = [8, 8, 8], strides = [1, 1, 1]} : vector<8x8x96xbf16> to vector<8x8x8xbf16>
    %27 = vector.extract_strided_slice %25 {offsets = [0, 0, 32], sizes = [8, 8, 8], strides = [1, 1, 1]} : vector<8x8x96xbf16> to vector<8x8x8xbf16>
    %28 = vector.extract_strided_slice %25 {offsets = [0, 0, 64], sizes = [8, 8, 8], strides = [1, 1, 1]} : vector<8x8x96xbf16> to vector<8x8x8xbf16>
    "tpu.trace_start"() <{level = 10 : i32, message = "bqd,bkd->bqk"}> : () -> ()
    %cst_15 = arith.constant dense<0.000000e+00> : vector<8x8x8xf32>
    %29 = tpu.matmul %26, %27, %cst_15 {dimension_numbers = #tpu.dot_dimension_numbers<[2], [2], [1], [1], [0, 0, 0, 1, 1, 1], [0], [0]>} : vector<8x8x8xbf16>, vector<8x8x8xbf16>, vector<8x8x8xf32> -> vector<8x8x8xf32>
    "tpu.trace_stop"() : () -> ()
    %cst_16 = arith.constant 0.353553385 : f32
    %30 = vector.broadcast %cst_16 : f32 to vector<8x8x8xf32>
    %31 = arith.mulf %29, %30 : vector<8x8x8xf32>
    %32 = arith.addf %31, %11 : vector<8x8x8xf32>
    %cst_17 = arith.constant dense<0xFF800000> : vector<8x8xf32>
    %33 = vector.multi_reduction <maximumf>, %32, %cst_17 [2] : vector<8x8x8xf32> to vector<8x8xf32>
    %34 = vector.shape_cast %33 : vector<8x8xf32> to vector<8x8x1xf32>
    %35 = vector.broadcast %34 : vector<8x8x1xf32> to vector<8x8x8xf32>
    %36 = arith.subf %32, %35 : vector<8x8x8xf32>
    %37 = math.exp %36 : vector<8x8x8xf32>
    %cst_18 = arith.constant dense<0.000000e+00> : vector<8x8xf32>
    %38 = vector.multi_reduction <add>, %37, %cst_18 [2] : vector<8x8x8xf32> to vector<8x8xf32>
    %39 = vector.shape_cast %38 : vector<8x8xf32> to vector<8x8x1xf32>
    %40 = tpu.reciprocal %39 {approx = true} : vector<8x8x1xf32> -> vector<8x8x1xf32>
    %41 = vector.broadcast %40 : vector<8x8x1xf32> to vector<8x8x8xf32>
    %42 = arith.mulf %37, %41 : vector<8x8x8xf32>
    %43 = arith.truncf %42 : vector<8x8x8xf32> to vector<8x8x8xbf16>
    "tpu.trace_start"() <{level = 10 : i32, message = "bqk,bkd->bqd"}> : () -> ()
    %cst_19 = arith.constant dense<0.000000e+00> : vector<8x8x8xf32>
    %44 = tpu.matmul %43, %28, %cst_19 {dimension_numbers = #tpu.dot_dimension_numbers<[2], [1], [1], [2], [0, 0, 0, 1, 1, 2], [0], [0]>} : vector<8x8x8xbf16>, vector<8x8x8xbf16>, vector<8x8x8xf32> -> vector<8x8x8xf32>
    "tpu.trace_stop"() : () -> ()
    %45 = arith.truncf %44 : vector<8x8x8xf32> to vector<8x8x8xbf16>
    %c0_20 = arith.constant 0 : index
    %c0_21 = arith.constant 0 : index
    %c0_22 = arith.constant 0 : index
    %46 = vector.load %arg16[%c0_20, %c0_21, %c0_22] : memref<8x8x32xbf16, #tpu.memory_space<vmem>>, vector<8x8x8xbf16>
    tpu.vector_store %arg16[%c0_20, %c0_21, %c0_22], %45 {strides = array<i32>} : memref<8x8x32xbf16, #tpu.memory_space<vmem>>, vector<8x8x8xbf16>,
    %47 = vector.extract_strided_slice %25 {offsets = [0, 0, 8], sizes = [8, 8, 8], strides = [1, 1, 1]} : vector<8x8x96xbf16> to vector<8x8x8xbf16>
    %48 = vector.extract_strided_slice %25 {offsets = [0, 0, 40], sizes = [8, 8, 8], strides = [1, 1, 1]} : vector<8x8x96xbf16> to vector<8x8x8xbf16>
    %49 = vector.extract_strided_slice %25 {offsets = [0, 0, 72], sizes = [8, 8, 8], strides = [1, 1, 1]} : vector<8x8x96xbf16> to vector<8x8x8xbf16>
    "tpu.trace_start"() <{level = 10 : i32, message = "bqd,bkd->bqk"}> : () -> ()
    %cst_23 = arith.constant dense<0.000000e+00> : vector<8x8x8xf32>
    %50 = tpu.matmul %47, %48, %cst_23 {dimension_numbers = #tpu.dot_dimension_numbers<[2], [2], [1], [1], [0, 0, 0, 1, 1, 1], [0], [0]>} : vector<8x8x8xbf16>, vector<8x8x8xbf16>, vector<8x8x8xf32> -> vector<8x8x8xf32>
    "tpu.trace_stop"() : () -> ()
    %cst_24 = arith.constant 0.353553385 : f32
    %51 = vector.broadcast %cst_24 : f32 to vector<8x8x8xf32>
    %52 = arith.mulf %50, %51 : vector<8x8x8xf32>
    %53 = arith.addf %52, %11 : vector<8x8x8xf32>
    %cst_25 = arith.constant dense<0xFF800000> : vector<8x8xf32>
    %54 = vector.multi_reduction <maximumf>, %53, %cst_25 [2] : vector<8x8x8xf32> to vector<8x8xf32>
    %55 = vector.shape_cast %54 : vector<8x8xf32> to vector<8x8x1xf32>
    %56 = vector.broadcast %55 : vector<8x8x1xf32> to vector<8x8x8xf32>
    %57 = arith.subf %53, %56 : vector<8x8x8xf32>
    %58 = math.exp %57 : vector<8x8x8xf32>
    %cst_26 = arith.constant dense<0.000000e+00> : vector<8x8xf32>
    %59 = vector.multi_reduction <add>, %58, %cst_26 [2] : vector<8x8x8xf32> to vector<8x8xf32>
    %60 = vector.shape_cast %59 : vector<8x8xf32> to vector<8x8x1xf32>
    %61 = tpu.reciprocal %60 {approx = true} : vector<8x8x1xf32> -> vector<8x8x1xf32>
    %62 = vector.broadcast %61 : vector<8x8x1xf32> to vector<8x8x8xf32>
    %63 = arith.mulf %58, %62 : vector<8x8x8xf32>
    %64 = arith.truncf %63 : vector<8x8x8xf32> to vector<8x8x8xbf16>
    "tpu.trace_start"() <{level = 10 : i32, message = "bqk,bkd->bqd"}> : () -> ()
    %cst_27 = arith.constant dense<0.000000e+00> : vector<8x8x8xf32>
    %65 = tpu.matmul %64, %49, %cst_27 {dimension_numbers = #tpu.dot_dimension_numbers<[2], [1], [1], [2], [0, 0, 0, 1, 1, 2], [0], [0]>} : vector<8x8x8xbf16>, vector<8x8x8xbf16>, vector<8x8x8xf32> -> vector<8x8x8xf32>
    "tpu.trace_stop"() : () -> ()
    %66 = arith.truncf %65 : vector<8x8x8xf32> to vector<8x8x8xbf16>
    %c0_28 = arith.constant 0 : index
    %c0_29 = arith.constant 0 : index
    %c8 = arith.constant 8 : index
    %67 = vector.load %arg16[%c0_28, %c0_29, %c8] : memref<8x8x32xbf16, #tpu.memory_space<vmem>>, vector<8x8x8xbf16>
    tpu.vector_store %arg16[%c0_28, %c0_29, %c8], %66 {strides = array<i32>} : memref<8x8x32xbf16, #tpu.memory_space<vmem>>, vector<8x8x8xbf16>,
    %68 = vector.extract_strided_slice %25 {offsets = [0, 0, 16], sizes = [8, 8, 8], strides = [1, 1, 1]} : vector<8x8x96xbf16> to vector<8x8x8xbf16>
    %69 = vector.extract_strided_slice %25 {offsets = [0, 0, 48], sizes = [8, 8, 8], strides = [1, 1, 1]} : vector<8x8x96xbf16> to vector<8x8x8xbf16>
    %70 = vector.extract_strided_slice %25 {offsets = [0, 0, 80], sizes = [8, 8, 8], strides = [1, 1, 1]} : vector<8x8x96xbf16> to vector<8x8x8xbf16>
    "tpu.trace_start"() <{level = 10 : i32, message = "bqd,bkd->bqk"}> : () -> ()
    %cst_30 = arith.constant dense<0.000000e+00> : vector<8x8x8xf32>
    %71 = tpu.matmul %68, %69, %cst_30 {dimension_numbers = #tpu.dot_dimension_numbers<[2], [2], [1], [1], [0, 0, 0, 1, 1, 1], [0], [0]>} : vector<8x8x8xbf16>, vector<8x8x8xbf16>, vector<8x8x8xf32> -> vector<8x8x8xf32>
    "tpu.trace_stop"() : () -> ()
    %cst_31 = arith.constant 0.353553385 : f32
    %72 = vector.broadcast %cst_31 : f32 to vector<8x8x8xf32>
    %73 = arith.mulf %71, %72 : vector<8x8x8xf32>
    %74 = arith.addf %73, %11 : vector<8x8x8xf32>
    %cst_32 = arith.constant dense<0xFF800000> : vector<8x8xf32>
    %75 = vector.multi_reduction <maximumf>, %74, %cst_32 [2] : vector<8x8x8xf32> to vector<8x8xf32>
    %76 = vector.shape_cast %75 : vector<8x8xf32> to vector<8x8x1xf32>
    %77 = vector.broadcast %76 : vector<8x8x1xf32> to vector<8x8x8xf32>
    %78 = arith.subf %74, %77 : vector<8x8x8xf32>
    %79 = math.exp %78 : vector<8x8x8xf32>
    %cst_33 = arith.constant dense<0.000000e+00> : vector<8x8xf32>
    %80 = vector.multi_reduction <add>, %79, %cst_33 [2] : vector<8x8x8xf32> to vector<8x8xf32>
    %81 = vector.shape_cast %80 : vector<8x8xf32> to vector<8x8x1xf32>
    %82 = tpu.reciprocal %81 {approx = true} : vector<8x8x1xf32> -> vector<8x8x1xf32>
    %83 = vector.broadcast %82 : vector<8x8x1xf32> to vector<8x8x8xf32>
    %84 = arith.mulf %79, %83 : vector<8x8x8xf32>
    %85 = arith.truncf %84 : vector<8x8x8xf32> to vector<8x8x8xbf16>
    "tpu.trace_start"() <{level = 10 : i32, message = "bqk,bkd->bqd"}> : () -> ()
    %cst_34 = arith.constant dense<0.000000e+00> : vector<8x8x8xf32>
    %86 = tpu.matmul %85, %70, %cst_34 {dimension_numbers = #tpu.dot_dimension_numbers<[2], [1], [1], [2], [0, 0, 0, 1, 1, 2], [0], [0]>} : vector<8x8x8xbf16>, vector<8x8x8xbf16>, vector<8x8x8xf32> -> vector<8x8x8xf32>
    "tpu.trace_stop"() : () -> ()
    %87 = arith.truncf %86 : vector<8x8x8xf32> to vector<8x8x8xbf16>
    %c0_35 = arith.constant 0 : index
    %c0_36 = arith.constant 0 : index
    %c16 = arith.constant 16 : index
    %88 = vector.load %arg16[%c0_35, %c0_36, %c16] : memref<8x8x32xbf16, #tpu.memory_space<vmem>>, vector<8x8x8xbf16>
    tpu.vector_store %arg16[%c0_35, %c0_36, %c16], %87 {strides = array<i32>} : memref<8x8x32xbf16, #tpu.memory_space<vmem>>, vector<8x8x8xbf16>,
    %89 = vector.extract_strided_slice %25 {offsets = [0, 0, 24], sizes = [8, 8, 8], strides = [1, 1, 1]} : vector<8x8x96xbf16> to vector<8x8x8xbf16>
    %90 = vector.extract_strided_slice %25 {offsets = [0, 0, 56], sizes = [8, 8, 8], strides = [1, 1, 1]} : vector<8x8x96xbf16> to vector<8x8x8xbf16>
    %91 = vector.extract_strided_slice %25 {offsets = [0, 0, 88], sizes = [8, 8, 8], strides = [1, 1, 1]} : vector<8x8x96xbf16> to vector<8x8x8xbf16>
    "tpu.trace_start"() <{level = 10 : i32, message = "bqd,bkd->bqk"}> : () -> ()
    %cst_37 = arith.constant dense<0.000000e+00> : vector<8x8x8xf32>
    %92 = tpu.matmul %89, %90, %cst_37 {dimension_numbers = #tpu.dot_dimension_numbers<[2], [2], [1], [1], [0, 0, 0, 1, 1, 1], [0], [0]>} : vector<8x8x8xbf16>, vector<8x8x8xbf16>, vector<8x8x8xf32> -> vector<8x8x8xf32>
    "tpu.trace_stop"() : () -> ()
    %cst_38 = arith.constant 0.353553385 : f32
    %93 = vector.broadcast %cst_38 : f32 to vector<8x8x8xf32>
    %94 = arith.mulf %92, %93 : vector<8x8x8xf32>
    %95 = arith.addf %94, %11 : vector<8x8x8xf32>
    %cst_39 = arith.constant dense<0xFF800000> : vector<8x8xf32>
    %96 = vector.multi_reduction <maximumf>, %95, %cst_39 [2] : vector<8x8x8xf32> to vector<8x8xf32>
    %97 = vector.shape_cast %96 : vector<8x8xf32> to vector<8x8x1xf32>
    %98 = vector.broadcast %97 : vector<8x8x1xf32> to vector<8x8x8xf32>
    %99 = arith.subf %95, %98 : vector<8x8x8xf32>
    %100 = math.exp %99 : vector<8x8x8xf32>
    %cst_40 = arith.constant dense<0.000000e+00> : vector<8x8xf32>
    %101 = vector.multi_reduction <add>, %100, %cst_40 [2] : vector<8x8x8xf32> to vector<8x8xf32>
    %102 = vector.shape_cast %101 : vector<8x8xf32> to vector<8x8x1xf32>
    %103 = tpu.reciprocal %102 {approx = true} : vector<8x8x1xf32> -> vector<8x8x1xf32>
    %104 = vector.broadcast %103 : vector<8x8x1xf32> to vector<8x8x8xf32>
    %105 = arith.mulf %100, %104 : vector<8x8x8xf32>
    %106 = arith.truncf %105 : vector<8x8x8xf32> to vector<8x8x8xbf16>
    "tpu.trace_start"() <{level = 10 : i32, message = "bqk,bkd->bqd"}> : () -> ()
    %cst_41 = arith.constant dense<0.000000e+00> : vector<8x8x8xf32>
    %107 = tpu.matmul %106, %91, %cst_41 {dimension_numbers = #tpu.dot_dimension_numbers<[2], [1], [1], [2], [0, 0, 0, 1, 1, 2], [0], [0]>} : vector<8x8x8xbf16>, vector<8x8x8xbf16>, vector<8x8x8xf32> -> vector<8x8x8xf32>
    "tpu.trace_stop"() : () -> ()
    %108 = arith.truncf %107 : vector<8x8x8xf32> to vector<8x8x8xbf16>
    %c0_42 = arith.constant 0 : index
    %c0_43 = arith.constant 0 : index
    %c24 = arith.constant 24 : index
    %109 = vector.load %arg16[%c0_42, %c0_43, %c24] : memref<8x8x32xbf16, #tpu.memory_space<vmem>>, vector<8x8x8xbf16>
    tpu.vector_store %arg16[%c0_42, %c0_43, %c24], %108 {strides = array<i32>} : memref<8x8x32xbf16, #tpu.memory_space<vmem>>, vector<8x8x8xbf16>,
    %c0_44 = arith.constant 0 : index
    %c0_45 = arith.constant 0 : index
    %c0_46 = arith.constant 0 : index
    %110 = vector.load %arg16[%c0_44, %c0_45, %c0_46] : memref<8x8x32xbf16, #tpu.memory_space<vmem>>, vector<8x8x32xbf16>
    %111 = vector.shape_cast %110 : vector<8x8x32xbf16> to vector<64x32xbf16>
    %112 = arith.index_cast %arg1 : i32 to index
    %c0_47 = arith.constant 0 : index
    %c0_48 = arith.constant 0 : index
    %113 = vector.load %arg7[%112, %c0_47, %c0_48] : memref<2x32x32xbf16, #tpu.memory_space<vmem>>, vector<1x32x32xbf16>
    %114 = vector.shape_cast %113 : vector<1x32x32xbf16> to vector<32x32xbf16>
    %cst_49 = arith.constant dense<0.000000e+00> : vector<64x32xf32>
    %115 = tpu.matmul %111, %114, %cst_49 {dimension_numbers = #tpu.dot_dimension_numbers<[1], [0], [0], [1], [0, 0, 1, 1], [], []>} : vector<64x32xbf16>, vector<32x32xbf16>, vector<64x32xf32> -> vector<64x32xf32>
    %116 = arith.index_cast %arg1 : i32 to index
    %c0_50 = arith.constant 0 : index
    %c0_51 = arith.constant 0 : index
    %117 = vector.load %arg8[%116, %c0_50, %c0_51] : memref<2x1x32xf32, #tpu.memory_space<vmem>>, vector<1x1x32xf32>
    %118 = vector.shape_cast %117 : vector<1x1x32xf32> to vector<1x32xf32>
    %119 = vector.broadcast %118 : vector<1x32xf32> to vector<64x32xf32>
    %120 = arith.addf %115, %119 : vector<64x32xf32>
    %121 = arith.index_cast %arg1 : i32 to index
    %c0_52 = arith.constant 0 : index
    %c0_53 = arith.constant 0 : index
    %122 = vector.load %arg13[%121, %c0_52, %c0_53] : memref<2x4x32xf32, #tpu.memory_space<vmem>>, vector<1x4x32xf32>
    %123 = vector.shape_cast %122 : vector<1x4x32xf32> to vector<4x32xf32>
    %124 = arith.addf %13, %120 : vector<64x32xf32>
    %125 = vector.extract_strided_slice %123 {offsets = [0, 0], sizes = [1, 32], strides = [1, 1]} : vector<4x32xf32> to vector<1x32xf32>
    %126 = vector.extract_strided_slice %123 {offsets = [1, 0], sizes = [1, 32], strides = [1, 1]} : vector<4x32xf32> to vector<1x32xf32>
    %cst_54 = arith.constant dense<0.000000e+00> : vector<64xf32>
    %127 = vector.multi_reduction <add>, %124, %cst_54 [1] : vector<64x32xf32> to vector<64xf32>
    %128 = vector.shape_cast %127 : vector<64xf32> to vector<64x1xf32>
    %cst_55 = arith.constant 3.200000e+01 : f32
    %129 = vector.broadcast %cst_55 : f32 to vector<64x1xf32>
    %130 = arith.divf %128, %129 : vector<64x1xf32>
    %131 = vector.broadcast %130 : vector<64x1xf32> to vector<64x32xf32>
    %132 = arith.subf %124, %131 : vector<64x32xf32>
    %133 = arith.mulf %132, %132 : vector<64x32xf32>
    %cst_56 = arith.constant dense<0.000000e+00> : vector<64xf32>
    %134 = vector.multi_reduction <add>, %133, %cst_56 [1] : vector<64x32xf32> to vector<64xf32>
    %135 = vector.shape_cast %134 : vector<64xf32> to vector<64x1xf32>
    %cst_57 = arith.constant 3.200000e+01 : f32
    %136 = vector.broadcast %cst_57 : f32 to vector<64x1xf32>
    %137 = arith.divf %135, %136 : vector<64x1xf32>
    %138 = vector.broadcast %130 : vector<64x1xf32> to vector<64x32xf32>
    %139 = arith.subf %124, %138 : vector<64x32xf32>
    %cst_58 = arith.constant 9.99999997E-7 : f32
    %140 = vector.broadcast %cst_58 : f32 to vector<64x1xf32>
    %141 = arith.addf %137, %140 : vector<64x1xf32>
    %142 = math.rsqrt %141 : vector<64x1xf32>
    %143 = vector.broadcast %142 : vector<64x1xf32> to vector<64x32xf32>
    %144 = arith.mulf %139, %143 : vector<64x32xf32>
    %145 = vector.broadcast %125 : vector<1x32xf32> to vector<64x32xf32>
    %146 = arith.mulf %144, %145 : vector<64x32xf32>
    %147 = vector.broadcast %126 : vector<1x32xf32> to vector<64x32xf32>
    %148 = arith.addf %146, %147 : vector<64x32xf32>
    %149 = arith.truncf %148 : vector<64x32xf32> to vector<64x32xbf16>
    %150 = arith.index_cast %arg1 : i32 to index
    %c0_59 = arith.constant 0 : index
    %c0_60 = arith.constant 0 : index
    %151 = vector.load %arg9[%150, %c0_59, %c0_60] : memref<2x32x64xbf16, #tpu.memory_space<vmem>>, vector<1x32x64xbf16>
    %152 = vector.shape_cast %151 : vector<1x32x64xbf16> to vector<32x64xbf16>
    %cst_61 = arith.constant dense<0.000000e+00> : vector<64x64xf32>
    %153 = tpu.matmul %149, %152, %cst_61 {dimension_numbers = #tpu.dot_dimension_numbers<[1], [0], [0], [1], [0, 0, 1, 1], [], []>} : vector<64x32xbf16>, vector<32x64xbf16>, vector<64x64xf32> -> vector<64x64xf32>
    %154 = arith.index_cast %arg1 : i32 to index
    %c0_62 = arith.constant 0 : index
    %c0_63 = arith.constant 0 : index
    %155 = vector.load %arg10[%154, %c0_62, %c0_63] : memref<2x1x64xf32, #tpu.memory_space<vmem>>, vector<1x1x64xf32>
    %156 = vector.shape_cast %155 : vector<1x1x64xf32> to vector<1x64xf32>
    %157 = vector.broadcast %156 : vector<1x64xf32> to vector<64x64xf32>
    %158 = arith.addf %153, %157 : vector<64x64xf32>
    %cst_64 = arith.constant 0.000000e+00 : f32
    %159 = vector.broadcast %cst_64 : f32 to vector<64x64xf32>
    %160 = arith.maximumf %158, %159 : vector<64x64xf32>
    %161 = arith.truncf %160 : vector<64x64xf32> to vector<64x64xbf16>
    %162 = arith.index_cast %arg1 : i32 to index
    %c0_65 = arith.constant 0 : index
    %c0_66 = arith.constant 0 : index
    %163 = vector.load %arg11[%162, %c0_65, %c0_66] : memref<2x64x32xbf16, #tpu.memory_space<vmem>>, vector<1x64x32xbf16>
    %164 = vector.shape_cast %163 : vector<1x64x32xbf16> to vector<64x32xbf16>
    %cst_67 = arith.constant dense<0.000000e+00> : vector<64x32xf32>
    %165 = tpu.matmul %161, %164, %cst_67 {dimension_numbers = #tpu.dot_dimension_numbers<[1], [0], [0], [1], [0, 0, 1, 1], [], []>} : vector<64x64xbf16>, vector<64x32xbf16>, vector<64x32xf32> -> vector<64x32xf32>
    %166 = arith.index_cast %arg1 : i32 to index
    %c0_68 = arith.constant 0 : index
    %c0_69 = arith.constant 0 : index
    %167 = vector.load %arg12[%166, %c0_68, %c0_69] : memref<2x1x32xf32, #tpu.memory_space<vmem>>, vector<1x1x32xf32>
    %168 = vector.shape_cast %167 : vector<1x1x32xf32> to vector<1x32xf32>
    %169 = vector.broadcast %168 : vector<1x32xf32> to vector<64x32xf32>
    %170 = arith.addf %165, %169 : vector<64x32xf32>
    %171 = arith.addf %148, %170 : vector<64x32xf32>
    %172 = vector.extract_strided_slice %123 {offsets = [2, 0], sizes = [1, 32], strides = [1, 1]} : vector<4x32xf32> to vector<1x32xf32>
    %173 = vector.extract_strided_slice %123 {offsets = [3, 0], sizes = [1, 32], strides = [1, 1]} : vector<4x32xf32> to vector<1x32xf32>
    %cst_70 = arith.constant dense<0.000000e+00> : vector<64xf32>
    %174 = vector.multi_reduction <add>, %171, %cst_70 [1] : vector<64x32xf32> to vector<64xf32>
    %175 = vector.shape_cast %174 : vector<64xf32> to vector<64x1xf32>
    %cst_71 = arith.constant 3.200000e+01 : f32
    %176 = vector.broadcast %cst_71 : f32 to vector<64x1xf32>
    %177 = arith.divf %175, %176 : vector<64x1xf32>
    %178 = vector.broadcast %177 : vector<64x1xf32> to vector<64x32xf32>
    %179 = arith.subf %171, %178 : vector<64x32xf32>
    %180 = arith.mulf %179, %179 : vector<64x32xf32>
    %cst_72 = arith.constant dense<0.000000e+00> : vector<64xf32>
    %181 = vector.multi_reduction <add>, %180, %cst_72 [1] : vector<64x32xf32> to vector<64xf32>
    %182 = vector.shape_cast %181 : vector<64xf32> to vector<64x1xf32>
    %cst_73 = arith.constant 3.200000e+01 : f32
    %183 = vector.broadcast %cst_73 : f32 to vector<64x1xf32>
    %184 = arith.divf %182, %183 : vector<64x1xf32>
    %185 = vector.broadcast %177 : vector<64x1xf32> to vector<64x32xf32>
    %186 = arith.subf %171, %185 : vector<64x32xf32>
    %cst_74 = arith.constant 9.99999997E-7 : f32
    %187 = vector.broadcast %cst_74 : f32 to vector<64x1xf32>
    %188 = arith.addf %184, %187 : vector<64x1xf32>
    %189 = math.rsqrt %188 : vector<64x1xf32>
    %190 = vector.broadcast %189 : vector<64x1xf32> to vector<64x32xf32>
    %191 = arith.mulf %186, %190 : vector<64x32xf32>
    %192 = vector.broadcast %172 : vector<1x32xf32> to vector<64x32xf32>
    %193 = arith.mulf %191, %192 : vector<64x32xf32>
    %194 = vector.broadcast %173 : vector<1x32xf32> to vector<64x32xf32>
    %195 = arith.addf %193, %194 : vector<64x32xf32>
    %196 = vector.shape_cast %195 : vector<64x32xf32> to vector<8x8x32xf32>
    %c0_75 = arith.constant 0 : index
    %c0_76 = arith.constant 0 : index
    %c0_77 = arith.constant 0 : index
    %197 = vector.load %arg15[%c0_75, %c0_76, %c0_77] : memref<8x8x32xf32, #tpu.memory_space<vmem>>, vector<8x8x32xf32>
    tpu.vector_store %arg15[%c0_75, %c0_76, %c0_77], %196 {strides = array<i32>} : memref<8x8x32xf32, #tpu.memory_space<vmem>>, vector<8x8x32xf32>,
    %c1_i32 = arith.constant 1 : i32
    %198 = arith.cmpi eq, %arg1, %c1_i32 : i32
    %199 = arith.extui %198 : i1 to i32
    %c0_i32_78 = arith.constant 0 : i32
    %200 = arith.cmpi ne, %199, %c0_i32_78 : i32
    scf.if %200 {
      %c0_79 = arith.constant 0 : index
      %c0_80 = arith.constant 0 : index
      %c0_81 = arith.constant 0 : index
      %201 = vector.load %arg15[%c0_79, %c0_80, %c0_81] : memref<8x8x32xf32, #tpu.memory_space<vmem>>, vector<8x8x32xf32>
      %202 = vector.broadcast %3 : vector<8x8x1xf32> to vector<8x8x32xf32>
      %203 = arith.mulf %202, %201 : vector<8x8x32xf32>
      %cst_82 = arith.constant dense<0.000000e+00> : vector<8x32xf32>
      %204 = vector.multi_reduction <add>, %203, %cst_82 [1] : vector<8x8x32xf32> to vector<8x32xf32>
      %205 = vector.shape_cast %204 : vector<8x32xf32> to vector<8x1x32xf32>
      %cst_83 = arith.constant 1.250000e-01 : f32
      %206 = vector.broadcast %cst_83 : f32 to vector<8x1x32xf32>
      %207 = arith.mulf %205, %206 : vector<8x1x32xf32>
      %208 = arith.truncf %207 : vector<8x1x32xf32> to vector<8x1x32xbf16>
      %c0_84 = arith.constant 0 : index
      %c0_85 = arith.constant 0 : index
      %c0_86 = arith.constant 0 : index
      %209 = vector.load %arg14[%c0_84, %c0_85, %c0_86] : memref<8x1x32xbf16, #tpu.memory_space<vmem>>, vector<8x1x32xbf16>
      tpu.vector_store %arg14[%c0_84, %c0_85, %c0_86], %208 {strides = array<i32>} : memref<8x1x32xbf16, #tpu.memory_space<vmem>>, vector<8x1x32xbf16>,
    } else {
    }
    return
  }
  func.func @transform_0(%arg0: i32, %arg1: i32) -> (i32, i32, i32, i32) {
    %c0_i32 = arith.constant 0 : i32
    %c0_i32_0 = arith.constant 0 : i32
    %c0_i32_1 = arith.constant 0 : i32
    %c0_i32_2 = arith.constant 0 : i32
    return %arg0, %c0_i32, %c0_i32_0, %c0_i32_1 : i32, i32, i32, i32
  }
  func.func @transform_1(%arg0: i32, %arg1: i32) -> (i32, i32, i32) {
    %c0_i32 = arith.constant 0 : i32
    %c0_i32_0 = arith.constant 0 : i32
    %c0_i32_1 = arith.constant 0 : i32
    return %arg0, %c0_i32, %c0_i32_0 : i32, i32, i32
  }
  func.func @transform_2(%arg0: i32, %arg1: i32) -> (i32, i32, i32) {
    %c0_i32 = arith.constant 0 : i32
    %c0_i32_0 = arith.constant 0 : i32
    %c0_i32_1 = arith.constant 0 : i32
    return %arg0, %c0_i32, %c0_i32_0 : i32, i32, i32
  }
  func.func @transform_3(%arg0: i32, %arg1: i32) -> (i32, i32, i32) {
    %c0_i32 = arith.constant 0 : i32
    %c0_i32_0 = arith.constant 0 : i32
    %c0_i32_1 = arith.constant 0 : i32
    %c0_i32_2 = arith.constant 0 : i32
    return %c0_i32, %c0_i32_0, %c0_i32_1 : i32, i32, i32
  }
  func.func @transform_4(%arg0: i32, %arg1: i32) -> (i32, i32, i32) {
    %c0_i32 = arith.constant 0 : i32
    %c0_i32_0 = arith.constant 0 : i32
    %c0_i32_1 = arith.constant 0 : i32
    %c0_i32_2 = arith.constant 0 : i32
    return %c0_i32, %c0_i32_0, %c0_i32_1 : i32, i32, i32
  }
  func.func @transform_5(%arg0: i32, %arg1: i32) -> (i32, i32, i32) {
    %c0_i32 = arith.constant 0 : i32
    %c0_i32_0 = arith.constant 0 : i32
    %c0_i32_1 = arith.constant 0 : i32
    %c0_i32_2 = arith.constant 0 : i32
    return %c0_i32, %c0_i32_0, %c0_i32_1 : i32, i32, i32
  }
  func.func @transform_6(%arg0: i32, %arg1: i32) -> (i32, i32, i32) {
    %c0_i32 = arith.constant 0 : i32
    %c0_i32_0 = arith.constant 0 : i32
    %c0_i32_1 = arith.constant 0 : i32
    %c0_i32_2 = arith.constant 0 : i32
    return %c0_i32, %c0_i32_0, %c0_i32_1 : i32, i32, i32
  }
  func.func @transform_7(%arg0: i32, %arg1: i32) -> (i32, i32, i32) {
    %c0_i32 = arith.constant 0 : i32
    %c0_i32_0 = arith.constant 0 : i32
    %c0_i32_1 = arith.constant 0 : i32
    %c0_i32_2 = arith.constant 0 : i32
    return %c0_i32, %c0_i32_0, %c0_i32_1 : i32, i32, i32
  }
  func.func @transform_8(%arg0: i32, %arg1: i32) -> (i32, i32, i32) {
    %c0_i32 = arith.constant 0 : i32
    %c0_i32_0 = arith.constant 0 : i32
    %c0_i32_1 = arith.constant 0 : i32
    %c0_i32_2 = arith.constant 0 : i32
    return %c0_i32, %c0_i32_0, %c0_i32_1 : i32, i32, i32
  }
  func.func @transform_9(%arg0: i32, %arg1: i32) -> (i32, i32, i32) {
    %c0_i32 = arith.constant 0 : i32
    %c0_i32_0 = arith.constant 0 : i32
    %c0_i32_1 = arith.constant 0 : i32
    %c0_i32_2 = arith.constant 0 : i32
    return %c0_i32, %c0_i32_0, %c0_i32_1 : i32, i32, i32
  }
  func.func @transform_10(%arg0: i32, %arg1: i32) -> (i32, i32, i32) {
    %c0_i32 = arith.constant 0 : i32
    %c0_i32_0 = arith.constant 0 : i32
    %c0_i32_1 = arith.constant 0 : i32
    %c0_i32_2 = arith.constant 0 : i32
    return %c0_i32, %c0_i32_0, %c0_i32_1 : i32, i32, i32
  }
  func.func @transform_11(%arg0: i32, %arg1: i32) -> (i32, i32, i32) {
    %c0_i32 = arith.constant 0 : i32
    %c0_i32_0 = arith.constant 0 : i32
    %c0_i32_1 = arith.constant 0 : i32
    %c0_i32_2 = arith.constant 0 : i32
    return %c0_i32, %c0_i32_0, %c0_i32_1 : i32, i32, i32
  }
  func.func @transform_12(%arg0: i32, %arg1: i32) -> (i32, i32, i32) {
    %c0_i32 = arith.constant 0 : i32
    %c0_i32_0 = arith.constant 0 : i32
    %c0_i32_1 = arith.constant 0 : i32
    return %arg0, %c0_i32, %c0_i32_0 : i32, i32, i32
  }
}

module attributes {stable_mosaic.version = 11 : i64} {
  func.func @_fused_encoder_kernel(%arg0: i32, %arg1: i32, %arg2: memref<2x4x32xbf16, #tpu.memory_space<vmem>>, %arg3: memref<2x4x1xf32, #tpu.memory_space<vmem>>, %arg4: memref<2x1x4xf32, #tpu.memory_space<vmem>>, %arg5: memref<2x32x96xbf16, #tpu.memory_space<vmem>>, %arg6: memref<2x1x96xf32, #tpu.memory_space<vmem>>, %arg7: memref<2x32x32xbf16, #tpu.memory_space<vmem>>, %arg8: memref<2x1x32xf32, #tpu.memory_space<vmem>>, %arg9: memref<2x32x64xbf16, #tpu.memory_space<vmem>>, %arg10: memref<2x1x64xf32, #tpu.memory_space<vmem>>, %arg11: memref<2x64x32xbf16, #tpu.memory_space<vmem>>, %arg12: memref<2x1x32xf32, #tpu.memory_space<vmem>>, %arg13: memref<2x4x32xf32, #tpu.memory_space<vmem>>, %arg14: memref<2x1x32xf32, #tpu.memory_space<vmem>>, %arg15: memref<2x4x32xf32, #tpu.memory_space<vmem>>, %arg16: memref<2x4x32xbf16, #tpu.memory_space<vmem>>) attributes {dimension_semantics = [#tpu.dimension_semantics<parallel>, #tpu.dimension_semantics<arbitrary>], iteration_bounds = array<i64: 1, 2>, scalar_prefetch = 0 : i64, scratch_operands = 2 : i64, tpu.core_type = #tpu.core_type<tc>, window_params = [{transform_indices = @transform_0, window_bounds = array<i64: 2, 4, 32>}, {transform_indices = @transform_1, window_bounds = array<i64: 2, 4, 1>}, {transform_indices = @transform_2, window_bounds = array<i64: 2, 1, 4>}, {pipeline_mode = #tpu.pipeline_mode<synchronous>, transform_indices = @transform_3, window_bounds = array<i64: 2, 32, 96>}, {pipeline_mode = #tpu.pipeline_mode<synchronous>, transform_indices = @transform_4, window_bounds = array<i64: 2, 1, 96>}, {pipeline_mode = #tpu.pipeline_mode<synchronous>, transform_indices = @transform_5, window_bounds = array<i64: 2, 32, 32>}, {pipeline_mode = #tpu.pipeline_mode<synchronous>, transform_indices = @transform_6, window_bounds = array<i64: 2, 1, 32>}, {pipeline_mode = #tpu.pipeline_mode<synchronous>, transform_indices = @transform_7, window_bounds = array<i64: 2, 32, 64>}, {pipeline_mode = #tpu.pipeline_mode<synchronous>, transform_indices = @transform_8, window_bounds = array<i64: 2, 1, 64>}, {pipeline_mode = #tpu.pipeline_mode<synchronous>, transform_indices = @transform_9, window_bounds = array<i64: 2, 64, 32>}, {pipeline_mode = #tpu.pipeline_mode<synchronous>, transform_indices = @transform_10, window_bounds = array<i64: 2, 1, 32>}, {pipeline_mode = #tpu.pipeline_mode<synchronous>, transform_indices = @transform_11, window_bounds = array<i64: 2, 4, 32>}, {transform_indices = @transform_12, window_bounds = array<i64: 2, 1, 32>}]} {
    %c0_i32 = arith.constant 0 : i32
    %0 = arith.cmpi eq, %arg1, %c0_i32 : i32
    %1 = arith.extui %0 : i1 to i32
    %c0_i32_0 = arith.constant 0 : i32
    %2 = arith.cmpi ne, %1, %c0_i32_0 : i32
    scf.if %2 {
      %c0_79 = arith.constant 0 : index
      %c0_80 = arith.constant 0 : index
      %c0_81 = arith.constant 0 : index
      %201 = vector.load %arg2[%c0_79, %c0_80, %c0_81] : memref<2x4x32xbf16, #tpu.memory_space<vmem>>, vector<2x4x32xbf16>
      %202 = arith.extf %201 : vector<2x4x32xbf16> to vector<2x4x32xf32>
      %c0_82 = arith.constant 0 : index
      %c0_83 = arith.constant 0 : index
      %c0_84 = arith.constant 0 : index
      %203 = vector.load %arg15[%c0_82, %c0_83, %c0_84] : memref<2x4x32xf32, #tpu.memory_space<vmem>>, vector<2x4x32xf32>
      tpu.vector_store %arg15[%c0_82, %c0_83, %c0_84], %202 {strides = array<i32>} : memref<2x4x32xf32, #tpu.memory_space<vmem>>, vector<2x4x32xf32>,
    } else {
    }
    %c0 = arith.constant 0 : index
    %c0_1 = arith.constant 0 : index
    %c0_2 = arith.constant 0 : index
    %3 = vector.load %arg3[%c0, %c0_1, %c0_2] : memref<2x4x1xf32, #tpu.memory_space<vmem>>, vector<2x4x1xf32>
    %c0_3 = arith.constant 0 : index
    %c0_4 = arith.constant 0 : index
    %c0_5 = arith.constant 0 : index
    %4 = vector.load %arg4[%c0_3, %c0_4, %c0_5] : memref<2x1x4xf32, #tpu.memory_space<vmem>>, vector<2x1x4xf32>
    %5 = vector.broadcast %3 : vector<2x4x1xf32> to vector<2x4x4xf32>
    %6 = vector.broadcast %4 : vector<2x1x4xf32> to vector<2x4x4xf32>
    %7 = arith.mulf %5, %6 : vector<2x4x4xf32>
    %cst = arith.constant 1.000000e+00 : f32
    %8 = vector.broadcast %cst : f32 to vector<2x4x4xf32>
    %9 = arith.subf %7, %8 : vector<2x4x4xf32>
    %cst_6 = arith.constant 1.000000e+09 : f32
    %10 = vector.broadcast %cst_6 : f32 to vector<2x4x4xf32>
    %11 = arith.mulf %9, %10 : vector<2x4x4xf32>
    %c0_7 = arith.constant 0 : index
    %c0_8 = arith.constant 0 : index
    %c0_9 = arith.constant 0 : index
    %12 = vector.load %arg15[%c0_7, %c0_8, %c0_9] : memref<2x4x32xf32, #tpu.memory_space<vmem>>, vector<2x4x32xf32>
    %13 = vector.shape_cast %12 : vector<2x4x32xf32> to vector<8x32xf32>
    %14 = arith.truncf %13 : vector<8x32xf32> to vector<8x32xbf16>
    %15 = arith.index_cast %arg1 : i32 to index
    %c0_10 = arith.constant 0 : index
    %c0_11 = arith.constant 0 : index
    %16 = vector.load %arg5[%15, %c0_10, %c0_11] : memref<2x32x96xbf16, #tpu.memory_space<vmem>>, vector<1x32x96xbf16>
    %17 = vector.shape_cast %16 : vector<1x32x96xbf16> to vector<32x96xbf16>
    %cst_12 = arith.constant dense<0.000000e+00> : vector<8x96xf32>
    %18 = tpu.matmul %14, %17, %cst_12 {dimension_numbers = #tpu.dot_dimension_numbers<[1], [0], [0], [1], [0, 0, 1, 1], [], []>} : vector<8x32xbf16>, vector<32x96xbf16>, vector<8x96xf32> -> vector<8x96xf32>
    %19 = arith.index_cast %arg1 : i32 to index
    %c0_13 = arith.constant 0 : index
    %c0_14 = arith.constant 0 : index
    %20 = vector.load %arg6[%19, %c0_13, %c0_14] : memref<2x1x96xf32, #tpu.memory_space<vmem>>, vector<1x1x96xf32>
    %21 = vector.shape_cast %20 : vector<1x1x96xf32> to vector<1x96xf32>
    %22 = vector.broadcast %21 : vector<1x96xf32> to vector<8x96xf32>
    %23 = arith.addf %18, %22 : vector<8x96xf32>
    %24 = arith.truncf %23 : vector<8x96xf32> to vector<8x96xbf16>
    %25 = vector.shape_cast %24 : vector<8x96xbf16> to vector<2x4x96xbf16>
    %26 = vector.extract_strided_slice %25 {offsets = [0, 0, 0], sizes = [2, 4, 8], strides = [1, 1, 1]} : vector<2x4x96xbf16> to vector<2x4x8xbf16>
    %27 = vector.extract_strided_slice %25 {offsets = [0, 0, 32], sizes = [2, 4, 8], strides = [1, 1, 1]} : vector<2x4x96xbf16> to vector<2x4x8xbf16>
    %28 = vector.extract_strided_slice %25 {offsets = [0, 0, 64], sizes = [2, 4, 8], strides = [1, 1, 1]} : vector<2x4x96xbf16> to vector<2x4x8xbf16>
    "tpu.trace_start"() <{level = 10 : i32, message = "bqd,bkd->bqk"}> : () -> ()
    %cst_15 = arith.constant dense<0.000000e+00> : vector<2x4x4xf32>
    %29 = tpu.matmul %26, %27, %cst_15 {dimension_numbers = #tpu.dot_dimension_numbers<[2], [2], [1], [1], [0, 0, 0, 1, 1, 1], [0], [0]>} : vector<2x4x8xbf16>, vector<2x4x8xbf16>, vector<2x4x4xf32> -> vector<2x4x4xf32>
    "tpu.trace_stop"() : () -> ()
    %cst_16 = arith.constant 0.353553385 : f32
    %30 = vector.broadcast %cst_16 : f32 to vector<2x4x4xf32>
    %31 = arith.mulf %29, %30 : vector<2x4x4xf32>
    %32 = arith.addf %31, %11 : vector<2x4x4xf32>
    %cst_17 = arith.constant dense<0xFF800000> : vector<2x4xf32>
    %33 = vector.multi_reduction <maximumf>, %32, %cst_17 [2] : vector<2x4x4xf32> to vector<2x4xf32>
    %34 = vector.shape_cast %33 : vector<2x4xf32> to vector<2x4x1xf32>
    %35 = vector.broadcast %34 : vector<2x4x1xf32> to vector<2x4x4xf32>
    %36 = arith.subf %32, %35 : vector<2x4x4xf32>
    %37 = math.exp %36 : vector<2x4x4xf32>
    %cst_18 = arith.constant dense<0.000000e+00> : vector<2x4xf32>
    %38 = vector.multi_reduction <add>, %37, %cst_18 [2] : vector<2x4x4xf32> to vector<2x4xf32>
    %39 = vector.shape_cast %38 : vector<2x4xf32> to vector<2x4x1xf32>
    %40 = tpu.reciprocal %39 {approx = true} : vector<2x4x1xf32> -> vector<2x4x1xf32>
    %41 = vector.broadcast %40 : vector<2x4x1xf32> to vector<2x4x4xf32>
    %42 = arith.mulf %37, %41 : vector<2x4x4xf32>
    %43 = arith.truncf %42 : vector<2x4x4xf32> to vector<2x4x4xbf16>
    "tpu.trace_start"() <{level = 10 : i32, message = "bqk,bkd->bqd"}> : () -> ()
    %cst_19 = arith.constant dense<0.000000e+00> : vector<2x4x8xf32>
    %44 = tpu.matmul %43, %28, %cst_19 {dimension_numbers = #tpu.dot_dimension_numbers<[2], [1], [1], [2], [0, 0, 0, 1, 1, 2], [0], [0]>} : vector<2x4x4xbf16>, vector<2x4x8xbf16>, vector<2x4x8xf32> -> vector<2x4x8xf32>
    "tpu.trace_stop"() : () -> ()
    %45 = arith.truncf %44 : vector<2x4x8xf32> to vector<2x4x8xbf16>
    %c0_20 = arith.constant 0 : index
    %c0_21 = arith.constant 0 : index
    %c0_22 = arith.constant 0 : index
    %46 = vector.load %arg16[%c0_20, %c0_21, %c0_22] : memref<2x4x32xbf16, #tpu.memory_space<vmem>>, vector<2x4x8xbf16>
    tpu.vector_store %arg16[%c0_20, %c0_21, %c0_22], %45 {strides = array<i32>} : memref<2x4x32xbf16, #tpu.memory_space<vmem>>, vector<2x4x8xbf16>,
    %47 = vector.extract_strided_slice %25 {offsets = [0, 0, 8], sizes = [2, 4, 8], strides = [1, 1, 1]} : vector<2x4x96xbf16> to vector<2x4x8xbf16>
    %48 = vector.extract_strided_slice %25 {offsets = [0, 0, 40], sizes = [2, 4, 8], strides = [1, 1, 1]} : vector<2x4x96xbf16> to vector<2x4x8xbf16>
    %49 = vector.extract_strided_slice %25 {offsets = [0, 0, 72], sizes = [2, 4, 8], strides = [1, 1, 1]} : vector<2x4x96xbf16> to vector<2x4x8xbf16>
    "tpu.trace_start"() <{level = 10 : i32, message = "bqd,bkd->bqk"}> : () -> ()
    %cst_23 = arith.constant dense<0.000000e+00> : vector<2x4x4xf32>
    %50 = tpu.matmul %47, %48, %cst_23 {dimension_numbers = #tpu.dot_dimension_numbers<[2], [2], [1], [1], [0, 0, 0, 1, 1, 1], [0], [0]>} : vector<2x4x8xbf16>, vector<2x4x8xbf16>, vector<2x4x4xf32> -> vector<2x4x4xf32>
    "tpu.trace_stop"() : () -> ()
    %cst_24 = arith.constant 0.353553385 : f32
    %51 = vector.broadcast %cst_24 : f32 to vector<2x4x4xf32>
    %52 = arith.mulf %50, %51 : vector<2x4x4xf32>
    %53 = arith.addf %52, %11 : vector<2x4x4xf32>
    %cst_25 = arith.constant dense<0xFF800000> : vector<2x4xf32>
    %54 = vector.multi_reduction <maximumf>, %53, %cst_25 [2] : vector<2x4x4xf32> to vector<2x4xf32>
    %55 = vector.shape_cast %54 : vector<2x4xf32> to vector<2x4x1xf32>
    %56 = vector.broadcast %55 : vector<2x4x1xf32> to vector<2x4x4xf32>
    %57 = arith.subf %53, %56 : vector<2x4x4xf32>
    %58 = math.exp %57 : vector<2x4x4xf32>
    %cst_26 = arith.constant dense<0.000000e+00> : vector<2x4xf32>
    %59 = vector.multi_reduction <add>, %58, %cst_26 [2] : vector<2x4x4xf32> to vector<2x4xf32>
    %60 = vector.shape_cast %59 : vector<2x4xf32> to vector<2x4x1xf32>
    %61 = tpu.reciprocal %60 {approx = true} : vector<2x4x1xf32> -> vector<2x4x1xf32>
    %62 = vector.broadcast %61 : vector<2x4x1xf32> to vector<2x4x4xf32>
    %63 = arith.mulf %58, %62 : vector<2x4x4xf32>
    %64 = arith.truncf %63 : vector<2x4x4xf32> to vector<2x4x4xbf16>
    "tpu.trace_start"() <{level = 10 : i32, message = "bqk,bkd->bqd"}> : () -> ()
    %cst_27 = arith.constant dense<0.000000e+00> : vector<2x4x8xf32>
    %65 = tpu.matmul %64, %49, %cst_27 {dimension_numbers = #tpu.dot_dimension_numbers<[2], [1], [1], [2], [0, 0, 0, 1, 1, 2], [0], [0]>} : vector<2x4x4xbf16>, vector<2x4x8xbf16>, vector<2x4x8xf32> -> vector<2x4x8xf32>
    "tpu.trace_stop"() : () -> ()
    %66 = arith.truncf %65 : vector<2x4x8xf32> to vector<2x4x8xbf16>
    %c0_28 = arith.constant 0 : index
    %c0_29 = arith.constant 0 : index
    %c8 = arith.constant 8 : index
    %67 = vector.load %arg16[%c0_28, %c0_29, %c8] : memref<2x4x32xbf16, #tpu.memory_space<vmem>>, vector<2x4x8xbf16>
    tpu.vector_store %arg16[%c0_28, %c0_29, %c8], %66 {strides = array<i32>} : memref<2x4x32xbf16, #tpu.memory_space<vmem>>, vector<2x4x8xbf16>,
    %68 = vector.extract_strided_slice %25 {offsets = [0, 0, 16], sizes = [2, 4, 8], strides = [1, 1, 1]} : vector<2x4x96xbf16> to vector<2x4x8xbf16>
    %69 = vector.extract_strided_slice %25 {offsets = [0, 0, 48], sizes = [2, 4, 8], strides = [1, 1, 1]} : vector<2x4x96xbf16> to vector<2x4x8xbf16>
    %70 = vector.extract_strided_slice %25 {offsets = [0, 0, 80], sizes = [2, 4, 8], strides = [1, 1, 1]} : vector<2x4x96xbf16> to vector<2x4x8xbf16>
    "tpu.trace_start"() <{level = 10 : i32, message = "bqd,bkd->bqk"}> : () -> ()
    %cst_30 = arith.constant dense<0.000000e+00> : vector<2x4x4xf32>
    %71 = tpu.matmul %68, %69, %cst_30 {dimension_numbers = #tpu.dot_dimension_numbers<[2], [2], [1], [1], [0, 0, 0, 1, 1, 1], [0], [0]>} : vector<2x4x8xbf16>, vector<2x4x8xbf16>, vector<2x4x4xf32> -> vector<2x4x4xf32>
    "tpu.trace_stop"() : () -> ()
    %cst_31 = arith.constant 0.353553385 : f32
    %72 = vector.broadcast %cst_31 : f32 to vector<2x4x4xf32>
    %73 = arith.mulf %71, %72 : vector<2x4x4xf32>
    %74 = arith.addf %73, %11 : vector<2x4x4xf32>
    %cst_32 = arith.constant dense<0xFF800000> : vector<2x4xf32>
    %75 = vector.multi_reduction <maximumf>, %74, %cst_32 [2] : vector<2x4x4xf32> to vector<2x4xf32>
    %76 = vector.shape_cast %75 : vector<2x4xf32> to vector<2x4x1xf32>
    %77 = vector.broadcast %76 : vector<2x4x1xf32> to vector<2x4x4xf32>
    %78 = arith.subf %74, %77 : vector<2x4x4xf32>
    %79 = math.exp %78 : vector<2x4x4xf32>
    %cst_33 = arith.constant dense<0.000000e+00> : vector<2x4xf32>
    %80 = vector.multi_reduction <add>, %79, %cst_33 [2] : vector<2x4x4xf32> to vector<2x4xf32>
    %81 = vector.shape_cast %80 : vector<2x4xf32> to vector<2x4x1xf32>
    %82 = tpu.reciprocal %81 {approx = true} : vector<2x4x1xf32> -> vector<2x4x1xf32>
    %83 = vector.broadcast %82 : vector<2x4x1xf32> to vector<2x4x4xf32>
    %84 = arith.mulf %79, %83 : vector<2x4x4xf32>
    %85 = arith.truncf %84 : vector<2x4x4xf32> to vector<2x4x4xbf16>
    "tpu.trace_start"() <{level = 10 : i32, message = "bqk,bkd->bqd"}> : () -> ()
    %cst_34 = arith.constant dense<0.000000e+00> : vector<2x4x8xf32>
    %86 = tpu.matmul %85, %70, %cst_34 {dimension_numbers = #tpu.dot_dimension_numbers<[2], [1], [1], [2], [0, 0, 0, 1, 1, 2], [0], [0]>} : vector<2x4x4xbf16>, vector<2x4x8xbf16>, vector<2x4x8xf32> -> vector<2x4x8xf32>
    "tpu.trace_stop"() : () -> ()
    %87 = arith.truncf %86 : vector<2x4x8xf32> to vector<2x4x8xbf16>
    %c0_35 = arith.constant 0 : index
    %c0_36 = arith.constant 0 : index
    %c16 = arith.constant 16 : index
    %88 = vector.load %arg16[%c0_35, %c0_36, %c16] : memref<2x4x32xbf16, #tpu.memory_space<vmem>>, vector<2x4x8xbf16>
    tpu.vector_store %arg16[%c0_35, %c0_36, %c16], %87 {strides = array<i32>} : memref<2x4x32xbf16, #tpu.memory_space<vmem>>, vector<2x4x8xbf16>,
    %89 = vector.extract_strided_slice %25 {offsets = [0, 0, 24], sizes = [2, 4, 8], strides = [1, 1, 1]} : vector<2x4x96xbf16> to vector<2x4x8xbf16>
    %90 = vector.extract_strided_slice %25 {offsets = [0, 0, 56], sizes = [2, 4, 8], strides = [1, 1, 1]} : vector<2x4x96xbf16> to vector<2x4x8xbf16>
    %91 = vector.extract_strided_slice %25 {offsets = [0, 0, 88], sizes = [2, 4, 8], strides = [1, 1, 1]} : vector<2x4x96xbf16> to vector<2x4x8xbf16>
    "tpu.trace_start"() <{level = 10 : i32, message = "bqd,bkd->bqk"}> : () -> ()
    %cst_37 = arith.constant dense<0.000000e+00> : vector<2x4x4xf32>
    %92 = tpu.matmul %89, %90, %cst_37 {dimension_numbers = #tpu.dot_dimension_numbers<[2], [2], [1], [1], [0, 0, 0, 1, 1, 1], [0], [0]>} : vector<2x4x8xbf16>, vector<2x4x8xbf16>, vector<2x4x4xf32> -> vector<2x4x4xf32>
    "tpu.trace_stop"() : () -> ()
    %cst_38 = arith.constant 0.353553385 : f32
    %93 = vector.broadcast %cst_38 : f32 to vector<2x4x4xf32>
    %94 = arith.mulf %92, %93 : vector<2x4x4xf32>
    %95 = arith.addf %94, %11 : vector<2x4x4xf32>
    %cst_39 = arith.constant dense<0xFF800000> : vector<2x4xf32>
    %96 = vector.multi_reduction <maximumf>, %95, %cst_39 [2] : vector<2x4x4xf32> to vector<2x4xf32>
    %97 = vector.shape_cast %96 : vector<2x4xf32> to vector<2x4x1xf32>
    %98 = vector.broadcast %97 : vector<2x4x1xf32> to vector<2x4x4xf32>
    %99 = arith.subf %95, %98 : vector<2x4x4xf32>
    %100 = math.exp %99 : vector<2x4x4xf32>
    %cst_40 = arith.constant dense<0.000000e+00> : vector<2x4xf32>
    %101 = vector.multi_reduction <add>, %100, %cst_40 [2] : vector<2x4x4xf32> to vector<2x4xf32>
    %102 = vector.shape_cast %101 : vector<2x4xf32> to vector<2x4x1xf32>
    %103 = tpu.reciprocal %102 {approx = true} : vector<2x4x1xf32> -> vector<2x4x1xf32>
    %104 = vector.broadcast %103 : vector<2x4x1xf32> to vector<2x4x4xf32>
    %105 = arith.mulf %100, %104 : vector<2x4x4xf32>
    %106 = arith.truncf %105 : vector<2x4x4xf32> to vector<2x4x4xbf16>
    "tpu.trace_start"() <{level = 10 : i32, message = "bqk,bkd->bqd"}> : () -> ()
    %cst_41 = arith.constant dense<0.000000e+00> : vector<2x4x8xf32>
    %107 = tpu.matmul %106, %91, %cst_41 {dimension_numbers = #tpu.dot_dimension_numbers<[2], [1], [1], [2], [0, 0, 0, 1, 1, 2], [0], [0]>} : vector<2x4x4xbf16>, vector<2x4x8xbf16>, vector<2x4x8xf32> -> vector<2x4x8xf32>
    "tpu.trace_stop"() : () -> ()
    %108 = arith.truncf %107 : vector<2x4x8xf32> to vector<2x4x8xbf16>
    %c0_42 = arith.constant 0 : index
    %c0_43 = arith.constant 0 : index
    %c24 = arith.constant 24 : index
    %109 = vector.load %arg16[%c0_42, %c0_43, %c24] : memref<2x4x32xbf16, #tpu.memory_space<vmem>>, vector<2x4x8xbf16>
    tpu.vector_store %arg16[%c0_42, %c0_43, %c24], %108 {strides = array<i32>} : memref<2x4x32xbf16, #tpu.memory_space<vmem>>, vector<2x4x8xbf16>,
    %c0_44 = arith.constant 0 : index
    %c0_45 = arith.constant 0 : index
    %c0_46 = arith.constant 0 : index
    %110 = vector.load %arg16[%c0_44, %c0_45, %c0_46] : memref<2x4x32xbf16, #tpu.memory_space<vmem>>, vector<2x4x32xbf16>
    %111 = vector.shape_cast %110 : vector<2x4x32xbf16> to vector<8x32xbf16>
    %112 = arith.index_cast %arg1 : i32 to index
    %c0_47 = arith.constant 0 : index
    %c0_48 = arith.constant 0 : index
    %113 = vector.load %arg7[%112, %c0_47, %c0_48] : memref<2x32x32xbf16, #tpu.memory_space<vmem>>, vector<1x32x32xbf16>
    %114 = vector.shape_cast %113 : vector<1x32x32xbf16> to vector<32x32xbf16>
    %cst_49 = arith.constant dense<0.000000e+00> : vector<8x32xf32>
    %115 = tpu.matmul %111, %114, %cst_49 {dimension_numbers = #tpu.dot_dimension_numbers<[1], [0], [0], [1], [0, 0, 1, 1], [], []>} : vector<8x32xbf16>, vector<32x32xbf16>, vector<8x32xf32> -> vector<8x32xf32>
    %116 = arith.index_cast %arg1 : i32 to index
    %c0_50 = arith.constant 0 : index
    %c0_51 = arith.constant 0 : index
    %117 = vector.load %arg8[%116, %c0_50, %c0_51] : memref<2x1x32xf32, #tpu.memory_space<vmem>>, vector<1x1x32xf32>
    %118 = vector.shape_cast %117 : vector<1x1x32xf32> to vector<1x32xf32>
    %119 = vector.broadcast %118 : vector<1x32xf32> to vector<8x32xf32>
    %120 = arith.addf %115, %119 : vector<8x32xf32>
    %121 = arith.index_cast %arg1 : i32 to index
    %c0_52 = arith.constant 0 : index
    %c0_53 = arith.constant 0 : index
    %122 = vector.load %arg13[%121, %c0_52, %c0_53] : memref<2x4x32xf32, #tpu.memory_space<vmem>>, vector<1x4x32xf32>
    %123 = vector.shape_cast %122 : vector<1x4x32xf32> to vector<4x32xf32>
    %124 = arith.addf %13, %120 : vector<8x32xf32>
    %125 = vector.extract_strided_slice %123 {offsets = [0, 0], sizes = [1, 32], strides = [1, 1]} : vector<4x32xf32> to vector<1x32xf32>
    %126 = vector.extract_strided_slice %123 {offsets = [1, 0], sizes = [1, 32], strides = [1, 1]} : vector<4x32xf32> to vector<1x32xf32>
    %cst_54 = arith.constant dense<0.000000e+00> : vector<8xf32>
    %127 = vector.multi_reduction <add>, %124, %cst_54 [1] : vector<8x32xf32> to vector<8xf32>
    %128 = vector.shape_cast %127 : vector<8xf32> to vector<8x1xf32>
    %cst_55 = arith.constant 3.200000e+01 : f32
    %129 = vector.broadcast %cst_55 : f32 to vector<8x1xf32>
    %130 = arith.divf %128, %129 : vector<8x1xf32>
    %131 = vector.broadcast %130 : vector<8x1xf32> to vector<8x32xf32>
    %132 = arith.subf %124, %131 : vector<8x32xf32>
    %133 = arith.mulf %132, %132 : vector<8x32xf32>
    %cst_56 = arith.constant dense<0.000000e+00> : vector<8xf32>
    %134 = vector.multi_reduction <add>, %133, %cst_56 [1] : vector<8x32xf32> to vector<8xf32>
    %135 = vector.shape_cast %134 : vector<8xf32> to vector<8x1xf32>
    %cst_57 = arith.constant 3.200000e+01 : f32
    %136 = vector.broadcast %cst_57 : f32 to vector<8x1xf32>
    %137 = arith.divf %135, %136 : vector<8x1xf32>
    %138 = vector.broadcast %130 : vector<8x1xf32> to vector<8x32xf32>
    %139 = arith.subf %124, %138 : vector<8x32xf32>
    %cst_58 = arith.constant 9.99999997E-7 : f32
    %140 = vector.broadcast %cst_58 : f32 to vector<8x1xf32>
    %141 = arith.addf %137, %140 : vector<8x1xf32>
    %142 = math.rsqrt %141 : vector<8x1xf32>
    %143 = vector.broadcast %142 : vector<8x1xf32> to vector<8x32xf32>
    %144 = arith.mulf %139, %143 : vector<8x32xf32>
    %145 = vector.broadcast %125 : vector<1x32xf32> to vector<8x32xf32>
    %146 = arith.mulf %144, %145 : vector<8x32xf32>
    %147 = vector.broadcast %126 : vector<1x32xf32> to vector<8x32xf32>
    %148 = arith.addf %146, %147 : vector<8x32xf32>
    %149 = arith.truncf %148 : vector<8x32xf32> to vector<8x32xbf16>
    %150 = arith.index_cast %arg1 : i32 to index
    %c0_59 = arith.constant 0 : index
    %c0_60 = arith.constant 0 : index
    %151 = vector.load %arg9[%150, %c0_59, %c0_60] : memref<2x32x64xbf16, #tpu.memory_space<vmem>>, vector<1x32x64xbf16>
    %152 = vector.shape_cast %151 : vector<1x32x64xbf16> to vector<32x64xbf16>
    %cst_61 = arith.constant dense<0.000000e+00> : vector<8x64xf32>
    %153 = tpu.matmul %149, %152, %cst_61 {dimension_numbers = #tpu.dot_dimension_numbers<[1], [0], [0], [1], [0, 0, 1, 1], [], []>} : vector<8x32xbf16>, vector<32x64xbf16>, vector<8x64xf32> -> vector<8x64xf32>
    %154 = arith.index_cast %arg1 : i32 to index
    %c0_62 = arith.constant 0 : index
    %c0_63 = arith.constant 0 : index
    %155 = vector.load %arg10[%154, %c0_62, %c0_63] : memref<2x1x64xf32, #tpu.memory_space<vmem>>, vector<1x1x64xf32>
    %156 = vector.shape_cast %155 : vector<1x1x64xf32> to vector<1x64xf32>
    %157 = vector.broadcast %156 : vector<1x64xf32> to vector<8x64xf32>
    %158 = arith.addf %153, %157 : vector<8x64xf32>
    %cst_64 = arith.constant 0.000000e+00 : f32
    %159 = vector.broadcast %cst_64 : f32 to vector<8x64xf32>
    %160 = arith.maximumf %158, %159 : vector<8x64xf32>
    %161 = arith.truncf %160 : vector<8x64xf32> to vector<8x64xbf16>
    %162 = arith.index_cast %arg1 : i32 to index
    %c0_65 = arith.constant 0 : index
    %c0_66 = arith.constant 0 : index
    %163 = vector.load %arg11[%162, %c0_65, %c0_66] : memref<2x64x32xbf16, #tpu.memory_space<vmem>>, vector<1x64x32xbf16>
    %164 = vector.shape_cast %163 : vector<1x64x32xbf16> to vector<64x32xbf16>
    %cst_67 = arith.constant dense<0.000000e+00> : vector<8x32xf32>
    %165 = tpu.matmul %161, %164, %cst_67 {dimension_numbers = #tpu.dot_dimension_numbers<[1], [0], [0], [1], [0, 0, 1, 1], [], []>} : vector<8x64xbf16>, vector<64x32xbf16>, vector<8x32xf32> -> vector<8x32xf32>
    %166 = arith.index_cast %arg1 : i32 to index
    %c0_68 = arith.constant 0 : index
    %c0_69 = arith.constant 0 : index
    %167 = vector.load %arg12[%166, %c0_68, %c0_69] : memref<2x1x32xf32, #tpu.memory_space<vmem>>, vector<1x1x32xf32>
    %168 = vector.shape_cast %167 : vector<1x1x32xf32> to vector<1x32xf32>
    %169 = vector.broadcast %168 : vector<1x32xf32> to vector<8x32xf32>
    %170 = arith.addf %165, %169 : vector<8x32xf32>
    %171 = arith.addf %148, %170 : vector<8x32xf32>
    %172 = vector.extract_strided_slice %123 {offsets = [2, 0], sizes = [1, 32], strides = [1, 1]} : vector<4x32xf32> to vector<1x32xf32>
    %173 = vector.extract_strided_slice %123 {offsets = [3, 0], sizes = [1, 32], strides = [1, 1]} : vector<4x32xf32> to vector<1x32xf32>
    %cst_70 = arith.constant dense<0.000000e+00> : vector<8xf32>
    %174 = vector.multi_reduction <add>, %171, %cst_70 [1] : vector<8x32xf32> to vector<8xf32>
    %175 = vector.shape_cast %174 : vector<8xf32> to vector<8x1xf32>
    %cst_71 = arith.constant 3.200000e+01 : f32
    %176 = vector.broadcast %cst_71 : f32 to vector<8x1xf32>
    %177 = arith.divf %175, %176 : vector<8x1xf32>
    %178 = vector.broadcast %177 : vector<8x1xf32> to vector<8x32xf32>
    %179 = arith.subf %171, %178 : vector<8x32xf32>
    %180 = arith.mulf %179, %179 : vector<8x32xf32>
    %cst_72 = arith.constant dense<0.000000e+00> : vector<8xf32>
    %181 = vector.multi_reduction <add>, %180, %cst_72 [1] : vector<8x32xf32> to vector<8xf32>
    %182 = vector.shape_cast %181 : vector<8xf32> to vector<8x1xf32>
    %cst_73 = arith.constant 3.200000e+01 : f32
    %183 = vector.broadcast %cst_73 : f32 to vector<8x1xf32>
    %184 = arith.divf %182, %183 : vector<8x1xf32>
    %185 = vector.broadcast %177 : vector<8x1xf32> to vector<8x32xf32>
    %186 = arith.subf %171, %185 : vector<8x32xf32>
    %cst_74 = arith.constant 9.99999997E-7 : f32
    %187 = vector.broadcast %cst_74 : f32 to vector<8x1xf32>
    %188 = arith.addf %184, %187 : vector<8x1xf32>
    %189 = math.rsqrt %188 : vector<8x1xf32>
    %190 = vector.broadcast %189 : vector<8x1xf32> to vector<8x32xf32>
    %191 = arith.mulf %186, %190 : vector<8x32xf32>
    %192 = vector.broadcast %172 : vector<1x32xf32> to vector<8x32xf32>
    %193 = arith.mulf %191, %192 : vector<8x32xf32>
    %194 = vector.broadcast %173 : vector<1x32xf32> to vector<8x32xf32>
    %195 = arith.addf %193, %194 : vector<8x32xf32>
    %196 = vector.shape_cast %195 : vector<8x32xf32> to vector<2x4x32xf32>
    %c0_75 = arith.constant 0 : index
    %c0_76 = arith.constant 0 : index
    %c0_77 = arith.constant 0 : index
    %197 = vector.load %arg15[%c0_75, %c0_76, %c0_77] : memref<2x4x32xf32, #tpu.memory_space<vmem>>, vector<2x4x32xf32>
    tpu.vector_store %arg15[%c0_75, %c0_76, %c0_77], %196 {strides = array<i32>} : memref<2x4x32xf32, #tpu.memory_space<vmem>>, vector<2x4x32xf32>,
    %c1_i32 = arith.constant 1 : i32
    %198 = arith.cmpi eq, %arg1, %c1_i32 : i32
    %199 = arith.extui %198 : i1 to i32
    %c0_i32_78 = arith.constant 0 : i32
    %200 = arith.cmpi ne, %199, %c0_i32_78 : i32
    scf.if %200 {
      %c0_79 = arith.constant 0 : index
      %c0_80 = arith.constant 0 : index
      %c0_81 = arith.constant 0 : index
      %201 = vector.load %arg15[%c0_79, %c0_80, %c0_81] : memref<2x4x32xf32, #tpu.memory_space<vmem>>, vector<2x4x32xf32>
      %202 = vector.broadcast %3 : vector<2x4x1xf32> to vector<2x4x32xf32>
      %203 = arith.mulf %202, %201 : vector<2x4x32xf32>
      %cst_82 = arith.constant dense<0.000000e+00> : vector<2x32xf32>
      %204 = vector.multi_reduction <add>, %203, %cst_82 [1] : vector<2x4x32xf32> to vector<2x32xf32>
      %205 = vector.shape_cast %204 : vector<2x32xf32> to vector<2x1x32xf32>
      %cst_83 = arith.constant 2.500000e-01 : f32
      %206 = vector.broadcast %cst_83 : f32 to vector<2x1x32xf32>
      %207 = arith.mulf %205, %206 : vector<2x1x32xf32>
      %c0_84 = arith.constant 0 : index
      %c0_85 = arith.constant 0 : index
      %c0_86 = arith.constant 0 : index
      %208 = vector.load %arg14[%c0_84, %c0_85, %c0_86] : memref<2x1x32xf32, #tpu.memory_space<vmem>>, vector<2x1x32xf32>
      tpu.vector_store %arg14[%c0_84, %c0_85, %c0_86], %207 {strides = array<i32>} : memref<2x1x32xf32, #tpu.memory_space<vmem>>, vector<2x1x32xf32>,
    } else {
    }
    return
  }
  func.func @transform_0(%arg0: i32, %arg1: i32) -> (i32, i32, i32) {
    %c0_i32 = arith.constant 0 : i32
    %c0_i32_0 = arith.constant 0 : i32
    %c0_i32_1 = arith.constant 0 : i32
    return %arg0, %c0_i32, %c0_i32_0 : i32, i32, i32
  }
  func.func @transform_1(%arg0: i32, %arg1: i32) -> (i32, i32, i32) {
    %c0_i32 = arith.constant 0 : i32
    %c0_i32_0 = arith.constant 0 : i32
    %c0_i32_1 = arith.constant 0 : i32
    return %arg0, %c0_i32, %c0_i32_0 : i32, i32, i32
  }
  func.func @transform_2(%arg0: i32, %arg1: i32) -> (i32, i32, i32) {
    %c0_i32 = arith.constant 0 : i32
    %c0_i32_0 = arith.constant 0 : i32
    %c0_i32_1 = arith.constant 0 : i32
    return %arg0, %c0_i32, %c0_i32_0 : i32, i32, i32
  }
  func.func @transform_3(%arg0: i32, %arg1: i32) -> (i32, i32, i32) {
    %c0_i32 = arith.constant 0 : i32
    %c0_i32_0 = arith.constant 0 : i32
    %c0_i32_1 = arith.constant 0 : i32
    %c0_i32_2 = arith.constant 0 : i32
    return %c0_i32, %c0_i32_0, %c0_i32_1 : i32, i32, i32
  }
  func.func @transform_4(%arg0: i32, %arg1: i32) -> (i32, i32, i32) {
    %c0_i32 = arith.constant 0 : i32
    %c0_i32_0 = arith.constant 0 : i32
    %c0_i32_1 = arith.constant 0 : i32
    %c0_i32_2 = arith.constant 0 : i32
    return %c0_i32, %c0_i32_0, %c0_i32_1 : i32, i32, i32
  }
  func.func @transform_5(%arg0: i32, %arg1: i32) -> (i32, i32, i32) {
    %c0_i32 = arith.constant 0 : i32
    %c0_i32_0 = arith.constant 0 : i32
    %c0_i32_1 = arith.constant 0 : i32
    %c0_i32_2 = arith.constant 0 : i32
    return %c0_i32, %c0_i32_0, %c0_i32_1 : i32, i32, i32
  }
  func.func @transform_6(%arg0: i32, %arg1: i32) -> (i32, i32, i32) {
    %c0_i32 = arith.constant 0 : i32
    %c0_i32_0 = arith.constant 0 : i32
    %c0_i32_1 = arith.constant 0 : i32
    %c0_i32_2 = arith.constant 0 : i32
    return %c0_i32, %c0_i32_0, %c0_i32_1 : i32, i32, i32
  }
  func.func @transform_7(%arg0: i32, %arg1: i32) -> (i32, i32, i32) {
    %c0_i32 = arith.constant 0 : i32
    %c0_i32_0 = arith.constant 0 : i32
    %c0_i32_1 = arith.constant 0 : i32
    %c0_i32_2 = arith.constant 0 : i32
    return %c0_i32, %c0_i32_0, %c0_i32_1 : i32, i32, i32
  }
  func.func @transform_8(%arg0: i32, %arg1: i32) -> (i32, i32, i32) {
    %c0_i32 = arith.constant 0 : i32
    %c0_i32_0 = arith.constant 0 : i32
    %c0_i32_1 = arith.constant 0 : i32
    %c0_i32_2 = arith.constant 0 : i32
    return %c0_i32, %c0_i32_0, %c0_i32_1 : i32, i32, i32
  }
  func.func @transform_9(%arg0: i32, %arg1: i32) -> (i32, i32, i32) {
    %c0_i32 = arith.constant 0 : i32
    %c0_i32_0 = arith.constant 0 : i32
    %c0_i32_1 = arith.constant 0 : i32
    %c0_i32_2 = arith.constant 0 : i32
    return %c0_i32, %c0_i32_0, %c0_i32_1 : i32, i32, i32
  }
  func.func @transform_10(%arg0: i32, %arg1: i32) -> (i32, i32, i32) {
    %c0_i32 = arith.constant 0 : i32
    %c0_i32_0 = arith.constant 0 : i32
    %c0_i32_1 = arith.constant 0 : i32
    %c0_i32_2 = arith.constant 0 : i32
    return %c0_i32, %c0_i32_0, %c0_i32_1 : i32, i32, i32
  }
  func.func @transform_11(%arg0: i32, %arg1: i32) -> (i32, i32, i32) {
    %c0_i32 = arith.constant 0 : i32
    %c0_i32_0 = arith.constant 0 : i32
    %c0_i32_1 = arith.constant 0 : i32
    %c0_i32_2 = arith.constant 0 : i32
    return %c0_i32, %c0_i32_0, %c0_i32_1 : i32, i32, i32
  }
  func.func @transform_12(%arg0: i32, %arg1: i32) -> (i32, i32, i32) {
    %c0_i32 = arith.constant 0 : i32
    %c0_i32_0 = arith.constant 0 : i32
    %c0_i32_1 = arith.constant 0 : i32
    return %arg0, %c0_i32, %c0_i32_0 : i32, i32, i32
  }
}

</mosaic_0001>

<bundles_post_ra>
// kernel: tag_predictor_forward.3
= control target key start
LH: loop header
LB: loop body
LE: loop exit
PB: predicated region body
PF: predicated region fallthrough
CT: control target
= control target key end

     0   :  { %s4025_s0 = inlined_call_operand.hbm [shape: bf16[2,4,32], index: 0, kind: input, shape index: {}]   ;;  %s4026_s1 = inlined_call_operand.hbm [shape: f32[2,4,1], index: 1, kind: input, shape index: {}]   ;;  %s4027_s2 = inlined_call_operand.hbm [shape: f32[2,1,4], index: 2, kind: input, shape index: {}]   ;;  %s4028_s3 = inlined_call_operand.hbm [shape: bf16[2,32,96], index: 3, kind: input, shape index: {}]   ;;  %s4029_s4 = inlined_call_operand.hbm [shape: f32[2,1,96], index: 4, kind: input, shape index: {}]   ;;  %s4030_s5 = inlined_call_operand.hbm [shape: bf16[2,32,32], index: 5, kind: input, shape index: {}]   ;;  %s4031_s6 = inlined_call_operand.hbm [shape: f32[2,1,32], index: 6, kind: input, shape index: {}]   ;;  %s4032_s7 = inlined_call_operand.hbm [shape: bf16[2,32,64], index: 7, kind: input, shape index: {}]   ;;  %s4033_s8 = inlined_call_operand.hbm [shape: f32[2,1,64], index: 8, kind: input, shape index: {}]   ;;  %s4034_s9 = inlined_call_operand.hbm [shape: bf16[2,64,32], index: 9, kind: input, shape index: {}]   ;;  %s4035_s10 = inlined_call_operand.hbm [shape: f32[2,1,32], index: 10, kind: input, shape index: {}]   ;;  %s4036_s11 = inlined_call_operand.hbm [shape: f32[2,4,32], index: 11, kind: input, shape index: {}]   ;;  %s4037_s12 = inlined_call_operand.hbm [shape: f32[2,1,32], index: 12, kind: output, shape index: {}]  }
   0x1   :  { %4049 = sst [smem:[#allocation36_spill]] %s4037_s12 }
   0x2   :  { %17 = vsyncpa [#allocation5], 0 }
   0x3   :  { %18 = vsyncpa [#allocation8], 0 }
   0x4   :  { %19 = vsyncpa [#allocation11], 0 }
   0x5   :  { %20 = vsyncpa [#allocation14], 0 }
   0x6   :  { %21 = vsyncpa [#allocation17], 0 }
   0x7   :  { %22 = vsyncpa [#allocation20], 0 }
   0x8   :  { %23 = vsyncpa [#allocation23], 0 }
   0x9   :  { %24 = vsyncpa [#allocation6], 0  ;;  %s3364_s21 = smov 0   ;;  %s3366_s22 = smov 0  }
   0xa   :  { %s3368_s23 = smov 0  }
   0xb LB: > { %4050 = sst [smem:[#allocation33_spill]] %s3249_s21  ;;  %s3259_s24 = smov [#allocation7]   ;;  %s3257_s23 = sphi %s3368_s23, %s30_s23   ;;  %s3253_s22 = sphi %s3366_s22, %s4071_s22   ;;  %s3249_s21 = sphi %s3364_s21, %s4070_s21  }
   0xc   : > { %4051 = sst [smem:[#allocation34_spill]] %s3257_s23  ;;  %s371_s25 = sshll.u32 %s3259_s24, 4  ;;  %s3388_s25 = int_to_ptr.vmem [resolvable:$true] %s371_s25 }
   0xd   : > { %s4038_s26 = sadd.s32 4294967295, %s3257_s23   ;;  %p2355_p0 = scmp.ge.s32.totalorder %s3257_s23, 1 }
   0xe   : > { %p340_p1 = scmp.lt.s32.totalorder %s3257_s23, 3  ;;  %p3384_p2 = scmp.eq.s32.totalorder %s4038_s26, 0 }
   0xf   : > { %s3260_s29 = smov [#allocation10]   ;;  %s3261_s14 = smov [#allocation13]  }
  0x10   : > { %s4052_s27 = scalar_select %p3384_p2, 1, 0 }
  0x11   : > { %p3390_p3 = pnand %p2355_p0, %p340_p1  ;;  %s400_s30 = sshll.u32 %s3260_s29, 4  ;;  %s3396_s30 = int_to_ptr.vmem [resolvable:$true] %s400_s30 }
  0x12   : > { %4053 = sst [smem:[#allocation35_spill]] %s4052_s27  ;;  %s426_s15 = sshll.u32 %s3261_s14, 4  ;;  %s3404_s15 = int_to_ptr.vmem [resolvable:$true] %s426_s15 }
  0x13   : > { %s4054_s28 = scalar_select %p3390_p3, 1, 0 }
  0x14   : > { %p2665_p4 = pneg %p3390_p3  ;;  %s3262_s16 = smov [#allocation16]  }
  0x15   : > { %s3406_s17 = sshll.u32 %s3262_s16, 4  ;;  %s2841_s20 = scalar_lea.hbm %s4026_s1, 128  ;;  %s453_s17 = int_to_ptr.vmem [resolvable:$true] %s3406_s17 }
  0x16   : > { %p3400_p5 = pnand %p3384_p2, %p2665_p4  ;;  %p2842_p6 = scmp.ne.s32.totalorder %s4026_s1, %s2841_s20 }
  0x17   : > { %p2848_p10 = scmp.lt.u32.totalorder %s2841_s20, %s4026_s1 }
  0x18   : > { %p3416_p7 = pneg %p3400_p5 }
  0x1a   : > { %p2844_p8 = pnand %p3416_p7, %p2842_p6 }
  0x1c   : > { %p2845_p9 = pneg %p2844_p8 }
  0x1e   : > { %p2850_p11 = pnand %p2848_p10, %p2845_p9 }
  0x20   : > { %2853 = shalt.err (!%p2850_p11)
}
  0x21   : > { %s2854_s18 = scalar_lea.vmem %s3388_s25, 128  ;;  %p2862_p1 = scmp.lt.s32.totalorder %s3388_s25, %s3388_s25 }
  0x22   : > { %p2855_p12 = scmp.ne.s32.totalorder %s3388_s25, %s2854_s18  ;;  %p2863_p4 = scmp.lt.s32.totalorder %s2854_s18, %s2854_s18 }
  0x24   : > { %p2857_p13 = pnand %p2855_p12, %p3416_p7  ;;  %p2864_p6 = por %p2863_p4, %p2862_p1 }
  0x26   : > { %p2858_p0 = pneg %p2857_p13 }
  0x28   : > { %p2865_p8 = pnand %p2864_p6, %p2858_p0 }
  0x2a   : > { %2868 = shalt.err (!%p2865_p8)
}
  0x2b   : > { %s4047_s19 = smov 64   ;;  %s4048_s20 = smov 4  }
  0x2c   : > { %2671 = dma.hbm_to_vmem [thread:$0]  (!%p3400_p5), %s4026_s1, 128, %s3388_s25, [#allocation8], %s4047_s19, %s4047_s19, %s4048_s20  }
  0x2d   : > { %s2869_s18 = scalar_lea.hbm %s4028_s3, 512 }
  0x2e   : > { %p2870_p9 = scmp.ne.s32.totalorder %s4028_s3, %s2869_s18  ;;  %p2876_p12 = scmp.lt.u32.totalorder %s2869_s18, %s4028_s3 }
  0x30   : > { %p2872_p10 = pnand %p2870_p9, %p3416_p7 }
  0x32   : > { %p2873_p11 = pneg %p2872_p10 }
  0x34   : > { %p2878_p13 = pnand %p2876_p12, %p2873_p11 }
  0x36   : > { %2881 = shalt.err (!%p2878_p13)
}
  0x37   : > { %s2882_s25 = scalar_lea.vmem %s3396_s30, 512  ;;  %p2890_p6 = scmp.lt.s32.totalorder %s3396_s30, %s3396_s30 }
  0x38   : > { %p2883_p0 = scmp.ne.s32.totalorder %s3396_s30, %s2882_s25  ;;  %p2891_p8 = scmp.lt.s32.totalorder %s2882_s25, %s2882_s25 }
  0x3a   : > { %p2885_p1 = pnand %p2883_p0, %p3416_p7  ;;  %p2892_p9 = por %p2891_p8, %p2890_p6 }
  0x3c   : > { %p2886_p4 = pneg %p2885_p1 }
  0x3e   : > { %p2893_p10 = pnand %p2892_p9, %p2886_p4 }
  0x40   : > { %2896 = shalt.err (!%p2893_p10)
}
  0x41   : > { %2677 = dma.hbm_to_vmem [thread:$0]  (!%p3400_p5), %s4028_s3, 512, %s3396_s30, [#allocation11], %s4047_s19, %s4047_s19, %s4048_s20  }
  0x42   : > { %s2897_s24 = scalar_lea.hbm %s4030_s5, 512 }
  0x43   : > { %p2898_p11 = scmp.ne.s32.totalorder %s4030_s5, %s2897_s24  ;;  %p2904_p0 = scmp.lt.u32.totalorder %s2897_s24, %s4030_s5 }
  0x45   : > { %p2900_p12 = pnand %p2898_p11, %p3416_p7 }
  0x47   : > { %p2901_p13 = pneg %p2900_p12 }
  0x49   : > { %p2906_p1 = pnand %p2904_p0, %p2901_p13 }
  0x4b   : > { %2909 = shalt.err (!%p2906_p1)
}
  0x4c   : > { %s2910_s30 = scalar_lea.vmem %s3404_s15, 512  ;;  %p2918_p9 = scmp.lt.s32.totalorder %s3404_s15, %s3404_s15 }
  0x4d   : > { %p2911_p4 = scmp.ne.s32.totalorder %s3404_s15, %s2910_s30  ;;  %p2919_p10 = scmp.lt.s32.totalorder %s2910_s30, %s2910_s30 }
  0x4f   : > { %p2913_p6 = pnand %p2911_p4, %p3416_p7  ;;  %p2920_p11 = por %p2919_p10, %p2918_p9 }
  0x51   : > { %p2914_p8 = pneg %p2913_p6 }
  0x53   : > { %p2921_p12 = pnand %p2920_p11, %p2914_p8 }
  0x55   : > { %2924 = shalt.err (!%p2921_p12)
}
  0x56   : > { %2683 = dma.hbm_to_vmem [thread:$0]  (!%p3400_p5), %s4030_s5, 512, %s3404_s15, [#allocation14], %s4047_s19, %s4047_s19, %s4048_s20  }
  0x57   : > { %s2925_s27 = scalar_lea.hbm %s4032_s7, 512 }
  0x58   : > { %p2926_p13 = scmp.ne.s32.totalorder %s4032_s7, %s2925_s27  ;;  %p2932_p4 = scmp.lt.u32.totalorder %s2925_s27, %s4032_s7 }
  0x5a   : > { %p2928_p0 = pnand %p2926_p13, %p3416_p7 }
  0x5c   : > { %p2929_p1 = pneg %p2928_p0 }
  0x5e   : > { %p2934_p6 = pnand %p2932_p4, %p2929_p1 }
  0x60   : > { %2937 = shalt.err (!%p2934_p6)
}
  0x61   : > { %s2938_s18 = scalar_lea.vmem %s453_s17, 512  ;;  %p2946_p11 = scmp.lt.s32.totalorder %s453_s17, %s453_s17 }
  0x62   : > { %p2939_p8 = scmp.ne.s32.totalorder %s453_s17, %s2938_s18  ;;  %p2947_p12 = scmp.lt.s32.totalorder %s2938_s18, %s2938_s18 }
  0x64   : > { %p2941_p9 = pnand %p2939_p8, %p3416_p7  ;;  %p2948_p2 = por %p2947_p12, %p2946_p11 }
  0x66   : > { %p2942_p10 = pneg %p2941_p9 }
  0x68   : > { %p2949_p3 = pnand %p2948_p2, %p2942_p10 }
  0x6a   : > { %2952 = shalt.err (!%p2949_p3)
}
  0x6b   : > { %2689 = dma.hbm_to_vmem [thread:$0]  (!%p3400_p5), %s4032_s7, 512, %s453_s17, [#allocation17], %s4047_s19, %s4047_s19, %s4048_s20  }
  0x6c   : > { %s3265_s25 = smov [#allocation19]   ;;  %s2953_s27 = scalar_lea.hbm %s4034_s9, 1024 }
  0x6d   : > { %s478_s12 = sshll.u32 %s3265_s25, 4  ;;  %p2954_p2 = scmp.ne.s32.totalorder %s4034_s9, %s2953_s27  ;;  %s479_s12 = int_to_ptr.vmem [resolvable:$true] %s478_s12 }
  0x6e   : > { %p2960_p0 = scmp.lt.u32.totalorder %s2953_s27, %s4034_s9 }
  0x6f   : > { %p2956_p3 = pnand %p2954_p2, %p3416_p7 }
  0x71   : > { %p2957_p13 = pneg %p2956_p3 }
  0x73   : > { %p2962_p1 = pnand %p2960_p0, %p2957_p13 }
  0x75   : > { %2965 = shalt.err (!%p2962_p1)
}
  0x76   : > { %s2966_s17 = scalar_lea.vmem %s479_s12, 1024  ;;  %p2974_p9 = scmp.lt.s32.totalorder %s479_s12, %s479_s12 }
  0x77   : > { %p2967_p4 = scmp.ne.s32.totalorder %s479_s12, %s2966_s17  ;;  %p2975_p10 = scmp.lt.s32.totalorder %s2966_s17, %s2966_s17 }
  0x79   : > { %p2969_p6 = pnand %p2967_p4, %p3416_p7  ;;  %p2976_p11 = por %p2975_p10, %p2974_p9 }
  0x7b   : > { %p2970_p8 = pneg %p2969_p6 }
  0x7d   : > { %p2977_p12 = pnand %p2976_p11, %p2970_p8 }
  0x7f   : > { %2980 = shalt.err (!%p2977_p12)
}
  0x80   : > { %2695 = dma.hbm_to_vmem [thread:$0]  (!%p3400_p5), %s4034_s9, 1024, %s479_s12, [#allocation20], %s4047_s19, %s4047_s19, %s4048_s20  }
  0x81   : > { %s39_s30 = sadd.s32 1, %s3253_s22  ;;  %s3266_s25 = smov [#allocation4]  }
  0x82   : > { %p40_p2 = scmp.ge.s32.totalorder %s39_s30, 2  ;;  %s355_s21 = sshll.u32 %s3266_s25, 4  ;;  %s356_s21 = int_to_ptr.vmem [resolvable:$true] %s355_s21 }
  0x83   : > { %s2981_s24 = scalar_lea.hbm %s4025_s0, 64 }
  0x84   : > { %s4073_s30 = smov (%p40_p2, %s39_s30), 0  ;;  %p2982_p3 = scmp.ne.s32.totalorder %s4025_s0, %s2981_s24 }
  0x85   : > { %p2988_p1 = scmp.lt.u32.totalorder %s2981_s24, %s4025_s0 }
  0x86   : > { %p2984_p13 = pnand %p2982_p3, %p3416_p7 }
  0x88   : > { %p2985_p0 = pneg %p2984_p13 }
  0x8a   : > { %p2990_p4 = pnand %p2988_p1, %p2985_p0 }
  0x8c   : > { %2993 = shalt.err (!%p2990_p4)
}
  0x8d   : > { %s2994_s17 = scalar_lea.vmem %s356_s21, 64  ;;  %p3002_p10 = scmp.lt.s32.totalorder %s356_s21, %s356_s21 }
  0x8e   : > { %p2995_p6 = scmp.ne.s32.totalorder %s356_s21, %s2994_s17  ;;  %p3003_p11 = scmp.lt.s32.totalorder %s2994_s17, %s2994_s17 }
  0x90   : > { %p2997_p8 = pnand %p2995_p6, %p3416_p7  ;;  %p3004_p12 = por %p3003_p11, %p3002_p10 }
  0x92   : > { %p2998_p9 = pneg %p2997_p8 }
  0x94   : > { %p3005_p2 = pnand %p3004_p12, %p2998_p9 }
  0x96   : > { %3008 = shalt.err (!%p3005_p2)
}
  0x97   : > { %s3267_s18 = smov 32   ;;  %s3268_s15 = smov 2  }
  0x98   : > { %2668 = dma.hbm_to_vmem [thread:$0]  (!%p3400_p5), %s4025_s0, 64, %s356_s21, [#allocation5], %s3267_s18, %s3267_s18, %s3268_s15  }
  0x99   : > { %s3269_s27 = smov [#allocation9]   ;;  %s3009_s16 = scalar_lea.hbm %s4027_s2, 32 }
  0x9a   : > { %s387_s24 = sshll.u32 %s3269_s27, 4  ;;  %p3010_p3 = scmp.ne.s32.totalorder %s4027_s2, %s3009_s16  ;;  %s388_s24 = int_to_ptr.vmem [resolvable:$true] %s387_s24 }
  0x9b   : > { %p3016_p1 = scmp.lt.u32.totalorder %s3009_s16, %s4027_s2 }
  0x9c   : > { %p3012_p13 = pnand %p3010_p3, %p3416_p7 }
  0x9e   : > { %p3013_p0 = pneg %p3012_p13 }
  0xa0   : > { %p3018_p4 = pnand %p3016_p1, %p3013_p0 }
  0xa2   : > { %3021 = shalt.err (!%p3018_p4)
}
  0xa3   : > { %s3022_s21 = scalar_lea.vmem %s388_s24, 32  ;;  %p3030_p10 = scmp.lt.s32.totalorder %s388_s24, %s388_s24 }
  0xa4   : > { %p3023_p6 = scmp.ne.s32.totalorder %s388_s24, %s3022_s21  ;;  %p3031_p11 = scmp.lt.s32.totalorder %s3022_s21, %s3022_s21 }
  0xa6   : > { %p3025_p8 = pnand %p3023_p6, %p3416_p7  ;;  %p3032_p12 = por %p3031_p11, %p3030_p10 }
  0xa8   : > { %p3026_p9 = pneg %p3025_p8 }
  0xaa   : > { %p3033_p2 = pnand %p3032_p12, %p3026_p9 }
  0xac   : > { %3036 = shalt.err (!%p3033_p2)
}
  0xad   : > { %s3270_s18 = smov 16   ;;  %s3271_s15 = smov 1  }
  0xae   : > { %2674 = dma.hbm_to_vmem [thread:$0]  (!%p3400_p5), %s4027_s2, 32, %s388_s24, [#allocation8], %s3270_s18, %s3270_s18, %s3271_s15  }
  0xaf   : > { %s3272_s25 = smov [#allocation12]   ;;  %s3273_s27 = smov [#allocation15]  }
  0xb0   : > { %s413_s23 = sshll.u32 %s3272_s25, 4  ;;  %s439_s29 = sshll.u32 %s3273_s27, 4  ;;  %s414_s23 = int_to_ptr.vmem [resolvable:$true] %s413_s23  ;;  %s3577_s29 = int_to_ptr.vmem [resolvable:$true] %s439_s29 }
  0xb1   : > { %s3037_s12 = scalar_lea.hbm %s4029_s4, 32 }
  0xb2   : > { %p3038_p3 = scmp.ne.s32.totalorder %s4029_s4, %s3037_s12  ;;  %p3044_p1 = scmp.lt.u32.totalorder %s3037_s12, %s4029_s4 }
  0xb4   : > { %p3040_p13 = pnand %p3038_p3, %p3416_p7 }
  0xb6   : > { %p3041_p0 = pneg %p3040_p13 }
  0xb8   : > { %p3046_p4 = pnand %p3044_p1, %p3041_p0 }
  0xba   : > { %3049 = shalt.err (!%p3046_p4)
}
  0xbb   : > { %s3050_s20 = scalar_lea.vmem %s414_s23, 32  ;;  %p3058_p10 = scmp.lt.s32.totalorder %s414_s23, %s414_s23 }
  0xbc   : > { %p3051_p6 = scmp.ne.s32.totalorder %s414_s23, %s3050_s20  ;;  %p3059_p11 = scmp.lt.s32.totalorder %s3050_s20, %s3050_s20 }
  0xbe   : > { %p3053_p8 = pnand %p3051_p6, %p3416_p7  ;;  %p3060_p12 = por %p3059_p11, %p3058_p10 }
  0xc0   : > { %p3054_p9 = pneg %p3053_p8 }
  0xc2   : > { %p3061_p2 = pnand %p3060_p12, %p3054_p9 }
  0xc4   : > { %3064 = shalt.err (!%p3061_p2)
}
  0xc5   : > { %2680 = dma.hbm_to_vmem [thread:$0]  (!%p3400_p5), %s4029_s4, 32, %s414_s23, [#allocation11], %s3270_s18, %s3270_s18, %s3271_s15  }
  0xc6   : > { %s3065_s12 = scalar_lea.hbm %s4031_s6, 32 }
  0xc7   : > { %p3066_p3 = scmp.ne.s32.totalorder %s4031_s6, %s3065_s12  ;;  %p3072_p1 = scmp.lt.u32.totalorder %s3065_s12, %s4031_s6 }
  0xc9   : > { %p3068_p13 = pnand %p3066_p3, %p3416_p7 }
  0xcb   : > { %p3069_p0 = pneg %p3068_p13 }
  0xcd   : > { %p3074_p4 = pnand %p3072_p1, %p3069_p0 }
  0xcf   : > { %3077 = shalt.err (!%p3074_p4)
}
  0xd0   : > { %s3078_s23 = scalar_lea.vmem %s3577_s29, 32  ;;  %p3086_p10 = scmp.lt.s32.totalorder %s3577_s29, %s3577_s29 }
  0xd1   : > { %p3079_p6 = scmp.ne.s32.totalorder %s3577_s29, %s3078_s23  ;;  %p3087_p11 = scmp.lt.s32.totalorder %s3078_s23, %s3078_s23 }
  0xd3   : > { %p3081_p8 = pnand %p3079_p6, %p3416_p7  ;;  %p3088_p12 = por %p3087_p11, %p3086_p10 }
  0xd5   : > { %p3082_p9 = pneg %p3081_p8 }
  0xd7   : > { %p3089_p2 = pnand %p3088_p12, %p3082_p9 }
  0xd9   : > { %3092 = shalt.err (!%p3089_p2)
}
  0xda   : > { %2686 = dma.hbm_to_vmem [thread:$0]  (!%p3400_p5), %s4031_s6, 32, %s3577_s29, [#allocation14], %s3270_s18, %s3270_s18, %s3271_s15  }
  0xdb   : > { %s3274_s27 = smov [#allocation18]   ;;  %s3275_s16 = smov [#allocation21]  }
  0xdc   : > { %s465_s14 = sshll.u32 %s3274_s27, 4  ;;  %s491_s12 = sshll.u32 %s3275_s16, 4  ;;  %s466_s14 = int_to_ptr.vmem [resolvable:$true] %s465_s14  ;;  %s3626_s12 = int_to_ptr.vmem [resolvable:$true] %s491_s12 }
  0xdd   : > { %s3093_s19 = scalar_lea.hbm %s4033_s8, 32 }
  0xde   : > { %p3094_p3 = scmp.ne.s32.totalorder %s4033_s8, %s3093_s19  ;;  %p3100_p1 = scmp.lt.u32.totalorder %s3093_s19, %s4033_s8 }
  0xe0   : > { %p3096_p13 = pnand %p3094_p3, %p3416_p7 }
  0xe2   : > { %p3097_p0 = pneg %p3096_p13 }
  0xe4   : > { %p3102_p4 = pnand %p3100_p1, %p3097_p0 }
  0xe6   : > { %3105 = shalt.err (!%p3102_p4)
}
  0xe7   : > { %s3106_s25 = scalar_lea.vmem %s466_s14, 32  ;;  %p3114_p10 = scmp.lt.s32.totalorder %s466_s14, %s466_s14 }
  0xe8   : > { %p3107_p6 = scmp.ne.s32.totalorder %s466_s14, %s3106_s25  ;;  %p3115_p11 = scmp.lt.s32.totalorder %s3106_s25, %s3106_s25 }
  0xea   : > { %p3109_p8 = pnand %p3107_p6, %p3416_p7  ;;  %p3116_p12 = por %p3115_p11, %p3114_p10 }
  0xec   : > { %p3110_p9 = pneg %p3109_p8 }
  0xee   : > { %p3117_p2 = pnand %p3116_p12, %p3110_p9 }
  0xf0   : > { %3120 = shalt.err (!%p3117_p2)
}
  0xf1   : > { %2692 = dma.hbm_to_vmem [thread:$0]  (!%p3400_p5), %s4033_s8, 32, %s466_s14, [#allocation17], %s3270_s18, %s3270_s18, %s3271_s15  }
  0xf2   : > { %s3121_s19 = scalar_lea.hbm %s4035_s10, 32 }
  0xf3   : > { %p3122_p3 = scmp.ne.s32.totalorder %s4035_s10, %s3121_s19  ;;  %p3128_p1 = scmp.lt.u32.totalorder %s3121_s19, %s4035_s10 }
  0xf5   : > { %p3124_p13 = pnand %p3122_p3, %p3416_p7 }
  0xf7   : > { %p3125_p0 = pneg %p3124_p13 }
  0xf9   : > { %p3130_p4 = pnand %p3128_p1, %p3125_p0 }
  0xfb   : > { %3133 = shalt.err (!%p3130_p4)
}
  0xfc   : > { %s3134_s14 = scalar_lea.vmem %s3626_s12, 32  ;;  %p3142_p10 = scmp.lt.s32.totalorder %s3626_s12, %s3626_s12 }
  0xfd   : > { %p3135_p6 = scmp.ne.s32.totalorder %s3626_s12, %s3134_s14  ;;  %p3143_p11 = scmp.lt.s32.totalorder %s3134_s14, %s3134_s14 }
  0xff   : > { %p3137_p8 = pnand %p3135_p6, %p3416_p7  ;;  %p3144_p12 = por %p3143_p11, %p3142_p10 }
 0x101   : > { %p3138_p9 = pneg %p3137_p8 }
 0x103   : > { %p3145_p2 = pnand %p3144_p12, %p3138_p9 }
 0x105   : > { %3148 = shalt.err (!%p3145_p2)
}
 0x106   : > { %2698 = dma.hbm_to_vmem [thread:$0]  (!%p3400_p5), %s4035_s10, 32, %s3626_s12, [#allocation20], %s3270_s18, %s3270_s18, %s3271_s15  }
 0x107   : > { %s3276_s16 = smov [#allocation22]   ;;  %s3149_s24 = scalar_lea.hbm %s4036_s11, 128 }
 0x108   : > { %s504_s17 = sshll.u32 %s3276_s16, 4  ;;  %p3150_p3 = scmp.ne.s32.totalorder %s4036_s11, %s3149_s24  ;;  %s505_s17 = int_to_ptr.vmem [resolvable:$true] %s504_s17 }
 0x109   : > { %p3156_p1 = scmp.lt.u32.totalorder %s3149_s24, %s4036_s11 }
 0x10a   : > { %p3152_p13 = pnand %p3150_p3, %p3416_p7 }
 0x10c   : > { %p3153_p0 = pneg %p3152_p13 }
 0x10e   : > { %p3158_p4 = pnand %p3156_p1, %p3153_p0 }
 0x110   : > { %3161 = shalt.err (!%p3158_p4)
}
 0x111   : > { %s3162_s18 = scalar_lea.vmem %s505_s17, 128  ;;  %p3170_p10 = scmp.lt.s32.totalorder %s505_s17, %s505_s17 }
 0x112   : > { %p3163_p6 = scmp.ne.s32.totalorder %s505_s17, %s3162_s18  ;;  %p3171_p11 = scmp.lt.s32.totalorder %s3162_s18, %s3162_s18 }
 0x114   : > { %p3165_p8 = pnand %p3163_p6, %p3416_p7  ;;  %p3172_p12 = por %p3171_p11, %p3170_p10 }
 0x116   : > { %p3166_p9 = pneg %p3165_p8 }
 0x118   : > { %p3173_p2 = pnand %p3172_p12, %p3166_p9 }
 0x11a   : > { %3176 = shalt.err (!%p3173_p2)
}
 0x11b   : > { %s4057_s15 = smov 4   ;;  %s4058_s12 = smov 64  }
 0x11c   : > { %2701 = dma.hbm_to_vmem [thread:$0]  (!%p3400_p5), %s4036_s11, 128, %s505_s17, [#allocation23], %s4058_s12, %s4058_s12, %s4057_s15  }
 0x11d   : > { %p4059_p3 = scmp.ne.s32.totalorder %s4054_s28, 0 }
 0x11e   : > { %s4060_s26 = sld [smem:[#allocation35_spill]] (!%p4059_p3) }
 0x11f   : > { %520 = sbr.rel (%p4059_p3) target bundleno = 4542 (0x11be), region = 68 }
 0x124   : > { %p4061_p7 = scmp.ne.s32.totalorder (!%p4059_p3), %s4060_s26, 0 }
 0x126   : > { %3216 = dma.done.wait (%p4061_p7), [#allocation5], 64  }
 0x127   : > { %3218 = vsyncadd (%p4061_p7), [#allocation5], 4294967232 }
 0x128   : > { %3220 = dma.done.wait (%p4061_p7), [#allocation8], 160  }
 0x129   : > { %3222 = vsyncadd (%p4061_p7), [#allocation8], 4294967136 }
 0x12a   : > { %3224 = dma.done.wait (%p4061_p7), [#allocation11], 544  }
 0x12b   : > { %3226 = vsyncadd (%p4061_p7), [#allocation11], 4294966752 }
 0x12c   : > { %3228 = dma.done.wait (%p4061_p7), [#allocation14], 544  }
 0x12d   : > { %3230 = vsyncadd (%p4061_p7), [#allocation14], 4294966752 }
 0x12e   : > { %3232 = dma.done.wait (%p4061_p7), [#allocation17], 544  }
 0x12f   : > { %3234 = vsyncadd (%p4061_p7), [#allocation17], 4294966752 }
 0x130   : > { %3236 = dma.done.wait (%p4061_p7), [#allocation20], 1056  }
 0x131   : > { %3238 = vsyncadd (%p4061_p7), [#allocation20], 4294966240 }
 0x132   : > { %3240 = dma.done.wait (%p4061_p7), [#allocation23], 128  }
 0x133   : > { %3242 = vsyncadd (%p4061_p7), [#allocation23], 4294967168  ;;  %s4062_s28 = sld [smem:[#allocation33_spill]] }
 0x139   : > { %p2381_p5 = scmp.ne.s32.totalorder %s4062_s28, 0 }
 0x13a   : > { %v605_v0 = vld [vmem:[#allocation4] sm:$0x3] (!%p2381_p5)  ;;  %vm609_vm0 = vcmask (!%p2381_p5), 257024   ;;  %v606_v1 = vld [vmem:[#allocation4 + $0x2] sm:$0x3] (!%p2381_p5) }
 0x13b   : > { %604 = sbr.rel (%p2381_p5) target bundleno = 322 (0x142), region = 120  ;;  %v607_v2 = vunpack.c.l.bf16 (!%p2381_p5), %v605_v0  ;;  %v608_v3 = vunpack.c.l.bf16 (!%p2381_p5), %v606_v1 }
 0x13d   : > { %610 = vst.msk [vmem:[#allocation2] sm:$0xf] (!%p2381_p5), %vm609_vm0, %v607_v2  ;;  %611 = vst.msk [vmem:[#allocation2 + $0x4] sm:$0xf] (!%p2381_p5), %vm609_vm0, %v608_v3 }
 0x142 PF: > { %s4063_s13 = sld [smem:[#allocation33_spill]]  ;;  %v3277_v5 = vmov 0.0   ;;  %vm3278_vm1 = vmmov 0   ;;  %vm678_vm2 = vcmask 261120   ;;  %v3279_v11 = vmov 1983009808  }
 0x143   : > { %2481 = vmatprep.subr.bf16.mxu0 %v3277_v5  ;;  %2485 = vmatprep.mubr.msk.bf16.mxu0 %vm3278_vm1, %v3277_v5  ;;  %v725_v12 = vunpack.c.l.s4 %v3279_v11  ;;  %v727_v13 = vlaneseq  ;;  %v612_v27 = vld [vmem:[#allocation7] sm:$0xf]  ;;  %s3280_s23 = smov 96   ;;  %v3281_v28 = vmov 0   ;;  %v613_v30 = vld [vmem:[#allocation7 + $0x4] sm:$0xf] }
 0x144   : > { %v3730_v4 = vld [vmem:[#allocation2] sm:$0xf]  ;;  %v3735_v6 = vld [vmem:[#allocation2 + $0x4] sm:$0xf]  ;;  %2489 = vmatprep.subr.bf16.mxu1 %v3277_v5  ;;  %2491 = vmatprep.mubr.msk.bf16.mxu1 %vm3278_vm1, %v3277_v5  ;;  %vm741_vm3 = vcmask 64512   ;;  %vm847_vm4 = vcmask 27648  }
 0x145   : > { %v648_v8 = vcombine.low %v3730_v4, %v3735_v6  ;;  %v726_v14 = vunpack.c.0.s8 %v725_v12  ;;  %v3750_v15 = vshrl.u32 %v727_v13, 7  ;;  %2792 = vset.pattern.permute.xlu1 %v3281_v28  ;;  %2793 = vset.pattern.permute.xlu0 %v3281_v28  ;;  %v2382_v35 = vld [vmem:[#allocation9] ss:$0 sm:$0xff]  ;;  %v2383_v38 = vld [vmem:[#allocation9 + $0x1] ss:$0 sm:$0xff]  ;;  %s3282_s20 = smov 64  }
 0x146   : > { %618 = vperm.xlu1 %2792, %v612_v27   ;;  %s3283_s29 = smov 88   ;;  %s3284_s14 = smov 120   ;;  %vm878_vm5 = vcmask 1041408   ;;  %vm874_vm6 = vcmask 31744   ;;  %vm972_vm7 = vcmask 58368   ;;  %vm1223_vm8 = vcmask 123968  }
 0x147   : > { %v650_v10 = vpack.c.bf16 %v648_v8, %v648_v8  ;;  %v3754_v19 = vsub.s32 %v726_v14, %v3750_v15  ;;  %s3285_s18 = smov 56   ;;  %s3286_s15 = smov 80   ;;  %vm1474_vm9 = vcmask 189568   ;;  %vm1725_vm10 = vcmask 255168  }
 0x148   : > { %s3728_s16 = sshll.u32 %s4063_s13, 4  ;;  %s658_s24 = scalar_lea.vmem [#allocation12], %s4063_s13  ;;  %vm2012_vm11 = vcmask 523264   ;;  %vm2137_vm12 = vcmask 257024  }
 0x149   : > { %s653_s17 = scalar_lea.vmem [#allocation10], %s3728_s16  ;;  %s1731_s21 = scalar_lea.vmem [#allocation13], %s3728_s16  ;;  %v2388_v16 = vld [vmem:[%s658_s24] ss:$0 sm:$0xff] }
 0x14a   : > { %v2794_v7 = vld [vmem:[%s653_s17] sm:$0xff]   ;;  %v2795_v9 = vld [vmem:[%s653_s17 + $0x8] sm:$0xff]   ;;  %s1899_s19 = scalar_lea.vmem [#allocation16], %s3728_s16  ;;  %623 = vperm.xlu1 %2792, %v613_v30   ;;  %s3287_s12 = smov 112  }
 0x14b   : > { %2482 = vmatpush3.bf16.msra.mxu0 %v2794_v7  ;;  %s3288_s25 = smov 48   ;;  %s3289_s27 = smov 72  }
 0x14c   : > { %2483 = vmatprep.subr.bf16.mxu0 %v3277_v5  ;;  %s3290_s26 = smov 104   ;;  %s3291_s28 = smov 40  }
 0x14d   : > { %s3292_s17 = smov 8   ;;  %s3293_s24 = smov 16  }
 0x14e   : > { %s2386_s16 = sshll.u32 %s4063_s13, 2  ;;  %p2426_p13 = scmp.ne.s32.totalorder %s4063_s13, 1 }
 0x14f   : > { %2484 = vmatpush3.bf16.msra.mxu0 %v2795_v9  ;;  %vm2164_vm13 = vcmask (!%p2426_p13), 253952  }
 0x150   : > { %2495 = vmatprep.subr.bf16.mxu0 %v3277_v5 }
 0x152   : > { %2486 = vmatmul.mubr.msk.bf16.vlgmr.msra.gmra.mrb[0].mxu0 %vm678_vm2, %v650_v10 }
 0x153   : > { %2497 = vmatprep.mubr.msk.bf16.mxu0 %vm3278_vm1, %v3277_v5 }
 0x1c5   : > { %v3775_v36 = vpop.permute.xlu1 %618 }
 0x1c6   : > { %v638_v37 = vmul.f32 %v2382_v35, %v3775_v36 }
 0x1c8   : > { %v2384_v40 = vadd.f32 -1.0, %v638_v37 }
 0x1c9   : > { %v3778_v39 = vpop.permute.xlu1 %623 }
 0x1ca   : > { %v639_v41 = vmul.f32 %v2383_v38, %v3778_v39  ;;  %v3781_v42 = vmul.f32 1e+09, %v2384_v40 }
 0x1cc   : > { %v2385_v44 = vadd.f32 -1.0, %v639_v41 }
 0x1ce   : > { %v3784_v51 = vmul.f32 1e+09, %v2385_v44 }
 0x225   : > { %v716_v17 = vpop.f32.mrb[0].mxu0 }
 0x226   : > { %v717_v18 = vadd.f32 %v2388_v16, %v716_v17  ;;  %v2487_v20 = vpop.f32.mrb[1].mxu0 }
 0x227   : > { %v719_v21 = vpop.f32.mrb[2].mxu0 }
 0x228   : > { %v722_v22 = vpack.c.bf16 %v717_v18, %v717_v18  ;;  %v2488_v23 = vpop.f32.mrb[3].mxu0 }
 0x22a   : > { %v730_v24 = vrot.slane %v722_v22, %v3754_v19 }
 0x22c   : > { %v731_v25 = vcombine.high %v730_v24, %v730_v24  ;;  %v3758_v26 = vrot.slane %v730_v24, %v3754_v19 }
 0x22e   : > { %739 = vrot.lane.b32.xlu0 %v3758_v26, %s3280_s23  ;;  %v3762_v29 = vrot.slane %v731_v25, %v3754_v19 }
 0x232   : > { %795 = vrot.lane.b32.xlu0 %v3762_v29, %s3280_s23  ;;  %s3294_s23 = smov 24  }
 0x2a0   : > { %v740_v31 = vpop.permute.xlu0 %739 }
 0x2a1   : > { %v746_v32 = vsel %vm741_vm3, %v740_v31, 0 }
 0x2a2   : > { %2490 = vmatpush3.bf16.xpose.msra.mxu1 %v746_v32 }
 0x2a3   : > { %2501 = vmatprep.subr.bf16.mxu1 %v3277_v5 }
 0x2a4   : > { %v796_v33 = vpop.permute.xlu0 %795 }
 0x2a5   : > { %v801_v34 = vsel %vm741_vm3, %v796_v33, 0 }
 0x2a6   : > { %2496 = vmatpush3.bf16.xpose.msra.mxu0 %v801_v34 }
 0x2a7   : > { %2507 = vmatprep.subr.bf16.mxu0 %v3277_v5 }
 0x2a9   : > { %2492 = vmatmul.mubr.msk.bf16.vlgmr.msra.gmra.mrb[0].mxu1 %vm741_vm3, %v730_v24 }
 0x2aa   : > { %2503 = vmatprep.mubr.msk.bf16.mxu1 %vm3278_vm1, %v3277_v5 }
 0x2ad   : > { %2498 = vmatmul.mubr.msk.bf16.vlgmr.msra.gmra.mrb[4].mxu0 %vm741_vm3, %v731_v25 }
 0x2ae   : > { %2509 = vmatprep.mubr.msk.bf16.mxu0 %vm3278_vm1, %v3277_v5 }
 0x37c   : > { %v782_v43 = vpop.f32.mrb[0].mxu1 }
 0x37d   : > { %v843_v45 = vmul.f32 0.35355338, %v782_v43  ;;  %v2493_v46 = vpop.f32.mrb[1].mxu1 }
 0x37e   : > { %v785_v47 = vpop.f32.mrb[2].mxu1 }
 0x37f   : > { %v2494_v48 = vpop.f32.mrb[3].mxu1  ;;  %v845_v49 = vadd.f32 %v843_v45, %v3781_v42 }
 0x380   : > { %v837_v50 = vpop.f32.mrb[4].mxu0 }
 0x381   : > { %v844_v52 = vmul.f32 0.35355338, %v837_v50  ;;  %v2499_v53 = vpop.f32.mrb[5].mxu0  ;;  %v848_v54 = vsel %vm847_vm4, %v845_v49, -inf }
 0x382   : > { %v840_v55 = vpop.f32.mrb[6].mxu0  ;;  %849 = vmax.xlane.f32.xlu0 %v848_v54 }
 0x383   : > { %v2500_v56 = vpop.f32.mrb[7].mxu0  ;;  %v846_v57 = vadd.f32 %v844_v52, %v3784_v51 }
 0x385   : > { %v851_v58 = vsel %vm847_vm4, %v846_v57, -inf }
 0x386   : > { %852 = vmax.xlane.f32.xlu1 %v851_v58 }
 0x397   : > { %872 = vrot.lane.b32.xlu1 %v3758_v26, %s3282_s20 }
 0x39b   : > { %977 = vrot.lane.b32.xlu1 %v3758_v26, %s3283_s29 }
 0x39f   : > { %1027 = vrot.lane.b32.xlu1 %v3762_v29, %s3283_s29 }
 0x3a3   : > { %1025 = vrot.lane.b32.xlu1 %v3762_v29, %s3284_s14 }
 0x40f   : > { %v850_v59 = vpop.xlane.xlu0 %849 }
 0x410   : > { %v854_v60 = vsub.f32 %v845_v49, %v850_v59 }
 0x412   : > { %v856_v61 = vmul.f32 1.442695, %v854_v60 }
 0x413   : > { %v853_v62 = vpop.xlane.xlu1 %852 }
 0x414   : > { %2805 = vpow2.f32 %v856_v61  ;;  %v855_v63 = vsub.f32 %v846_v57, %v853_v62 }
 0x416   : > { %v858_v0 = vmul.f32 1.442695, %v855_v63 }
 0x417   : > { %v873_v1 = vpop.permute.xlu1 %872 }
 0x418   : > { %2807 = vpow2.f32 %v858_v0  ;;  %v880_v2 = vsel %vm878_vm5, %v873_v1, 0 }
 0x419   : > { %2502 = vmatpush3.bf16.msra.mxu1 %v880_v2 }
 0x41a   : > { %2513 = vmatprep.subr.bf16.mxu1 %v3277_v5 }
 0x41b   : > { %v978_v16 = vpop.permute.xlu1 %977 }
 0x41c   : > { %v983_v21 = vsel %vm741_vm3, %v978_v16, 0 }
 0x41e   : > { %v2806_v3 = vpop.eup %2805 }
 0x41f   : > { %v860_v7 = vsel %vm847_vm4, %v2806_v3, 0.0  ;;  %v1028_v23 = vpop.permute.xlu1 %1027 }
 0x420   : > { %861 = vadd.xlane.f32.xlu0 %v860_v7  ;;  %v1033_v25 = vsel %vm741_vm3, %v1028_v23, 0 }
 0x422   : > { %v2808_v8 = vpop.eup %2807 }
 0x423   : > { %v863_v9 = vsel %vm847_vm4, %v2808_v8, 0.0  ;;  %v1026_v28 = vpop.permute.xlu1 %1025 }
 0x424   : > { %864 = vadd.xlane.f32.xlu0 %v863_v9 }
 0x43a   : > { %922 = vrot.lane.b32.xlu0 %v3762_v29, %s3282_s20  ;;  %s2434_s20 = sshll.u32 %s4063_s13, 5 }
 0x43b   : > { %s3952_s29 = scalar_lea.vmem [#allocation19], %s2434_s20 }
 0x43e   : > { %975 = vrot.lane.b32.xlu0 %v3758_v26, %s3284_s14  ;;  %s1904_s14 = scalar_lea.vmem [#allocation18], %s4063_s13 }
 0x4ad   : > { %v862_v10 = vpop.xlane.xlu0 %861 }
 0x4ae   : > { %2809 = vrcp.f32 %v862_v10 }
 0x4b1   : > { %v865_v11 = vpop.xlane.xlu0 %864 }
 0x4b2   : > { %2811 = vrcp.f32 %v865_v11 }
 0x4b5   : > { %v923_v12 = vpop.permute.xlu0 %922 }
 0x4b6   : > { %v928_v13 = vsel %vm878_vm5, %v923_v12, 0 }
 0x4b7   : > { %2508 = vmatpush3.bf16.msra.mxu0 %v928_v13 }
 0x4b8   : > { %v2810_v14 = vpop.eup %2809  ;;  %2519 = vmatprep.subr.bf16.mxu0 %v3277_v5 }
 0x4b9   : > { %v868_v17 = vmul.f32 %v2810_v14, %v2806_v3  ;;  %v976_v27 = vpop.permute.xlu0 %975 }
 0x4bb   : > { %v870_v18 = vpack.c.bf16 %v868_v17, %v868_v17 }
 0x4bc   : > { %v2812_v20 = vpop.eup %2811 }
 0x4bd   : > { %v869_v22 = vmul.f32 %v2812_v20, %v2808_v8  ;;  %2504 = vmatmul.mubr.msk.bf16.vlgmr.msra.gmra.mrb[4].mxu1 %vm874_vm6, %v870_v18 }
 0x4be   : > { %2514 = vmatpush3.bf16.xpose.msra.mxu1 %v983_v21  ;;  %2515 = vmatprep.mubr.msk.bf16.mxu1 %vm3278_vm1, %v3277_v5 }
 0x4bf   : > { %v871_v24 = vpack.c.bf16 %v869_v22, %v869_v22  ;;  %2525 = vmatprep.subr.bf16.mxu1 %v3277_v5 }
 0x4c1   : > { %2510 = vmatmul.mubr.msk.bf16.vlgmr.msra.gmra.mrb[8].mxu0 %vm874_vm6, %v871_v24 }
 0x4c2   : > { %2520 = vmatpush3.bf16.xpose.msra.mxu0 %v1033_v25  ;;  %2521 = vmatprep.mubr.msk.bf16.mxu0 %vm3278_vm1, %v3277_v5 }
 0x4c3   : > { %2531 = vmatprep.subr.bf16.mxu0 %v3277_v5 }
 0x4c5   : > { %2516 = vmatmul.mubr.msk.bf16.vlgmr.msra.gmra.mrb[8].mxu1 %vm741_vm3, %v976_v27 }
 0x4c6   : > { %2527 = vmatprep.mubr.msk.bf16.mxu1 %vm3278_vm1, %v3277_v5 }
 0x4c9   : > { %2522 = vmatmul.mubr.msk.bf16.vlgmr.msra.gmra.mrb[12].mxu0 %vm741_vm3, %v1026_v28 }
 0x4ca   : > { %2533 = vmatprep.mubr.msk.bf16.mxu0 %vm3278_vm1, %v3277_v5 }
 0x590   : > { %v916_v30 = vpop.f32.mrb[4].mxu1 }
 0x591   : > { %v970_v31 = vpack.c.bf16 %v916_v30, %v916_v30  ;;  %v2505_v32 = vpop.f32.mrb[5].mxu1 }
 0x592   : > { %v919_v33 = vpop.f32.mrb[6].mxu1 }
 0x593   : > { %973 = vst.msk [vmem:[#allocation3] sm:$0x3] %vm972_vm7, %v970_v31  ;;  %v2506_v34 = vpop.f32.mrb[7].mxu1 }
 0x594   : > { %v964_v35 = vpop.f32.mrb[8].mxu0 }
 0x595   : > { %v971_v37 = vpack.c.bf16 %v964_v35, %v964_v35  ;;  %v2511_v38 = vpop.f32.mrb[9].mxu0 }
 0x596   : > { %v967_v40 = vpop.f32.mrb[10].mxu0 }
 0x597   : > { %974 = vst.msk [vmem:[#allocation3 + $0x2] sm:$0x3] %vm972_vm7, %v971_v37  ;;  %v2512_v41 = vpop.f32.mrb[11].mxu0 }
 0x598   : > { %v1019_v43 = vpop.f32.mrb[8].mxu1 }
 0x599   : > { %v1075_v44 = vmul.f32 0.35355338, %v1019_v43  ;;  %v2517_v45 = vpop.f32.mrb[9].mxu1 }
 0x59a   : > { %v1022_v46 = vpop.f32.mrb[10].mxu1 }
 0x59b   : > { %v2518_v47 = vpop.f32.mrb[11].mxu1  ;;  %v1077_v48 = vadd.f32 %v1075_v44, %v3781_v42 }
 0x59c   : > { %v1069_v49 = vpop.f32.mrb[12].mxu0 }
 0x59d   : > { %v1076_v50 = vmul.f32 0.35355338, %v1069_v49  ;;  %v2523_v52 = vpop.f32.mrb[13].mxu0  ;;  %v1079_v53 = vsel %vm847_vm4, %v1077_v48, -inf }
 0x59e   : > { %1080 = vmax.xlane.f32.xlu0 %v1079_v53  ;;  %v1072_v54 = vpop.f32.mrb[14].mxu0 }
 0x59f   : > { %v2524_v55 = vpop.f32.mrb[15].mxu0  ;;  %v1078_v56 = vadd.f32 %v1076_v50, %v3784_v51 }
 0x5a1   : > { %v1082_v57 = vsel %vm847_vm4, %v1078_v56, -inf }
 0x5a2   : > { %1083 = vmax.xlane.f32.xlu1 %v1082_v57 }
 0x5b3   : > { %1103 = vrot.lane.b32.xlu1 %v3758_v26, %s3285_s18 }
 0x5b7   : > { %1228 = vrot.lane.b32.xlu1 %v3758_v26, %s3286_s15 }
 0x5bb   : > { %1278 = vrot.lane.b32.xlu1 %v3762_v29, %s3286_s15 }
 0x5bf   : > { %1276 = vrot.lane.b32.xlu1 %v3762_v29, %s3287_s12 }
 0x62b   : > { %v1081_v58 = vpop.xlane.xlu0 %1080 }
 0x62c   : > { %v1085_v59 = vsub.f32 %v1077_v48, %v1081_v58 }
 0x62e   : > { %v1087_v60 = vmul.f32 1.442695, %v1085_v59 }
 0x62f   : > { %v1084_v61 = vpop.xlane.xlu1 %1083 }
 0x630   : > { %2813 = vpow2.f32 %v1087_v60  ;;  %v1086_v62 = vsub.f32 %v1078_v56, %v1084_v61 }
 0x632   : > { %v1089_v63 = vmul.f32 1.442695, %v1086_v62 }
 0x633   : > { %v1104_v0 = vpop.permute.xlu1 %1103 }
 0x634   : > { %2815 = vpow2.f32 %v1089_v63  ;;  %v1109_v1 = vsel %vm878_vm5, %v1104_v0, 0 }
 0x635   : > { %2526 = vmatpush3.bf16.msra.mxu1 %v1109_v1 }
 0x636   : > { %2537 = vmatprep.subr.bf16.mxu1 %v3277_v5 }
 0x637   : > { %v1229_v14 = vpop.permute.xlu1 %1228 }
 0x638   : > { %v1234_v20 = vsel %vm741_vm3, %v1229_v14, 0 }
 0x63a   : > { %v2814_v2 = vpop.eup %2813 }
 0x63b   : > { %v1091_v3 = vsel %vm847_vm4, %v2814_v2, 0.0  ;;  %v1279_v22 = vpop.permute.xlu1 %1278 }
 0x63c   : > { %1092 = vadd.xlane.f32.xlu0 %v1091_v3  ;;  %v1284_v24 = vsel %vm741_vm3, %v1279_v22, 0 }
 0x63e   : > { %v2816_v7 = vpop.eup %2815 }
 0x63f   : > { %v1094_v8 = vsel %vm847_vm4, %v2816_v7, 0.0  ;;  %v1277_v27 = vpop.permute.xlu1 %1276 }
 0x640   : > { %1095 = vadd.xlane.f32.xlu0 %v1094_v8 }
 0x656   : > { %1151 = vrot.lane.b32.xlu0 %v3762_v29, %s3285_s18  ;;  %s1980_s18 = scalar_lea.vmem [#allocation21], %s4063_s13 }
 0x65a   : > { %1226 = vrot.lane.b32.xlu0 %v3758_v26, %s3287_s12 }
 0x6c9   : > { %v1093_v9 = vpop.xlane.xlu0 %1092 }
 0x6ca   : > { %2817 = vrcp.f32 %v1093_v9 }
 0x6cd   : > { %v1096_v10 = vpop.xlane.xlu0 %1095 }
 0x6ce   : > { %2819 = vrcp.f32 %v1096_v10 }
 0x6d1   : > { %v1152_v11 = vpop.permute.xlu0 %1151 }
 0x6d2   : > { %v1157_v12 = vsel %vm878_vm5, %v1152_v11, 0 }
 0x6d3   : > { %2532 = vmatpush3.bf16.msra.mxu0 %v1157_v12 }
 0x6d4   : > { %v2818_v13 = vpop.eup %2817  ;;  %2543 = vmatprep.subr.bf16.mxu0 %v3277_v5 }
 0x6d5   : > { %v1099_v16 = vmul.f32 %v2818_v13, %v2814_v2  ;;  %v1227_v25 = vpop.permute.xlu0 %1226 }
 0x6d7   : > { %v1101_v17 = vpack.c.bf16 %v1099_v16, %v1099_v16 }
 0x6d8   : > { %v2820_v18 = vpop.eup %2819 }
 0x6d9   : > { %v1100_v21 = vmul.f32 %v2820_v18, %v2816_v7  ;;  %2528 = vmatmul.mubr.msk.bf16.vlgmr.msra.gmra.mrb[12].mxu1 %vm874_vm6, %v1101_v17 }
 0x6da   : > { %2538 = vmatpush3.bf16.xpose.msra.mxu1 %v1234_v20  ;;  %2539 = vmatprep.mubr.msk.bf16.mxu1 %vm3278_vm1, %v3277_v5 }
 0x6db   : > { %v1102_v23 = vpack.c.bf16 %v1100_v21, %v1100_v21  ;;  %2549 = vmatprep.subr.bf16.mxu1 %v3277_v5 }
 0x6dd   : > { %2534 = vmatmul.mubr.msk.bf16.vlgmr.msra.gmra.mrb[16].mxu0 %vm874_vm6, %v1102_v23 }
 0x6de   : > { %2544 = vmatpush3.bf16.xpose.msra.mxu0 %v1284_v24  ;;  %2545 = vmatprep.mubr.msk.bf16.mxu0 %vm3278_vm1, %v3277_v5 }
 0x6df   : > { %2555 = vmatprep.subr.bf16.mxu0 %v3277_v5 }
 0x6e1   : > { %2540 = vmatmul.mubr.msk.bf16.vlgmr.msra.gmra.mrb[16].mxu1 %vm741_vm3, %v1227_v25 }
 0x6e2   : > { %2551 = vmatprep.mubr.msk.bf16.mxu1 %vm3278_vm1, %v3277_v5 }
 0x6e5   : > { %2546 = vmatmul.mubr.msk.bf16.vlgmr.msra.gmra.mrb[20].mxu0 %vm741_vm3, %v1277_v27 }
 0x6e6   : > { %2557 = vmatprep.mubr.msk.bf16.mxu0 %vm3278_vm1, %v3277_v5 }
 0x7ac   : > { %v3849_v28 = vpop.f32.mrb[12].mxu1 }
 0x7ad   : > { %v2529_v30 = vpop.f32.mrb[13].mxu1 }
 0x7ae   : > { %v1148_v31 = vpop.f32.mrb[14].mxu1 }
 0x7af   : > { %v2530_v32 = vpop.f32.mrb[15].mxu1 }
 0x7b0   : > { %v3851_v33 = vpop.f32.mrb[16].mxu0 }
 0x7b1   : > { %v2535_v34 = vpop.f32.mrb[17].mxu0 }
 0x7b2   : > { %v1196_v35 = vpop.f32.mrb[18].mxu0 }
 0x7b3   : > { %v2536_v37 = vpop.f32.mrb[19].mxu0 }
 0x7b4   : > { %v1270_v38 = vpop.f32.mrb[16].mxu1 }
 0x7b5   : > { %v1326_v40 = vmul.f32 0.35355338, %v1270_v38  ;;  %v2541_v41 = vpop.f32.mrb[17].mxu1 }
 0x7b6   : > { %v1273_v43 = vpop.f32.mrb[18].mxu1 }
 0x7b7   : > { %v2542_v44 = vpop.f32.mrb[19].mxu1  ;;  %v1328_v45 = vadd.f32 %v1326_v40, %v3781_v42 }
 0x7b8   : > { %v1320_v46 = vpop.f32.mrb[20].mxu0 }
 0x7b9   : > { %v1327_v47 = vmul.f32 0.35355338, %v1320_v46  ;;  %v2547_v48 = vpop.f32.mrb[21].mxu0  ;;  %v1330_v49 = vsel %vm847_vm4, %v1328_v45, -inf }
 0x7ba   : > { %1331 = vmax.xlane.f32.xlu0 %v1330_v49  ;;  %v1323_v50 = vpop.f32.mrb[22].mxu0 }
 0x7bb   : > { %v2548_v52 = vpop.f32.mrb[23].mxu0  ;;  %v1329_v53 = vadd.f32 %v1327_v47, %v3784_v51 }
 0x7bd   : > { %v1333_v54 = vsel %vm847_vm4, %v1329_v53, -inf }
 0x7be   : > { %1334 = vmax.xlane.f32.xlu1 %v1333_v54  ;;  %v1199_v54 = vpack.c.bf16 %v3849_v28, %v3849_v28 }
 0x7cf   : > { %1354 = vrot.lane.b32.xlu1 %v3758_v26, %s3288_s25 }
 0x7d3   : > { %1479 = vrot.lane.b32.xlu1 %v3758_v26, %s3289_s27 }
 0x7d7   : > { %1529 = vrot.lane.b32.xlu1 %v3762_v29, %s3289_s27 }
 0x7db   : > { %1527 = vrot.lane.b32.xlu1 %v3762_v29, %s3290_s26 }
 0x847   : > { %v1332_v55 = vpop.xlane.xlu0 %1331 }
 0x848   : > { %v1336_v56 = vsub.f32 %v1328_v45, %v1332_v55  ;;  %v1200_v55 = vpack.c.bf16 %v3851_v33, %v3851_v33 }
 0x84a   : > { %v1338_v57 = vmul.f32 1.442695, %v1336_v56  ;;  %v1216_v56 = vrot.slane %v1200_v55, %v3754_v19 }
 0x84b   : > { %v1335_v58 = vpop.xlane.xlu1 %1334 }
 0x84c   : > { %2821 = vpow2.f32 %v1338_v57  ;;  %v1337_v59 = vsub.f32 %v1329_v53, %v1335_v58 }
 0x84e   : > { %v1340_v60 = vmul.f32 1.442695, %v1337_v59 }
 0x84f   : > { %v1355_v61 = vpop.permute.xlu1 %1354 }
 0x850   : > { %2823 = vpow2.f32 %v1340_v60  ;;  %v1360_v62 = vsel %vm878_vm5, %v1355_v61, 0 }
 0x851   : > { %2550 = vmatpush3.bf16.msra.mxu1 %v1360_v62 }
 0x852   : > { %2561 = vmatprep.subr.bf16.mxu1 %v3277_v5 }
 0x853   : > { %v1480_v11 = vpop.permute.xlu1 %1479 }
 0x854   : > { %v1485_v16 = vsel %vm741_vm3, %v1480_v11, 0 }
 0x856   : > { %v2822_v63 = vpop.eup %2821 }
 0x857   : > { %v1342_v0 = vsel %vm847_vm4, %v2822_v63, 0.0  ;;  %v1530_v18 = vpop.permute.xlu1 %1529 }
 0x858   : > { %1343 = vadd.xlane.f32.xlu0 %v1342_v0  ;;  %v1535_v21 = vsel %vm741_vm3, %v1530_v18, 0 }
 0x85a   : > { %v2824_v1 = vpop.eup %2823 }
 0x85b   : > { %v1345_v2 = vsel %vm847_vm4, %v2824_v1, 0.0  ;;  %v1528_v23 = vpop.permute.xlu1 %1527 }
 0x85c   : > { %1346 = vadd.xlane.f32.xlu0 %v1345_v2 }
 0x872   : > { %1402 = vrot.lane.b32.xlu0 %v3762_v29, %s3288_s25 }
 0x876   : > { %1477 = vrot.lane.b32.xlu0 %v3758_v26, %s3290_s26 }
 0x8e5   : > { %v1344_v3 = vpop.xlane.xlu0 %1343 }
 0x8e6   : > { %2825 = vrcp.f32 %v1344_v3 }
 0x8e9   : > { %v1347_v7 = vpop.xlane.xlu0 %1346 }
 0x8ea   : > { %2827 = vrcp.f32 %v1347_v7 }
 0x8ed   : > { %v1403_v8 = vpop.permute.xlu0 %1402 }
 0x8ee   : > { %v1408_v9 = vsel %vm878_vm5, %v1403_v8, 0 }
 0x8ef   : > { %2556 = vmatpush3.bf16.msra.mxu0 %v1408_v9 }
 0x8f0   : > { %v2826_v10 = vpop.eup %2825  ;;  %2567 = vmatprep.subr.bf16.mxu0 %v3277_v5 }
 0x8f1   : > { %v1350_v12 = vmul.f32 %v2826_v10, %v2822_v63  ;;  %v1478_v22 = vpop.permute.xlu0 %1477 }
 0x8f3   : > { %v1352_v13 = vpack.c.bf16 %v1350_v12, %v1350_v12 }
 0x8f4   : > { %v2828_v14 = vpop.eup %2827 }
 0x8f5   : > { %v1351_v17 = vmul.f32 %v2828_v14, %v2824_v1  ;;  %2552 = vmatmul.mubr.msk.bf16.vlgmr.msra.gmra.mrb[20].mxu1 %vm874_vm6, %v1352_v13 }
 0x8f6   : > { %2562 = vmatpush3.bf16.xpose.msra.mxu1 %v1485_v16  ;;  %2563 = vmatprep.mubr.msk.bf16.mxu1 %vm3278_vm1, %v3277_v5 }
 0x8f7   : > { %v1353_v20 = vpack.c.bf16 %v1351_v17, %v1351_v17  ;;  %2573 = vmatprep.subr.bf16.mxu1 %v3277_v5 }
 0x8f9   : > { %2558 = vmatmul.mubr.msk.bf16.vlgmr.msra.gmra.mrb[24].mxu0 %vm874_vm6, %v1353_v20 }
 0x8fa   : > { %2568 = vmatpush3.bf16.xpose.msra.mxu0 %v1535_v21  ;;  %2569 = vmatprep.mubr.msk.bf16.mxu0 %vm3278_vm1, %v3277_v5 }
 0x8fb   : > { %2579 = vmatprep.subr.bf16.mxu0 %v3277_v5 }
 0x8fd   : > { %2564 = vmatmul.mubr.msk.bf16.vlgmr.msra.gmra.mrb[24].mxu1 %vm741_vm3, %v1478_v22 }
 0x8fe   : > { %2575 = vmatprep.mubr.msk.bf16.mxu1 %vm3278_vm1, %v3277_v5 }
 0x901   : > { %2570 = vmatmul.mubr.msk.bf16.vlgmr.msra.gmra.mrb[28].mxu0 %vm741_vm3, %v1528_v23  ;;  %v2797_v23 = vld [vmem:[%s1731_s21] sm:$0xff]  }
 0x902   : > { %2581 = vmatprep.mubr.msk.bf16.mxu0 %vm3278_vm1, %v3277_v5 }
 0x9c8   : > { %v3885_v24 = vpop.f32.mrb[20].mxu1 }
 0x9c9   : > { %v2553_v25 = vpop.f32.mrb[21].mxu1  ;;  %v1450_v9 = vpack.c.bf16 %v3885_v24, %v3885_v24  ;;  %v2798_v24 = vld [vmem:[%s1731_s21 + $0x8] sm:$0xff]   ;;  %s1736_s21 = scalar_lea.vmem [#allocation15], %s4063_s13 }
 0x9ca   : > { %v1399_v27 = vpop.f32.mrb[22].mxu1 }
 0x9cb   : > { %v2554_v30 = vpop.f32.mrb[23].mxu1  ;;  %v1460_v10 = vrot.slane %v1450_v9, %v3754_v19 }
 0x9cc   : > { %v1444_v31 = vpop.f32.mrb[24].mxu0 }
 0x9cd   : > { %v2559_v32 = vpop.f32.mrb[25].mxu0 }
 0x9ce   : > { %v1447_v34 = vpop.f32.mrb[26].mxu0 }
 0x9cf   : > { %v2560_v35 = vpop.f32.mrb[27].mxu0 }
 0x9d0   : > { %v1521_v37 = vpop.f32.mrb[24].mxu1 }
 0x9d1   : > { %v1577_v38 = vmul.f32 0.35355338, %v1521_v37  ;;  %v2565_v40 = vpop.f32.mrb[25].mxu1 }
 0x9d2   : > { %v1524_v41 = vpop.f32.mrb[26].mxu1 }
 0x9d3   : > { %v2566_v43 = vpop.f32.mrb[27].mxu1  ;;  %v1579_v44 = vadd.f32 %v1577_v38, %v3781_v42  ;;  %v1209_v42 = vrot.slane %v1199_v54, %v3754_v19 }
 0x9d4   : > { %v1571_v45 = vpop.f32.mrb[28].mxu0 }
 0x9d5   : > { %v1578_v46 = vmul.f32 0.35355338, %v1571_v45  ;;  %v2571_v47 = vpop.f32.mrb[29].mxu0  ;;  %v1581_v48 = vsel %vm847_vm4, %v1579_v44, -inf }
 0x9d6   : > { %1582 = vmax.xlane.f32.xlu0 %v1581_v48  ;;  %v1574_v49 = vpop.f32.mrb[30].mxu0 }
 0x9d7   : > { %v2572_v50 = vpop.f32.mrb[31].mxu0  ;;  %v1580_v52 = vadd.f32 %v1578_v46, %v3784_v51  ;;  %v1451_v51 = vpack.c.bf16 %v1444_v31, %v1444_v31 }
 0x9d8   : > { %v2409_v50 = vld [vmem:[%s1736_s21] ss:$0 sm:$0xff] }
 0x9d9   : > { %v1584_v53 = vsel %vm847_vm4, %v1580_v52, -inf  ;;  %v1467_v57 = vrot.slane %v1451_v51, %v3754_v19 }
 0x9da   : > { %1585 = vmax.xlane.f32.xlu1 %v1584_v53 }
 0x9eb   : > { %1605 = vrot.lane.b32.xlu1 %v3758_v26, %s3291_s28 }
 0x9ef   : > { %1217 = vrot.lane.b32.xlu1 %v1209_v42, %s3292_s17 }
 0x9f3   : > { %1219 = vrot.lane.b32.xlu1 %v1216_v56, %s3292_s17 }
 0x9f7   : > { %1470 = vrot.lane.b32.xlu1 %v1467_v57, %s3293_s24 }
 0xa63   : > { %v1583_v28 = vpop.xlane.xlu0 %1582 }
 0xa64   : > { %v1587_v58 = vsub.f32 %v1579_v44, %v1583_v28 }
 0xa66   : > { %v1589_v59 = vmul.f32 1.442695, %v1587_v58  ;;  %v3295_v58 = vmov 839922192  }
 0xa67   : > { %v1586_v26 = vpop.xlane.xlu1 %1585 }
 0xa68   : > { %2829 = vpow2.f32 %v1589_v59  ;;  %v1588_v60 = vsub.f32 %v1580_v52, %v1586_v26  ;;  %v1827_v59 = vunpack.c.l.s4 %v3295_v58  ;;  %v3296_v26 = vmov 1985246804  }
 0xa6a   : > { %v1591_v61 = vmul.f32 1.442695, %v1588_v60  ;;  %v1834_v60 = vunpack.c.l.s4 %v3296_v26 }
 0xa6b   : > { %v1606_v62 = vpop.permute.xlu1 %1605 }
 0xa6c   : > { %2831 = vpow2.f32 %v1591_v61  ;;  %v1611_v33 = vsel %vm878_vm5, %v1606_v62, 0  ;;  %v1828_v61 = vunpack.c.0.s8 %v1827_v59  ;;  %v1835_v62 = vunpack.c.0.s8 %v1834_v60 }
 0xa6d   : > { %2574 = vmatpush3.bf16.msra.mxu1 %v1611_v33 }
 0xa6e   : > { %2585 = vmatprep.subr.bf16.mxu1 %v3277_v5  ;;  %v3938_v33 = vsub.s32 %v1828_v61, %v3750_v15 }
 0xa6f   : > { %v1218_v63 = vpop.permute.xlu1 %1217 }
 0xa70   : > { %1224 = vst.msk [vmem:[#allocation3] sm:$0x3] %vm1223_vm8, %v1218_v63  ;;  %v3941_v63 = vsub.s32 %v1835_v62, %v3750_v15 }
 0xa72   : > { %v2830_v0 = vpop.eup %2829 }
 0xa73   : > { %v1220_v1 = vpop.permute.xlu1 %1219  ;;  %v1593_v2 = vsel %vm847_vm4, %v2830_v0, 0.0 }
 0xa74   : > { %1225 = vst.msk [vmem:[#allocation3 + $0x2] sm:$0x3] %vm1223_vm8, %v1220_v1  ;;  %1594 = vadd.xlane.f32.xlu0 %v1593_v2 }
 0xa76   : > { %v2832_v3 = vpop.eup %2831 }
 0xa77   : > { %v1471_v7 = vpop.permute.xlu1 %1470  ;;  %v1596_v8 = vsel %vm847_vm4, %v2832_v3, 0.0 }
 0xa78   : > { %1476 = vst.msk [vmem:[#allocation3 + $0x2] sm:$0x3] %vm1474_vm9, %v1471_v7  ;;  %1597 = vadd.xlane.f32.xlu0 %v1596_v8 }
 0xa8e   : > { %1653 = vrot.lane.b32.xlu0 %v3762_v29, %s3291_s28 }
 0xa92   : > { %1468 = vrot.lane.b32.xlu0 %v1460_v10, %s3293_s24 }
 0xb01   : > { %v1595_v11 = vpop.xlane.xlu0 %1594 }
 0xb02   : > { %2833 = vrcp.f32 %v1595_v11  ;;  %v2799_v11 = vld [vmem:[%s1899_s19] sm:$0xff]  }
 0xb05   : > { %v1598_v12 = vpop.xlane.xlu0 %1597 }
 0xb06   : > { %2835 = vrcp.f32 %v1598_v12  ;;  %v2800_v12 = vld [vmem:[%s1899_s19 + $0x8] sm:$0xff]   ;;  %s1809_s19 = scalar_lea.vmem [#allocation22], %s2386_s16 }
 0xb09   : > { %v1654_v13 = vpop.permute.xlu0 %1653 }
 0xb0a   : > { %v1659_v14 = vsel %vm878_vm5, %v1654_v13, 0  ;;  %v2801_v13 = vld [vmem:[%s3952_s29] sm:$0xff]  }
 0xb0b   : > { %2580 = vmatpush3.bf16.msra.mxu0 %v1659_v14  ;;  %v2802_v14 = vld [vmem:[%s3952_s29 + $0x8] sm:$0xff]  }
 0xb0c   : > { %v2834_v16 = vpop.eup %2833  ;;  %2593 = vmatprep.subr.bf16.mxu0 %v3277_v5 }
 0xb0d   : > { %v1601_v17 = vmul.f32 %v2834_v16, %v2830_v0  ;;  %v1469_v18 = vpop.permute.xlu0 %1468 }
 0xb0e   : > { %1475 = vst.msk [vmem:[#allocation3] sm:$0x3] %vm1474_vm9, %v1469_v18 }
 0xb0f   : > { %v1603_v29 = vpack.c.bf16 %v1601_v17, %v1601_v17 }
 0xb10   : > { %v2836_v20 = vpop.eup %2835 }
 0xb11   : > { %v1602_v21 = vmul.f32 %v2836_v20, %v2832_v3  ;;  %2576 = vmatmul.mubr.msk.bf16.vlgmr.msra.gmra.mrb[28].mxu1 %vm874_vm6, %v1603_v29  ;;  %v1877_v29 = vsub.s32 0, %v3750_v15  ;;  %v3960_v20 = vld [vmem:[%s1809_s19] sm:$0xf] }
 0xb12   : > { %2589 = vmatprep.mubr.msk.bf16.mxu1 %vm3278_vm1, %v3277_v5  ;;  %2586 = vmatpush3.bf16.msra.mxu1 %v2797_v23 }
 0xb13   : > { %v1604_v22 = vpack.c.bf16 %v1602_v21, %v1602_v21  ;;  %2587 = vmatprep.subr.bf16.mxu1 %v3277_v5  ;;  %v1886_v21 = vsub.s32 1, %v3750_v15 }
 0xb15   : > { %2582 = vmatmul.mubr.msk.bf16.vlgmr.msra.gmra.mrb[32].mxu0 %vm874_vm6, %v1604_v22  ;;  %v1878_v22 = vrot.slane %v3960_v20, %v1877_v29  ;;  %v1887_v23 = vrot.slane %v3960_v20, %v1886_v21 }
 0xb16   : > { %2597 = vmatprep.mubr.msk.bf16.mxu0 %vm3278_vm1, %v3277_v5  ;;  %2588 = vmatpush3.bf16.msra.mxu1 %v2798_v24 }
 0xb17   : > { %2601 = vmatprep.subr.bf16.mxu1 %v3277_v5  ;;  %2594 = vmatpush3.bf16.msra.mxu0 %v2799_v11  ;;  %v2121_v11 = vsub.s32 2, %v3750_v15 }
 0xb18   : > { %2595 = vmatprep.subr.bf16.mxu0 %v3277_v5 }
 0xb1b   : > { %2596 = vmatpush3.bf16.msra.mxu0 %v2800_v12  ;;  %v2130_v12 = vsub.s32 3, %v3750_v15 }
 0xbe4   : > { %v1647_v25 = vpop.f32.mrb[28].mxu1 }
 0xbe5   : > { %v1701_v27 = vpack.c.bf16 %v1647_v25, %v1647_v25  ;;  %v2577_v30 = vpop.f32.mrb[29].mxu1  ;;  %v1880_v25 = vcombine.high %v1878_v22, %v1878_v22 }
 0xbe6   : > { %v1650_v31 = vpop.f32.mrb[30].mxu1 }
 0xbe7   : > { %v1711_v32 = vrot.slane %v1701_v27, %v3754_v19  ;;  %v2578_v34 = vpop.f32.mrb[31].mxu1 }
 0xbe8   : > { %v1695_v35 = vpop.f32.mrb[32].mxu0  ;;  %v1889_v34 = vcombine.high %v1887_v23, %v1887_v23 }
 0xbe9   : > { %v1702_v37 = vpack.c.bf16 %v1695_v35, %v1695_v35  ;;  %1719 = vrot.lane.b32.xlu0 %v1711_v32, %s3294_s23  ;;  %v2583_v38 = vpop.f32.mrb[33].mxu0 }
 0xbea   : > { %v1698_v40 = vpop.f32.mrb[34].mxu0 }
 0xbeb   : > { %v1718_v41 = vrot.slane %v1702_v37, %v3754_v19  ;;  %v2584_v43 = vpop.f32.mrb[35].mxu0 }
 0xbed   : > { %1721 = vrot.lane.b32.xlu1 %v1718_v41, %s3294_s23 }
 0xc5b   : > { %v1720_v44 = vpop.permute.xlu0 %1719 }
 0xc5c   : > { %1726 = vst.msk [vmem:[#allocation3] sm:$0x3] %vm1725_vm10, %v1720_v44  ;;  %v2803_v44 = vld [vmem:[%s3952_s29 + $0x10] sm:$0xff]  }
 0xc5f   : > { %v1722_v45 = vpop.permute.xlu1 %1721 }
 0xc60   : > { %1727 = vst.msk [vmem:[#allocation3 + $0x2] sm:$0x3] %vm1725_vm10, %v1722_v45  ;;  %v2804_v45 = vld [vmem:[%s3952_s29 + $0x18] sm:$0xff]  }
 0xc63   : > { %v1728_v46 = vld [vmem:[#allocation3] sm:$0x3] }
 0xc67   : > { %v1729_v47 = vld [vmem:[#allocation3 + $0x2] sm:$0x3] }
 0xc68   : > { %v1746_v48 = vcombine.low %v1728_v46, %v1729_v47  ;;  %v2414_v46 = vld [vmem:[%s1904_s14] ss:$0 sm:$0xff] }
 0xc6a   : > { %v1753_v49 = vrot.slane %v1746_v48, %v3754_v19 }
 0xc6c   : > { %2590 = vmatmul.mubr.msk.bf16.vlgmr.msra.gmra.mrb[32].mxu1 %vm678_vm2, %v1753_v49 }
 0xc6d   : > { %2609 = vmatprep.mubr.msk.bf16.mxu1 %vm3278_vm1, %v3277_v5  ;;  %2602 = vmatpush3.bf16.msra.mxu1 %v2801_v13  ;;  %v2122_v13 = vrot.slane %v3960_v20, %v2121_v11 }
 0xc6e   : > { %2603 = vmatprep.subr.bf16.mxu1 %v3277_v5 }
 0xc71   : > { %2604 = vmatpush3.bf16.msra.mxu1 %v2802_v14  ;;  %v2131_v14 = vrot.slane %v3960_v20, %v2130_v12 }
 0xc72   : > { %2605 = vmatprep.subr.bf16.mxu1 %v3277_v5 }
 0xc73   : > { %v2133_v21 = vcombine.high %v2131_v14, %v2131_v14 }
 0xc75   : > { %2606 = vmatpush3.bf16.msra.mxu1 %v2803_v44 }
 0xc76   : > { %2607 = vmatprep.subr.bf16.mxu1 %v3277_v5 }
 0xc79   : > { %2608 = vmatpush3.bf16.msra.mxu1 %v2804_v45 }
 0xd3f   : > { %v1803_v52 = vpop.f32.mrb[32].mxu1 }
 0xd40   : > { %v1804_v53 = vadd.f32 %v2409_v50, %v1803_v52  ;;  %v2591_v54 = vpop.f32.mrb[33].mxu1 }
 0xd41   : > { %v1806_v42 = vpop.f32.mrb[34].mxu1 }
 0xd42   : > { %v1812_v55 = vcombine.high %v1804_v53, %v1804_v53  ;;  %v2592_v56 = vpop.f32.mrb[35].mxu1  ;;  %v1814_v51 = vadd.f32 %v1804_v53, %v3730_v4  ;;  %v2420_v42 = vld [vmem:[%s1980_s18] ss:$0 sm:$0xff] }
 0xd44   : > { %v1815_v57 = vadd.f32 %v1812_v55, %v3735_v6 }
 0xd46   : > { %v1818_v28 = vcombine.low %v1814_v51, %v1815_v57 }
 0xd48   : > { %v1820_v19 = vsel %vm678_vm2, %v1818_v28, 0.0 }
 0xd49   : > { %1821 = vadd.xlane.f32.xlu0 %v1820_v19 }
 0xdd6   : > { %v1822_v4 = vpop.xlane.xlu0 %1821 }
 0xdd7   : > { %v1824_v6 = vmul.f32 0.03125, %v1822_v4 }
 0xdd9   : > { %v1832_v0 = vrot.slane %v1824_v6, %v3938_v33  ;;  %v1839_v1 = vrot.slane %v1824_v6, %v3941_v63 }
 0xddb   : > { %v1842_v2 = vsub.f32 %v1814_v51, %v1832_v0  ;;  %v1843_v3 = vsub.f32 %v1815_v57, %v1839_v1 }
 0xddd   : > { %v1844_v7 = vmul.f32 %v1842_v2, %v1842_v2  ;;  %v1845_v8 = vmul.f32 %v1843_v3, %v1843_v3 }
 0xddf   : > { %v1848_v9 = vcombine.low %v1844_v7, %v1845_v8 }
 0xde1   : > { %v1850_v10 = vsel %vm678_vm2, %v1848_v9, 0.0 }
 0xde2   : > { %1851 = vadd.xlane.f32.xlu1 %v1850_v10 }
 0xe6f   : > { %v1852_v16 = vpop.xlane.xlu1 %1851 }
 0xe70   : > { %v1853_v17 = vmul.f32 0.03125, %v1852_v16 }
 0xe72   : > { %v1854_v18 = vadd.f32 1e-06, %v1853_v17  ;;  %v2124_v17 = vcombine.high %v2122_v13, %v2122_v13 }
 0xe74   : > { %2837 = vrsqrt.f32 %v1854_v18 }
 0xe7e   : > { %v2838_v24 = vpop.eup %2837 }
 0xe7f   : > { %v1863_v27 = vrot.slane %v2838_v24, %v3938_v33  ;;  %v1870_v30 = vrot.slane %v2838_v24, %v3941_v63 }
 0xe81   : > { %v1873_v31 = vmul.f32 %v1863_v27, %v1842_v2  ;;  %v1874_v32 = vmul.f32 %v1870_v30, %v1843_v3 }
 0xe83   : > { %v1882_v35 = vmul.f32 %v1878_v22, %v1873_v31  ;;  %v1883_v37 = vmul.f32 %v1880_v25, %v1874_v32 }
 0xe85   : > { %v1891_v38 = vadd.f32 %v1887_v23, %v1882_v35  ;;  %v1892_v40 = vadd.f32 %v1889_v34, %v1883_v37 }
 0xe87   : > { %v1895_v41 = vcombine.low %v1891_v38, %v1892_v40 }
 0xe89   : > { %v1897_v43 = vpack.c.bf16 %v1895_v41, %v1895_v41 }
 0xe8b   : > { %2598 = vmatmul.mubr.msk.bf16.vlgmr.msra.gmra.mrb[36].mxu0 %vm678_vm2, %v1897_v43 }
 0xf5e   : > { %v1961_v47 = vpop.f32.mrb[36].mxu0 }
 0xf5f   : > { %v1962_v48 = vadd.f32 %v2414_v46, %v1961_v47  ;;  %v2599_v49 = vpop.f32.mrb[37].mxu0 }
 0xf60   : > { %v1964_v50 = vpop.f32.mrb[38].mxu0 }
 0xf61   : > { %v1967_v52 = vmax.f32 %v1962_v48, 0.0  ;;  %v2600_v53 = vpop.f32.mrb[39].mxu0 }
 0xf63   : > { %v1968_v54 = vpack.c.bf16 %v1967_v52, %v1967_v52 }
 0xf65   : > { %2610 = vmatmul.mubr.msk.bf16.vlgmr.msra.gmra.mrb[36].mxu1 %vm2012_vm11, %v1968_v54 }
0x1038   : > { %v2050_v55 = vpop.f32.mrb[36].mxu1 }
0x1039   : > { %v2051_v56 = vadd.f32 %v2420_v42, %v2050_v55  ;;  %v2611_v51 = vpop.f32.mrb[37].mxu1 }
0x103a   : > { %v2053_v57 = vpop.f32.mrb[38].mxu1 }
0x103b   : > { %v2057_v5 = vcombine.high %v2051_v56, %v2051_v56  ;;  %v2612_v28 = vpop.f32.mrb[39].mxu1  ;;  %v2059_v19 = vadd.f32 %v2051_v56, %v1891_v38 }
0x103d   : > { %v2060_v58 = vadd.f32 %v2057_v5, %v1892_v40 }
0x103f   : > { %v2063_v59 = vcombine.low %v2059_v19, %v2060_v58 }
0x1041   : > { %v2065_v26 = vsel %vm678_vm2, %v2063_v59, 0.0 }
0x1042   : > { %2066 = vadd.xlane.f32.xlu0 %v2065_v26 }
0x10cf   : > { %v2067_v60 = vpop.xlane.xlu0 %2066 }
0x10d0   : > { %v2068_v61 = vmul.f32 0.03125, %v2067_v60 }
0x10d2   : > { %v2076_v62 = vrot.slane %v2068_v61, %v3938_v33  ;;  %v2083_v4 = vrot.slane %v2068_v61, %v3941_v63 }
0x10d4   : > { %v2086_v6 = vsub.f32 %v2059_v19, %v2076_v62  ;;  %v2087_v0 = vsub.f32 %v2060_v58, %v2083_v4 }
0x10d6   : > { %v2088_v1 = vmul.f32 %v2086_v6, %v2086_v6  ;;  %v2089_v2 = vmul.f32 %v2087_v0, %v2087_v0 }
0x10d8   : > { %v2092_v3 = vcombine.low %v2088_v1, %v2089_v2 }
0x10da   : > { %v2094_v7 = vsel %vm678_vm2, %v2092_v3, 0.0 }
0x10db   : > { %2095 = vadd.xlane.f32.xlu0 %v2094_v7 }
0x1168   : > { %v2096_v8 = vpop.xlane.xlu0 %2095 }
0x1169   : > { %v2097_v9 = vmul.f32 0.03125, %v2096_v8 }
0x116b   : > { %v2098_v10 = vadd.f32 1e-06, %v2097_v9 }
0x116d   : > { %2839 = vrsqrt.f32 %v2098_v10 }
0x1177   : > { %v2840_v16 = vpop.eup %2839 }
0x1178   : > { %v2107_v18 = vrot.slane %v2840_v16, %v3938_v33  ;;  %v2114_v29 = vrot.slane %v2840_v16, %v3941_v63 }
0x117a   : > { %v2117_v22 = vmul.f32 %v2107_v18, %v2086_v6  ;;  %v2118_v23 = vmul.f32 %v2114_v29, %v2087_v0  ;;  %2143 = sbr.rel (%p2426_p13) target bundleno = 4506 (0x119a), region = 124 }
0x117c   : > { %v2126_v24 = vmul.f32 %v2122_v13, %v2117_v22  ;;  %v2127_v25 = vmul.f32 %v2124_v17, %v2118_v23 }
0x117e   : > { %v2135_v27 = vadd.f32 %v2131_v14, %v2126_v24  ;;  %v2136_v30 = vadd.f32 %v2133_v21, %v2127_v25 }
0x1180   : > { %2138 = vst.msk [vmem:[#allocation2] sm:$0xf] %vm2137_vm12, %v2135_v27  ;;  %2139 = vst.msk [vmem:[#allocation2 + $0x4] sm:$0xf] %vm2137_vm12, %v2136_v30 }
0x1187   : > { %v2144_v15 = vld [vmem:[#allocation2] sm:$0xf]  ;;  %v2145_v20 = vld [vmem:[#allocation2 + $0x4] sm:$0xf] }
0x1188   : > { %v2146_v31 = vmul.f32 %v2144_v15, %v3775_v36  ;;  %v2147_v33 = vmul.f32 %v2145_v20, %v3778_v39 }
0x118a   : > { %v2148_v63 = vsel %vm2137_vm12, %v2146_v31, 0.0  ;;  %v2155_v32 = vsel %vm2137_vm12, %v2147_v33, 0.0 }
0x118b   : > { %v2149_v34 = vrot.slane %v2148_v63, 4  ;;  %v2156_v35 = vrot.slane %v2155_v32, 4 }
0x118d   : > { %v2150_v37 = vadd.f32 %v2149_v34, %v2148_v63  ;;  %v2157_v38 = vadd.f32 %v2156_v35, %v2155_v32 }
0x118f   : > { %v2151_v40 = vrot.slane %v2150_v37, 2  ;;  %v2158_v41 = vrot.slane %v2157_v38, 2 }
0x1191   : > { %v2152_v43 = vadd.f32 %v2151_v40, %v2150_v37  ;;  %v2159_v44 = vadd.f32 %v2158_v41, %v2157_v38 }
0x1193   : > { %v2153_v45 = vrot.slane %v2152_v43, 1  ;;  %v2160_v46 = vrot.slane %v2159_v44, 1 }
0x1195   : > { %v2154_v47 = vadd.f32 %v2153_v45, %v2152_v43  ;;  %v2161_v48 = vadd.f32 %v2160_v46, %v2159_v44 }
0x1197   : > { %v2162_v49 = vmul.f32 0.25, %v2154_v47  ;;  %v2163_v50 = vmul.f32 0.25, %v2161_v48 }
0x1199   : > { %2165 = vst.msk [vmem:[#allocation24] sm:$0x1] %vm2164_vm13, %v2162_v49  ;;  %2166 = vst.msk [vmem:[#allocation24 + $0x1] sm:$0x1] %vm2164_vm13, %v2163_v50 }
0x119a PF: > { %s4064_s13 = sld [smem:[#allocation34_spill]]  ;;  %s3297_s25 = smov [#allocation24]  }
0x119b   : > { %s2176_s27 = sshll.u32 %s3297_s25, 4  ;;  %s2177_s27 = int_to_ptr.vmem [resolvable:$true] %s2176_s27 }
0x119c   : > { %s3177_s26 = scalar_lea.vmem %s2177_s27, 32  ;;  %p3184_p8 = scmp.lt.s32.totalorder %s2177_s27, %s2177_s27 }
0x119d   : > { %p3178_p1 = scmp.ne.s32.totalorder %s2177_s27, %s3177_s26  ;;  %p3185_p9 = scmp.lt.s32.totalorder %s3177_s26, %s3177_s26 }
0x119f   : > { %p3186_p10 = por %p3185_p9, %p3184_p8 }
0x11a0   : > { %s4065_s15 = sadd.s32 4294967295, %s4064_s13  }
0x11a1   : > { %p3988_p0 = scmp.eq.s32.totalorder %s4065_s15, 1 }
0x11a3   : > { %p3179_p4 = pnand %p3178_p1, %p3988_p0 }
0x11a5   : > { %p3180_p6 = pneg %p3179_p4 }
0x11a7   : > { %p3187_p11 = pnand %p3186_p10, %p3180_p6 }
0x11a9   : > { %3190 = shalt.err (!%p3187_p11)
}
0x11aa   : > { %s4067_s23 = sld [smem:[#allocation36_spill]] }
0x11b0   : > { %s4068_s20 = smov %s4067_s23  ;;  %s3191_s21 = scalar_lea.hbm %s4067_s23, 32 }
0x11b1   : > { %p3192_p12 = scmp.ne.s32.totalorder %s4068_s20, %s3191_s21  ;;  %p3197_p7 = scmp.lt.u32.totalorder %s3191_s21, %s4068_s20 }
0x11b3   : > { %p3193_p2 = pnand %p3192_p12, %p3988_p0 }
0x11b5   : > { %p3194_p3 = pneg %p3193_p2 }
0x11b7   : > { %p3199_p5 = pnand %p3197_p7, %p3194_p3 }
0x11b9   : > { %3202 = shalt.err (!%p3199_p5)
}
0x11ba   : > { %s3298_s18 = smov 1  }
0x11bb   : > { %2662 = dma.vmem_to_hbm [thread:$0]  (%p3988_p0), %s2177_s27, 32, %s4068_s20, [#allocation6], %s3293_s24, %s3293_s24, %s3298_s18  }
0x11bc   : > { %3244 = dma.done.wait (%p3988_p0), [#allocation6], 32  }
0x11bd   : > { %3246 = vsyncadd (%p3988_p0), [#allocation6], 4294967264 }
0x11be PF: > { %s4069_s25 = sld [smem:[#allocation34_spill]]  ;;  %s4070_s21 = smov %s3253_s22 }
0x11bf   : > { %s4071_s22 = smov %s4073_s30 }
0x11c4   : > { %s30_s23 = sadd.s32 1, %s4069_s25  }
0x11c5   : > { %p27_p13 = scmp.ge.s32.totalorder %s30_s23, 4  }
0x11c7   :  { %29 = sbr.rel (!%p27_p13) target bundleno = 11 (0xb), region = 162 }
0x11ce   :  { %2192 = vsyncpa [#allocation5], 1 }
0x11cf   :  { %2194 = vsyncpa [#allocation5 + $0x1], 1 }
0x11d0   :  { %2195 = vsyncpa [#allocation8], 1 }
0x11d1   :  { %2196 = vsyncpa [#allocation11], 1 }
0x11d2   :  { %2197 = vsyncpa [#allocation14], 1 }
0x11d3   :  { %2198 = vsyncpa [#allocation17], 1 }
0x11d4   :  { %2199 = vsyncpa [#allocation20], 1 }
0x11d5   :  { %2200 = vsyncpa [#allocation23], 1 }
0x11d6   :  { %2201 = vsyncpa [#allocation6], 1 }
0x11d7   :  { %2203 = vsyncpa [#allocation6 + $0x1], 1 }

// kernel: tag_predictor_forward.2
= control target key start
LH: loop header
LB: loop body
LE: loop exit
PB: predicated region body
PF: predicated region fallthrough
CT: control target
= control target key end

     0   :  { %s10396_s0 = inlined_call_operand.hbm [shape: bf16[8,8,4,32], index: 0, kind: input, shape index: {}]   ;;  %s10397_s1 = inlined_call_operand.hbm [shape: f32[8,8,1], index: 1, kind: input, shape index: {}]   ;;  %s10398_s2 = inlined_call_operand.hbm [shape: f32[8,1,8], index: 2, kind: input, shape index: {}]   ;;  %s10399_s3 = inlined_call_operand.hbm [shape: bf16[2,32,96], index: 3, kind: input, shape index: {}]   ;;  %s10400_s4 = inlined_call_operand.hbm [shape: f32[2,1,96], index: 4, kind: input, shape index: {}]   ;;  %s10401_s5 = inlined_call_operand.hbm [shape: bf16[2,32,32], index: 5, kind: input, shape index: {}]   ;;  %s10402_s6 = inlined_call_operand.hbm [shape: f32[2,1,32], index: 6, kind: input, shape index: {}]   ;;  %s10403_s7 = inlined_call_operand.hbm [shape: bf16[2,32,64], index: 7, kind: input, shape index: {}]   ;;  %s10404_s8 = inlined_call_operand.hbm [shape: f32[2,1,64], index: 8, kind: input, shape index: {}]   ;;  %s10405_s9 = inlined_call_operand.hbm [shape: bf16[2,64,32], index: 9, kind: input, shape index: {}]   ;;  %s10406_s10 = inlined_call_operand.hbm [shape: f32[2,1,32], index: 10, kind: input, shape index: {}]   ;;  %s10407_s11 = inlined_call_operand.hbm [shape: f32[2,4,32], index: 11, kind: input, shape index: {}]   ;;  %s10408_s12 = inlined_call_operand.hbm [shape: bf16[8,1,32], index: 12, kind: output, shape index: {}]  }
   0x1   :  { %10444 = sst [smem:[#allocation61_spill]] %s10397_s1 }
   0x2   :  { %10445 = sst [smem:[#allocation62_spill]] %s10408_s12 }
   0x3   :  { %17 = vsyncpa [#allocation5], 0 }
   0x4   :  { %18 = vsyncpa [#allocation8], 0 }
   0x5   :  { %19 = vsyncpa [#allocation11], 0 }
   0x6   :  { %20 = vsyncpa [#allocation14], 0 }
   0x7   :  { %21 = vsyncpa [#allocation17], 0 }
   0x8   :  { %22 = vsyncpa [#allocation20], 0 }
   0x9   :  { %23 = vsyncpa [#allocation23], 0 }
   0xa   :  { %24 = vsyncpa [#allocation6], 0  ;;  %s8101_s21 = smov 0   ;;  %s8103_s22 = smov 0  }
   0xb   :  { %s8105_s23 = smov 0  }
   0xc LB: > { %10446 = sst [smem:[#allocation33_spill]] %s7987_s21  ;;  %s7997_s24 = smov [#allocation7]   ;;  %s7995_s23 = sphi %s8105_s23, %s30_s23   ;;  %s7991_s22 = sphi %s8103_s22, %s10643_s22   ;;  %s7987_s21 = sphi %s8101_s21, %s10642_s21  }
   0xd   : > { %10447 = sst [smem:[#allocation34_spill]] %s7995_s23  ;;  %s372_s25 = sshll.u32 %s7997_s24, 4  ;;  %s8125_s25 = int_to_ptr.vmem [resolvable:$true] %s372_s25 }
   0xe   : > { %s10409_s26 = sadd.s32 4294967295, %s7995_s23   ;;  %p6403_p0 = scmp.ge.s32.totalorder %s7995_s23, 1 }
   0xf   : > { %p340_p1 = scmp.lt.s32.totalorder %s7995_s23, 3  ;;  %p8121_p2 = scmp.eq.s32.totalorder %s10409_s26, 0 }
  0x10   : > { %s7998_s29 = smov [#allocation10]   ;;  %s7999_s14 = smov [#allocation13]  }
  0x11   : > { %s10448_s27 = scalar_select %p8121_p2, 1, 0 }
  0x12   : > { %p8127_p3 = pnand %p6403_p0, %p340_p1  ;;  %s401_s30 = sshll.u32 %s7998_s29, 4  ;;  %s8133_s30 = int_to_ptr.vmem [resolvable:$true] %s401_s30 }
  0x13   : > { %s8141_s15 = sshll.u32 %s7999_s14, 4  ;;  %s10451_s1 = sld [smem:[#allocation61_spill]]  ;;  %s428_s15 = int_to_ptr.vmem [resolvable:$true] %s8141_s15 }
  0x14   : > { %s10449_s28 = scalar_select %p8127_p3, 1, 0 }
  0x15   : > { %p7269_p4 = pneg %p8127_p3 }
  0x17   : > { %p8137_p5 = pnand %p8121_p2, %p7269_p4 }
  0x19   : > { %s7579_s18 = scalar_lea.hbm %s10451_s1, 1024  ;;  %p8151_p7 = pneg %p8137_p5 }
  0x1a   : > { %p7580_p6 = scmp.ne.s32.totalorder %s10451_s1, %s7579_s18  ;;  %p7586_p10 = scmp.lt.u32.totalorder %s7579_s18, %s10451_s1 }
  0x1c   : > { %p7582_p8 = pnand %p8151_p7, %p7580_p6 }
  0x1e   : > { %p7583_p9 = pneg %p7582_p8 }
  0x20   : > { %p7588_p11 = pnand %p7586_p10, %p7583_p9 }
  0x22   : > { %7591 = shalt.err (!%p7588_p11)
}
  0x23   : > { %s7592_s16 = scalar_lea.vmem %s8125_s25, 1024  ;;  %p7600_p1 = scmp.lt.s32.totalorder %s8125_s25, %s8125_s25 }
  0x24   : > { %p7593_p12 = scmp.ne.s32.totalorder %s8125_s25, %s7592_s16  ;;  %p7601_p4 = scmp.lt.s32.totalorder %s7592_s16, %s7592_s16 }
  0x26   : > { %p7595_p13 = pnand %p7593_p12, %p8151_p7  ;;  %p7602_p6 = por %p7601_p4, %p7600_p1 }
  0x28   : > { %p7596_p0 = pneg %p7595_p13 }
  0x2a   : > { %p7603_p8 = pnand %p7602_p6, %p7596_p0 }
  0x2c   : > { %7606 = shalt.err (!%p7603_p8)
}
  0x2d   : > { %s8000_s17 = smov 128   ;;  %s8001_s18 = smov 8  }
  0x2e   : > { %7275 = dma.hbm_to_vmem [thread:$0]  (!%p8137_p5), %s10451_s1, 1024, %s8125_s25, [#allocation8], %s8000_s17, %s8000_s17, %s8001_s18  }
  0x2f   : > { %s7607_s26 = scalar_lea.hbm %s10399_s3, 512 }
  0x30   : > { %p7608_p9 = scmp.ne.s32.totalorder %s10399_s3, %s7607_s26  ;;  %p7614_p12 = scmp.lt.u32.totalorder %s7607_s26, %s10399_s3 }
  0x32   : > { %p7610_p10 = pnand %p7608_p9, %p8151_p7 }
  0x34   : > { %p7611_p11 = pneg %p7610_p10 }
  0x36   : > { %p7616_p13 = pnand %p7614_p12, %p7611_p11 }
  0x38   : > { %7619 = shalt.err (!%p7616_p13)
}
  0x39   : > { %s7620_s25 = scalar_lea.vmem %s8133_s30, 512  ;;  %p7628_p6 = scmp.lt.s32.totalorder %s8133_s30, %s8133_s30 }
  0x3a   : > { %p7621_p0 = scmp.ne.s32.totalorder %s8133_s30, %s7620_s25  ;;  %p7629_p8 = scmp.lt.s32.totalorder %s7620_s25, %s7620_s25 }
  0x3c   : > { %p7623_p1 = pnand %p7621_p0, %p8151_p7  ;;  %p7630_p9 = por %p7629_p8, %p7628_p6 }
  0x3e   : > { %p7624_p4 = pneg %p7623_p1 }
  0x40   : > { %p7631_p10 = pnand %p7630_p9, %p7624_p4 }
  0x42   : > { %7634 = shalt.err (!%p7631_p10)
}
  0x43   : > { %s10416_s12 = smov 64   ;;  %s10417_s21 = smov 4  }
  0x44   : > { %7281 = dma.hbm_to_vmem [thread:$0]  (!%p8137_p5), %s10399_s3, 512, %s8133_s30, [#allocation11], %s10416_s12, %s10416_s12, %s10417_s21  }
  0x45   : > { %s8004_s17 = smov [#allocation16]   ;;  %s7635_s29 = scalar_lea.hbm %s10401_s5, 512 }
  0x46   : > { %s453_s18 = sshll.u32 %s8004_s17, 4  ;;  %p7636_p11 = scmp.ne.s32.totalorder %s10401_s5, %s7635_s29  ;;  %s454_s18 = int_to_ptr.vmem [resolvable:$true] %s453_s18 }
  0x47   : > { %p7642_p0 = scmp.lt.u32.totalorder %s7635_s29, %s10401_s5 }
  0x48   : > { %p7638_p12 = pnand %p7636_p11, %p8151_p7 }
  0x4a   : > { %p7639_p13 = pneg %p7638_p12 }
  0x4c   : > { %p7644_p1 = pnand %p7642_p0, %p7639_p13 }
  0x4e   : > { %7647 = shalt.err (!%p7644_p1)
}
  0x4f   : > { %s7648_s30 = scalar_lea.vmem %s428_s15, 512  ;;  %p7656_p9 = scmp.lt.s32.totalorder %s428_s15, %s428_s15 }
  0x50   : > { %p7649_p4 = scmp.ne.s32.totalorder %s428_s15, %s7648_s30  ;;  %p7657_p10 = scmp.lt.s32.totalorder %s7648_s30, %s7648_s30 }
  0x52   : > { %p7651_p6 = pnand %p7649_p4, %p8151_p7  ;;  %p7658_p2 = por %p7657_p10, %p7656_p9 }
  0x54   : > { %p7652_p8 = pneg %p7651_p6 }
  0x56   : > { %p7659_p3 = pnand %p7658_p2, %p7652_p8 }
  0x58   : > { %7662 = shalt.err (!%p7659_p3)
}
  0x59   : > { %7287 = dma.hbm_to_vmem [thread:$0]  (!%p8137_p5), %s10401_s5, 512, %s428_s15, [#allocation14], %s10416_s12, %s10416_s12, %s10417_s21  }
  0x5a   : > { %s7663_s19 = scalar_lea.hbm %s10403_s7, 512 }
  0x5b   : > { %p7664_p2 = scmp.ne.s32.totalorder %s10403_s7, %s7663_s19  ;;  %p7670_p12 = scmp.lt.u32.totalorder %s7663_s19, %s10403_s7 }
  0x5d   : > { %p7666_p3 = pnand %p7664_p2, %p8151_p7 }
  0x5f   : > { %p7667_p11 = pneg %p7666_p3 }
  0x61   : > { %p7672_p13 = pnand %p7670_p12, %p7667_p11 }
  0x63   : > { %7675 = shalt.err (!%p7672_p13)
}
  0x64   : > { %s7676_s25 = scalar_lea.vmem %s454_s18, 512  ;;  %p7684_p6 = scmp.lt.s32.totalorder %s454_s18, %s454_s18 }
  0x65   : > { %p7677_p0 = scmp.ne.s32.totalorder %s454_s18, %s7676_s25  ;;  %p7685_p8 = scmp.lt.s32.totalorder %s7676_s25, %s7676_s25 }
  0x67   : > { %p7679_p1 = pnand %p7677_p0, %p8151_p7  ;;  %p7686_p9 = por %p7685_p8, %p7684_p6 }
  0x69   : > { %p7680_p4 = pneg %p7679_p1 }
  0x6b   : > { %p7687_p10 = pnand %p7686_p9, %p7680_p4 }
  0x6d   : > { %7690 = shalt.err (!%p7687_p10)
}
  0x6e   : > { %7293 = dma.hbm_to_vmem [thread:$0]  (!%p8137_p5), %s10403_s7, 512, %s454_s18, [#allocation17], %s10416_s12, %s10416_s12, %s10417_s21  }
  0x6f   : > { %s8005_s1 = smov [#allocation19]   ;;  %s7691_s19 = scalar_lea.hbm %s10405_s9, 1024 }
  0x70   : > { %s479_s23 = sshll.u32 %s8005_s1, 4  ;;  %p7692_p2 = scmp.ne.s32.totalorder %s10405_s9, %s7691_s19  ;;  %s480_s23 = int_to_ptr.vmem [resolvable:$true] %s479_s23 }
  0x71   : > { %p7698_p12 = scmp.lt.u32.totalorder %s7691_s19, %s10405_s9 }
  0x72   : > { %p7694_p3 = pnand %p7692_p2, %p8151_p7 }
  0x74   : > { %p7695_p11 = pneg %p7694_p3 }
  0x76   : > { %p7700_p13 = pnand %p7698_p12, %p7695_p11 }
  0x78   : > { %7703 = shalt.err (!%p7700_p13)
}
  0x79   : > { %s7704_s18 = scalar_lea.vmem %s480_s23, 1024  ;;  %p7712_p6 = scmp.lt.s32.totalorder %s480_s23, %s480_s23 }
  0x7a   : > { %p7705_p0 = scmp.ne.s32.totalorder %s480_s23, %s7704_s18  ;;  %p7713_p8 = scmp.lt.s32.totalorder %s7704_s18, %s7704_s18 }
  0x7c   : > { %p7707_p1 = pnand %p7705_p0, %p8151_p7  ;;  %p7714_p9 = por %p7713_p8, %p7712_p6 }
  0x7e   : > { %p7708_p4 = pneg %p7707_p1 }
  0x80   : > { %p7715_p10 = pnand %p7714_p9, %p7708_p4 }
  0x82   : > { %7718 = shalt.err (!%p7715_p10)
}
  0x83   : > { %7299 = dma.hbm_to_vmem [thread:$0]  (!%p8137_p5), %s10405_s9, 1024, %s480_s23, [#allocation20], %s10416_s12, %s10416_s12, %s10417_s21  }
  0x84   : > { %s39_s30 = sadd.s32 1, %s7991_s22  ;;  %s8006_s1 = smov [#allocation4]  }
  0x85   : > { %p40_p2 = scmp.ge.s32.totalorder %s39_s30, 2  ;;  %s356_s26 = sshll.u32 %s8006_s1, 4  ;;  %s357_s26 = int_to_ptr.vmem [resolvable:$true] %s356_s26 }
  0x86   : > { %s7719_s20 = scalar_lea.hbm %s10396_s0, 2048 }
  0x87   : > { %s10645_s30 = smov (%p40_p2, %s39_s30), 0  ;;  %p7720_p3 = scmp.ne.s32.totalorder %s10396_s0, %s7719_s20 }
  0x88   : > { %p7726_p13 = scmp.lt.u32.totalorder %s7719_s20, %s10396_s0 }
  0x89   : > { %p7722_p11 = pnand %p7720_p3, %p8151_p7 }
  0x8b   : > { %p7723_p12 = pneg %p7722_p11 }
  0x8d   : > { %p7728_p0 = pnand %p7726_p13, %p7723_p12 }
  0x8f   : > { %7731 = shalt.err (!%p7728_p0)
}
  0x90   : > { %s7732_s18 = scalar_lea.vmem %s357_s26, 2048  ;;  %p7740_p8 = scmp.lt.s32.totalorder %s357_s26, %s357_s26 }
  0x91   : > { %p7733_p1 = scmp.ne.s32.totalorder %s357_s26, %s7732_s18  ;;  %p7741_p9 = scmp.lt.s32.totalorder %s7732_s18, %s7732_s18 }
  0x93   : > { %p7735_p4 = pnand %p7733_p1, %p8151_p7  ;;  %p7742_p10 = por %p7741_p9, %p7740_p8 }
  0x95   : > { %p7736_p6 = pneg %p7735_p4 }
  0x97   : > { %p7743_p2 = pnand %p7742_p10, %p7736_p6 }
  0x99   : > { %7746 = shalt.err (!%p7743_p2)
}
  0x9a   : > { %s8007_s25 = smov 32   ;;  %s8008_s15 = smov 2  }
  0x9b   : > { %7272 = dma.hbm_to_vmem [thread:$0]  (!%p8137_p5), %s10396_s0, 2048, %s357_s26, [#allocation5], %s8007_s25, %s8007_s25, %s8008_s15  }
  0x9c   : > { %s8009_s19 = smov [#allocation9]   ;;  %s7747_s16 = scalar_lea.hbm %s10398_s2, 128 }
  0x9d   : > { %s388_s20 = sshll.u32 %s8009_s19, 4  ;;  %p7748_p3 = scmp.ne.s32.totalorder %s10398_s2, %s7747_s16  ;;  %s389_s20 = int_to_ptr.vmem [resolvable:$true] %s388_s20 }
  0x9e   : > { %p7754_p13 = scmp.lt.u32.totalorder %s7747_s16, %s10398_s2 }
  0x9f   : > { %p7750_p11 = pnand %p7748_p3, %p8151_p7 }
  0xa1   : > { %p7751_p12 = pneg %p7750_p11 }
  0xa3   : > { %p7756_p0 = pnand %p7754_p13, %p7751_p12 }
  0xa5   : > { %7759 = shalt.err (!%p7756_p0)
}
  0xa6   : > { %s7760_s26 = scalar_lea.vmem %s389_s20, 128  ;;  %p7768_p8 = scmp.lt.s32.totalorder %s389_s20, %s389_s20 }
  0xa7   : > { %p7761_p1 = scmp.ne.s32.totalorder %s389_s20, %s7760_s26  ;;  %p7769_p9 = scmp.lt.s32.totalorder %s7760_s26, %s7760_s26 }
  0xa9   : > { %p7763_p4 = pnand %p7761_p1, %p8151_p7  ;;  %p7770_p10 = por %p7769_p9, %p7768_p8 }
  0xab   : > { %p7764_p6 = pneg %p7763_p4 }
  0xad   : > { %p7771_p2 = pnand %p7770_p10, %p7764_p6 }
  0xaf   : > { %7774 = shalt.err (!%p7771_p2)
}
  0xb0   : > { %s8010_s25 = smov 16   ;;  %s8011_s15 = smov 1  }
  0xb1   : > { %7278 = dma.hbm_to_vmem [thread:$0]  (!%p8137_p5), %s10398_s2, 128, %s389_s20, [#allocation8], %s8010_s25, %s8010_s25, %s8011_s15  }
  0xb2   : > { %s8012_s1 = smov [#allocation12]   ;;  %s8013_s19 = smov [#allocation15]  }
  0xb3   : > { %s414_s17 = sshll.u32 %s8012_s1, 4  ;;  %s440_s29 = sshll.u32 %s8013_s19, 4  ;;  %s415_s17 = int_to_ptr.vmem [resolvable:$true] %s414_s17  ;;  %s8304_s29 = int_to_ptr.vmem [resolvable:$true] %s440_s29 }
  0xb4   : > { %s7775_s23 = scalar_lea.hbm %s10400_s4, 32 }
  0xb5   : > { %p7776_p3 = scmp.ne.s32.totalorder %s10400_s4, %s7775_s23  ;;  %p7782_p13 = scmp.lt.u32.totalorder %s7775_s23, %s10400_s4 }
  0xb7   : > { %p7778_p11 = pnand %p7776_p3, %p8151_p7 }
  0xb9   : > { %p7779_p12 = pneg %p7778_p11 }
  0xbb   : > { %p7784_p0 = pnand %p7782_p13, %p7779_p12 }
  0xbd   : > { %7787 = shalt.err (!%p7784_p0)
}
  0xbe   : > { %s7788_s21 = scalar_lea.vmem %s415_s17, 32  ;;  %p7796_p8 = scmp.lt.s32.totalorder %s415_s17, %s415_s17 }
  0xbf   : > { %p7789_p1 = scmp.ne.s32.totalorder %s415_s17, %s7788_s21  ;;  %p7797_p9 = scmp.lt.s32.totalorder %s7788_s21, %s7788_s21 }
  0xc1   : > { %p7791_p4 = pnand %p7789_p1, %p8151_p7  ;;  %p7798_p10 = por %p7797_p9, %p7796_p8 }
  0xc3   : > { %p7792_p6 = pneg %p7791_p4 }
  0xc5   : > { %p7799_p2 = pnand %p7798_p10, %p7792_p6 }
  0xc7   : > { %7802 = shalt.err (!%p7799_p2)
}
  0xc8   : > { %7284 = dma.hbm_to_vmem [thread:$0]  (!%p8137_p5), %s10400_s4, 32, %s415_s17, [#allocation11], %s8010_s25, %s8010_s25, %s8011_s15  }
  0xc9   : > { %s7803_s23 = scalar_lea.hbm %s10402_s6, 32 }
  0xca   : > { %p7804_p3 = scmp.ne.s32.totalorder %s10402_s6, %s7803_s23  ;;  %p7810_p13 = scmp.lt.u32.totalorder %s7803_s23, %s10402_s6 }
  0xcc   : > { %p7806_p11 = pnand %p7804_p3, %p8151_p7 }
  0xce   : > { %p7807_p12 = pneg %p7806_p11 }
  0xd0   : > { %p7812_p0 = pnand %p7810_p13, %p7807_p12 }
  0xd2   : > { %7815 = shalt.err (!%p7812_p0)
}
  0xd3   : > { %s7816_s17 = scalar_lea.vmem %s8304_s29, 32  ;;  %p7824_p8 = scmp.lt.s32.totalorder %s8304_s29, %s8304_s29 }
  0xd4   : > { %p7817_p1 = scmp.ne.s32.totalorder %s8304_s29, %s7816_s17  ;;  %p7825_p9 = scmp.lt.s32.totalorder %s7816_s17, %s7816_s17 }
  0xd6   : > { %p7819_p4 = pnand %p7817_p1, %p8151_p7  ;;  %p7826_p10 = por %p7825_p9, %p7824_p8 }
  0xd8   : > { %p7820_p6 = pneg %p7819_p4 }
  0xda   : > { %p7827_p2 = pnand %p7826_p10, %p7820_p6 }
  0xdc   : > { %7830 = shalt.err (!%p7827_p2)
}
  0xdd   : > { %7290 = dma.hbm_to_vmem [thread:$0]  (!%p8137_p5), %s10402_s6, 32, %s8304_s29, [#allocation14], %s8010_s25, %s8010_s25, %s8011_s15  }
  0xde   : > { %s8014_s19 = smov [#allocation18]   ;;  %s8015_s16 = smov [#allocation21]  }
  0xdf   : > { %s466_s14 = sshll.u32 %s8014_s19, 4  ;;  %s492_s23 = sshll.u32 %s8015_s16, 4  ;;  %s467_s14 = int_to_ptr.vmem [resolvable:$true] %s466_s14  ;;  %s8353_s23 = int_to_ptr.vmem [resolvable:$true] %s492_s23 }
  0xe0   : > { %s7831_s12 = scalar_lea.hbm %s10404_s8, 32 }
  0xe1   : > { %p7832_p3 = scmp.ne.s32.totalorder %s10404_s8, %s7831_s12  ;;  %p7838_p13 = scmp.lt.u32.totalorder %s7831_s12, %s10404_s8 }
  0xe3   : > { %p7834_p11 = pnand %p7832_p3, %p8151_p7 }
  0xe5   : > { %p7835_p12 = pneg %p7834_p11 }
  0xe7   : > { %p7840_p0 = pnand %p7838_p13, %p7835_p12 }
  0xe9   : > { %7843 = shalt.err (!%p7840_p0)
}
  0xea   : > { %s7844_s1 = scalar_lea.vmem %s467_s14, 32  ;;  %p7852_p8 = scmp.lt.s32.totalorder %s467_s14, %s467_s14 }
  0xeb   : > { %p7845_p1 = scmp.ne.s32.totalorder %s467_s14, %s7844_s1  ;;  %p7853_p9 = scmp.lt.s32.totalorder %s7844_s1, %s7844_s1 }
  0xed   : > { %p7847_p4 = pnand %p7845_p1, %p8151_p7  ;;  %p7854_p10 = por %p7853_p9, %p7852_p8 }
  0xef   : > { %p7848_p6 = pneg %p7847_p4 }
  0xf1   : > { %p7855_p2 = pnand %p7854_p10, %p7848_p6 }
  0xf3   : > { %7858 = shalt.err (!%p7855_p2)
}
  0xf4   : > { %7296 = dma.hbm_to_vmem [thread:$0]  (!%p8137_p5), %s10404_s8, 32, %s467_s14, [#allocation17], %s8010_s25, %s8010_s25, %s8011_s15  }
  0xf5   : > { %s7859_s12 = scalar_lea.hbm %s10406_s10, 32 }
  0xf6   : > { %p7860_p3 = scmp.ne.s32.totalorder %s10406_s10, %s7859_s12  ;;  %p7866_p13 = scmp.lt.u32.totalorder %s7859_s12, %s10406_s10 }
  0xf8   : > { %p7862_p11 = pnand %p7860_p3, %p8151_p7 }
  0xfa   : > { %p7863_p12 = pneg %p7862_p11 }
  0xfc   : > { %p7868_p0 = pnand %p7866_p13, %p7863_p12 }
  0xfe   : > { %7871 = shalt.err (!%p7868_p0)
}
  0xff   : > { %s7872_s14 = scalar_lea.vmem %s8353_s23, 32  ;;  %p7880_p8 = scmp.lt.s32.totalorder %s8353_s23, %s8353_s23 }
 0x100   : > { %p7873_p1 = scmp.ne.s32.totalorder %s8353_s23, %s7872_s14  ;;  %p7881_p9 = scmp.lt.s32.totalorder %s7872_s14, %s7872_s14 }
 0x102   : > { %p7875_p4 = pnand %p7873_p1, %p8151_p7  ;;  %p7882_p10 = por %p7881_p9, %p7880_p8 }
 0x104   : > { %p7876_p6 = pneg %p7875_p4 }
 0x106   : > { %p7883_p2 = pnand %p7882_p10, %p7876_p6 }
 0x108   : > { %7886 = shalt.err (!%p7883_p2)
}
 0x109   : > { %7302 = dma.hbm_to_vmem [thread:$0]  (!%p8137_p5), %s10406_s10, 32, %s8353_s23, [#allocation20], %s8010_s25, %s8010_s25, %s8011_s15  }
 0x10a   : > { %s8016_s16 = smov [#allocation22]   ;;  %s7887_s20 = scalar_lea.hbm %s10407_s11, 128 }
 0x10b   : > { %s505_s18 = sshll.u32 %s8016_s16, 4  ;;  %p7888_p3 = scmp.ne.s32.totalorder %s10407_s11, %s7887_s20  ;;  %s506_s18 = int_to_ptr.vmem [resolvable:$true] %s505_s18 }
 0x10c   : > { %p7894_p13 = scmp.lt.u32.totalorder %s7887_s20, %s10407_s11 }
 0x10d   : > { %p7890_p11 = pnand %p7888_p3, %p8151_p7 }
 0x10f   : > { %p7891_p12 = pneg %p7890_p11 }
 0x111   : > { %p7896_p0 = pnand %p7894_p13, %p7891_p12 }
 0x113   : > { %7899 = shalt.err (!%p7896_p0)
}
 0x114   : > { %s7900_s25 = scalar_lea.vmem %s506_s18, 128  ;;  %p7908_p8 = scmp.lt.s32.totalorder %s506_s18, %s506_s18 }
 0x115   : > { %p7901_p1 = scmp.ne.s32.totalorder %s506_s18, %s7900_s25  ;;  %p7909_p9 = scmp.lt.s32.totalorder %s7900_s25, %s7900_s25 }
 0x117   : > { %p7903_p4 = pnand %p7901_p1, %p8151_p7  ;;  %p7910_p10 = por %p7909_p9, %p7908_p8 }
 0x119   : > { %p7904_p6 = pneg %p7903_p4 }
 0x11b   : > { %p7911_p2 = pnand %p7910_p10, %p7904_p6 }
 0x11d   : > { %7914 = shalt.err (!%p7911_p2)
}
 0x11e   : > { %s10453_s15 = smov 4   ;;  %s10454_s23 = smov 64  }
 0x11f   : > { %7305 = dma.hbm_to_vmem [thread:$0]  (!%p8137_p5), %s10407_s11, 128, %s506_s18, [#allocation23], %s10454_s23, %s10454_s23, %s10453_s15  }
 0x120   : > { %p10455_p3 = scmp.ne.s32.totalorder %s10449_s28, 0 }
 0x121   : > { %p10456_p7 = scmp.ne.s32.totalorder (!%p10455_p3), %s10448_s27, 0 }
 0x122   : > { %521 = sbr.rel (%p10455_p3) target bundleno = 5004 (0x138c), region = 68 }
 0x129   : > { %7954 = dma.done.wait (%p10456_p7), [#allocation5], 2048  }
 0x12a   : > { %7956 = vsyncadd (%p10456_p7), [#allocation5], 4294965248 }
 0x12b   : > { %7958 = dma.done.wait (%p10456_p7), [#allocation8], 1152  }
 0x12c   : > { %7960 = vsyncadd (%p10456_p7), [#allocation8], 4294966144 }
 0x12d   : > { %7962 = dma.done.wait (%p10456_p7), [#allocation11], 544  }
 0x12e   : > { %7964 = vsyncadd (%p10456_p7), [#allocation11], 4294966752 }
 0x12f   : > { %7966 = dma.done.wait (%p10456_p7), [#allocation14], 544  }
 0x130   : > { %7968 = vsyncadd (%p10456_p7), [#allocation14], 4294966752 }
 0x131   : > { %7970 = dma.done.wait (%p10456_p7), [#allocation17], 544  }
 0x132   : > { %7972 = vsyncadd (%p10456_p7), [#allocation17], 4294966752 }
 0x133   : > { %7974 = dma.done.wait (%p10456_p7), [#allocation20], 1056  }
 0x134   : > { %7976 = vsyncadd (%p10456_p7), [#allocation20], 4294966240 }
 0x135   : > { %7978 = dma.done.wait (%p10456_p7), [#allocation23], 128  }
 0x136   : > { %7980 = vsyncadd (%p10456_p7), [#allocation23], 4294967168  ;;  %s10457_s28 = sld [smem:[#allocation33_spill]] }
 0x13c   : > { %p6429_p5 = scmp.ne.s32.totalorder %s10457_s28, 0 }
 0x13e   : > { %605 = sbr.rel (%p6429_p5) target bundleno = 513 (0x201), region = 120 }
 0x145   : > { %v8454_v0 = vld [vmem:[#allocation4] sm:$0x3]  ;;  %v8456_v1 = vld [vmem:[#allocation4 + $0x2] sm:$0x3]  ;;  %v8458_v2 = vld [vmem:[#allocation4 + $0x4] sm:$0x3] }
 0x146   : > { %v8460_v3 = vld [vmem:[#allocation4 + $0x6] sm:$0x3]  ;;  %v8462_v4 = vld [vmem:[#allocation4 + $0x8] sm:$0x3]  ;;  %v8464_v5 = vld [vmem:[#allocation4 + $0xa] sm:$0x3]  ;;  %v10486_v59 = vunpack.c.l.bf16 %v8458_v2 }
 0x147   : > { %v8466_v6 = vld [vmem:[#allocation4 + $0xc] sm:$0x3]  ;;  %v8468_v7 = vld [vmem:[#allocation4 + $0xe] sm:$0x3]  ;;  %v8470_v8 = vld [vmem:[#allocation4 + $0x10] sm:$0x3] }
 0x148   : > { %v8472_v9 = vld [vmem:[#allocation4 + $0x12] sm:$0x3]  ;;  %v8474_v10 = vld [vmem:[#allocation4 + $0x14] sm:$0x3]  ;;  %v8476_v11 = vld [vmem:[#allocation4 + $0x16] sm:$0x3]  ;;  %v10490_v2 = vunpack.c.l.bf16 %v8466_v6 }
 0x149   : > { %v8478_v12 = vld [vmem:[#allocation4 + $0x18] sm:$0x3]  ;;  %v8480_v13 = vld [vmem:[#allocation4 + $0x1a] sm:$0x3]  ;;  %v8482_v14 = vld [vmem:[#allocation4 + $0x1c] sm:$0x3] }
 0x14a   : > { %v8484_v15 = vld [vmem:[#allocation4 + $0x1e] sm:$0x3]  ;;  %v8486_v16 = vld [vmem:[#allocation4 + $0x20] sm:$0x3]  ;;  %v8488_v17 = vld [vmem:[#allocation4 + $0x22] sm:$0x3] }
 0x14b   : > { %v8490_v18 = vld [vmem:[#allocation4 + $0x24] sm:$0x3]  ;;  %v8492_v19 = vld [vmem:[#allocation4 + $0x26] sm:$0x3]  ;;  %v8494_v20 = vld [vmem:[#allocation4 + $0x28] sm:$0x3] }
 0x14c   : > { %v8500_v25 = vld [vmem:[#allocation4 + $0x2a] sm:$0x3]  ;;  %v8502_v26 = vld [vmem:[#allocation4 + $0x2c] sm:$0x3]  ;;  %v8504_v27 = vld [vmem:[#allocation4 + $0x2e] sm:$0x3] }
 0x14d   : > { %v8510_v32 = vld [vmem:[#allocation4 + $0x30] sm:$0x3]  ;;  %v8512_v33 = vld [vmem:[#allocation4 + $0x32] sm:$0x3]  ;;  %v8514_v34 = vld [vmem:[#allocation4 + $0x34] sm:$0x3] }
 0x14e   : > { %v8520_v39 = vld [vmem:[#allocation4 + $0x36] sm:$0x3]  ;;  %v8522_v40 = vld [vmem:[#allocation4 + $0x38] sm:$0x3]  ;;  %v8524_v41 = vld [vmem:[#allocation4 + $0x3a] sm:$0x3] }
 0x14f   : > { %v8530_v46 = vld [vmem:[#allocation4 + $0x3c] sm:$0x3]  ;;  %v8532_v47 = vld [vmem:[#allocation4 + $0x3e] sm:$0x3]  ;;  %v8534_v48 = vld [vmem:[#allocation4 + $0x40] sm:$0x3] }
 0x150   : > { %v8540_v53 = vld [vmem:[#allocation4 + $0x42] sm:$0x3]  ;;  %v8542_v54 = vld [vmem:[#allocation4 + $0x44] sm:$0x3]  ;;  %v8544_v55 = vld [vmem:[#allocation4 + $0x46] sm:$0x3] }
 0x151   : > { %v8550_v60 = vld [vmem:[#allocation4 + $0x48] sm:$0x3]  ;;  %v8552_v61 = vld [vmem:[#allocation4 + $0x4a] sm:$0x3]  ;;  %v8554_v62 = vld [vmem:[#allocation4 + $0x4c] sm:$0x3] }
 0x152   : > { %10458 = vst [vmem:[#allocation35_spill] sm:$0xff] %v8554_v62  ;;  %v8560_v50 = vld [vmem:[#allocation4 + $0x4e] sm:$0x3]  ;;  %v8562_v57 = vld [vmem:[#allocation4 + $0x50] sm:$0x3]  ;;  %vm734_vm0 = vcmask 257024  }
 0x153   : > { %10459 = vst [vmem:[#allocation36_spill] sm:$0xff] %v8560_v50  ;;  %10460 = vst [vmem:[#allocation37_spill] sm:$0xff] %v8562_v57  ;;  %v8564_v58 = vld [vmem:[#allocation4 + $0x52] sm:$0x3]  ;;  %v8570_v44 = vld [vmem:[#allocation4 + $0x54] sm:$0x3] }
 0x154   : > { %10461 = vst [vmem:[#allocation38_spill] sm:$0xff] %v8564_v58  ;;  %10462 = vst [vmem:[#allocation39_spill] sm:$0xff] %v8570_v44  ;;  %v8572_v52 = vld [vmem:[#allocation4 + $0x56] sm:$0x3]  ;;  %v8574_v51 = vld [vmem:[#allocation4 + $0x58] sm:$0x3] }
 0x155   : > { %10463 = vst [vmem:[#allocation40_spill] sm:$0xff] %v8572_v52  ;;  %10464 = vst [vmem:[#allocation41_spill] sm:$0xff] %v8574_v51  ;;  %v8580_v38 = vld [vmem:[#allocation4 + $0x5a] sm:$0x3]  ;;  %v8582_v49 = vld [vmem:[#allocation4 + $0x5c] sm:$0x3] }
 0x156   : > { %10465 = vst [vmem:[#allocation42_spill] sm:$0xff] %v8580_v38  ;;  %10466 = vst [vmem:[#allocation43_spill] sm:$0xff] %v8582_v49  ;;  %v8584_v45 = vld [vmem:[#allocation4 + $0x5e] sm:$0x3]  ;;  %v8590_v35 = vld [vmem:[#allocation4 + $0x60] sm:$0x3] }
 0x157   : > { %10467 = vst [vmem:[#allocation44_spill] sm:$0xff] %v8584_v45  ;;  %10468 = vst [vmem:[#allocation45_spill] sm:$0xff] %v8590_v35  ;;  %v8592_v43 = vld [vmem:[#allocation4 + $0x62] sm:$0x3]  ;;  %v8594_v42 = vld [vmem:[#allocation4 + $0x64] sm:$0x3]  ;;  %v10487_v45 = vunpack.c.l.bf16 %v8460_v3 }
 0x158   : > { %10469 = vst [vmem:[#allocation46_spill] sm:$0xff] %v8592_v43  ;;  %10470 = vst [vmem:[#allocation47_spill] sm:$0xff] %v8594_v42  ;;  %v8600_v29 = vld [vmem:[#allocation4 + $0x66] sm:$0x3]  ;;  %v8602_v37 = vld [vmem:[#allocation4 + $0x68] sm:$0x3] }
 0x159   : > { %10471 = vst [vmem:[#allocation48_spill] sm:$0xff] %v8600_v29  ;;  %10472 = vst [vmem:[#allocation49_spill] sm:$0xff] %v8602_v37  ;;  %v8604_v36 = vld [vmem:[#allocation4 + $0x6a] sm:$0x3]  ;;  %v8610_v23 = vld [vmem:[#allocation4 + $0x6c] sm:$0x3]  ;;  %v10485_v29 = vunpack.c.l.bf16 %v8456_v1  ;;  %v10489_v1 = vunpack.c.l.bf16 %v8464_v5 }
 0x15a   : > { %10473 = vst [vmem:[#allocation50_spill] sm:$0xff] %v8604_v36  ;;  %10474 = vst [vmem:[#allocation51_spill] sm:$0xff] %v8610_v23  ;;  %v8612_v31 = vld [vmem:[#allocation4 + $0x6e] sm:$0x3]  ;;  %v8614_v30 = vld [vmem:[#allocation4 + $0x70] sm:$0x3]  ;;  %v10484_v23 = vunpack.c.l.bf16 %v8454_v0  ;;  %v10488_v0 = vunpack.c.l.bf16 %v8462_v4  ;;  %v10491_v36 = vunpack.c.l.bf16 %v8468_v7 }
 0x15b   : > { %10475 = vst [vmem:[#allocation52_spill] sm:$0xff] %v8612_v31  ;;  %10476 = vst [vmem:[#allocation53_spill] sm:$0xff] %v8614_v30  ;;  %v8620_v51 = vld [vmem:[#allocation4 + $0x72] sm:$0x3]  ;;  %v8622_v28 = vld [vmem:[#allocation4 + $0x74] sm:$0x3] }
 0x15c   : > { %10477 = vst [vmem:[#allocation54_spill] sm:$0xff] %v8620_v51  ;;  %10478 = vst [vmem:[#allocation55_spill] sm:$0xff] %v8622_v28  ;;  %v8624_v24 = vld [vmem:[#allocation4 + $0x76] sm:$0x3]  ;;  %v8630_v35 = vld [vmem:[#allocation4 + $0x78] sm:$0x3] }
 0x15d   : > { %10479 = vst [vmem:[#allocation56_spill] sm:$0xff] %v8624_v24  ;;  %10480 = vst [vmem:[#allocation57_spill] sm:$0xff] %v8630_v35  ;;  %v8632_v22 = vld [vmem:[#allocation4 + $0x7a] sm:$0x3]  ;;  %v8634_v21 = vld [vmem:[#allocation4 + $0x7c] sm:$0x3] }
 0x15e   : > { %10481 = vst [vmem:[#allocation58_spill] sm:$0xff] %v8632_v22  ;;  %10482 = vst [vmem:[#allocation59_spill] sm:$0xff] %v8634_v21  ;;  %v8640_v37 = vld [vmem:[#allocation4 + $0x7e] sm:$0x3]  ;;  %v735_v56 = vsel %vm734_vm0, %v10484_v23, 0.0  ;;  %v742_v42 = vsel %vm734_vm0, %v10485_v29, 0.0 }
 0x15f   : > { %10483 = vst [vmem:[#allocation60_spill] sm:$0xff] %v8640_v37  ;;  %v749_v24 = vsel %vm734_vm0, %v10486_v59, 0.0  ;;  %v736_v49 = vrot.slane %v735_v56, 4  ;;  %v743_v35 = vrot.slane %v742_v42, 4  ;;  %v756_v21 = vsel %vm734_vm0, %v10487_v45, 0.0 }
 0x160   : > { %v750_v63 = vrot.slane %v749_v24, 4  ;;  %v757_v31 = vrot.slane %v756_v21, 4  ;;  %v763_v23 = vsel %vm734_vm0, %v10488_v0, 0.0  ;;  %v770_v29 = vsel %vm734_vm0, %v10489_v1, 0.0 }
 0x161   : > { %v777_v59 = vsel %vm734_vm0, %v10490_v2, 0.0  ;;  %v737_v37 = vadd.f32 %v736_v49, %v735_v56  ;;  %v744_v22 = vadd.f32 %v743_v35, %v742_v42  ;;  %v764_v51 = vrot.slane %v763_v23, 4 }
 0x162   : > { %v751_v28 = vadd.f32 %v750_v63, %v749_v24  ;;  %v758_v3 = vadd.f32 %v757_v31, %v756_v21  ;;  %v771_v30 = vrot.slane %v770_v29, 4  ;;  %v778_v45 = vrot.slane %v777_v59, 4 }
 0x163   : > { %v784_v4 = vsel %vm734_vm0, %v10491_v36, 0.0  ;;  %v738_v0 = vrot.slane %v737_v37, 2  ;;  %v745_v43 = vrot.slane %v744_v22, 2  ;;  %v765_v38 = vadd.f32 %v764_v51, %v763_v23 }
 0x164   : > { %v752_v5 = vrot.slane %v751_v28, 2  ;;  %v759_v1 = vrot.slane %v758_v3, 2  ;;  %v772_v52 = vadd.f32 %v771_v30, %v770_v29  ;;  %v779_v6 = vadd.f32 %v778_v45, %v777_v59 }
 0x165   : > { %v785_v44 = vrot.slane %v784_v4, 4  ;;  %v739_v2 = vadd.f32 %v738_v0, %v737_v37  ;;  %v746_v49 = vadd.f32 %v745_v43, %v744_v22  ;;  %v766_v24 = vrot.slane %v765_v38, 2 }
 0x166   : > { %v753_v35 = vadd.f32 %v752_v5, %v751_v28  ;;  %v760_v42 = vadd.f32 %v759_v1, %v758_v3  ;;  %v773_v21 = vrot.slane %v772_v52, 2  ;;  %v780_v31 = vrot.slane %v779_v6, 2 }
 0x167   : > { %v786_v56 = vadd.f32 %v785_v44, %v784_v4  ;;  %v740_v63 = vrot.slane %v739_v2, 1  ;;  %v747_v7 = vrot.slane %v746_v49, 1  ;;  %v767_v36 = vadd.f32 %v766_v24, %v765_v38 }
 0x168   : > { %v754_v58 = vrot.slane %v753_v35, 1  ;;  %v761_v57 = vrot.slane %v760_v42, 1  ;;  %v774_v50 = vadd.f32 %v773_v21, %v772_v52  ;;  %v781_v62 = vadd.f32 %v780_v31, %v779_v6 }
 0x169   : > { %v787_v51 = vrot.slane %v786_v56, 2  ;;  %v8670_v23 = vadd.f32 %v740_v63, %v739_v2  ;;  %v8672_v30 = vadd.f32 %v747_v7, %v746_v49  ;;  %v768_v22 = vrot.slane %v767_v36, 1 }
 0x16a   : > { %v8674_v37 = vadd.f32 %v754_v58, %v753_v35  ;;  %v8676_v28 = vadd.f32 %v761_v57, %v760_v42  ;;  %v775_v43 = vrot.slane %v774_v50, 1  ;;  %v782_v29 = vrot.slane %v781_v62, 1 }
 0x16b   : > { %v788_v44 = vadd.f32 %v787_v51, %v786_v56  ;;  %v8678_v59 = vadd.f32 %v768_v22, %v767_v36  ;;  %v10492_v38 = vunpack.c.l.bf16 %v8470_v8  ;;  %v10493_v3 = vunpack.c.l.bf16 %v8472_v9 }
 0x16c   : > { %v10494_v4 = vunpack.c.l.bf16 %v8474_v10  ;;  %v8689_v0 = vadd.f32 %v775_v43, %v774_v50  ;;  %v8691_v57 = vadd.f32 %v782_v29, %v781_v62  ;;  %v10495_v8 = vunpack.c.l.bf16 %v8476_v11 }
 0x16d   : > { %v791_v52 = vsel %vm734_vm0, %v10492_v38, 0.0  ;;  %v798_v45 = vsel %vm734_vm0, %v10493_v3, 0.0  ;;  %v789_v5 = vrot.slane %v788_v44, 1  ;;  %v10496_v9 = vunpack.c.l.bf16 %v8478_v12 }
 0x16e   : > { %v805_v58 = vsel %vm734_vm0, %v10494_v4, 0.0  ;;  %v792_v1 = vrot.slane %v791_v52, 4  ;;  %v799_v6 = vrot.slane %v798_v45, 4  ;;  %v812_v49 = vsel %vm734_vm0, %v10495_v8, 0.0 }
 0x16f   : > { %v806_v2 = vrot.slane %v805_v58, 4  ;;  %v819_v35 = vsel %vm734_vm0, %v10496_v9, 0.0  ;;  %v8699_v24 = vadd.f32 %v789_v5, %v788_v44  ;;  %v813_v42 = vrot.slane %v812_v49, 4 }
 0x170   : > { %v793_v10 = vadd.f32 %v792_v1, %v791_v52  ;;  %v820_v50 = vrot.slane %v819_v35, 4  ;;  %v800_v21 = vadd.f32 %v799_v6, %v798_v45  ;;  %v10497_v31 = vunpack.c.l.bf16 %v8480_v13 }
 0x171   : > { %v807_v62 = vadd.f32 %v806_v2, %v805_v58  ;;  %v10498_v63 = vunpack.c.l.bf16 %v8482_v14  ;;  %v814_v36 = vadd.f32 %v813_v42, %v812_v49  ;;  %v10499_v44 = vunpack.c.l.bf16 %v8484_v15 }
 0x172   : > { %v826_v56 = vsel %vm734_vm0, %v10497_v31, 0.0  ;;  %v794_v7 = vrot.slane %v793_v10, 2  ;;  %v821_v12 = vadd.f32 %v820_v50, %v819_v35  ;;  %v801_v22 = vrot.slane %v800_v21, 2 }
 0x173   : > { %v833_v11 = vsel %vm734_vm0, %v10498_v63, 0.0  ;;  %v827_v51 = vrot.slane %v826_v56, 4  ;;  %v808_v43 = vrot.slane %v807_v62, 2  ;;  %v840_v38 = vsel %vm734_vm0, %v10499_v44, 0.0 }
 0x174   : > { %v834_v29 = vrot.slane %v833_v11, 4  ;;  %v795_v52 = vadd.f32 %v794_v7, %v793_v10  ;;  %v815_v3 = vrot.slane %v814_v36, 2  ;;  %v822_v13 = vrot.slane %v821_v12, 2 }
 0x175   : > { %v828_v45 = vadd.f32 %v827_v51, %v826_v56  ;;  %v802_v4 = vadd.f32 %v801_v22, %v800_v21  ;;  %v809_v58 = vadd.f32 %v808_v43, %v807_v62  ;;  %v841_v5 = vrot.slane %v840_v38, 4 }
 0x176   : > { %v835_v14 = vadd.f32 %v834_v29, %v833_v11  ;;  %v796_v1 = vrot.slane %v795_v52, 1  ;;  %v816_v6 = vadd.f32 %v815_v3, %v814_v36  ;;  %v823_v2 = vadd.f32 %v822_v13, %v821_v12 }
 0x177   : > { %v829_v8 = vrot.slane %v828_v45, 2  ;;  %v803_v49 = vrot.slane %v802_v4, 1  ;;  %v810_v9 = vrot.slane %v809_v58, 1  ;;  %v842_v42 = vadd.f32 %v841_v5, %v840_v38 }
 0x178   : > { %v836_v35 = vrot.slane %v835_v14, 2  ;;  %v8710_v50 = vadd.f32 %v796_v1, %v795_v52  ;;  %v817_v15 = vrot.slane %v816_v6, 1  ;;  %v824_v31 = vrot.slane %v823_v2, 1 }
 0x179   : > { %v830_v10 = vadd.f32 %v829_v8, %v828_v45  ;;  %v8712_v63 = vadd.f32 %v803_v49, %v802_v4  ;;  %v8714_v56 = vadd.f32 %v810_v9, %v809_v58  ;;  %v843_v62 = vrot.slane %v842_v42, 2 }
 0x17a   : > { %v837_v21 = vadd.f32 %v836_v35, %v835_v14  ;;  %v8716_v11 = vadd.f32 %v817_v15, %v816_v6  ;;  %v8718_v7 = vadd.f32 %v824_v31, %v823_v2  ;;  %v10500_v12 = vunpack.c.l.bf16 %v8486_v16 }
 0x17b   : > { %v831_v36 = vrot.slane %v830_v10, 1  ;;  %v844_v43 = vadd.f32 %v843_v62, %v842_v42  ;;  %v10501_v44 = vunpack.c.l.bf16 %v8488_v17  ;;  %v10502_v13 = vunpack.c.l.bf16 %v8490_v18 }
 0x17c   : > { %v847_v51 = vsel %vm734_vm0, %v10500_v12, 0.0  ;;  %v838_v22 = vrot.slane %v837_v21, 1  ;;  %v10503_v4 = vunpack.c.l.bf16 %v8492_v19  ;;  %v10504_v2 = vunpack.c.l.bf16 %v8494_v20 }
 0x17d   : > { %v848_v29 = vrot.slane %v847_v51, 4  ;;  %v854_v38 = vsel %vm734_vm0, %v10501_v44, 0.0  ;;  %v8726_v52 = vadd.f32 %v831_v36, %v830_v10  ;;  %v861_v45 = vsel %vm734_vm0, %v10502_v13, 0.0 }
 0x17e   : > { %v855_v3 = vrot.slane %v854_v38, 4  ;;  %v868_v16 = vsel %vm734_vm0, %v10503_v4, 0.0  ;;  %v8734_v58 = vadd.f32 %v838_v22, %v837_v21  ;;  %v845_v14 = vrot.slane %v844_v43, 1 }
 0x17f   : > { %v849_v5 = vadd.f32 %v848_v29, %v847_v51  ;;  %v862_v1 = vrot.slane %v861_v45, 4  ;;  %v869_v17 = vrot.slane %v868_v16, 4  ;;  %v875_v8 = vsel %vm734_vm0, %v10504_v2, 0.0 }
 0x180   : > { %v856_v6 = vadd.f32 %v855_v3, %v854_v38  ;;  %v10505_v49 = vunpack.c.l.bf16 %v8500_v25  ;;  %v8742_v9 = vadd.f32 %v845_v14, %v844_v43  ;;  %v876_v42 = vrot.slane %v875_v8, 4 }
 0x181   : > { %v850_v19 = vrot.slane %v849_v5, 2  ;;  %v863_v35 = vadd.f32 %v862_v1, %v861_v45  ;;  %v870_v31 = vadd.f32 %v869_v17, %v868_v16  ;;  %v10506_v21 = vunpack.c.l.bf16 %v8502_v26 }
 0x182   : > { %v882_v18 = vsel %vm734_vm0, %v10505_v49, 0.0  ;;  %v857_v15 = vrot.slane %v856_v6, 2  ;;  %v877_v12 = vadd.f32 %v876_v42, %v875_v8  ;;  %v10507_v43 = vunpack.c.l.bf16 %v8504_v27 }
 0x183   : > { %v883_v10 = vrot.slane %v882_v18, 4  ;;  %v889_v62 = vsel %vm734_vm0, %v10506_v21, 0.0  ;;  %v851_v36 = vadd.f32 %v850_v19, %v849_v5  ;;  %v864_v20 = vrot.slane %v863_v35, 2 }
 0x184   : > { %v890_v51 = vrot.slane %v889_v62, 4  ;;  %v858_v22 = vadd.f32 %v857_v15, %v856_v6  ;;  %v871_v25 = vrot.slane %v870_v31, 2  ;;  %v896_v44 = vsel %vm734_vm0, %v10507_v43, 0.0 }
 0x185   : > { %v884_v29 = vadd.f32 %v883_v10, %v882_v18  ;;  %v852_v38 = vrot.slane %v851_v36, 1  ;;  %v865_v3 = vadd.f32 %v864_v20, %v863_v35  ;;  %v878_v13 = vrot.slane %v877_v12, 2 }
 0x186   : > { %v891_v45 = vadd.f32 %v890_v51, %v889_v62  ;;  %v859_v4 = vrot.slane %v858_v22, 1  ;;  %v872_v16 = vadd.f32 %v871_v25, %v870_v31  ;;  %v897_v14 = vrot.slane %v896_v44, 4 }
 0x187   : > { %v885_v26 = vrot.slane %v884_v29, 2  ;;  %v8750_v1 = vadd.f32 %v852_v38, %v851_v36  ;;  %v866_v5 = vrot.slane %v865_v3, 1  ;;  %v879_v17 = vadd.f32 %v878_v13, %v877_v12 }
 0x188   : > { %v892_v2 = vrot.slane %v891_v45, 2  ;;  %v8752_v6 = vadd.f32 %v859_v4, %v858_v22  ;;  %v873_v8 = vrot.slane %v872_v16, 1  ;;  %v898_v27 = vadd.f32 %v897_v14, %v896_v44 }
 0x189   : > { %v886_v49 = vadd.f32 %v885_v26, %v884_v29  ;;  %v8754_v18 = vadd.f32 %v866_v5, %v865_v3  ;;  %v880_v19 = vrot.slane %v879_v17, 1  ;;  %v10508_v42 = vunpack.c.l.bf16 %v8510_v32 }
 0x18a   : > { %v893_v35 = vadd.f32 %v892_v2, %v891_v45  ;;  %v8759_v31 = vadd.f32 %v873_v8, %v872_v16  ;;  %v899_v21 = vrot.slane %v898_v27, 2  ;;  %v10509_v12 = vunpack.c.l.bf16 %v8512_v33 }
 0x18b   : > { %v903_v15 = vsel %vm734_vm0, %v10508_v42, 0.0  ;;  %v887_v10 = vrot.slane %v886_v49, 1  ;;  %v8761_v36 = vadd.f32 %v880_v19, %v879_v17  ;;  %v10510_v22 = vunpack.c.l.bf16 %v8514_v34 }
 0x18c   : > { %v904_v62 = vrot.slane %v903_v15, 4  ;;  %v894_v20 = vrot.slane %v893_v35, 1  ;;  %v910_v51 = vsel %vm734_vm0, %v10509_v12, 0.0  ;;  %v900_v32 = vadd.f32 %v899_v21, %v898_v27 }
 0x18d   : > { %v917_v25 = vsel %vm734_vm0, %v10510_v22, 0.0  ;;  %v8769_v29 = vadd.f32 %v887_v10, %v886_v49  ;;  %v911_v44 = vrot.slane %v910_v51, 4  ;;  %v10511_v13 = vunpack.c.l.bf16 %v8520_v39 }
 0x18e   : > { %v905_v43 = vadd.f32 %v904_v62, %v903_v15  ;;  %v8771_v38 = vadd.f32 %v894_v20, %v893_v35  ;;  %v918_v3 = vrot.slane %v917_v25, 4  ;;  %v10512_v33 = vunpack.c.l.bf16 %v8522_v40 }
 0x18f   : > { %v924_v45 = vsel %vm734_vm0, %v10511_v13, 0.0  ;;  %v901_v16 = vrot.slane %v900_v32, 1  ;;  %v912_v26 = vadd.f32 %v911_v44, %v910_v51  ;;  %v10513_v2 = vunpack.c.l.bf16 %v8524_v41 }
 0x190   : > { %v931_v4 = vsel %vm734_vm0, %v10512_v33, 0.0  ;;  %v906_v34 = vrot.slane %v905_v43, 2  ;;  %v925_v14 = vrot.slane %v924_v45, 4  ;;  %v919_v5 = vadd.f32 %v918_v3, %v917_v25 }
 0x191   : > { %v932_v17 = vrot.slane %v931_v4, 4  ;;  %v938_v8 = vsel %vm734_vm0, %v10513_v2, 0.0  ;;  %v10514_v49 = vunpack.c.l.bf16 %v8530_v46  ;;  %v8785_v27 = vadd.f32 %v901_v16, %v900_v32 }
 0x192   : > { %v907_v19 = vadd.f32 %v906_v34, %v905_v43  ;;  %v913_v40 = vrot.slane %v912_v26, 2  ;;  %v926_v35 = vadd.f32 %v925_v14, %v924_v45  ;;  %v920_v42 = vrot.slane %v919_v5, 2 }
 0x193   : > { %v945_v39 = vsel %vm734_vm0, %v10514_v49, 0.0  ;;  %v933_v15 = vadd.f32 %v932_v17, %v931_v4  ;;  %v939_v10 = vrot.slane %v938_v8, 4  ;;  %v10515_v41 = vunpack.c.l.bf16 %v8532_v47 }
 0x194   : > { %v946_v21 = vrot.slane %v945_v39, 4  ;;  %v908_v62 = vrot.slane %v907_v19, 1  ;;  %v914_v20 = vadd.f32 %v913_v40, %v912_v26  ;;  %v927_v12 = vrot.slane %v926_v35, 2 }
 0x195   : > { %v952_v51 = vsel %vm734_vm0, %v10515_v41, 0.0  ;;  %v921_v22 = vadd.f32 %v920_v42, %v919_v5  ;;  %v934_v46 = vrot.slane %v933_v15, 2  ;;  %v940_v25 = vadd.f32 %v939_v10, %v938_v8 }
 0x196   : > { %v947_v44 = vadd.f32 %v946_v21, %v945_v39  ;;  %v8790_v32 = vadd.f32 %v908_v62, %v907_v19  ;;  %v915_v43 = vrot.slane %v914_v20, 1  ;;  %v928_v3 = vadd.f32 %v927_v12, %v926_v35 }
 0x197   : > { %v953_v13 = vrot.slane %v952_v51, 4  ;;  %v922_v45 = vrot.slane %v921_v22, 1  ;;  %v935_v33 = vadd.f32 %v934_v46, %v933_v15  ;;  %v941_v4 = vrot.slane %v940_v25, 2 }
 0x198   : > { %v948_v16 = vrot.slane %v947_v44, 2  ;;  %v8792_v34 = vadd.f32 %v915_v43, %v914_v20  ;;  %v929_v26 = vrot.slane %v928_v3, 1  ;;  %v10516_v47 = vunpack.c.l.bf16 %v8534_v48 }
 0x199   : > { %v954_v14 = vadd.f32 %v953_v13, %v952_v51  ;;  %v8797_v17 = vadd.f32 %v922_v45, %v921_v22  ;;  %v936_v2 = vrot.slane %v935_v33, 1  ;;  %v942_v8 = vadd.f32 %v941_v4, %v940_v25 }
 0x19a   : > { %v959_v5 = vsel %vm734_vm0, %v10516_v47, 0.0  ;;  %v949_v49 = vadd.f32 %v948_v16, %v947_v44  ;;  %v8799_v39 = vadd.f32 %v929_v26, %v928_v3  ;;  %v10517_v35 = vunpack.c.l.bf16 %v8540_v53 }
 0x19b   : > { %v955_v19 = vrot.slane %v954_v14, 2  ;;  %v960_v40 = vrot.slane %v959_v5, 4  ;;  %v8804_v15 = vadd.f32 %v936_v2, %v935_v33  ;;  %v943_v10 = vrot.slane %v942_v8, 1 }
 0x19c   : > { %v966_v42 = vsel %vm734_vm0, %v10517_v35, 0.0  ;;  %v950_v21 = vrot.slane %v949_v49, 1  ;;  %v10518_v12 = vunpack.c.l.bf16 %v8542_v54  ;;  %v10519_v51 = vunpack.c.l.bf16 %v8544_v55 }
 0x19d   : > { %v967_v48 = vrot.slane %v966_v42, 4  ;;  %v956_v62 = vadd.f32 %v955_v19, %v954_v14  ;;  %v961_v20 = vadd.f32 %v960_v40, %v959_v5  ;;  %v8812_v46 = vadd.f32 %v943_v10, %v942_v8  ;;  %v10522_v40 = vld [vmem:[#allocation35_spill] sm:$0xff] }
 0x19e   : > { %v973_v41 = vsel %vm734_vm0, %v10518_v12, 0.0  ;;  %v980_v22 = vsel %vm734_vm0, %v10519_v51, 0.0  ;;  %v8814_v53 = vadd.f32 %v950_v21, %v949_v49  ;;  %v10520_v45 = vunpack.c.l.bf16 %v8550_v60  ;;  %v10524_v51 = vld [vmem:[#allocation36_spill] sm:$0xff] }
 0x19f   : > { %v968_v25 = vadd.f32 %v967_v48, %v966_v42  ;;  %v974_v44 = vrot.slane %v973_v41, 4  ;;  %v957_v43 = vrot.slane %v956_v62, 1  ;;  %v962_v3 = vrot.slane %v961_v20, 2 }
 0x1a0   : > { %v981_v13 = vrot.slane %v980_v22, 4  ;;  %v987_v33 = vsel %vm734_vm0, %v10520_v45, 0.0  ;;  %v10521_v55 = vunpack.c.l.bf16 %v8552_v61  ;;  %v10523_v35 = vunpack.c.l.bf16 %v10522_v40 }
 0x1a1   : > { %v969_v54 = vrot.slane %v968_v25, 2  ;;  %v975_v4 = vadd.f32 %v974_v44, %v973_v41  ;;  %v988_v16 = vrot.slane %v987_v33, 4  ;;  %v8822_v14 = vadd.f32 %v957_v43, %v956_v62 }
 0x1a2   : > { %v994_v26 = vsel %vm734_vm0, %v10521_v55, 0.0  ;;  %v963_v47 = vadd.f32 %v962_v3, %v961_v20  ;;  %v982_v5 = vadd.f32 %v981_v13, %v980_v22  ;;  %v1001_v60 = vsel %vm734_vm0, %v10523_v35, 0.0 }
 0x1a3   : > { %v995_v2 = vrot.slane %v994_v26, 4  ;;  %v970_v8 = vadd.f32 %v969_v54, %v968_v25  ;;  %v976_v49 = vrot.slane %v975_v4, 2  ;;  %v989_v19 = vadd.f32 %v988_v16, %v987_v33 }
 0x1a4   : > { %v964_v42 = vrot.slane %v963_v47, 1  ;;  %v983_v10 = vrot.slane %v982_v5, 2  ;;  %v1002_v48 = vrot.slane %v1001_v60, 4  ;;  %v10525_v62 = vunpack.c.l.bf16 %v10524_v51 }
 0x1a5   : > { %v996_v21 = vadd.f32 %v995_v2, %v994_v26  ;;  %v971_v12 = vrot.slane %v970_v8, 1  ;;  %v977_v61 = vadd.f32 %v976_v49, %v975_v4  ;;  %v990_v41 = vrot.slane %v989_v19, 2  ;;  %v10526_v26 = vld [vmem:[#allocation37_spill] sm:$0xff] }
 0x1a6   : > { %v1008_v20 = vsel %vm734_vm0, %v10525_v62, 0.0  ;;  %v8830_v22 = vadd.f32 %v964_v42, %v963_v47  ;;  %v984_v25 = vadd.f32 %v983_v10, %v982_v5  ;;  %v1003_v43 = vadd.f32 %v1002_v48, %v1001_v60  ;;  %v10530_v42 = vld [vmem:[#allocation38_spill] sm:$0xff]  ;;  %v10534_v62 = vld [vmem:[#allocation39_spill] sm:$0xff] }
 0x1a7   : > { %v997_v44 = vrot.slane %v996_v21, 2  ;;  %v8832_v3 = vadd.f32 %v971_v12, %v970_v8  ;;  %v978_v13 = vrot.slane %v977_v61, 1  ;;  %v991_v45 = vadd.f32 %v990_v41, %v989_v19 }
 0x1a8   : > { %v1009_v33 = vrot.slane %v1008_v20, 4  ;;  %v985_v54 = vrot.slane %v984_v25, 1  ;;  %v1004_v55 = vrot.slane %v1003_v43, 2  ;;  %v10527_v4 = vunpack.c.l.bf16 %v10526_v26 }
 0x1a9   : > { %v998_v16 = vadd.f32 %v997_v44, %v996_v21  ;;  %v8837_v49 = vadd.f32 %v978_v13, %v977_v61  ;;  %v992_v40 = vrot.slane %v991_v45, 1  ;;  %v10531_v10 = vunpack.c.l.bf16 %v10530_v42 }
 0x1aa   : > { %v1015_v2 = vsel %vm734_vm0, %v10527_v4, 0.0  ;;  %v1010_v47 = vadd.f32 %v1009_v33, %v1008_v20  ;;  %v8839_v5 = vadd.f32 %v985_v54, %v984_v25  ;;  %v1005_v8 = vadd.f32 %v1004_v55, %v1003_v43  ;;  %v10536_v25 = vld [vmem:[#allocation40_spill] sm:$0xff] }
 0x1ab   : > { %10528 = vst [vmem:[#allocation35_spill] sm:$0xff] %v8837_v49  ;;  %v1016_v35 = vrot.slane %v1015_v2, 4  ;;  %v999_v60 = vrot.slane %v998_v16, 1  ;;  %v1022_v19 = vsel %vm734_vm0, %v10531_v10, 0.0  ;;  %v8844_v48 = vadd.f32 %v992_v40, %v991_v45  ;;  %v10576_v49 = vld [vmem:[#allocation54_spill] sm:$0xff] }
 0x1ac   : > { %10529 = vst [vmem:[#allocation36_spill] sm:$0xff] %v8839_v5  ;;  %v1011_v21 = vrot.slane %v1010_v47, 2  ;;  %v1023_v41 = vrot.slane %v1022_v19, 4  ;;  %v1006_v61 = vrot.slane %v1005_v8, 1  ;;  %v10535_v44 = vunpack.c.l.bf16 %v10534_v62 }
 0x1ad   : > { %10532 = vst [vmem:[#allocation37_spill] sm:$0xff] %v8844_v48  ;;  %v1017_v12 = vadd.f32 %v1016_v35, %v1015_v2  ;;  %v8846_v51 = vadd.f32 %v999_v60, %v998_v16  ;;  %v10537_v13 = vunpack.c.l.bf16 %v10536_v25  ;;  %v10539_v2 = vld [vmem:[#allocation41_spill] sm:$0xff]  ;;  %v10541_v35 = vld [vmem:[#allocation42_spill] sm:$0xff]  ;;  %vm1311_vm1 = vcmask 1041409  }
 0x1ae   : > { %v1029_v20 = vsel %vm734_vm0, %v10535_v44, 0.0  ;;  %v1012_v33 = vadd.f32 %v1011_v21, %v1010_v47  ;;  %v1024_v55 = vadd.f32 %v1023_v41, %v1022_v19  ;;  %v8854_v45 = vadd.f32 %v1006_v61, %v1005_v8  ;;  %v10543_v19 = vld [vmem:[#allocation43_spill] sm:$0xff] }
 0x1af   : > { %10533 = vst [vmem:[#allocation38_spill] sm:$0xff] %v8846_v51  ;;  %v1036_v43 = vsel %vm734_vm0, %v10537_v13, 0.0  ;;  %v1018_v54 = vrot.slane %v1017_v12, 2  ;;  %v1030_v26 = vrot.slane %v1029_v20, 4  ;;  %v10540_v40 = vunpack.c.l.bf16 %v10539_v2 }
 0x1b0   : > { %10538 = vst [vmem:[#allocation39_spill] sm:$0xff] %v8854_v45  ;;  %v1037_v4 = vrot.slane %v1036_v43, 4  ;;  %v10542_v60 = vunpack.c.l.bf16 %v10541_v35  ;;  %v1013_v10 = vrot.slane %v1012_v33, 1  ;;  %v1025_v44 = vrot.slane %v1024_v55, 2 }
 0x1b1   : > { %v1043_v16 = vsel %vm734_vm0, %v10540_v40, 0.0  ;;  %v1019_v62 = vadd.f32 %v1018_v54, %v1017_v12  ;;  %v1031_v25 = vadd.f32 %v1030_v26, %v1029_v20  ;;  %v10544_v41 = vunpack.c.l.bf16 %v10543_v19 }
 0x1b2   : > { %v1050_v42 = vsel %vm734_vm0, %v10542_v60, 0.0  ;;  %v1038_v13 = vadd.f32 %v1037_v4, %v1036_v43  ;;  %v1044_v47 = vrot.slane %v1043_v16, 4  ;;  %v8865_v61 = vadd.f32 %v1013_v10, %v1012_v33  ;;  %v10547_v43 = vld [vmem:[#allocation44_spill] sm:$0xff] }
 0x1b3   : > { %v1051_v21 = vrot.slane %v1050_v42, 4  ;;  %v1057_v8 = vsel %vm734_vm0, %v10544_v41, 0.0  ;;  %v1020_v2 = vrot.slane %v1019_v62, 1  ;;  %v1026_v45 = vadd.f32 %v1025_v44, %v1024_v55 }
 0x1b4   : > { %10545 = vst [vmem:[#allocation40_spill] sm:$0xff] %v8865_v61  ;;  %v1032_v40 = vrot.slane %v1031_v25, 2  ;;  %v1039_v51 = vrot.slane %v1038_v13, 2  ;;  %v1045_v35 = vadd.f32 %v1044_v47, %v1043_v16  ;;  %v1058_v60 = vrot.slane %v1057_v8, 4  ;;  %v10550_v61 = vld [vmem:[#allocation45_spill] sm:$0xff] }
 0x1b5   : > { %v1052_v48 = vadd.f32 %v1051_v21, %v1050_v42  ;;  %v8867_v5 = vadd.f32 %v1020_v2, %v1019_v62  ;;  %v1027_v12 = vrot.slane %v1026_v45, 1  ;;  %v10548_v54 = vunpack.c.l.bf16 %v10547_v43 }
 0x1b6   : > { %v1033_v20 = vadd.f32 %v1032_v40, %v1031_v25  ;;  %v1040_v4 = vadd.f32 %v1039_v51, %v1038_v13  ;;  %v1046_v19 = vrot.slane %v1045_v35, 2  ;;  %v1059_v33 = vadd.f32 %v1058_v60, %v1057_v8  ;;  %v10553_v51 = vld [vmem:[#allocation46_spill] sm:$0xff] }
 0x1b7   : > { %10546 = vst [vmem:[#allocation41_spill] sm:$0xff] %v8867_v5  ;;  %v1064_v26 = vsel %vm734_vm0, %v10548_v54, 0.0  ;;  %v1053_v41 = vrot.slane %v1052_v48, 2  ;;  %v8872_v10 = vadd.f32 %v1027_v12, %v1026_v45  ;;  %v10551_v16 = vunpack.c.l.bf16 %v10550_v61  ;;  %v10556_v5 = vld [vmem:[#allocation47_spill] sm:$0xff] }
 0x1b8   : > { %v1034_v55 = vrot.slane %v1033_v20, 1  ;;  %v1065_v44 = vrot.slane %v1064_v26, 4  ;;  %v1041_v62 = vrot.slane %v1040_v4, 1  ;;  %v1047_v47 = vadd.f32 %v1046_v19, %v1045_v35 }
 0x1b9   : > { %10549 = vst [vmem:[#allocation42_spill] sm:$0xff] %v8872_v10  ;;  %v1071_v42 = vsel %vm734_vm0, %v10551_v16, 0.0  ;;  %v1054_v21 = vadd.f32 %v1053_v41, %v1052_v48  ;;  %v1060_v25 = vrot.slane %v1059_v33, 2  ;;  %v10554_v13 = vunpack.c.l.bf16 %v10553_v51 }
 0x1ba   : > { %v8877_v2 = vadd.f32 %v1034_v55, %v1033_v20  ;;  %v1066_v40 = vadd.f32 %v1065_v44, %v1064_v26  ;;  %v1072_v43 = vrot.slane %v1071_v42, 4  ;;  %v8882_v45 = vadd.f32 %v1041_v62, %v1040_v4  ;;  %v10560_v62 = vld [vmem:[#allocation48_spill] sm:$0xff] }
 0x1bb   : > { %v1078_v8 = vsel %vm734_vm0, %v10554_v13, 0.0  ;;  %v1048_v60 = vrot.slane %v1047_v47, 1  ;;  %v1055_v12 = vrot.slane %v1054_v21, 1  ;;  %v1061_v54 = vadd.f32 %v1060_v25, %v1059_v33 }
 0x1bc   : > { %10552 = vst [vmem:[#allocation43_spill] sm:$0xff] %v8877_v2  ;;  %10555 = vst [vmem:[#allocation44_spill] sm:$0xff] %v8882_v45  ;;  %v1067_v61 = vrot.slane %v1066_v40, 2  ;;  %v1073_v10 = vadd.f32 %v1072_v43, %v1071_v42  ;;  %v1079_v16 = vrot.slane %v1078_v8, 4  ;;  %v10557_v35 = vunpack.c.l.bf16 %v10556_v5  ;;  %v10563_v5 = vld [vmem:[#allocation49_spill] sm:$0xff] }
 0x1bd   : > { %v8887_v20 = vadd.f32 %v1048_v60, %v1047_v47  ;;  %v8889_v26 = vadd.f32 %v1055_v12, %v1054_v21  ;;  %v1062_v19 = vrot.slane %v1061_v54, 1  ;;  %v10561_v51 = vunpack.c.l.bf16 %v10560_v62  ;;  %v10567_v62 = vld [vmem:[#allocation51_spill] sm:$0xff] }
 0x1be   : > { %v1085_v48 = vsel %vm734_vm0, %v10557_v35, 0.0  ;;  %v1068_v55 = vadd.f32 %v1067_v61, %v1066_v40  ;;  %v1074_v44 = vrot.slane %v1073_v10, 2  ;;  %v1080_v4 = vadd.f32 %v1079_v16, %v1078_v8  ;;  %v10565_v61 = vld [vmem:[#allocation50_spill] sm:$0xff] }
 0x1bf   : > { %10558 = vst [vmem:[#allocation45_spill] sm:$0xff] %v8887_v20  ;;  %10559 = vst [vmem:[#allocation46_spill] sm:$0xff] %v8889_v26  ;;  %v1086_v41 = vrot.slane %v1085_v48, 4  ;;  %v1092_v33 = vsel %vm734_vm0, %v10561_v51, 0.0  ;;  %v8894_v25 = vadd.f32 %v1062_v19, %v1061_v54  ;;  %v10564_v13 = vunpack.c.l.bf16 %v10563_v5 }
 0x1c0   : > { %v1093_v43 = vrot.slane %v1092_v33, 4  ;;  %v1069_v60 = vrot.slane %v1068_v55, 1  ;;  %v1075_v21 = vadd.f32 %v1074_v44, %v1073_v10  ;;  %v1081_v12 = vrot.slane %v1080_v4, 2 }
 0x1c1   : > { %10562 = vst [vmem:[#allocation47_spill] sm:$0xff] %v8894_v25  ;;  %v1087_v42 = vadd.f32 %v1086_v41, %v1085_v48  ;;  %v1099_v47 = vsel %vm734_vm0, %v10564_v13, 0.0  ;;  %v10566_v8 = vunpack.c.l.bf16 %v10565_v61  ;;  %v10568_v51 = vunpack.c.l.bf16 %v10567_v62  ;;  %v10571_v61 = vld [vmem:[#allocation52_spill] sm:$0xff] }
 0x1c2   : > { %v1100_v35 = vrot.slane %v1099_v47, 4  ;;  %v1094_v40 = vadd.f32 %v1093_v43, %v1092_v33  ;;  %v8905_v48 = vadd.f32 %v1069_v60, %v1068_v55  ;;  %v1076_v19 = vrot.slane %v1075_v21, 1 }
 0x1c3   : > { %v1088_v26 = vrot.slane %v1087_v42, 2  ;;  %v1106_v16 = vsel %vm734_vm0, %v10566_v8, 0.0  ;;  %v1113_v54 = vsel %vm734_vm0, %v10568_v51, 0.0  ;;  %v1082_v41 = vadd.f32 %v1081_v12, %v1080_v4 }
 0x1c4   : > { %10569 = vst [vmem:[#allocation48_spill] sm:$0xff] %v8905_v48  ;;  %v1101_v5 = vadd.f32 %v1100_v35, %v1099_v47  ;;  %v1095_v25 = vrot.slane %v1094_v40, 2  ;;  %v1107_v10 = vrot.slane %v1106_v16, 4  ;;  %v1114_v44 = vrot.slane %v1113_v54, 4 }
 0x1c5   : > { %v1089_v13 = vadd.f32 %v1088_v26, %v1087_v42  ;;  %v8907_v20 = vadd.f32 %v1076_v19, %v1075_v21  ;;  %v1083_v33 = vrot.slane %v1082_v41, 1  ;;  %v10572_v45 = vunpack.c.l.bf16 %v10571_v61  ;;  %v10573_v26 = vld [vmem:[#allocation53_spill] sm:$0xff] }
 0x1c6   : > { %v1102_v43 = vrot.slane %v1101_v5, 2  ;;  %v1096_v2 = vadd.f32 %v1095_v25, %v1094_v40  ;;  %v1108_v51 = vadd.f32 %v1107_v10, %v1106_v16  ;;  %v1115_v55 = vadd.f32 %v1114_v44, %v1113_v54 }
 0x1c7   : > { %10570 = vst [vmem:[#allocation49_spill] sm:$0xff] %v8907_v20  ;;  %v1120_v8 = vsel %vm734_vm0, %v10572_v45, 0.0  ;;  %v1090_v62 = vrot.slane %v1089_v13, 1  ;;  %v8912_v60 = vadd.f32 %v1083_v33, %v1082_v41  ;;  %v10574_v42 = vunpack.c.l.bf16 %v10573_v26  ;;  %v10579_v33 = vld [vmem:[#allocation55_spill] sm:$0xff] }
 0x1c8   : > { %v1103_v4 = vadd.f32 %v1102_v43, %v1101_v5  ;;  %v1121_v47 = vrot.slane %v1120_v8, 4  ;;  %v1097_v35 = vrot.slane %v1096_v2, 1  ;;  %v1109_v19 = vrot.slane %v1108_v51, 2 }
 0x1c9   : > { %v1127_v12 = vsel %vm734_vm0, %v10574_v42, 0.0  ;;  %v8917_v21 = vadd.f32 %v1090_v62, %v1089_v13  ;;  %v1116_v20 = vrot.slane %v1115_v55, 2  ;;  %v10577_v25 = vunpack.c.l.bf16 %v10576_v49 }
 0x1ca   : > { %v1104_v61 = vrot.slane %v1103_v4, 1  ;;  %v1122_v48 = vadd.f32 %v1121_v47, %v1120_v8  ;;  %v1128_v45 = vrot.slane %v1127_v12, 4  ;;  %v8922_v16 = vadd.f32 %v1097_v35, %v1096_v2 }
 0x1cb   : > { %10575 = vst [vmem:[#allocation50_spill] sm:$0xff] %v8917_v21  ;;  %v1134_v40 = vsel %vm734_vm0, %v10577_v25, 0.0  ;;  %v1110_v54 = vadd.f32 %v1109_v19, %v1108_v51  ;;  %v1117_v41 = vadd.f32 %v1116_v20, %v1115_v55  ;;  %v10580_v43 = vunpack.c.l.bf16 %v10579_v33  ;;  %v10581_v25 = vld [vmem:[#allocation56_spill] sm:$0xff]  ;;  %v10583_v20 = vld [vmem:[#allocation57_spill] sm:$0xff] }
 0x1cc   : > { %v1135_v5 = vrot.slane %v1134_v40, 4  ;;  %v8924_v10 = vadd.f32 %v1104_v61, %v1103_v4  ;;  %v1123_v44 = vrot.slane %v1122_v48, 2  ;;  %v1129_v13 = vadd.f32 %v1128_v45, %v1127_v12 }
 0x1cd   : > { %v1141_v62 = vsel %vm734_vm0, %v10580_v43, 0.0  ;;  %v1111_v26 = vrot.slane %v1110_v54, 1  ;;  %v1118_v8 = vrot.slane %v1117_v41, 1  ;;  %v10582_v2 = vunpack.c.l.bf16 %v10581_v25  ;;  %v10587_v43 = vld [vmem:[#allocation58_spill] sm:$0xff] }
 0x1ce   : > { %10578 = vst [vmem:[#allocation51_spill] sm:$0xff] %v8924_v10  ;;  %v1136_v47 = vadd.f32 %v1135_v5, %v1134_v40  ;;  %v1142_v42 = vrot.slane %v1141_v62, 4  ;;  %v1124_v49 = vadd.f32 %v1123_v44, %v1122_v48  ;;  %v1130_v21 = vrot.slane %v1129_v13, 2  ;;  %v10589_v10 = vld [vmem:[#allocation59_spill] sm:$0xff] }
 0x1cf   : > { %v1148_v51 = vsel %vm734_vm0, %v10582_v2, 0.0  ;;  %v10584_v55 = vunpack.c.l.bf16 %v10583_v20  ;;  %v8935_v35 = vadd.f32 %v1111_v26, %v1110_v54  ;;  %v8937_v12 = vadd.f32 %v1118_v8, %v1117_v41 }
 0x1d0   : > { %v1137_v19 = vrot.slane %v1136_v47, 2  ;;  %v1143_v61 = vadd.f32 %v1142_v42, %v1141_v62  ;;  %v1125_v45 = vrot.slane %v1124_v49, 1  ;;  %v1131_v33 = vadd.f32 %v1130_v21, %v1129_v13 }
 0x1d1   : > { %v1155_v4 = vsel %vm734_vm0, %v10584_v55, 0.0  ;;  %10585 = vst [vmem:[#allocation52_spill] sm:$0xff] %v8935_v35  ;;  %10586 = vst [vmem:[#allocation53_spill] sm:$0xff] %v8937_v12  ;;  %v1149_v40 = vrot.slane %v1148_v51, 4  ;;  %v10588_v25 = vunpack.c.l.bf16 %v10587_v43  ;;  %v10590_v20 = vunpack.c.l.bf16 %v10589_v10  ;;  %v10592_v43 = vld [vmem:[#allocation60_spill] sm:$0xff] }
 0x1d2   : > { %v1156_v5 = vrot.slane %v1155_v4, 4  ;;  %v1138_v48 = vadd.f32 %v1137_v19, %v1136_v47  ;;  %v1144_v44 = vrot.slane %v1143_v61, 2  ;;  %v8945_v54 = vadd.f32 %v1125_v45, %v1124_v49 }
 0x1d3   : > { %v1162_v2 = vsel %vm734_vm0, %v10588_v25, 0.0  ;;  %v1169_v55 = vsel %vm734_vm0, %v10590_v20, 0.0  ;;  %v1132_v41 = vrot.slane %v1131_v33, 1  ;;  %v1150_v26 = vadd.f32 %v1149_v40, %v1148_v51 }
 0x1d4   : > { %10591 = vst [vmem:[#allocation54_spill] sm:$0xff] %v8945_v54  ;;  %v1157_v8 = vadd.f32 %v1156_v5, %v1155_v4  ;;  %v1139_v62 = vrot.slane %v1138_v48, 1  ;;  %v1145_v42 = vadd.f32 %v1144_v44, %v1143_v61  ;;  %v1163_v21 = vrot.slane %v1162_v2, 4 }
 0x1d5   : > { %v1170_v13 = vrot.slane %v1169_v55, 4  ;;  %v8947_v12 = vadd.f32 %v1132_v41, %v1131_v33  ;;  %v1151_v47 = vrot.slane %v1150_v26, 2  ;;  %v10593_v35 = vunpack.c.l.bf16 %v10592_v43 }
 0x1d6   : > { %v1158_v19 = vrot.slane %v1157_v8, 2  ;;  %v8952_v10 = vadd.f32 %v1139_v62, %v1138_v48  ;;  %v1146_v20 = vrot.slane %v1145_v42, 1  ;;  %v1164_v49 = vadd.f32 %v1163_v21, %v1162_v2 }
 0x1d7   : > { %v1176_v25 = vsel %vm734_vm0, %v10593_v35, 0.0  ;;  %v1171_v45 = vadd.f32 %v1170_v13, %v1169_v55  ;;  %v1152_v54 = vadd.f32 %v1151_v47, %v1150_v26  ;;  %v8955_v61 = vmul.f32 0.25, %v8670_v23 }
 0x1d8   : > { %v1159_v51 = vadd.f32 %v1158_v19, %v1157_v8  ;;  %v1177_v4 = vrot.slane %v1176_v25, 4  ;;  %v8957_v40 = vadd.f32 %v1146_v20, %v1145_v42  ;;  %v1165_v33 = vrot.slane %v1164_v49, 2 }
 0x1d9   : > { %v1172_v5 = vrot.slane %v1171_v45, 2  ;;  %v8960_v44 = vmul.f32 0.25, %v8672_v30  ;;  %v1153_v41 = vrot.slane %v1152_v54, 1  ;;  %v8963_v62 = vmul.f32 0.25, %v8674_v37 }
 0x1da   : > { %v1160_v35 = vrot.slane %v1159_v51, 1  ;;  %v1178_v48 = vadd.f32 %v1177_v4, %v1176_v25  ;;  %v1166_v2 = vadd.f32 %v1165_v33, %v1164_v49  ;;  %v8966_v26 = vmul.f32 0.25, %v8676_v28 }
 0x1db   : > { %v1173_v55 = vadd.f32 %v1172_v5, %v1171_v45  ;;  %v8969_v23 = vmul.f32 0.25, %v8678_v59  ;;  %v8971_v8 = vadd.f32 %v1153_v41, %v1152_v54  ;;  %v8976_v21 = vmul.f32 0.25, %v8689_v0 }
 0x1dc   : > { %v8973_v42 = vadd.f32 %v1160_v35, %v1159_v51  ;;  %v1179_v30 = vrot.slane %v1178_v48, 2  ;;  %v1167_v13 = vrot.slane %v1166_v2, 1  ;;  %v8979_v37 = vmul.f32 0.25, %v8691_v57 }
 0x1dd   : > { %v1174_v47 = vrot.slane %v1173_v55, 1  ;;  %v8982_v19 = vmul.f32 0.25, %v8699_v24  ;;  %v8985_v59 = vmul.f32 0.25, %v8710_v50  ;;  %v8988_v54 = vmul.f32 0.25, %v8712_v63 }
 0x1de   : > { %v1180_v28 = vadd.f32 %v1179_v30, %v1178_v48  ;;  %v8991_v43 = vmul.f32 0.25, %v8714_v56  ;;  %v1168_v0 = vadd.f32 %v1167_v13, %v1166_v2  ;;  %v8994_v20 = vmul.f32 0.25, %v8716_v11  ;;  %v10606_v13 = vld [vmem:[#allocation43_spill] sm:$0xff] }
 0x1df   : > { %v1175_v25 = vadd.f32 %v1174_v47, %v1173_v55  ;;  %v8997_v57 = vmul.f32 0.25, %v8718_v7  ;;  %v9000_v49 = vmul.f32 0.25, %v8726_v52  ;;  %v9003_v50 = vmul.f32 0.25, %v8734_v58  ;;  %v10605_v55 = vld [vmem:[#allocation42_spill] sm:$0xff] }
 0x1e0   : > { %v1181_v24 = vrot.slane %v1180_v28, 1  ;;  %v9006_v63 = vmul.f32 0.25, %v8742_v9  ;;  %v1199_v56 = vmul.f32 0.25, %v8750_v1  ;;  %v1200_v45 = vmul.f32 0.25, %v8752_v6 }
 0x1e1   : > { %v1201_v11 = vmul.f32 0.25, %v8754_v18  ;;  %v9012_v51 = vmul.f32 0.25, %v8759_v31  ;;  %v9015_v4 = vmul.f32 0.25, %v8761_v36  ;;  %v9018_v52 = vmul.f32 0.25, %v8769_v29 }
 0x1e2   : > { %v1182_v7 = vadd.f32 %v1181_v24, %v1180_v28  ;;  %v9021_v58 = vmul.f32 0.25, %v8771_v38  ;;  %v9024_v9 = vmul.f32 0.25, %v8785_v27  ;;  %v1207_v1 = vmul.f32 0.25, %v8790_v32  ;;  %v10608_v28 = vld [vmem:[#allocation44_spill] sm:$0xff] }
 0x1e3   : > { %v1208_v6 = vmul.f32 0.25, %v8792_v34  ;;  %v1209_v18 = vmul.f32 0.25, %v8797_v17  ;;  %v1210_v31 = vmul.f32 0.25, %v8799_v39  ;;  %v9031_v36 = vmul.f32 0.25, %v8804_v15  ;;  %v10594_v17 = vld [vmem:[#allocation35_spill] sm:$0xff]  ;;  %v10595_v15 = vld [vmem:[#allocation36_spill] sm:$0xff] }
 0x1e4   : > { %v9034_v29 = vmul.f32 0.25, %v8812_v46  ;;  %v9037_v38 = vmul.f32 0.25, %v8814_v53  ;;  %v9040_v27 = vmul.f32 0.25, %v8822_v14  ;;  %v9043_v32 = vmul.f32 0.25, %v8830_v22  ;;  %v10596_v46 = vld [vmem:[#allocation37_spill] sm:$0xff]  ;;  %v10598_v53 = vld [vmem:[#allocation38_spill] sm:$0xff] }
 0x1e5   : > { %v9046_v34 = vmul.f32 0.25, %v8832_v3  ;;  %v9049_v39 = vmul.f32 0.25, %v10594_v17  ;;  %v9052_v33 = vmul.f32 0.25, %v10595_v15  ;;  %v9055_v5 = vmul.f32 0.25, %v10596_v46  ;;  %v10600_v14 = vld [vmem:[#allocation39_spill] sm:$0xff]  ;;  %v10602_v22 = vld [vmem:[#allocation40_spill] sm:$0xff] }
 0x1e6   : > { %v9058_v41 = vmul.f32 0.25, %v10598_v53  ;;  %v9061_v35 = vmul.f32 0.25, %v10600_v14  ;;  %v9064_v48 = vmul.f32 0.25, %v10602_v22  ;;  %v10604_v3 = vld [vmem:[#allocation41_spill] sm:$0xff]  ;;  %v1224_v30 = vmul.f32 0.25, %v10605_v55  ;;  %v10612_v46 = vld [vmem:[#allocation46_spill] sm:$0xff] }
 0x1e7   : > { %10597 = vst [vmem:[#allocation55_spill] sm:$0xff] %v9055_v5  ;;  %v1223_v2 = vmul.f32 0.25, %v10604_v3  ;;  %v9069_v47 = vmul.f32 0.25, %v10606_v13  ;;  %v9072_v24 = vmul.f32 0.25, %v10608_v28  ;;  %v10610_v17 = vld [vmem:[#allocation45_spill] sm:$0xff]  ;;  %v9078_v53 = vmul.f32 0.25, %v10612_v46 }
 0x1e8   : > { %10599 = vst [vmem:[#allocation56_spill] sm:$0xff] %v9058_v41  ;;  %10601 = vst [vmem:[#allocation57_spill] sm:$0xff] %v9061_v35  ;;  %v9075_v15 = vmul.f32 0.25, %v10610_v17  ;;  %v10614_v14 = vld [vmem:[#allocation47_spill] sm:$0xff]  ;;  %v10616_v22 = vld [vmem:[#allocation48_spill] sm:$0xff]  ;;  %v1232_v13 = vmul.f32 0.25, %v8912_v60 }
 0x1e9   : > { %10603 = vst [vmem:[#allocation58_spill] sm:$0xff] %v9064_v48  ;;  %10607 = vst [vmem:[#allocation59_spill] sm:$0xff] %v9069_v47  ;;  %v9081_v35 = vmul.f32 0.25, %v10614_v14  ;;  %v9084_v48 = vmul.f32 0.25, %v10616_v22  ;;  %v10618_v3 = vld [vmem:[#allocation49_spill] sm:$0xff]  ;;  %v10619_v41 = vld [vmem:[#allocation50_spill] sm:$0xff] }
 0x1ea   : > { %10609 = vst [vmem:[#allocation60_spill] sm:$0xff] %v9072_v24  ;;  %10611 = vst [vmem:[#allocation35_spill] sm:$0xff] %v9075_v15  ;;  %v1231_v55 = vmul.f32 0.25, %v10618_v3  ;;  %v1233_v5 = vmul.f32 0.25, %v10619_v41  ;;  %v1234_v28 = vmul.f32 0.25, %v8922_v16  ;;  %v10620_v24 = vld [vmem:[#allocation51_spill] sm:$0xff] }
 0x1eb   : > { %10613 = vst [vmem:[#allocation36_spill] sm:$0xff] %v9078_v53  ;;  %10615 = vst [vmem:[#allocation37_spill] sm:$0xff] %v9081_v35  ;;  %v1235_v17 = vmul.f32 0.25, %v10620_v24  ;;  %v10621_v15 = vld [vmem:[#allocation52_spill] sm:$0xff]  ;;  %v10622_v46 = vld [vmem:[#allocation53_spill] sm:$0xff]  ;;  %v1239_v22 = vmul.f32 0.25, %v8947_v12  ;;  %v1312_v12 = vsel %vm1311_vm1, %v8960_v44, %v8955_v61  ;;  %v1339_v44 = vsel %vm1311_vm1, %v1208_v6, %v1207_v1 }
 0x1ec   : > { %10617 = vst [vmem:[#allocation38_spill] sm:$0xff] %v9084_v48  ;;  %v9092_v47 = vmul.f32 0.25, %v10621_v15  ;;  %v9095_v53 = vmul.f32 0.25, %v10622_v46  ;;  %v10623_v14 = vld [vmem:[#allocation54_spill] sm:$0xff]  ;;  %v1240_v3 = vmul.f32 0.25, %v8952_v10  ;;  %v1241_v60 = vmul.f32 0.25, %v8957_v40 }
 0x1ed   : > { %v9098_v35 = vmul.f32 0.25, %v10623_v14  ;;  %v1242_v41 = vmul.f32 0.25, %v8971_v8  ;;  %v1243_v16 = vmul.f32 0.25, %v8973_v42  ;;  %v1244_v24 = vmul.f32 0.25, %v1168_v0 }
 0x1ee   : > { %v9105_v48 = vmul.f32 0.25, %v1175_v25  ;;  %v9107_v15 = vmul.f32 0.25, %v1182_v7  ;;  %vm1313_vm2 = vcmask 1042434   ;;  %vm1315_vm3 = vcmask 1043459  }
 0x1ef   : > { %vm1317_vm4 = vcmask 1044484   ;;  %vm1319_vm5 = vcmask 1045509   ;;  %vm1321_vm6 = vcmask 1046534   ;;  %v1314_v10 = vsel %vm1313_vm2, %v8963_v62, %v1312_v12  ;;  %v10629_v46 = vld [vmem:[#allocation57_spill] sm:$0xff] }
 0x1f0   : > { %vm1323_vm7 = vcmask 1047559   ;;  %v1325_v40 = vsel %vm1311_vm1, %v8988_v54, %v8985_v59  ;;  %v1332_v8 = vsel %vm1311_vm1, %v1200_v45, %v1199_v56  ;;  %v1316_v42 = vsel %vm1315_vm3, %v8966_v26, %v1314_v10  ;;  %v10624_v6 = vld [vmem:[#allocation59_spill] sm:$0xff]  ;;  %v10631_v12 = vld [vmem:[#allocation58_spill] sm:$0xff] }
 0x1f1   : > { %v1326_v0 = vsel %vm1313_vm2, %v8991_v43, %v1325_v40  ;;  %v1333_v61 = vsel %vm1313_vm2, %v1201_v11, %v1332_v8  ;;  %v1318_v62 = vsel %vm1317_vm4, %v8969_v23, %v1316_v42  ;;  %v1340_v54 = vsel %vm1313_vm2, %v1209_v18, %v1339_v44 }
 0x1f2   : > { %v1327_v25 = vsel %vm1315_vm3, %v8994_v20, %v1326_v0  ;;  %v1334_v59 = vsel %vm1315_vm3, %v9012_v51, %v1333_v61  ;;  %v1320_v26 = vsel %vm1319_vm5, %v8976_v21, %v1318_v62  ;;  %v1341_v45 = vsel %vm1315_vm3, %v1210_v31, %v1340_v54  ;;  %v10632_v40 = vld [vmem:[#allocation37_spill] sm:$0xff] }
 0x1f3   : > { %v1328_v43 = vsel %vm1317_vm4, %v8997_v57, %v1327_v25  ;;  %v1335_v56 = vsel %vm1317_vm4, %v9015_v4, %v1334_v59  ;;  %v1322_v23 = vsel %vm1321_vm6, %v8979_v37, %v1320_v26  ;;  %v1342_v21 = vsel %vm1317_vm4, %v9031_v36, %v1341_v45  ;;  %v10633_v42 = vld [vmem:[#allocation38_spill] sm:$0xff] }
 0x1f4   : > { %v1329_v20 = vsel %vm1319_vm5, %v9000_v49, %v1328_v43  ;;  %v1336_v11 = vsel %vm1319_vm5, %v9018_v52, %v1335_v56  ;;  %v1324_v57 = vsel %vm1323_vm7, %v8982_v19, %v1322_v23  ;;  %v1343_v37 = vsel %vm1319_vm5, %v9034_v29, %v1342_v21  ;;  %v10625_v29 = vld [vmem:[#allocation55_spill] sm:$0xff] }
 0x1f5   : > { %v1330_v51 = vsel %vm1321_vm6, %v9003_v50, %v1329_v20  ;;  %v1337_v7 = vsel %vm1321_vm6, %v9021_v58, %v1336_v11  ;;  %v1344_v52 = vsel %vm1321_vm6, %v9037_v38, %v1343_v37  ;;  %v1346_v19 = vsel %vm1311_vm1, %v9046_v34, %v9043_v32 }
 0x1f6   : > { %v1331_v49 = vsel %vm1323_vm7, %v9006_v63, %v1330_v51  ;;  %v1338_v4 = vsel %vm1323_vm7, %v9024_v9, %v1337_v7  ;;  %v1345_v50 = vsel %vm1323_vm7, %v9040_v27, %v1344_v52  ;;  %v1347_v58 = vsel %vm1313_vm2, %v9049_v39, %v1346_v19  ;;  %v10626_v27 = vld [vmem:[#allocation60_spill] sm:$0xff] }
 0x1f7   : > { %v1353_v1 = vsel %vm1311_vm1, %v1224_v30, %v1223_v2  ;;  %v1360_v63 = vsel %vm1311_vm1, %v1232_v13, %v1231_v55  ;;  %v1348_v9 = vsel %vm1315_vm3, %v9052_v33, %v1347_v58  ;;  %v1367_v36 = vsel %vm1311_vm1, %v1240_v3, %v1239_v22  ;;  %v10627_v2 = vld [vmem:[#allocation56_spill] sm:$0xff]  ;;  %v10628_v30 = vld [vmem:[#allocation35_spill] sm:$0xff] }
 0x1f8   : > { %v1354_v18 = vsel %vm1313_vm2, %v10624_v6, %v1353_v1  ;;  %v1361_v31 = vsel %vm1313_vm2, %v1233_v5, %v1360_v63  ;;  %v1349_v38 = vsel %vm1317_vm4, %v10625_v29, %v1348_v9  ;;  %v1368_v39 = vsel %vm1313_vm2, %v1241_v60, %v1367_v36  ;;  %v10630_v22 = vld [vmem:[#allocation36_spill] sm:$0xff] }
 0x1f9   : > { %v1355_v32 = vsel %vm1315_vm3, %v10626_v27, %v1354_v18  ;;  %v1362_v34 = vsel %vm1315_vm3, %v1234_v28, %v1361_v31  ;;  %v1350_v33 = vsel %vm1319_vm5, %v10627_v2, %v1349_v38  ;;  %v1369_v13 = vsel %vm1315_vm3, %v1242_v41, %v1368_v39 }
 0x1fa   : > { %v1356_v55 = vsel %vm1317_vm4, %v10628_v30, %v1355_v32  ;;  %v1363_v5 = vsel %vm1317_vm4, %v1235_v17, %v1362_v34  ;;  %v1351_v14 = vsel %vm1321_vm6, %v10629_v46, %v1350_v33  ;;  %v1370_v60 = vsel %vm1317_vm4, %v1243_v16, %v1369_v13 }
 0x1fb   : > { %v1357_v3 = vsel %vm1319_vm5, %v10630_v22, %v1356_v55  ;;  %v1364_v28 = vsel %vm1319_vm5, %v9092_v47, %v1363_v5  ;;  %v1352_v10 = vsel %vm1323_vm7, %v10631_v12, %v1351_v14  ;;  %v1371_v41 = vsel %vm1319_vm5, %v1244_v24, %v1370_v60 }
 0x1fc   : > { %v1358_v8 = vsel %vm1321_vm6, %v10632_v40, %v1357_v3  ;;  %v1365_v17 = vsel %vm1321_vm6, %v9095_v53, %v1364_v28  ;;  %v1372_v47 = vsel %vm1321_vm6, %v9105_v48, %v1371_v41  ;;  %vm1382_vm8 = vcmask 261120  }
 0x1fd   : > { %v1359_v0 = vsel %vm1323_vm7, %v10633_v42, %v1358_v8  ;;  %v1366_v61 = vsel %vm1323_vm7, %v9098_v35, %v1365_v17  ;;  %v1373_v16 = vsel %vm1323_vm7, %v9107_v15, %v1372_v47  ;;  %1383 = vst.msk [vmem:[#allocation2] sm:$0xff] %vm1382_vm8, %v1324_v57  ;;  %1384 = vst.msk [vmem:[#allocation2 + $0x8] sm:$0xff] %vm1382_vm8, %v1331_v49 }
 0x1fe   : > { %1385 = vst.msk [vmem:[#allocation2 + $0x10] sm:$0xff] %vm1382_vm8, %v1338_v4  ;;  %1386 = vst.msk [vmem:[#allocation2 + $0x18] sm:$0xff] %vm1382_vm8, %v1345_v50 }
 0x1ff   : > { %1387 = vst.msk [vmem:[#allocation2 + $0x20] sm:$0xff] %vm1382_vm8, %v1352_v10  ;;  %1388 = vst.msk [vmem:[#allocation2 + $0x28] sm:$0xff] %vm1382_vm8, %v1359_v0 }
 0x200   : > { %1389 = vst.msk [vmem:[#allocation2 + $0x30] sm:$0xff] %vm1382_vm8, %v1366_v61  ;;  %1390 = vst.msk [vmem:[#allocation2 + $0x38] sm:$0xff] %vm1382_vm8, %v1373_v16 }
 0x201 PF: > { %s10634_s27 = sld [smem:[#allocation33_spill]]  ;;  %vm1558_vm9 = vcmask 261120   ;;  %v8017_v23 = vmov 0   ;;  %v8018_v20 = vmov 0.0   ;;  %vm8019_vm10 = vmmov 0   ;;  %s8020_s18 = smov 96  }
 0x202   : > { %7396 = vset.pattern.permute.xlu1 %v8017_v23  ;;  %7395 = vset.pattern.permute.xlu0 %v8017_v23  ;;  %v1392_v2 = vld [vmem:[#allocation7 + $0x8] sm:$0xff]  ;;  %v1391_v33 = vld [vmem:[#allocation7] sm:$0xff]  ;;  %v1393_v30 = vld [vmem:[#allocation7 + $0x10] sm:$0xff]  ;;  %s8021_s26 = smov 64   ;;  %vm1662_vm11 = vcmask 64512   ;;  %vm2162_vm12 = vcmask 1043456  }
 0x203   : > { %v1394_v55 = vld [vmem:[#allocation7 + $0x18] sm:$0xff]  ;;  %v1395_v5 = vld [vmem:[#allocation7 + $0x20] sm:$0xff]  ;;  %v1396_v13 = vld [vmem:[#allocation7 + $0x28] sm:$0xff]  ;;  %s8022_s12 = smov 88   ;;  %s8023_s20 = smov 120   ;;  %vm2550_vm13 = vcmask 60416  }
 0x204   : > { %v1519_v35 = vld [vmem:[#allocation2] sm:$0xff]  ;;  %v1520_v53 = vld [vmem:[#allocation2 + $0x8] sm:$0xff]  ;;  %v1397_v46 = vld [vmem:[#allocation7 + $0x30] sm:$0xff]  ;;  %s8024_s17 = smov 56   ;;  %s8025_s21 = smov 80   ;;  %vm3511_vm14 = vcmask 126016  }
 0x205   : > { %v1527_v48 = vpack.c.bf16 %v1520_v53, %v1519_v35  ;;  %v1521_v59 = vld [vmem:[#allocation2 + $0x10] sm:$0xff]  ;;  %v1522_v54 = vld [vmem:[#allocation2 + $0x18] sm:$0xff]  ;;  %s8026_s29 = smov 112   ;;  %s8027_s14 = smov 48   ;;  %vm4472_vm15 = vcmask 191616   ;;  %vm5433_vm0 = vcmask 257216  }
 0x206   : > { %v1523_v24 = vld [vmem:[#allocation2 + $0x20] sm:$0xff]  ;;  %v1524_v44 = vld [vmem:[#allocation2 + $0x28] sm:$0xff]  ;;  %v1528_v56 = vpack.c.bf16 %v1522_v54, %v1521_v59  ;;  %v1398_v14 = vld [vmem:[#allocation7 + $0x38] sm:$0xff]  ;;  %s8028_s25 = smov 72   ;;  %s8029_s15 = smov 104   ;;  %vm5874_vm1 = vcmask 523264  }
 0x207   : > { %s9210_s13 = sshll.u32 %s10634_s27, 4  ;;  %6781 = vmatprep.mubr.msk.bf16.mxu0 %vm1558_vm9, %v1527_v48  ;;  %v1529_v25 = vpack.c.bf16 %v1524_v44, %v1523_v24  ;;  %v1525_v26 = vld [vmem:[#allocation2 + $0x30] sm:$0xff]  ;;  %v1526_v43 = vld [vmem:[#allocation2 + $0x38] sm:$0xff]  ;;  %s1538_s16 = scalar_lea.vmem [#allocation12], %s10634_s27 }
 0x208   : > { %s1533_s24 = scalar_lea.vmem [#allocation10], %s9210_s13  ;;  %v1530_v45 = vpack.c.bf16 %v1526_v43, %v1525_v26  ;;  %v6448_v11 = vld [vmem:[%s1538_s16] ss:$0 sm:$0xff]  ;;  %s8030_s23 = smov 40  }
 0x209   : > { %v7397_v15 = vld [vmem:[%s1533_s24] sm:$0xff]   ;;  %v7398_v62 = vld [vmem:[%s1533_s24 + $0x8] sm:$0xff]   ;;  %6785 = vmatprep.mubr.msk.bf16.mxu1 %vm1558_vm9, %v1529_v25  ;;  %s8031_s1 = smov 8   ;;  %s8032_s19 = smov 16  }
 0x20a   : > { %6777 = vmatprep.subr.bf16.mxu0 %v7397_v15  ;;  %7213 = vmatprep.subr.bf16.mxu1 %v7397_v15  ;;  %s8033_s28 = smov 24   ;;  %s5451_s24 = scalar_lea.vmem [#allocation13], %s9210_s13 }
 0x20b   : > { %6778 = vmatpush3.bf16.msra.mxu0 %v7397_v15  ;;  %7215 = vmatpush3.bf16.msra.mxu1 %v7397_v15  ;;  %s5456_s16 = scalar_lea.vmem [#allocation15], %s10634_s27  ;;  %p6582_p11 = scmp.ne.s32.totalorder %s10634_s27, 1 }
 0x20c   : > { %6779 = vmatprep.subr.bf16.mxu0 %v7398_v62  ;;  %7214 = vmatprep.subr.bf16.mxu1 %v7398_v62  ;;  %vm6188_vm2 = vcmask (!%p6582_p11), 253952   ;;  %vm6189_vm3 = vsmask.f32 (!%p6582_p11), 256 }
 0x20d   : > { %vm10337_vm4 = vmand (!%p6582_p11), %vm6188_vm2, %vm6189_vm3 }
 0x20f   : > { %6780 = vmatpush3.bf16.msra.mxu0 %v7398_v62  ;;  %7216 = vmatpush3.bf16.msra.mxu1 %v7398_v62 }
 0x210   : > { %6801 = vmatprep.subr.bf16.mxu0 %v8018_v20  ;;  %6789 = vmatprep.subr.bf16.mxu1 %v8018_v20 }
 0x212   : > { %6782 = vmatmul.mubr.msk.bf16.vlgmr.msra.gmra.mrb[0].mxu0 %vm1558_vm9, %v1528_v56  ;;  %6786 = vmatmul.mubr.msk.bf16.vlgmr.msra.gmra.mrb[0].mxu1 %vm1558_vm9, %v1530_v45 }
 0x213   : > { %6803 = vmatprep.mubr.msk.bf16.mxu0 %vm8019_vm10, %v8018_v20  ;;  %6791 = vmatprep.mubr.msk.bf16.mxu1 %vm8019_vm10, %v8018_v20 }
 0x2e5   : > { %v6783_v21 = vpop.f32.mrb[0].mxu0  ;;  %v6787_v57 = vpop.f32.mrb[0].mxu1 }
 0x2e6   : > { %v1614_v51 = vadd.f32 %v6783_v21, %v6448_v11  ;;  %v1605_v7 = vpop.f32.mrb[1].mxu0  ;;  %v1621_v37 = vpop.f32.mrb[1].mxu1  ;;  %v1630_v27 = vadd.f32 %v6787_v57, %v6448_v11  ;;  %v6430_v21 = vld [vmem:[#allocation9] ss:$0 sm:$0xff] }
 0x2e7   : > { %v1606_v49 = vadd.f32 %v6448_v11, %v1605_v7  ;;  %v6784_v4 = vpop.f32.mrb[2].mxu0  ;;  %v6788_v52 = vpop.f32.mrb[2].mxu1  ;;  %v1622_v18 = vadd.f32 %v6448_v11, %v1621_v37 }
 0x2e8   : > { %v9224_v19 = vpack.c.bf16 %v1614_v51, %v1614_v51  ;;  %v1617_v50 = vadd.f32 %v6784_v4, %v6448_v11  ;;  %v1608_v58 = vpop.f32.mrb[3].mxu0  ;;  %v1624_v1 = vpop.f32.mrb[3].mxu1  ;;  %v1633_v29 = vadd.f32 %v6788_v52, %v6448_v11  ;;  %v9243_v39 = vpack.c.bf16 %v1630_v27, %v1630_v27  ;;  %v6431_v52 = vld [vmem:[#allocation9 + $0x1] ss:$0 sm:$0xff] }
 0x2e9   : > { %v9226_v63 = vpack.c.bf16 %v1606_v49, %v1606_v49  ;;  %v1609_v9 = vadd.f32 %v6448_v11, %v1608_v58  ;;  %v1625_v6 = vadd.f32 %v6448_v11, %v1624_v1  ;;  %v9237_v32 = vpack.c.bf16 %v1622_v18, %v1622_v18  ;;  %v6432_v11 = vld [vmem:[#allocation9 + $0x2] ss:$0 sm:$0xff]  ;;  %v6434_v49 = vld [vmem:[#allocation9 + $0x4] ss:$0 sm:$0xff] }
 0x2ea   : > { %1757 = vrot.lane.b32.xlu1 %v9224_v19, %s8020_s18  ;;  %v9230_v31 = vpack.c.bf16 %v1617_v50, %v1617_v50  ;;  %v9240_v34 = vpack.c.bf16 %v1633_v29, %v1633_v29 }
 0x2eb   : > { %1660 = vrot.lane.b32.xlu0 %v9226_v63, %s8020_s18  ;;  %v9232_v36 = vpack.c.bf16 %v1609_v9, %v1609_v9  ;;  %v9234_v38 = vpack.c.bf16 %v1625_v6, %v1625_v6 }
 0x2ee   : > { %1805 = vrot.lane.b32.xlu1 %v9230_v31, %s8020_s18 }
 0x2ef   : > { %1709 = vrot.lane.b32.xlu0 %v9232_v36, %s8020_s18 }
 0x2f2   : > { %1901 = vrot.lane.b32.xlu1 %v9234_v38, %s8020_s18 }
 0x2f3   : > { %1853 = vrot.lane.b32.xlu0 %v9237_v32, %s8020_s18 }
 0x2f6   : > { %1997 = vrot.lane.b32.xlu1 %v9240_v34, %s8020_s18 }
 0x2f7   : > { %1949 = vrot.lane.b32.xlu0 %v9243_v39, %s8020_s18  ;;  %s5717_s18 = scalar_lea.vmem [#allocation16], %s9210_s13  ;;  %s6446_s13 = sshll.u32 %s10634_s27, 2 }
 0x2fa   : > { %1414 = vperm.xlu1 %7396, %v1392_v2  }
 0x2fb   : > { %1409 = vperm.xlu0 %7395, %v1391_v33  }
 0x2fe   : > { %1419 = vperm.xlu1 %7396, %v1393_v30  }
 0x2ff   : > { %1424 = vperm.xlu0 %7395, %v1394_v55  }
 0x302   : > { %1429 = vperm.xlu1 %7396, %v1395_v5  }
 0x303   : > { %1434 = vperm.xlu0 %7395, %v1396_v13  }
 0x306   : > { %1439 = vperm.xlu1 %7396, %v1397_v46  }
 0x307   : > { %1444 = vperm.xlu0 %7395, %v1398_v14   ;;  %v6433_v14 = vld [vmem:[#allocation9 + $0x3] ss:$0 sm:$0xff] }
 0x30a   : > { %2254 = vrot.lane.b32.xlu1 %v9224_v19, %s8021_s26 }
 0x30b   : > { %2157 = vrot.lane.b32.xlu0 %v9226_v63, %s8021_s26 }
 0x30e   : > { %2350 = vrot.lane.b32.xlu1 %v9237_v32, %s8021_s26 }
 0x30f   : > { %2302 = vrot.lane.b32.xlu0 %v9230_v31, %s8021_s26 }
 0x312   : > { %2206 = vrot.lane.b32.xlu1 %v9232_v36, %s8021_s26 }
 0x35c   : > { %v1758_v22 = vpop.permute.xlu1 %1757 }
 0x35d   : > { %v1763_v3 = vsel %vm1662_vm11, %v1758_v22, 0  ;;  %v1661_v28 = vpop.permute.xlu0 %1660 }
 0x35e   : > { %v1667_v60 = vsel %vm1662_vm11, %v1661_v28, 0  ;;  %6802 = vmatpush3.bf16.xpose.msra.mxu0 %v1763_v3  ;;  %v6436_v28 = vld [vmem:[#allocation9 + $0x6] ss:$0 sm:$0xff] }
 0x35f   : > { %6790 = vmatpush3.bf16.xpose.msra.mxu1 %v1667_v60  ;;  %6813 = vmatprep.subr.bf16.mxu0 %v8018_v20 }
 0x360   : > { %6795 = vmatprep.subr.bf16.mxu1 %v8018_v20  ;;  %v1806_v17 = vpop.permute.xlu1 %1805 }
 0x361   : > { %v1710_v12 = vpop.permute.xlu0 %1709  ;;  %v1811_v42 = vsel %vm1662_vm11, %v1806_v17, 0 }
 0x362   : > { %v1715_v40 = vsel %vm1662_vm11, %v1710_v12, 0 }
 0x364   : > { %v1902_v61 = vpop.permute.xlu1 %1901 }
 0x365   : > { %6804 = vmatmul.mubr.msk.bf16.vlgmr.msra.gmra.mrb[4].mxu0 %vm1662_vm11, %v9224_v19  ;;  %v1854_v10 = vpop.permute.xlu0 %1853  ;;  %v1907_v16 = vsel %vm1662_vm11, %v1902_v61, 0 }
 0x366   : > { %v1859_v8 = vsel %vm1662_vm11, %v1854_v10, 0  ;;  %6792 = vmatmul.mubr.msk.bf16.vlgmr.msra.gmra.mrb[4].mxu1 %vm1662_vm11, %v9226_v63  ;;  %6815 = vmatprep.mubr.msk.bf16.mxu0 %vm8019_vm10, %v8018_v20 }
 0x367   : > { %6796 = vmatpush3.bf16.xpose.msra.mxu1 %v1715_v40  ;;  %6814 = vmatpush3.bf16.xpose.msra.mxu0 %v1859_v8 }
 0x368   : > { %6797 = vmatprep.mubr.msk.bf16.mxu1 %vm8019_vm10, %v8018_v20  ;;  %6807 = vmatprep.subr.bf16.mxu1 %v8018_v20  ;;  %v1998_v47 = vpop.permute.xlu1 %1997 }
 0x369   : > { %6825 = vmatprep.subr.bf16.mxu0 %v8018_v20  ;;  %v1950_v41 = vpop.permute.xlu0 %1949  ;;  %v2003_v24 = vsel %vm1662_vm11, %v1998_v47, 0 }
 0x36a   : > { %v1955_v0 = vsel %vm1662_vm11, %v1950_v41, 0 }
 0x36e   : > { %6798 = vmatmul.mubr.msk.bf16.vlgmr.msra.gmra.mrb[8].mxu1 %vm1662_vm11, %v9232_v36  ;;  %6816 = vmatmul.mubr.msk.bf16.vlgmr.msra.gmra.mrb[8].mxu0 %vm1662_vm11, %v9237_v32 }
 0x36f   : > { %6808 = vmatpush3.bf16.xpose.msra.mxu1 %v1811_v42  ;;  %6826 = vmatpush3.bf16.xpose.msra.mxu0 %v1955_v0 }
 0x370   : > { %6809 = vmatprep.mubr.msk.bf16.mxu1 %vm8019_vm10, %v8018_v20  ;;  %6827 = vmatprep.mubr.msk.bf16.mxu0 %vm8019_vm10, %v8018_v20 }
 0x371   : > { %6819 = vmatprep.subr.bf16.mxu1 %v8018_v20  ;;  %6837 = vmatprep.subr.bf16.mxu0 %v8018_v20 }
 0x376   : > { %6810 = vmatmul.mubr.msk.bf16.vlgmr.msra.gmra.mrb[12].mxu1 %vm1662_vm11, %v9230_v31  ;;  %6828 = vmatmul.mubr.msk.bf16.vlgmr.msra.gmra.mrb[12].mxu0 %vm1662_vm11, %v9243_v39 }
 0x377   : > { %6820 = vmatpush3.bf16.xpose.msra.mxu1 %v1907_v16  ;;  %6821 = vmatprep.mubr.msk.bf16.mxu1 %vm8019_vm10, %v8018_v20 }
 0x378   : > { %6831 = vmatprep.subr.bf16.mxu1 %v8018_v20  ;;  %6839 = vmatprep.mubr.msk.bf16.mxu0 %vm8019_vm10, %v8018_v20 }
 0x379   : > { %v9296_v35 = vpop.permute.xlu1 %1414 }
 0x37a   : > { %v9298_v53 = vpop.permute.xlu0 %1409  ;;  %v1496_v33 = vmul.f32 %v6431_v52, %v9296_v35 }
 0x37b   : > { %v1495_v51 = vmul.f32 %v6430_v21, %v9298_v53 }
 0x37c   : > { %v6439_v12 = vadd.f32 -1.0, %v1496_v33 }
 0x37d   : > { %v9300_v48 = vpop.permute.xlu1 %1419  ;;  %v6438_v37 = vadd.f32 -1.0, %v1495_v51 }
 0x37e   : > { %6822 = vmatmul.mubr.msk.bf16.vlgmr.msra.gmra.mrb[16].mxu1 %vm1662_vm11, %v9234_v38  ;;  %v9305_v44 = vpop.permute.xlu0 %1424  ;;  %v1497_v57 = vmul.f32 %v6432_v11, %v9300_v48  ;;  %v9352_v16 = vmul.f32 1e+09, %v6439_v12 }
 0x37f   : > { %6832 = vmatpush3.bf16.xpose.msra.mxu1 %v2003_v24  ;;  %6833 = vmatprep.mubr.msk.bf16.mxu1 %vm8019_vm10, %v8018_v20  ;;  %v9334_v50 = vmul.f32 1e+09, %v6438_v37  ;;  %v1498_v10 = vmul.f32 %v6433_v14, %v9305_v44 }
 0x380   : > { %6843 = vmatprep.subr.bf16.mxu1 %v8018_v20  ;;  %v6440_v7 = vadd.f32 -1.0, %v1497_v57 }
 0x381   : > { %v9310_v15 = vpop.permute.xlu1 %1429 }
 0x382   : > { %v9312_v62 = vpop.permute.xlu0 %1434  ;;  %v9332_v4 = vmul.f32 1e+09, %v6440_v7  ;;  %v1499_v1 = vmul.f32 %v6434_v49, %v9310_v15  ;;  %v6435_v7 = vld [vmem:[#allocation9 + $0x5] ss:$0 sm:$0xff] }
 0x384   : > { %v6442_v22 = vadd.f32 -1.0, %v1499_v1 }
 0x385   : > { %v9314_v25 = vpop.permute.xlu1 %1439 }
 0x386   : > { %6834 = vmatmul.mubr.msk.bf16.vlgmr.msra.gmra.mrb[20].mxu1 %vm1662_vm11, %v9240_v34  ;;  %v9318_v59 = vpop.permute.xlu0 %1444  ;;  %v9349_v40 = vmul.f32 1e+09, %v6442_v22  ;;  %v1501_v8 = vmul.f32 %v6436_v28, %v9314_v25 }
 0x387   : > { %6845 = vmatprep.mubr.msk.bf16.mxu1 %vm8019_vm10, %v8018_v20 }
 0x388   : > { %v6444_v21 = vadd.f32 -1.0, %v1501_v8 }
 0x389   : > { %v9322_v54 = vpop.permute.xlu1 %2254 }
 0x38a   : > { %v2158_v26 = vpop.permute.xlu0 %2157  ;;  %v9361_v49 = vmul.f32 1e+09, %v6444_v21 }
 0x38b   : > { %v2164_v43 = vsel %vm2162_vm12, %v2158_v26, 0 }
 0x38c   : > { %6838 = vmatpush3.bf16.msra.mxu0 %v2164_v43  ;;  %v6441_v43 = vadd.f32 -1.0, %v1498_v10 }
 0x38d   : > { %v9325_v56 = vpop.permute.xlu1 %2350  ;;  %6849 = vmatprep.subr.bf16.mxu0 %v8018_v20 }
 0x38e   : > { %v9359_v37 = vmul.f32 1e+09, %v6441_v43 }
 0x391   : > { %v2207_v45 = vpop.permute.xlu1 %2206 }
 0x392   : > { %v2212_v23 = vsel %vm2162_vm12, %v2207_v45, 0 }
 0x393   : > { %6844 = vmatpush3.bf16.msra.mxu1 %v2212_v23 }
 0x394   : > { %6855 = vmatprep.subr.bf16.mxu1 %v8018_v20 }
 0x438   : > { %v1799_v58 = vpop.f32.mrb[4].mxu0 }
 0x439   : > { %v2047_v9 = vmul.f32 0.35355338, %v1799_v58  ;;  %v1703_v6 = vpop.f32.mrb[4].mxu1  ;;  %v6805_v18 = vpop.f32.mrb[5].mxu0 }
 0x43a   : > { %v2045_v29 = vmul.f32 0.35355338, %v1703_v6  ;;  %v6793_v27 = vpop.f32.mrb[5].mxu1  ;;  %v1802_v2 = vpop.f32.mrb[6].mxu0 }
 0x43b   : > { %v1706_v30 = vpop.f32.mrb[6].mxu1  ;;  %v6806_v55 = vpop.f32.mrb[7].mxu0  ;;  %v9339_v5 = vadd.f32 %v2047_v9, %v9332_v4  ;;  %v1500_v9 = vmul.f32 %v6435_v7, %v9312_v62 }
 0x43c   : > { %v6794_v13 = vpop.f32.mrb[7].mxu1  ;;  %v9342_v46 = vadd.f32 %v2045_v29, %v9334_v50 }
 0x43d   : > { %v2067_v3 = vsel %vm1662_vm11, %v9339_v5, -inf  ;;  %v6443_v22 = vadd.f32 -1.0, %v1500_v9 }
 0x43e   : > { %2068 = vmax.xlane.f32.xlu0 %v2067_v3  ;;  %v2061_v60 = vsel %vm1662_vm11, %v9342_v46, -inf }
 0x43f   : > { %2062 = vmax.xlane.f32.xlu1 %v2061_v60  ;;  %v6437_v60 = vld [vmem:[#allocation9 + $0x7] ss:$0 sm:$0xff]  ;;  %v9373_v10 = vmul.f32 1e+09, %v6443_v22 }
 0x440   : > { %v1502_v8 = vmul.f32 %v6437_v60, %v9318_v59 }
 0x441   : > { %v1751_v17 = vpop.f32.mrb[8].mxu1  ;;  %v1895_v41 = vpop.f32.mrb[8].mxu0 }
 0x442   : > { %v2046_v42 = vmul.f32 0.35355338, %v1751_v17  ;;  %v2049_v0 = vmul.f32 0.35355338, %v1895_v41  ;;  %v6799_v61 = vpop.f32.mrb[9].mxu1  ;;  %v6817_v47 = vpop.f32.mrb[9].mxu0 }
 0x443   : > { %v1754_v24 = vpop.f32.mrb[10].mxu1  ;;  %v1898_v26 = vpop.f32.mrb[10].mxu0  ;;  %v6445_v47 = vadd.f32 -1.0, %v1502_v8 }
 0x444   : > { %v6800_v45 = vpop.f32.mrb[11].mxu1  ;;  %v6818_v23 = vpop.f32.mrb[11].mxu0  ;;  %v2057_v11 = vadd.f32 %v2049_v0, %v9349_v40  ;;  %v9356_v57 = vadd.f32 %v2046_v42, %v9352_v16 }
 0x445   : > { %v9378_v43 = vmul.f32 1e+09, %v6445_v47 }
 0x446   : > { %v2073_v51 = vsel %vm1662_vm11, %v2057_v11, -inf  ;;  %v2064_v1 = vsel %vm1662_vm11, %v9356_v57, -inf }
 0x447   : > { %2074 = vmax.xlane.f32.xlu0 %v2073_v51 }
 0x449   : > { %v1847_v52 = vpop.f32.mrb[12].mxu1  ;;  %v1991_v58 = vpop.f32.mrb[12].mxu0 }
 0x44a   : > { %v2048_v6 = vmul.f32 0.35355338, %v1847_v52  ;;  %v2051_v18 = vmul.f32 0.35355338, %v1991_v58  ;;  %v6811_v29 = vpop.f32.mrb[13].mxu1  ;;  %v6829_v27 = vpop.f32.mrb[13].mxu0 }
 0x44b   : > { %v1850_v2 = vpop.f32.mrb[14].mxu1  ;;  %v1994_v33 = vpop.f32.mrb[14].mxu0  ;;  %2065 = vmax.xlane.f32.xlu0 %v2064_v1 }
 0x44c   : > { %v6812_v30 = vpop.f32.mrb[15].mxu1  ;;  %v6830_v55 = vpop.f32.mrb[15].mxu0  ;;  %v9367_v13 = vadd.f32 %v2051_v18, %v9361_v49  ;;  %v2056_v14 = vadd.f32 %v2048_v6, %v9359_v37 }
 0x44d   : > { %v9386_v58 = vpop.permute.xlu0 %2302 }
 0x44e   : > { %v2079_v3 = vsel %vm1662_vm11, %v9367_v13, -inf  ;;  %v2070_v28 = vsel %vm1662_vm11, %v2056_v14, -inf }
 0x44f   : > { %2080 = vmax.xlane.f32.xlu0 %v2079_v3  ;;  %2071 = vmax.xlane.f32.xlu1 %v2070_v28 }
 0x451   : > { %v1943_v12 = vpop.f32.mrb[16].mxu1 }
 0x452   : > { %v2050_v17 = vmul.f32 0.35355338, %v1943_v12  ;;  %v6823_v41 = vpop.f32.mrb[17].mxu1 }
 0x453   : > { %v1946_v42 = vpop.f32.mrb[18].mxu1 }
 0x454   : > { %v6824_v0 = vpop.f32.mrb[19].mxu1  ;;  %v2058_v61 = vadd.f32 %v2050_v17, %v9373_v10 }
 0x456   : > { %v2076_v24 = vsel %vm1662_vm11, %v2058_v61, -inf }
 0x457   : > { %2077 = vmax.xlane.f32.xlu1 %v2076_v24 }
 0x459   : > { %v2039_v26 = vpop.f32.mrb[20].mxu1 }
 0x45a   : > { %v2052_v45 = vmul.f32 0.35355338, %v2039_v26  ;;  %v6835_v23 = vpop.f32.mrb[21].mxu1 }
 0x45b   : > { %v2042_v21 = vpop.f32.mrb[22].mxu1 }
 0x45c   : > { %v6836_v51 = vpop.f32.mrb[23].mxu1  ;;  %v2060_v7 = vadd.f32 %v2052_v45, %v9378_v43 }
 0x45e   : > { %v2082_v52 = vsel %vm1662_vm11, %v2060_v7, -inf }
 0x45f   : > { %2083 = vmax.xlane.f32.xlu1 %v2082_v52 }
 0x465   : > { %2398 = vrot.lane.b32.xlu0 %v9234_v38, %s8021_s26 }
 0x470   : > { %2446 = vrot.lane.b32.xlu1 %v9243_v39, %s8021_s26 }
 0x4cb   : > { %v2069_v1 = vpop.xlane.xlu0 %2068 }
 0x4cc   : > { %v2087_v9 = vsub.f32 %v9339_v5, %v2069_v1  ;;  %v2063_v6 = vpop.xlane.xlu1 %2062 }
 0x4cd   : > { %v2085_v18 = vsub.f32 %v9342_v46, %v2063_v6 }
 0x4ce   : > { %v2097_v29 = vmul.f32 1.442695, %v2087_v9 }
 0x4cf   : > { %v2093_v27 = vmul.f32 1.442695, %v2085_v18 }
 0x4d0   : > { %7411 = vpow2.f32 %v2097_v29 }
 0x4d1   : > { %7413 = vpow2.f32 %v2093_v27 }
 0x4d4   : > { %v2075_v2 = vpop.xlane.xlu0 %2074 }
 0x4d5   : > { %v2089_v33 = vsub.f32 %v2057_v11, %v2075_v2 }
 0x4d7   : > { %v2101_v30 = vmul.f32 1.442695, %v2089_v33 }
 0x4d8   : > { %v2066_v55 = vpop.xlane.xlu0 %2065 }
 0x4d9   : > { %7415 = vpow2.f32 %v2101_v30  ;;  %v2086_v22 = vsub.f32 %v9356_v57, %v2066_v55 }
 0x4da   : > { %v9391_v3 = vpop.eup %7411 }
 0x4db   : > { %v2095_v28 = vmul.f32 1.442695, %v2086_v22  ;;  %v2115_v5 = vsel %vm1662_vm11, %v9391_v3, 0.0  ;;  %v9395_v60 = vpop.eup %7413 }
 0x4dc   : > { %v2072_v46 = vpop.xlane.xlu1 %2071  ;;  %2116 = vadd.xlane.f32.xlu0 %v2115_v5  ;;  %v2109_v11 = vsel %vm1662_vm11, %v9395_v60, 0.0  ;;  %v2081_v23 = vpop.xlane.xlu0 %2080 }
 0x4dd   : > { %7417 = vpow2.f32 %v2095_v28  ;;  %v2088_v12 = vsub.f32 %v2056_v14, %v2072_v46  ;;  %v2091_v21 = vsub.f32 %v9367_v13, %v2081_v23 }
 0x4df   : > { %v2099_v8 = vmul.f32 1.442695, %v2088_v12  ;;  %v2105_v51 = vmul.f32 1.442695, %v2091_v21 }
 0x4e0   : > { %2110 = vadd.xlane.f32.xlu0 %v2109_v11 }
 0x4e1   : > { %7419 = vpow2.f32 %v2099_v8  ;;  %v2260_v8 = vsel %vm2162_vm12, %v9322_v54, 0  ;;  %v2356_v54 = vsel %vm2162_vm12, %v9325_v56, 0 }
 0x4e3   : > { %v9399_v17 = vpop.eup %7415 }
 0x4e4   : > { %v2078_v57 = vpop.xlane.xlu1 %2077  ;;  %v2121_v41 = vsel %vm1662_vm11, %v9399_v17, 0.0 }
 0x4e5   : > { %v2090_v42 = vsub.f32 %v2058_v61, %v2078_v57  ;;  %2122 = vadd.xlane.f32.xlu0 %v2121_v41 }
 0x4e7   : > { %v9403_v0 = vpop.eup %7417  ;;  %v2103_v47 = vmul.f32 1.442695, %v2090_v42 }
 0x4e8   : > { %v2112_v14 = vsel %vm1662_vm11, %v9403_v0, 0.0 }
 0x4e9   : > { %7421 = vpow2.f32 %v2103_v47  ;;  %2113 = vadd.xlane.f32.xlu1 %v2112_v14 }
 0x4ea   : > { %7423 = vpow2.f32 %v2105_v51 }
 0x4eb   : > { %v9407_v24 = vpop.eup %7419 }
 0x4ec   : > { %v2118_v26 = vsel %vm1662_vm11, %v9407_v24, 0.0  ;;  %v2084_v52 = vpop.xlane.xlu1 %2083 }
 0x4ed   : > { %2119 = vadd.xlane.f32.xlu1 %v2118_v26  ;;  %v2092_v1 = vsub.f32 %v2060_v7, %v2084_v52  ;;  %v2399_v7 = vpop.permute.xlu0 %2398 }
 0x4ee   : > { %v2404_v51 = vsel %vm2162_vm12, %v2399_v7, 0 }
 0x4ef   : > { %v2107_v6 = vmul.f32 1.442695, %v2092_v1 }
 0x4f0   : > { %v2447_v33 = vpop.permute.xlu1 %2446 }
 0x4f1   : > { %7425 = vpow2.f32 %v2107_v6  ;;  %v2452_v21 = vsel %vm2162_vm12, %v2447_v33, 0 }
 0x4f3   : > { %v9411_v45 = vpop.eup %7421 }
 0x4f4   : > { %v2124_v61 = vsel %vm1662_vm11, %v9411_v45, 0.0  ;;  %v9419_v9 = vpop.eup %7423 }
 0x4f5   : > { %2125 = vadd.xlane.f32.xlu1 %v2124_v61  ;;  %v2127_v18 = vsel %vm1662_vm11, %v9419_v9, 0.0  ;;  %v2308_v61 = vsel %vm2162_vm12, %v9386_v58, 0 }
 0x4fb   : > { %2494 = vrot.lane.b32.xlu0 %v9240_v34, %s8021_s26  ;;  %v9423_v29 = vpop.eup %7425  ;;  %s6622_s26 = sshll.u32 %s10634_s27, 5 }
 0x4fc   : > { %v2130_v13 = vsel %vm1662_vm11, %v9423_v29, 0.0 }
 0x506   : > { %2561 = vrot.lane.b32.xlu1 %v9226_v63, %s8022_s12 }
 0x51a   : > { %2128 = vadd.xlane.f32.xlu0 %v2127_v18 }
 0x52a   : > { %2131 = vadd.xlane.f32.xlu1 %v2130_v13 }
 0x530   : > { %2611 = vrot.lane.b32.xlu0 %v9232_v36, %s8022_s12 }
 0x534   : > { %2609 = vrot.lane.b32.xlu0 %v9232_v36, %s8023_s20 }
 0x538   : > { %2711 = vrot.lane.b32.xlu0 %v9230_v31, %s8022_s12 }
 0x53b   : > { %2559 = vrot.lane.b32.xlu1 %v9226_v63, %s8023_s20 }
 0x53c   : > { %2709 = vrot.lane.b32.xlu0 %v9230_v31, %s8023_s20 }
 0x53f   : > { %2661 = vrot.lane.b32.xlu1 %v9224_v19, %s8022_s12 }
 0x540   : > { %2811 = vrot.lane.b32.xlu0 %v9234_v38, %s8022_s12 }
 0x543   : > { %2659 = vrot.lane.b32.xlu1 %v9224_v19, %s8023_s20 }
 0x544   : > { %2809 = vrot.lane.b32.xlu0 %v9234_v38, %s8023_s20 }
 0x547   : > { %2761 = vrot.lane.b32.xlu1 %v9237_v32, %s8022_s12 }
 0x548   : > { %2911 = vrot.lane.b32.xlu0 %v9240_v34, %s8022_s12 }
 0x54b   : > { %2759 = vrot.lane.b32.xlu1 %v9237_v32, %s8023_s20 }
 0x54c   : > { %2909 = vrot.lane.b32.xlu0 %v9240_v34, %s8023_s20 }
 0x54f   : > { %2861 = vrot.lane.b32.xlu1 %v9243_v39, %s8022_s12  ;;  %s10185_s12 = scalar_lea.vmem [#allocation19], %s6622_s26 }
 0x550   : > { %3071 = vrot.lane.b32.xlu0 %v9226_v63, %s8024_s17 }
 0x553   : > { %2859 = vrot.lane.b32.xlu1 %v9243_v39, %s8023_s20  ;;  %s5573_s20 = scalar_lea.vmem [#allocation22], %s6446_s13 }
 0x554   : > { %3215 = vrot.lane.b32.xlu0 %v9230_v31, %s8024_s17 }
 0x557   : > { %3119 = vrot.lane.b32.xlu1 %v9232_v36, %s8024_s17 }
 0x55b   : > { %3167 = vrot.lane.b32.xlu1 %v9224_v19, %s8024_s17 }
 0x55f   : > { %3263 = vrot.lane.b32.xlu1 %v9237_v32, %s8024_s17 }
 0x569   : > { %v2117_v27 = vpop.xlane.xlu0 %2116 }
 0x56d   : > { %v2111_v2 = vpop.xlane.xlu0 %2110 }
 0x56e   : > { %7427 = vrcp.f32 %v2111_v2 }
 0x56f   : > { %7429 = vrcp.f32 %v2117_v27 }
 0x572   : > { %v2123_v55 = vpop.xlane.xlu0 %2122 }
 0x576   : > { %v2114_v30 = vpop.xlane.xlu1 %2113 }
 0x577   : > { %7431 = vrcp.f32 %v2114_v30 }
 0x578   : > { %v7428_v22 = vpop.eup %7427  ;;  %7433 = vrcp.f32 %v2123_v55 }
 0x579   : > { %v2141_v28 = vmul.f32 %v7428_v22, %v9395_v60  ;;  %v7430_v12 = vpop.eup %7429 }
 0x57a   : > { %v2120_v5 = vpop.xlane.xlu1 %2119  ;;  %v2143_v11 = vmul.f32 %v7430_v12, %v9391_v3 }
 0x57b   : > { %7435 = vrcp.f32 %v2120_v5  ;;  %v2149_v46 = vpack.c.bf16 %v2141_v28, %v2141_v28 }
 0x57c   : > { %v2151_v42 = vpack.c.bf16 %v2143_v11, %v2143_v11 }
 0x57d   : > { %6840 = vmatmul.mubr.msk.bf16.vlgmr.msra.gmra.mrb[16].mxu0 %vm1662_vm11, %v2149_v46 }
 0x57e   : > { %6850 = vmatpush3.bf16.msra.mxu0 %v2260_v8  ;;  %6851 = vmatprep.mubr.msk.bf16.mxu0 %vm8019_vm10, %v8018_v20 }
 0x57f   : > { %6861 = vmatprep.subr.bf16.mxu0 %v8018_v20 }
 0x581   : > { %v7432_v57 = vpop.eup %7431 }
 0x582   : > { %v2126_v60 = vpop.xlane.xlu1 %2125  ;;  %v2142_v41 = vmul.f32 %v7432_v57, %v9403_v0  ;;  %v7434_v47 = vpop.eup %7433 }
 0x583   : > { %7437 = vrcp.f32 %v2126_v60  ;;  %v2145_v3 = vmul.f32 %v7434_v47, %v9399_v17 }
 0x584   : > { %v2150_v14 = vpack.c.bf16 %v2142_v41, %v2142_v41 }
 0x585   : > { %v7436_v26 = vpop.eup %7435  ;;  %6852 = vmatmul.mubr.msk.bf16.vlgmr.msra.gmra.mrb[20].mxu0 %vm1662_vm11, %v2151_v42  ;;  %v2153_v0 = vpack.c.bf16 %v2145_v3, %v2145_v3 }
 0x586   : > { %6862 = vmatpush3.bf16.msra.mxu0 %v2356_v54  ;;  %6846 = vmatmul.mubr.msk.bf16.vlgmr.msra.gmra.mrb[24].mxu1 %vm1662_vm11, %v2150_v14  ;;  %v2144_v56 = vmul.f32 %v7436_v26, %v9407_v24  ;;  %v2495_v24 = vpop.permute.xlu0 %2494  ;;  %v2562_v7 = vpop.permute.xlu1 %2561 }
 0x587   : > { %6856 = vmatpush3.bf16.msra.mxu1 %v2308_v61  ;;  %6863 = vmatprep.mubr.msk.bf16.mxu0 %vm8019_vm10, %v8018_v20  ;;  %v2500_v1 = vsel %vm2162_vm12, %v2495_v24, 0  ;;  %v2567_v30 = vsel %vm1662_vm11, %v2562_v7, 0 }
 0x588   : > { %6873 = vmatprep.subr.bf16.mxu0 %v8018_v20  ;;  %6857 = vmatprep.mubr.msk.bf16.mxu1 %vm8019_vm10, %v8018_v20  ;;  %v2152_v58 = vpack.c.bf16 %v2144_v56, %v2144_v56 }
 0x589   : > { %6867 = vmatprep.subr.bf16.mxu1 %v8018_v20 }
 0x58d   : > { %v7438_v23 = vpop.eup %7437  ;;  %6864 = vmatmul.mubr.msk.bf16.vlgmr.msra.gmra.mrb[24].mxu0 %vm1662_vm11, %v2153_v0 }
 0x58e   : > { %6874 = vmatpush3.bf16.msra.mxu0 %v2452_v21  ;;  %6858 = vmatmul.mubr.msk.bf16.vlgmr.msra.gmra.mrb[28].mxu1 %vm1662_vm11, %v2152_v58  ;;  %v2146_v17 = vmul.f32 %v7438_v23, %v9411_v45 }
 0x58f   : > { %6868 = vmatpush3.bf16.msra.mxu1 %v2404_v51  ;;  %6869 = vmatprep.mubr.msk.bf16.mxu1 %vm8019_vm10, %v8018_v20 }
 0x590   : > { %6879 = vmatprep.subr.bf16.mxu1 %v8018_v20  ;;  %6875 = vmatprep.mubr.msk.bf16.mxu0 %vm8019_vm10, %v8018_v20  ;;  %v2154_v52 = vpack.c.bf16 %v2146_v17, %v2146_v17 }
 0x591   : > { %6885 = vmatprep.subr.bf16.mxu0 %v8018_v20 }
 0x596   : > { %6870 = vmatmul.mubr.msk.bf16.vlgmr.msra.gmra.mrb[32].mxu1 %vm1662_vm11, %v2154_v52 }
 0x597   : > { %6880 = vmatpush3.bf16.msra.mxu1 %v2500_v1  ;;  %6881 = vmatprep.mubr.msk.bf16.mxu1 %vm8019_vm10, %v8018_v20 }
 0x598   : > { %6891 = vmatprep.subr.bf16.mxu1 %v8018_v20 }
 0x5a7   : > { %v2129_v6 = vpop.xlane.xlu0 %2128 }
 0x5a8   : > { %7439 = vrcp.f32 %v2129_v6 }
 0x5ab   : > { %v2612_v45 = vpop.permute.xlu0 %2611 }
 0x5ac   : > { %v2617_v41 = vsel %vm1662_vm11, %v2612_v45, 0 }
 0x5af   : > { %v2610_v18 = vpop.permute.xlu0 %2609 }
 0x5b2   : > { %v7440_v13 = vpop.eup %7439 }
 0x5b3   : > { %v2712_v27 = vpop.permute.xlu0 %2711  ;;  %v2147_v2 = vmul.f32 %v7440_v13, %v9419_v9 }
 0x5b4   : > { %v2717_v26 = vsel %vm1662_vm11, %v2712_v27, 0 }
 0x5b5   : > { %v2155_v33 = vpack.c.bf16 %v2147_v2, %v2147_v2 }
 0x5b7   : > { %v2132_v55 = vpop.xlane.xlu1 %2131  ;;  %6876 = vmatmul.mubr.msk.bf16.vlgmr.msra.gmra.mrb[28].mxu0 %vm1662_vm11, %v2155_v33  ;;  %v2710_v22 = vpop.permute.xlu0 %2709 }
 0x5b8   : > { %7441 = vrcp.f32 %v2132_v55  ;;  %6886 = vmatpush3.bf16.xpose.msra.mxu0 %v2567_v30  ;;  %6887 = vmatprep.mubr.msk.bf16.mxu0 %vm8019_vm10, %v8018_v20 }
 0x5b9   : > { %6897 = vmatprep.subr.bf16.mxu0 %v8018_v20 }
 0x5bb   : > { %v2560_v28 = vpop.permute.xlu1 %2559  ;;  %v2812_v5 = vpop.permute.xlu0 %2811 }
 0x5bc   : > { %v2817_v0 = vsel %vm1662_vm11, %v2812_v5, 0 }
 0x5bf   : > { %v2662_v46 = vpop.permute.xlu1 %2661  ;;  %6888 = vmatmul.mubr.msk.bf16.vlgmr.msra.gmra.mrb[32].mxu0 %vm1662_vm11, %v2560_v28  ;;  %v2810_v8 = vpop.permute.xlu0 %2809 }
 0x5c0   : > { %v2667_v9 = vsel %vm1662_vm11, %v2662_v46, 0  ;;  %6899 = vmatprep.mubr.msk.bf16.mxu0 %vm8019_vm10, %v8018_v20 }
 0x5c1   : > { %6898 = vmatpush3.bf16.xpose.msra.mxu0 %v2667_v9 }
 0x5c2   : > { %v7442_v12 = vpop.eup %7441  ;;  %6909 = vmatprep.subr.bf16.mxu0 %v8018_v20 }
 0x5c3   : > { %v2660_v11 = vpop.permute.xlu1 %2659  ;;  %v2148_v57 = vmul.f32 %v7442_v12, %v9423_v29  ;;  %v2912_v14 = vpop.permute.xlu0 %2911 }
 0x5c4   : > { %v2917_v21 = vsel %vm1662_vm11, %v2912_v14, 0 }
 0x5c5   : > { %v2156_v60 = vpack.c.bf16 %v2148_v57, %v2148_v57 }
 0x5c7   : > { %v2762_v42 = vpop.permute.xlu1 %2761  ;;  %6882 = vmatmul.mubr.msk.bf16.vlgmr.msra.gmra.mrb[36].mxu1 %vm1662_vm11, %v2156_v60  ;;  %v2910_v54 = vpop.permute.xlu0 %2909 }
 0x5c8   : > { %v2767_v47 = vsel %vm1662_vm11, %v2762_v42, 0  ;;  %6892 = vmatpush3.bf16.xpose.msra.mxu1 %v2617_v41  ;;  %6900 = vmatmul.mubr.msk.bf16.vlgmr.msra.gmra.mrb[36].mxu0 %vm1662_vm11, %v2660_v11 }
 0x5c9   : > { %6910 = vmatpush3.bf16.xpose.msra.mxu0 %v2767_v47  ;;  %6893 = vmatprep.mubr.msk.bf16.mxu1 %vm8019_vm10, %v8018_v20 }
 0x5ca   : > { %6903 = vmatprep.subr.bf16.mxu1 %v8018_v20  ;;  %6911 = vmatprep.mubr.msk.bf16.mxu0 %vm8019_vm10, %v8018_v20 }
 0x5cb   : > { %v2760_v29 = vpop.permute.xlu1 %2759  ;;  %6921 = vmatprep.subr.bf16.mxu0 %v8018_v20  ;;  %v3072_v56 = vpop.permute.xlu0 %3071 }
 0x5cc   : > { %v3077_v23 = vsel %vm2162_vm12, %v3072_v56, 0 }
 0x5cf   : > { %v2862_v61 = vpop.permute.xlu1 %2861  ;;  %6894 = vmatmul.mubr.msk.bf16.vlgmr.msra.gmra.mrb[40].mxu1 %vm1662_vm11, %v2610_v18 }
 0x5d0   : > { %v2867_v3 = vsel %vm1662_vm11, %v2862_v61, 0  ;;  %6904 = vmatpush3.bf16.xpose.msra.mxu1 %v2717_v26  ;;  %6912 = vmatmul.mubr.msk.bf16.vlgmr.msra.gmra.mrb[40].mxu0 %vm1662_vm11, %v2760_v29 }
 0x5d1   : > { %6922 = vmatpush3.bf16.xpose.msra.mxu0 %v2867_v3  ;;  %6905 = vmatprep.mubr.msk.bf16.mxu1 %vm8019_vm10, %v8018_v20 }
 0x5d2   : > { %6915 = vmatprep.subr.bf16.mxu1 %v8018_v20  ;;  %6923 = vmatprep.mubr.msk.bf16.mxu0 %vm8019_vm10, %v8018_v20 }
 0x5d3   : > { %6933 = vmatprep.subr.bf16.mxu0 %v8018_v20  ;;  %v2860_v58 = vpop.permute.xlu1 %2859 }
 0x5d7   : > { %6906 = vmatmul.mubr.msk.bf16.vlgmr.msra.gmra.mrb[44].mxu1 %vm1662_vm11, %v2710_v22  ;;  %v3120_v51 = vpop.permute.xlu1 %3119 }
 0x5d8   : > { %6916 = vmatpush3.bf16.xpose.msra.mxu1 %v2817_v0  ;;  %6924 = vmatmul.mubr.msk.bf16.vlgmr.msra.gmra.mrb[44].mxu0 %vm1662_vm11, %v2860_v58  ;;  %v3125_v17 = vsel %vm2162_vm12, %v3120_v51, 0 }
 0x5d9   : > { %6934 = vmatpush3.bf16.msra.mxu0 %v3077_v23  ;;  %6917 = vmatprep.mubr.msk.bf16.mxu1 %vm8019_vm10, %v8018_v20 }
 0x5da   : > { %6927 = vmatprep.subr.bf16.mxu1 %v8018_v20  ;;  %6935 = vmatprep.mubr.msk.bf16.mxu0 %vm8019_vm10, %v8018_v20 }
 0x5db   : > { %6945 = vmatprep.subr.bf16.mxu0 %v8018_v20 }
 0x5df   : > { %6918 = vmatmul.mubr.msk.bf16.vlgmr.msra.gmra.mrb[48].mxu1 %vm1662_vm11, %v2810_v8 }
 0x5e0   : > { %6928 = vmatpush3.bf16.xpose.msra.mxu1 %v2917_v21  ;;  %6929 = vmatprep.mubr.msk.bf16.mxu1 %vm8019_vm10, %v8018_v20 }
 0x5e1   : > { %6939 = vmatprep.subr.bf16.mxu1 %v8018_v20 }
 0x5e7   : > { %6930 = vmatmul.mubr.msk.bf16.vlgmr.msra.gmra.mrb[52].mxu1 %vm1662_vm11, %v2910_v54 }
 0x5e8   : > { %6940 = vmatpush3.bf16.msra.mxu1 %v3125_v17  ;;  %6941 = vmatprep.mubr.msk.bf16.mxu1 %vm8019_vm10, %v8018_v20 }
 0x5e9   : > { %6951 = vmatprep.subr.bf16.mxu1 %v8018_v20 }
 0x650   : > { %v2200_v24 = vpop.f32.mrb[16].mxu0 }
 0x651   : > { %v2542_v52 = vpack.c.bf16 %v2200_v24, %v2200_v24  ;;  %v6841_v1 = vpop.f32.mrb[17].mxu0 }
 0x652   : > { %v2203_v6 = vpop.f32.mrb[18].mxu0 }
 0x653   : > { %2551 = vst.msk [vmem:[#allocation3] sm:$0xf] %vm2550_vm13, %v2542_v52  ;;  %v6842_v45 = vpop.f32.mrb[19].mxu0 }
 0x658   : > { %v2296_v18 = vpop.f32.mrb[20].mxu0 }
 0x659   : > { %v2544_v13 = vpack.c.bf16 %v2296_v18, %v2296_v18  ;;  %v2248_v7 = vpop.f32.mrb[24].mxu1  ;;  %v6853_v27 = vpop.f32.mrb[21].mxu0 }
 0x65a   : > { %v2543_v2 = vpack.c.bf16 %v2248_v7, %v2248_v7  ;;  %v6847_v33 = vpop.f32.mrb[25].mxu1  ;;  %v2299_v30 = vpop.f32.mrb[22].mxu0 }
 0x65b   : > { %2553 = vst.msk [vmem:[#allocation3 + $0x8] sm:$0xf] %vm2550_vm13, %v2544_v13  ;;  %v2251_v55 = vpop.f32.mrb[26].mxu1  ;;  %v6854_v22 = vpop.f32.mrb[23].mxu0 }
 0x65c   : > { %2552 = vst.msk [vmem:[#allocation3 + $0x4] sm:$0xf] %vm2550_vm13, %v2543_v2  ;;  %v6848_v28 = vpop.f32.mrb[27].mxu1 }
 0x660   : > { %v2392_v5 = vpop.f32.mrb[24].mxu0 }
 0x661   : > { %v2546_v46 = vpack.c.bf16 %v2392_v5, %v2392_v5  ;;  %v2344_v9 = vpop.f32.mrb[28].mxu1  ;;  %v6865_v12 = vpop.f32.mrb[25].mxu0 }
 0x662   : > { %v2545_v8 = vpack.c.bf16 %v2344_v9, %v2344_v9  ;;  %v6859_v11 = vpop.f32.mrb[29].mxu1  ;;  %v2395_v57 = vpop.f32.mrb[26].mxu0 }
 0x663   : > { %2555 = vst.msk [vmem:[#allocation3 + $0x10] sm:$0xf] %vm2550_vm13, %v2546_v46  ;;  %v2347_v60 = vpop.f32.mrb[30].mxu1  ;;  %v6866_v41 = vpop.f32.mrb[27].mxu0 }
 0x664   : > { %2554 = vst.msk [vmem:[#allocation3 + $0xc] sm:$0xf] %vm2550_vm13, %v2545_v8  ;;  %v6860_v42 = vpop.f32.mrb[31].mxu1 }
 0x669   : > { %v2440_v47 = vpop.f32.mrb[32].mxu1 }
 0x66a   : > { %v2547_v14 = vpack.c.bf16 %v2440_v47, %v2440_v47  ;;  %v6871_v29 = vpop.f32.mrb[33].mxu1 }
 0x66b   : > { %v2443_v26 = vpop.f32.mrb[34].mxu1 }
 0x66c   : > { %2556 = vst.msk [vmem:[#allocation3 + $0x14] sm:$0xf] %vm2550_vm13, %v2547_v14  ;;  %v6872_v54 = vpop.f32.mrb[35].mxu1 }
 0x68a   : > { %v2488_v61 = vpop.f32.mrb[28].mxu0 }
 0x68b   : > { %v2548_v3 = vpack.c.bf16 %v2488_v61, %v2488_v61  ;;  %v6877_v56 = vpop.f32.mrb[29].mxu0 }
 0x68c   : > { %v2491_v0 = vpop.f32.mrb[30].mxu0 }
 0x68d   : > { %2557 = vst.msk [vmem:[#allocation3 + $0x18] sm:$0xf] %vm2550_vm13, %v2548_v3  ;;  %v6878_v58 = vpop.f32.mrb[31].mxu0 }
 0x692   : > { %v2603_v23 = vpop.f32.mrb[32].mxu0 }
 0x693   : > { %v2959_v21 = vmul.f32 0.35355338, %v2603_v23  ;;  %v6889_v51 = vpop.f32.mrb[33].mxu0 }
 0x694   : > { %v2606_v17 = vpop.f32.mrb[34].mxu0 }
 0x695   : > { %v6890_v24 = vpop.f32.mrb[35].mxu0  ;;  %v9551_v52 = vadd.f32 %v2959_v21, %v9334_v50 }
 0x697   : > { %v2975_v1 = vsel %vm1662_vm11, %v9551_v52, -inf }
 0x698   : > { %2976 = vmax.xlane.f32.xlu1 %v2975_v1 }
 0x69a   : > { %v2536_v6 = vpop.f32.mrb[36].mxu1 }
 0x69b   : > { %v2549_v45 = vpack.c.bf16 %v2536_v6, %v2536_v6  ;;  %v6883_v18 = vpop.f32.mrb[37].mxu1  ;;  %v2703_v13 = vpop.f32.mrb[36].mxu0 }
 0x69c   : > { %v2539_v7 = vpop.f32.mrb[38].mxu1  ;;  %v6901_v27 = vpop.f32.mrb[37].mxu0  ;;  %v2961_v22 = vmul.f32 0.35355338, %v2703_v13 }
 0x69d   : > { %2558 = vst.msk [vmem:[#allocation3 + $0x1c] sm:$0xf] %vm2550_vm13, %v2549_v45  ;;  %v6884_v2 = vpop.f32.mrb[39].mxu1  ;;  %v2706_v33 = vpop.f32.mrb[38].mxu0 }
 0x69e   : > { %v6902_v30 = vpop.f32.mrb[39].mxu0  ;;  %v2969_v47 = vadd.f32 %v2961_v22, %v9332_v4 }
 0x6a0   : > { %v2981_v61 = vsel %vm1662_vm11, %v2969_v47, -inf }
 0x6a2   : > { %v2653_v55 = vpop.f32.mrb[40].mxu1 }
 0x6a3   : > { %v2960_v28 = vmul.f32 0.35355338, %v2653_v55  ;;  %v6895_v5 = vpop.f32.mrb[41].mxu1  ;;  %v2803_v46 = vpop.f32.mrb[40].mxu0 }
 0x6a4   : > { %v2656_v9 = vpop.f32.mrb[42].mxu1  ;;  %v6913_v12 = vpop.f32.mrb[41].mxu0  ;;  %v2963_v41 = vmul.f32 0.35355338, %v2803_v46 }
 0x6a5   : > { %v6896_v8 = vpop.f32.mrb[43].mxu1  ;;  %v2806_v11 = vpop.f32.mrb[42].mxu0  ;;  %v2968_v57 = vadd.f32 %v2960_v28, %v9352_v16 }
 0x6a6   : > { %v6914_v60 = vpop.f32.mrb[43].mxu0  ;;  %v2971_v3 = vadd.f32 %v2963_v41, %v9349_v40  ;;  %v9577_v8 = vpop.permute.xlu1 %3167 }
 0x6a7   : > { %v2978_v42 = vsel %vm1662_vm11, %v2968_v57, -inf }
 0x6a8   : > { %2979 = vmax.xlane.f32.xlu0 %v2978_v42  ;;  %v2987_v24 = vsel %vm1662_vm11, %v2971_v3, -inf }
 0x6aa   : > { %v2753_v14 = vpop.f32.mrb[44].mxu1  ;;  %v9579_v11 = vpop.permute.xlu1 %3263 }
 0x6ab   : > { %v2962_v29 = vmul.f32 0.35355338, %v2753_v14  ;;  %v6907_v26 = vpop.f32.mrb[45].mxu1  ;;  %v2903_v54 = vpop.f32.mrb[44].mxu0 }
 0x6ac   : > { %v2965_v56 = vmul.f32 0.35355338, %v2903_v54  ;;  %v6925_v0 = vpop.f32.mrb[45].mxu0  ;;  %2982 = vmax.xlane.f32.xlu0 %v2981_v61  ;;  %v2756_v58 = vpop.f32.mrb[46].mxu1 }
 0x6ad   : > { %v6908_v23 = vpop.f32.mrb[47].mxu1  ;;  %v2906_v21 = vpop.f32.mrb[46].mxu0  ;;  %v2970_v51 = vadd.f32 %v2962_v29, %v9359_v37 }
 0x6ae   : > { %v6926_v17 = vpop.f32.mrb[47].mxu0  ;;  %v9565_v6 = vadd.f32 %v2965_v56, %v9361_v49  ;;  %v9582_v14 = vpop.permute.xlu0 %3215 }
 0x6af   : > { %v2984_v1 = vsel %vm1662_vm11, %v2970_v51, -inf }
 0x6b0   : > { %2988 = vmax.xlane.f32.xlu0 %v2987_v24  ;;  %2985 = vmax.xlane.f32.xlu1 %v2984_v1  ;;  %v2993_v7 = vsel %vm1662_vm11, %v9565_v6, -inf }
 0x6b2   : > { %v2853_v45 = vpop.f32.mrb[48].mxu1 }
 0x6b3   : > { %v2964_v18 = vmul.f32 0.35355338, %v2853_v45  ;;  %v6919_v13 = vpop.f32.mrb[49].mxu1 }
 0x6b4   : > { %2994 = vmax.xlane.f32.xlu0 %v2993_v7  ;;  %v2856_v27 = vpop.f32.mrb[50].mxu1 }
 0x6b5   : > { %v6920_v2 = vpop.f32.mrb[51].mxu1  ;;  %v2972_v33 = vadd.f32 %v2964_v18, %v9373_v10 }
 0x6b7   : > { %v2990_v30 = vsel %vm1662_vm11, %v2972_v33, -inf }
 0x6b8   : > { %2991 = vmax.xlane.f32.xlu1 %v2990_v30 }
 0x6ba   : > { %v2953_v55 = vpop.f32.mrb[52].mxu1 }
 0x6bb   : > { %v2966_v22 = vmul.f32 0.35355338, %v2953_v55  ;;  %v6931_v28 = vpop.f32.mrb[53].mxu1 }
 0x6bc   : > { %v2956_v5 = vpop.f32.mrb[54].mxu1 }
 0x6bd   : > { %v6932_v46 = vpop.f32.mrb[55].mxu1  ;;  %v2974_v9 = vadd.f32 %v2966_v22, %v9378_v43 }
 0x6bf   : > { %v2996_v12 = vsel %vm1662_vm11, %v2974_v9, -inf }
 0x6c0   : > { %2997 = vmax.xlane.f32.xlu1 %v2996_v12 }
 0x6ca   : > { %3311 = vrot.lane.b32.xlu0 %v9234_v38, %s8024_s17 }
 0x6d1   : > { %3359 = vrot.lane.b32.xlu1 %v9243_v39, %s8024_s17 }
 0x725   : > { %v2977_v60 = vpop.xlane.xlu1 %2976 }
 0x726   : > { %v2999_v41 = vsub.f32 %v9551_v52, %v2977_v60 }
 0x728   : > { %v3007_v42 = vmul.f32 1.442695, %v2999_v41 }
 0x72a   : > { %7443 = vpow2.f32 %v3007_v42 }
 0x734   : > { %v9584_v29 = vpop.eup %7443 }
 0x735   : > { %v2980_v26 = vpop.xlane.xlu0 %2979  ;;  %v3023_v54 = vsel %vm1662_vm11, %v9584_v29, 0.0 }
 0x736   : > { %v3000_v61 = vsub.f32 %v2968_v57, %v2980_v26  ;;  %3024 = vadd.xlane.f32.xlu0 %v3023_v54 }
 0x738   : > { %v3009_v56 = vmul.f32 1.442695, %v3000_v61 }
 0x739   : > { %v2983_v0 = vpop.xlane.xlu0 %2982 }
 0x73a   : > { %7445 = vpow2.f32 %v3009_v56  ;;  %v3001_v58 = vsub.f32 %v2969_v47, %v2983_v0 }
 0x73c   : > { %v3011_v23 = vmul.f32 1.442695, %v3001_v58 }
 0x73d   : > { %v2986_v21 = vpop.xlane.xlu1 %2985  ;;  %v2989_v17 = vpop.xlane.xlu0 %2988 }
 0x73e   : > { %7447 = vpow2.f32 %v3011_v23  ;;  %v3002_v52 = vsub.f32 %v2970_v51, %v2986_v21  ;;  %v3003_v24 = vsub.f32 %v2971_v3, %v2989_v17  ;;  %v3173_v21 = vsel %vm2162_vm12, %v9577_v8, 0 }
 0x740   : > { %v3013_v1 = vmul.f32 1.442695, %v3002_v52  ;;  %v3015_v45 = vmul.f32 1.442695, %v3003_v24 }
 0x741   : > { %v2995_v28 = vpop.xlane.xlu0 %2994 }
 0x742   : > { %7449 = vpow2.f32 %v3013_v1  ;;  %v3005_v5 = vsub.f32 %v9565_v6, %v2995_v28 }
 0x743   : > { %7451 = vpow2.f32 %v3015_v45 }
 0x744   : > { %v9588_v18 = vpop.eup %7445  ;;  %v3019_v46 = vmul.f32 1.442695, %v3005_v5 }
 0x745   : > { %v2992_v13 = vpop.xlane.xlu1 %2991  ;;  %v3026_v57 = vsel %vm1662_vm11, %v9588_v18, 0.0  ;;  %v3312_v6 = vpop.permute.xlu0 %3311 }
 0x746   : > { %v3004_v7 = vsub.f32 %v2972_v33, %v2992_v13  ;;  %3027 = vadd.xlane.f32.xlu1 %v3026_v57  ;;  %v3221_v57 = vsel %vm2162_vm12, %v9582_v14, 0  ;;  %v3317_v28 = vsel %vm2162_vm12, %v3312_v6, 0 }
 0x748   : > { %v9592_v27 = vpop.eup %7447  ;;  %v3017_v47 = vmul.f32 1.442695, %v3004_v7 }
 0x749   : > { %v3029_v2 = vsel %vm1662_vm11, %v9592_v27, 0.0 }
 0x74a   : > { %7453 = vpow2.f32 %v3017_v47  ;;  %3030 = vadd.xlane.f32.xlu0 %v3029_v2 }
 0x74b   : > { %7455 = vpow2.f32 %v3019_v46 }
 0x74c   : > { %v9596_v3 = vpop.eup %7449 }
 0x74d   : > { %v9598_v51 = vpop.eup %7451  ;;  %v3032_v30 = vsel %vm1662_vm11, %v9596_v3, 0.0  ;;  %v2998_v12 = vpop.xlane.xlu1 %2997 }
 0x74e   : > { %3033 = vadd.xlane.f32.xlu1 %v3032_v30  ;;  %v3035_v33 = vsel %vm1662_vm11, %v9598_v51, 0.0  ;;  %v3006_v60 = vsub.f32 %v2974_v9, %v2998_v12 }
 0x74f   : > { %3036 = vadd.xlane.f32.xlu0 %v3035_v33  ;;  %v3269_v33 = vsel %vm2162_vm12, %v9579_v11, 0 }
 0x750   : > { %v3021_v41 = vmul.f32 1.442695, %v3006_v60 }
 0x751   : > { %v3360_v0 = vpop.permute.xlu1 %3359 }
 0x752   : > { %7457 = vpow2.f32 %v3021_v41  ;;  %v3365_v5 = vsel %vm2162_vm12, %v3360_v0, 0 }
 0x754   : > { %v9604_v55 = vpop.eup %7453 }
 0x755   : > { %v3038_v22 = vsel %vm1662_vm11, %v9604_v55, 0.0  ;;  %v9612_v42 = vpop.eup %7455 }
 0x756   : > { %3039 = vadd.xlane.f32.xlu1 %v3038_v22  ;;  %v3041_v26 = vsel %vm1662_vm11, %v9612_v42, 0.0 }
 0x75c   : > { %v9616_v54 = vpop.eup %7457 }
 0x75d   : > { %v3044_v61 = vsel %vm1662_vm11, %v9616_v54, 0.0 }
 0x765   : > { %3407 = vrot.lane.b32.xlu0 %v9240_v34, %s8024_s17  ;;  %s5722_s17 = scalar_lea.vmem [#allocation18], %s10634_s27 }
 0x767   : > { %3522 = vrot.lane.b32.xlu1 %v9226_v63, %s8025_s21 }
 0x784   : > { %3042 = vadd.xlane.f32.xlu0 %v3041_v26 }
 0x78b   : > { %3045 = vadd.xlane.f32.xlu1 %v3044_v61 }
 0x79a   : > { %3572 = vrot.lane.b32.xlu0 %v9232_v36, %s8025_s21 }
 0x79c   : > { %3520 = vrot.lane.b32.xlu1 %v9226_v63, %s8026_s29 }
 0x79e   : > { %3570 = vrot.lane.b32.xlu0 %v9232_v36, %s8026_s29 }
 0x7a0   : > { %3622 = vrot.lane.b32.xlu1 %v9224_v19, %s8025_s21 }
 0x7a2   : > { %3672 = vrot.lane.b32.xlu0 %v9230_v31, %s8025_s21 }
 0x7a4   : > { %3620 = vrot.lane.b32.xlu1 %v9224_v19, %s8026_s29 }
 0x7a6   : > { %3670 = vrot.lane.b32.xlu0 %v9230_v31, %s8026_s29 }
 0x7a8   : > { %3722 = vrot.lane.b32.xlu1 %v9237_v32, %s8025_s21 }
 0x7aa   : > { %3772 = vrot.lane.b32.xlu0 %v9234_v38, %s8025_s21 }
 0x7ac   : > { %3720 = vrot.lane.b32.xlu1 %v9237_v32, %s8026_s29 }
 0x7ae   : > { %3770 = vrot.lane.b32.xlu0 %v9234_v38, %s8026_s29 }
 0x7b0   : > { %3822 = vrot.lane.b32.xlu1 %v9243_v39, %s8025_s21 }
 0x7b2   : > { %3872 = vrot.lane.b32.xlu0 %v9240_v34, %s8025_s21  ;;  %s5842_s21 = scalar_lea.vmem [#allocation21], %s10634_s27 }
 0x7b4   : > { %3820 = vrot.lane.b32.xlu1 %v9243_v39, %s8026_s29 }
 0x7b6   : > { %3870 = vrot.lane.b32.xlu0 %v9240_v34, %s8026_s29 }
 0x7b8   : > { %4080 = vrot.lane.b32.xlu1 %v9232_v36, %s8027_s14 }
 0x7ba   : > { %4032 = vrot.lane.b32.xlu0 %v9226_v63, %s8027_s14 }
 0x7bc   : > { %4128 = vrot.lane.b32.xlu1 %v9224_v19, %s8027_s14 }
 0x7be   : > { %4176 = vrot.lane.b32.xlu0 %v9230_v31, %s8027_s14 }
 0x7c0   : > { %4224 = vrot.lane.b32.xlu1 %v9237_v32, %s8027_s14 }
 0x7c3   : > { %v3025_v9 = vpop.xlane.xlu0 %3024 }
 0x7c4   : > { %7459 = vrcp.f32 %v3025_v9 }
 0x7ce   : > { %v7460_v56 = vpop.eup %7459 }
 0x7cf   : > { %v3055_v58 = vmul.f32 %v7460_v56, %v9584_v29 }
 0x7d1   : > { %v3063_v23 = vpack.c.bf16 %v3055_v58, %v3055_v58 }
 0x7d3   : > { %v3028_v17 = vpop.xlane.xlu1 %3027  ;;  %6936 = vmatmul.mubr.msk.bf16.vlgmr.msra.gmra.mrb[48].mxu0 %vm1662_vm11, %v3063_v23 }
 0x7d4   : > { %7461 = vrcp.f32 %v3028_v17  ;;  %6946 = vmatpush3.bf16.msra.mxu0 %v3173_v21  ;;  %6947 = vmatprep.mubr.msk.bf16.mxu0 %vm8019_vm10, %v8018_v20 }
 0x7d5   : > { %6957 = vmatprep.subr.bf16.mxu0 %v8018_v20 }
 0x7d7   : > { %v3031_v52 = vpop.xlane.xlu0 %3030 }
 0x7d8   : > { %7463 = vrcp.f32 %v3031_v52 }
 0x7db   : > { %v3034_v24 = vpop.xlane.xlu1 %3033 }
 0x7dc   : > { %7465 = vrcp.f32 %v3034_v24  ;;  %v3037_v1 = vpop.xlane.xlu0 %3036 }
 0x7dd   : > { %7467 = vrcp.f32 %v3037_v1 }
 0x7de   : > { %v7462_v29 = vpop.eup %7461 }
 0x7df   : > { %v3056_v45 = vmul.f32 %v7462_v29, %v9588_v18 }
 0x7e0   : > { %v3408_v12 = vpop.permute.xlu0 %3407 }
 0x7e1   : > { %v3064_v8 = vpack.c.bf16 %v3056_v45, %v3056_v45  ;;  %v3413_v60 = vsel %vm2162_vm12, %v3408_v12, 0 }
 0x7e2   : > { %v7464_v13 = vpop.eup %7463 }
 0x7e3   : > { %6942 = vmatmul.mubr.msk.bf16.vlgmr.msra.gmra.mrb[56].mxu1 %vm1662_vm11, %v3064_v8  ;;  %v3040_v7 = vpop.xlane.xlu1 %3039  ;;  %v3057_v47 = vmul.f32 %v7464_v13, %v9592_v27 }
 0x7e4   : > { %6952 = vmatpush3.bf16.msra.mxu1 %v3221_v57  ;;  %7469 = vrcp.f32 %v3040_v7  ;;  %6953 = vmatprep.mubr.msk.bf16.mxu1 %vm8019_vm10, %v8018_v20 }
 0x7e5   : > { %v3065_v2 = vpack.c.bf16 %v3057_v47, %v3057_v47  ;;  %6963 = vmatprep.subr.bf16.mxu1 %v8018_v20 }
 0x7e6   : > { %v7466_v30 = vpop.eup %7465 }
 0x7e7   : > { %v7468_v18 = vpop.eup %7467  ;;  %6948 = vmatmul.mubr.msk.bf16.vlgmr.msra.gmra.mrb[52].mxu0 %vm1662_vm11, %v3065_v2  ;;  %v3058_v14 = vmul.f32 %v7466_v30, %v9596_v3 }
 0x7e8   : > { %6958 = vmatpush3.bf16.msra.mxu0 %v3269_v33  ;;  %6959 = vmatprep.mubr.msk.bf16.mxu0 %vm8019_vm10, %v8018_v20  ;;  %v3059_v22 = vmul.f32 %v7468_v18, %v9598_v51 }
 0x7e9   : > { %v3066_v27 = vpack.c.bf16 %v3058_v14, %v3058_v14  ;;  %6969 = vmatprep.subr.bf16.mxu0 %v8018_v20 }
 0x7ea   : > { %v3067_v11 = vpack.c.bf16 %v3059_v22, %v3059_v22 }
 0x7eb   : > { %6954 = vmatmul.mubr.msk.bf16.vlgmr.msra.gmra.mrb[60].mxu1 %vm1662_vm11, %v3066_v27 }
 0x7ec   : > { %6964 = vmatpush3.bf16.msra.mxu1 %v3317_v28  ;;  %6965 = vmatprep.mubr.msk.bf16.mxu1 %vm8019_vm10, %v8018_v20 }
 0x7ed   : > { %6975 = vmatprep.subr.bf16.mxu1 %v8018_v20 }
 0x7ee   : > { %v7470_v3 = vpop.eup %7469 }
 0x7ef   : > { %6960 = vmatmul.mubr.msk.bf16.vlgmr.msra.gmra.mrb[56].mxu0 %vm1662_vm11, %v3067_v11  ;;  %v3060_v46 = vmul.f32 %v7470_v3, %v9604_v55  ;;  %v3523_v55 = vpop.permute.xlu1 %3522 }
 0x7f0   : > { %6970 = vmatpush3.bf16.msra.mxu0 %v3365_v5  ;;  %6971 = vmatprep.mubr.msk.bf16.mxu0 %vm8019_vm10, %v8018_v20  ;;  %v3528_v17 = vsel %vm1662_vm11, %v3523_v55, 0 }
 0x7f1   : > { %v3068_v51 = vpack.c.bf16 %v3060_v46, %v3060_v46  ;;  %6981 = vmatprep.subr.bf16.mxu0 %v8018_v20 }
 0x7f3   : > { %6966 = vmatmul.mubr.msk.bf16.vlgmr.msra.gmra.mrb[64].mxu1 %vm1662_vm11, %v3068_v51 }
 0x7f4   : > { %6976 = vmatpush3.bf16.msra.mxu1 %v3413_v60  ;;  %6977 = vmatprep.mubr.msk.bf16.mxu1 %vm8019_vm10, %v8018_v20 }
 0x7f5   : > { %6987 = vmatprep.subr.bf16.mxu1 %v8018_v20 }
 0x811   : > { %v3043_v41 = vpop.xlane.xlu0 %3042 }
 0x812   : > { %7471 = vrcp.f32 %v3043_v41 }
 0x815   : > { %v3573_v26 = vpop.permute.xlu0 %3572 }
 0x818   : > { %v3046_v61 = vpop.xlane.xlu1 %3045 }
 0x819   : > { %7473 = vrcp.f32 %v3046_v61  ;;  %v3571_v6 = vpop.permute.xlu0 %3570 }
 0x81c   : > { %v7472_v9 = vpop.eup %7471  ;;  %v3521_v56 = vpop.permute.xlu1 %3520 }
 0x81d   : > { %v3673_v0 = vpop.permute.xlu0 %3672  ;;  %v3061_v58 = vmul.f32 %v7472_v9, %v9612_v42  ;;  %v3578_v42 = vsel %vm1662_vm11, %v3573_v26, 0 }
 0x81e   : > { %v3678_v7 = vsel %vm1662_vm11, %v3673_v0, 0 }
 0x81f   : > { %v3069_v23 = vpack.c.bf16 %v3061_v58, %v3061_v58 }
 0x820   : > { %v3623_v21 = vpop.permute.xlu1 %3622 }
 0x821   : > { %6972 = vmatmul.mubr.msk.bf16.vlgmr.msra.gmra.mrb[60].mxu0 %vm1662_vm11, %v3069_v23  ;;  %v3671_v52 = vpop.permute.xlu0 %3670  ;;  %v3628_v13 = vsel %vm1662_vm11, %v3623_v21, 0 }
 0x822   : > { %6982 = vmatpush3.bf16.xpose.msra.mxu0 %v3528_v17  ;;  %6983 = vmatprep.mubr.msk.bf16.mxu0 %vm8019_vm10, %v8018_v20 }
 0x823   : > { %v7474_v24 = vpop.eup %7473  ;;  %6993 = vmatprep.subr.bf16.mxu0 %v8018_v20 }
 0x824   : > { %v3621_v1 = vpop.permute.xlu1 %3620  ;;  %v3062_v29 = vmul.f32 %v7474_v24, %v9616_v54 }
 0x825   : > { %v3773_v45 = vpop.permute.xlu0 %3772 }
 0x826   : > { %v3070_v8 = vpack.c.bf16 %v3062_v29, %v3062_v29  ;;  %v3778_v33 = vsel %vm1662_vm11, %v3773_v45, 0 }
 0x828   : > { %6978 = vmatmul.mubr.msk.bf16.vlgmr.msra.gmra.mrb[68].mxu1 %vm1662_vm11, %v3070_v8  ;;  %v3723_v57 = vpop.permute.xlu1 %3722 }
 0x829   : > { %6984 = vmatmul.mubr.msk.bf16.vlgmr.msra.gmra.mrb[64].mxu0 %vm1662_vm11, %v3521_v56  ;;  %6988 = vmatpush3.bf16.xpose.msra.mxu1 %v3578_v42  ;;  %v3771_v54 = vpop.permute.xlu0 %3770  ;;  %v3728_v2 = vsel %vm1662_vm11, %v3723_v57, 0 }
 0x82a   : > { %6994 = vmatpush3.bf16.xpose.msra.mxu0 %v3628_v13  ;;  %6989 = vmatprep.mubr.msk.bf16.mxu1 %vm8019_vm10, %v8018_v20 }
 0x82b   : > { %6995 = vmatprep.mubr.msk.bf16.mxu0 %vm8019_vm10, %v8018_v20  ;;  %6999 = vmatprep.subr.bf16.mxu1 %v8018_v20 }
 0x82c   : > { %7005 = vmatprep.subr.bf16.mxu0 %v8018_v20  ;;  %v3721_v47 = vpop.permute.xlu1 %3720 }
 0x82d   : > { %v3873_v30 = vpop.permute.xlu0 %3872 }
 0x82e   : > { %v3878_v11 = vsel %vm1662_vm11, %v3873_v30, 0 }
 0x830   : > { %6990 = vmatmul.mubr.msk.bf16.vlgmr.msra.gmra.mrb[72].mxu1 %vm1662_vm11, %v3571_v6  ;;  %v3823_v18 = vpop.permute.xlu1 %3822 }
 0x831   : > { %6996 = vmatmul.mubr.msk.bf16.vlgmr.msra.gmra.mrb[68].mxu0 %vm1662_vm11, %v3621_v1  ;;  %7000 = vmatpush3.bf16.xpose.msra.mxu1 %v3678_v7  ;;  %v3871_v14 = vpop.permute.xlu0 %3870  ;;  %v3828_v27 = vsel %vm1662_vm11, %v3823_v18, 0 }
 0x832   : > { %7006 = vmatpush3.bf16.xpose.msra.mxu0 %v3728_v2  ;;  %7001 = vmatprep.mubr.msk.bf16.mxu1 %vm8019_vm10, %v8018_v20 }
 0x833   : > { %7007 = vmatprep.mubr.msk.bf16.mxu0 %vm8019_vm10, %v8018_v20  ;;  %7011 = vmatprep.subr.bf16.mxu1 %v8018_v20 }
 0x834   : > { %7017 = vmatprep.subr.bf16.mxu0 %v8018_v20  ;;  %v3821_v28 = vpop.permute.xlu1 %3820 }
 0x835   : > { %v4033_v22 = vpop.permute.xlu0 %4032 }
 0x836   : > { %v4038_v3 = vsel %vm2162_vm12, %v4033_v22, 0 }
 0x838   : > { %7002 = vmatmul.mubr.msk.bf16.vlgmr.msra.gmra.mrb[76].mxu1 %vm1662_vm11, %v3671_v52  ;;  %v4081_v5 = vpop.permute.xlu1 %4080 }
 0x839   : > { %7008 = vmatmul.mubr.msk.bf16.vlgmr.msra.gmra.mrb[72].mxu0 %vm1662_vm11, %v3721_v47  ;;  %7012 = vmatpush3.bf16.xpose.msra.mxu1 %v3778_v33  ;;  %v4086_v46 = vsel %vm2162_vm12, %v4081_v5, 0 }
 0x83a   : > { %7018 = vmatpush3.bf16.xpose.msra.mxu0 %v3828_v27  ;;  %7013 = vmatprep.mubr.msk.bf16.mxu1 %vm8019_vm10, %v8018_v20 }
 0x83b   : > { %7019 = vmatprep.mubr.msk.bf16.mxu0 %vm8019_vm10, %v8018_v20  ;;  %7023 = vmatprep.subr.bf16.mxu1 %v8018_v20 }
 0x83c   : > { %7029 = vmatprep.subr.bf16.mxu0 %v8018_v20 }
 0x840   : > { %7014 = vmatmul.mubr.msk.bf16.vlgmr.msra.gmra.mrb[80].mxu1 %vm1662_vm11, %v3771_v54 }
 0x841   : > { %7020 = vmatmul.mubr.msk.bf16.vlgmr.msra.gmra.mrb[76].mxu0 %vm1662_vm11, %v3821_v28  ;;  %7024 = vmatpush3.bf16.xpose.msra.mxu1 %v3878_v11 }
 0x842   : > { %7030 = vmatpush3.bf16.msra.mxu0 %v4038_v3  ;;  %7025 = vmatprep.mubr.msk.bf16.mxu1 %vm8019_vm10, %v8018_v20 }
 0x843   : > { %7035 = vmatprep.subr.bf16.mxu1 %v8018_v20  ;;  %7031 = vmatprep.mubr.msk.bf16.mxu0 %vm8019_vm10, %v8018_v20 }
 0x844   : > { %7041 = vmatprep.subr.bf16.mxu0 %v8018_v20 }
 0x848   : > { %7026 = vmatmul.mubr.msk.bf16.vlgmr.msra.gmra.mrb[84].mxu1 %vm1662_vm11, %v3871_v14 }
 0x849   : > { %7036 = vmatpush3.bf16.msra.mxu1 %v4086_v46  ;;  %7037 = vmatprep.mubr.msk.bf16.mxu1 %vm8019_vm10, %v8018_v20 }
 0x84a   : > { %7047 = vmatprep.subr.bf16.mxu1 %v8018_v20 }
 0x8a6   : > { %v9736_v12 = vpop.f32.mrb[48].mxu0 }
 0x8a7   : > { %v6937_v51 = vpop.f32.mrb[49].mxu0 }
 0x8a8   : > { %v3116_v60 = vpop.f32.mrb[50].mxu0 }
 0x8a9   : > { %v6938_v41 = vpop.f32.mrb[51].mxu0 }
 0x8b6   : > { %v9738_v55 = vpop.f32.mrb[56].mxu1 }
 0x8b7   : > { %v6943_v26 = vpop.f32.mrb[57].mxu1 }
 0x8b8   : > { %v3164_v61 = vpop.f32.mrb[58].mxu1 }
 0x8b9   : > { %v6944_v6 = vpop.f32.mrb[59].mxu1 }
 0x8ba   : > { %v9740_v9 = vpop.f32.mrb[52].mxu0 }
 0x8bb   : > { %v6949_v56 = vpop.f32.mrb[53].mxu0 }
 0x8bc   : > { %v3212_v0 = vpop.f32.mrb[54].mxu0 }
 0x8bd   : > { %v6950_v58 = vpop.f32.mrb[55].mxu0 }
 0x8be   : > { %v9742_v23 = vpop.f32.mrb[60].mxu1 }
 0x8bf   : > { %v6955_v21 = vpop.f32.mrb[61].mxu1 }
 0x8c0   : > { %v3260_v17 = vpop.f32.mrb[62].mxu1 }
 0x8c1   : > { %v6956_v52 = vpop.f32.mrb[63].mxu1 }
 0x8c2   : > { %v9744_v24 = vpop.f32.mrb[56].mxu0 }
 0x8c3   : > { %v6961_v1 = vpop.f32.mrb[57].mxu0 }
 0x8c4   : > { %v3308_v29 = vpop.f32.mrb[58].mxu0 }
 0x8c5   : > { %v6962_v45 = vpop.f32.mrb[59].mxu0 }
 0x8c6   : > { %v9746_v8 = vpop.f32.mrb[64].mxu1 }
 0x8c7   : > { %v6967_v42 = vpop.f32.mrb[65].mxu1 }
 0x8c8   : > { %v3356_v13 = vpop.f32.mrb[66].mxu1 }
 0x8c9   : > { %v6968_v57 = vpop.f32.mrb[67].mxu1 }
 0x8f4   : > { %v9748_v54 = vpop.f32.mrb[60].mxu0 }
 0x8f5   : > { %v6973_v7 = vpop.f32.mrb[61].mxu0 }
 0x8f6   : > { %v3404_v47 = vpop.f32.mrb[62].mxu0 }
 0x8f7   : > { %v6974_v2 = vpop.f32.mrb[63].mxu0 }
 0x8fb   : > { %v9750_v30 = vpop.f32.mrb[68].mxu1 }
 0x8fc   : > { %v3564_v18 = vpop.f32.mrb[64].mxu0  ;;  %v6979_v33 = vpop.f32.mrb[69].mxu1 }
 0x8fd   : > { %v3920_v14 = vmul.f32 0.35355338, %v3564_v18  ;;  %v6985_v27 = vpop.f32.mrb[65].mxu0  ;;  %v3452_v22 = vpop.f32.mrb[70].mxu1 }
 0x8fe   : > { %v3567_v28 = vpop.f32.mrb[66].mxu0  ;;  %v6980_v11 = vpop.f32.mrb[71].mxu1 }
 0x8ff   : > { %v9753_v3 = vadd.f32 %v3920_v14, %v9334_v50  ;;  %v6986_v5 = vpop.f32.mrb[67].mxu0 }
 0x901   : > { %v3936_v46 = vsel %vm1662_vm11, %v9753_v3, -inf }
 0x902   : > { %3937 = vmax.xlane.f32.xlu1 %v3936_v46 }
 0x903   : > { %v3614_v51 = vpop.f32.mrb[72].mxu1 }
 0x904   : > { %v3921_v60 = vmul.f32 0.35355338, %v3614_v51  ;;  %v3664_v41 = vpop.f32.mrb[68].mxu0  ;;  %v6991_v26 = vpop.f32.mrb[73].mxu1 }
 0x905   : > { %v3922_v61 = vmul.f32 0.35355338, %v3664_v41  ;;  %v6997_v6 = vpop.f32.mrb[69].mxu0  ;;  %v3617_v56 = vpop.f32.mrb[74].mxu1 }
 0x906   : > { %v3929_v0 = vadd.f32 %v3921_v60, %v9352_v16  ;;  %v3667_v58 = vpop.f32.mrb[70].mxu0  ;;  %v6992_v21 = vpop.f32.mrb[75].mxu1 }
 0x907   : > { %v6998_v17 = vpop.f32.mrb[71].mxu0  ;;  %v3930_v52 = vadd.f32 %v3922_v61, %v9332_v4 }
 0x908   : > { %v3939_v1 = vsel %vm1662_vm11, %v3929_v0, -inf }
 0x909   : > { %3940 = vmax.xlane.f32.xlu0 %v3939_v1  ;;  %v3942_v57 = vsel %vm1662_vm11, %v3930_v52, -inf }
 0x90b   : > { %v3714_v29 = vpop.f32.mrb[76].mxu1 }
 0x90c   : > { %v3923_v45 = vmul.f32 0.35355338, %v3714_v29  ;;  %v3764_v42 = vpop.f32.mrb[72].mxu0  ;;  %v7003_v13 = vpop.f32.mrb[77].mxu1 }
 0x90d   : > { %v3924_v7 = vmul.f32 0.35355338, %v3764_v42  ;;  %v7009_v47 = vpop.f32.mrb[73].mxu0  ;;  %3943 = vmax.xlane.f32.xlu0 %v3942_v57  ;;  %v3717_v2 = vpop.f32.mrb[78].mxu1 }
 0x90e   : > { %v3931_v18 = vadd.f32 %v3923_v45, %v9359_v37  ;;  %v3767_v33 = vpop.f32.mrb[74].mxu0  ;;  %v7004_v14 = vpop.f32.mrb[79].mxu1 }
 0x90f   : > { %v3932_v27 = vadd.f32 %v3924_v7, %v9349_v40  ;;  %v7010_v22 = vpop.f32.mrb[75].mxu0  ;;  %v9778_v33 = vpop.permute.xlu1 %4128 }
 0x910   : > { %v3945_v28 = vsel %vm1662_vm11, %v3931_v18, -inf }
 0x911   : > { %v3948_v11 = vsel %vm1662_vm11, %v3932_v27, -inf  ;;  %3946 = vmax.xlane.f32.xlu1 %v3945_v28 }
 0x912   : > { %3949 = vmax.xlane.f32.xlu0 %v3948_v11  ;;  %v9783_v11 = vpop.permute.xlu0 %4176 }
 0x913   : > { %v3814_v5 = vpop.f32.mrb[80].mxu1  ;;  %v9780_v14 = vpop.permute.xlu1 %4224 }
 0x914   : > { %v3925_v46 = vmul.f32 0.35355338, %v3814_v5  ;;  %v3864_v51 = vpop.f32.mrb[76].mxu0  ;;  %v7015_v60 = vpop.f32.mrb[81].mxu1 }
 0x915   : > { %v3926_v41 = vmul.f32 0.35355338, %v3864_v51  ;;  %v7021_v26 = vpop.f32.mrb[77].mxu0  ;;  %v3817_v61 = vpop.f32.mrb[82].mxu1 }
 0x916   : > { %v3933_v6 = vadd.f32 %v3925_v46, %v9373_v10  ;;  %v3867_v56 = vpop.f32.mrb[78].mxu0  ;;  %v7016_v58 = vpop.f32.mrb[83].mxu1 }
 0x917   : > { %v9767_v21 = vadd.f32 %v3926_v41, %v9361_v49  ;;  %v7022_v17 = vpop.f32.mrb[79].mxu0 }
 0x918   : > { %v3951_v1 = vsel %vm1662_vm11, %v3933_v6, -inf }
 0x919   : > { %v3954_v29 = vsel %vm1662_vm11, %v9767_v21, -inf  ;;  %3952 = vmax.xlane.f32.xlu1 %v3951_v1 }
 0x91a   : > { %3955 = vmax.xlane.f32.xlu0 %v3954_v29 }
 0x91b   : > { %v3914_v45 = vpop.f32.mrb[84].mxu1 }
 0x91c   : > { %v3927_v42 = vmul.f32 0.35355338, %v3914_v45  ;;  %v7027_v13 = vpop.f32.mrb[85].mxu1 }
 0x91d   : > { %v3917_v57 = vpop.f32.mrb[86].mxu1 }
 0x91e   : > { %v3935_v7 = vadd.f32 %v3927_v42, %v9378_v43  ;;  %v7028_v47 = vpop.f32.mrb[87].mxu1 }
 0x920   : > { %v3957_v2 = vsel %vm1662_vm11, %v3935_v7, -inf }
 0x921   : > { %3958 = vmax.xlane.f32.xlu1 %v3957_v2 }
 0x930   : > { %4272 = vrot.lane.b32.xlu0 %v9234_v38, %s8027_s14 }
 0x932   : > { %4320 = vrot.lane.b32.xlu1 %v9243_v39, %s8027_s14 }
 0x98f   : > { %v3938_v22 = vpop.xlane.xlu1 %3937 }
 0x990   : > { %v3960_v28 = vsub.f32 %v9753_v3, %v3938_v22 }
 0x992   : > { %v3968_v5 = vmul.f32 1.442695, %v3960_v28 }
 0x994   : > { %7475 = vpow2.f32 %v3968_v5 }
 0x996   : > { %v3941_v46 = vpop.xlane.xlu0 %3940 }
 0x997   : > { %v3961_v51 = vsub.f32 %v3929_v0, %v3941_v46 }
 0x999   : > { %v3970_v60 = vmul.f32 1.442695, %v3961_v51 }
 0x99a   : > { %v3944_v41 = vpop.xlane.xlu0 %3943 }
 0x99b   : > { %7477 = vpow2.f32 %v3970_v60  ;;  %v3962_v26 = vsub.f32 %v3930_v52, %v3944_v41 }
 0x99d   : > { %v3972_v61 = vmul.f32 1.442695, %v3962_v26 }
 0x99e   : > { %v9785_v56 = vpop.eup %7475  ;;  %v3947_v58 = vpop.xlane.xlu1 %3946 }
 0x99f   : > { %7479 = vpow2.f32 %v3972_v61  ;;  %v3963_v17 = vsub.f32 %v3931_v18, %v3947_v58  ;;  %v3950_v1 = vpop.xlane.xlu0 %3949  ;;  %v3984_v3 = vsel %vm1662_vm11, %v9785_v56, 0.0 }
 0x9a0   : > { %v3964_v29 = vsub.f32 %v3932_v27, %v3950_v1  ;;  %3985 = vadd.xlane.f32.xlu0 %v3984_v3 }
 0x9a1   : > { %v3974_v45 = vmul.f32 1.442695, %v3963_v17 }
 0x9a2   : > { %v3976_v42 = vmul.f32 1.442695, %v3964_v29 }
 0x9a3   : > { %7481 = vpow2.f32 %v3974_v45 }
 0x9a4   : > { %7483 = vpow2.f32 %v3976_v42 }
 0x9a5   : > { %v9789_v0 = vpop.eup %7477 }
 0x9a6   : > { %v3953_v13 = vpop.xlane.xlu1 %3952  ;;  %v3987_v52 = vsel %vm1662_vm11, %v9789_v0, 0.0 }
 0x9a7   : > { %v3965_v57 = vsub.f32 %v3933_v6, %v3953_v13  ;;  %3988 = vadd.xlane.f32.xlu1 %v3987_v52  ;;  %v3956_v51 = vpop.xlane.xlu0 %3955 }
 0x9a8   : > { %v3966_v60 = vsub.f32 %v9767_v21, %v3956_v51  ;;  %v4182_v51 = vsel %vm2162_vm12, %v9783_v11, 0 }
 0x9a9   : > { %v9793_v47 = vpop.eup %7479  ;;  %v3978_v18 = vmul.f32 1.442695, %v3965_v57 }
 0x9aa   : > { %v3990_v2 = vsel %vm1662_vm11, %v9793_v47, 0.0  ;;  %v3980_v41 = vmul.f32 1.442695, %v3966_v60 }
 0x9ab   : > { %7485 = vpow2.f32 %v3978_v18  ;;  %3991 = vadd.xlane.f32.xlu0 %v3990_v2  ;;  %v4273_v21 = vpop.permute.xlu0 %4272 }
 0x9ac   : > { %7487 = vpow2.f32 %v3980_v41 }
 0x9ad   : > { %v9797_v27 = vpop.eup %7481 }
 0x9ae   : > { %v9799_v22 = vpop.eup %7483  ;;  %v3993_v28 = vsel %vm1662_vm11, %v9797_v27, 0.0  ;;  %v3959_v26 = vpop.xlane.xlu1 %3958 }
 0x9af   : > { %3994 = vadd.xlane.f32.xlu1 %v3993_v28  ;;  %v3996_v6 = vsel %vm1662_vm11, %v9799_v22, 0.0  ;;  %v3967_v61 = vsub.f32 %v3935_v7, %v3959_v26  ;;  %v4134_v28 = vsel %vm2162_vm12, %v9778_v33, 0 }
 0x9b0   : > { %3997 = vadd.xlane.f32.xlu0 %v3996_v6 }
 0x9b1   : > { %v3982_v58 = vmul.f32 1.442695, %v3967_v61  ;;  %v4230_v61 = vsel %vm2162_vm12, %v9780_v14, 0 }
 0x9b2   : > { %v4321_v45 = vpop.permute.xlu1 %4320 }
 0x9b3   : > { %7489 = vpow2.f32 %v3982_v58 }
 0x9b5   : > { %v9805_v5 = vpop.eup %7485 }
 0x9b6   : > { %v3999_v46 = vsel %vm1662_vm11, %v9805_v5, 0.0  ;;  %v9813_v17 = vpop.eup %7487 }
 0x9b7   : > { %4000 = vadd.xlane.f32.xlu1 %v3999_v46  ;;  %v4002_v1 = vsel %vm1662_vm11, %v9813_v17, 0.0 }
 0x9bd   : > { %v9817_v3 = vpop.eup %7489 }
 0x9be   : > { %v4005_v29 = vsel %vm1662_vm11, %v9817_v3, 0.0 }
 0x9c6   : > { %4368 = vrot.lane.b32.xlu0 %v9240_v34, %s8027_s14 }
 0x9c8   : > { %4483 = vrot.lane.b32.xlu1 %v9226_v63, %s8028_s25 }
 0x9e5   : > { %4003 = vadd.xlane.f32.xlu0 %v4002_v1  ;;  %v4278_v1 = vsel %vm2162_vm12, %v4273_v21, 0 }
 0x9ec   : > { %4006 = vadd.xlane.f32.xlu1 %v4005_v29  ;;  %v4326_v29 = vsel %vm2162_vm12, %v4321_v45, 0 }
 0x9fb   : > { %4533 = vrot.lane.b32.xlu0 %v9232_v36, %s8028_s25 }
 0x9fd   : > { %4481 = vrot.lane.b32.xlu1 %v9226_v63, %s8029_s15 }
 0x9ff   : > { %4531 = vrot.lane.b32.xlu0 %v9232_v36, %s8029_s15 }
 0xa01   : > { %4583 = vrot.lane.b32.xlu1 %v9224_v19, %s8028_s25 }
 0xa03   : > { %4633 = vrot.lane.b32.xlu0 %v9230_v31, %s8028_s25 }
 0xa05   : > { %4581 = vrot.lane.b32.xlu1 %v9224_v19, %s8029_s15 }
 0xa07   : > { %4631 = vrot.lane.b32.xlu0 %v9230_v31, %s8029_s15 }
 0xa09   : > { %4683 = vrot.lane.b32.xlu1 %v9237_v32, %s8028_s25 }
 0xa0b   : > { %4733 = vrot.lane.b32.xlu0 %v9234_v38, %s8028_s25 }
 0xa0d   : > { %4681 = vrot.lane.b32.xlu1 %v9237_v32, %s8029_s15 }
 0xa0f   : > { %4731 = vrot.lane.b32.xlu0 %v9234_v38, %s8029_s15 }
 0xa11   : > { %4783 = vrot.lane.b32.xlu1 %v9243_v39, %s8028_s25 }
 0xa13   : > { %4833 = vrot.lane.b32.xlu0 %v9240_v34, %s8028_s25 }
 0xa15   : > { %4781 = vrot.lane.b32.xlu1 %v9243_v39, %s8029_s15 }
 0xa17   : > { %4831 = vrot.lane.b32.xlu0 %v9240_v34, %s8029_s15 }
 0xa19   : > { %5041 = vrot.lane.b32.xlu1 %v9232_v36, %s8030_s23 }
 0xa1b   : > { %4993 = vrot.lane.b32.xlu0 %v9226_v63, %s8030_s23 }
 0xa2d   : > { %v3986_v7 = vpop.xlane.xlu0 %3985 }
 0xa2e   : > { %7491 = vrcp.f32 %v3986_v7 }
 0xa34   : > { %v3989_v42 = vpop.xlane.xlu1 %3988 }
 0xa35   : > { %7493 = vrcp.f32 %v3989_v42 }
 0xa38   : > { %v7492_v13 = vpop.eup %7491  ;;  %v3992_v52 = vpop.xlane.xlu0 %3991 }
 0xa39   : > { %7495 = vrcp.f32 %v3992_v52  ;;  %v4016_v57 = vmul.f32 %v7492_v13, %v9785_v56 }
 0xa3b   : > { %v4024_v18 = vpack.c.bf16 %v4016_v57, %v4016_v57 }
 0xa3c   : > { %v3995_v2 = vpop.xlane.xlu1 %3994 }
 0xa3d   : > { %7497 = vrcp.f32 %v3995_v2  ;;  %7032 = vmatmul.mubr.msk.bf16.vlgmr.msra.gmra.mrb[80].mxu0 %vm1662_vm11, %v4024_v18  ;;  %v3998_v63 = vpop.xlane.xlu0 %3997 }
 0xa3e   : > { %7042 = vmatpush3.bf16.msra.mxu0 %v4134_v28  ;;  %7499 = vrcp.f32 %v3998_v63  ;;  %7043 = vmatprep.mubr.msk.bf16.mxu0 %vm8019_vm10, %v8018_v20 }
 0xa3f   : > { %v7494_v36 = vpop.eup %7493  ;;  %7053 = vmatprep.subr.bf16.mxu0 %v8018_v20 }
 0xa40   : > { %v4017_v6 = vmul.f32 %v7494_v36, %v9789_v0 }
 0xa41   : > { %v4369_v42 = vpop.permute.xlu0 %4368 }
 0xa42   : > { %v4025_v56 = vpack.c.bf16 %v4017_v6, %v4017_v6  ;;  %v4374_v21 = vsel %vm2162_vm12, %v4369_v42, 0 }
 0xa43   : > { %v7496_v46 = vpop.eup %7495 }
 0xa44   : > { %7038 = vmatmul.mubr.msk.bf16.vlgmr.msra.gmra.mrb[88].mxu1 %vm1662_vm11, %v4025_v56  ;;  %v4001_v33 = vpop.xlane.xlu1 %4000  ;;  %v4018_v60 = vmul.f32 %v7496_v46, %v9793_v47 }
 0xa45   : > { %7048 = vmatpush3.bf16.msra.mxu1 %v4182_v51  ;;  %7501 = vrcp.f32 %v4001_v33  ;;  %7049 = vmatprep.mubr.msk.bf16.mxu1 %vm8019_vm10, %v8018_v20 }
 0xa46   : > { %v4026_v41 = vpack.c.bf16 %v4018_v60, %v4018_v60  ;;  %7059 = vmatprep.subr.bf16.mxu1 %v8018_v20 }
 0xa47   : > { %v7498_v26 = vpop.eup %7497 }
 0xa48   : > { %v7500_v0 = vpop.eup %7499  ;;  %7044 = vmatmul.mubr.msk.bf16.vlgmr.msra.gmra.mrb[84].mxu0 %vm1662_vm11, %v4026_v41  ;;  %v4019_v11 = vmul.f32 %v7498_v26, %v9797_v27 }
 0xa49   : > { %7054 = vmatpush3.bf16.msra.mxu0 %v4230_v61  ;;  %7055 = vmatprep.mubr.msk.bf16.mxu0 %vm8019_vm10, %v8018_v20  ;;  %v4020_v58 = vmul.f32 %v7500_v0, %v9799_v22 }
 0xa4a   : > { %v4027_v47 = vpack.c.bf16 %v4019_v11, %v4019_v11  ;;  %7065 = vmatprep.subr.bf16.mxu0 %v8018_v20 }
 0xa4b   : > { %v4028_v14 = vpack.c.bf16 %v4020_v58, %v4020_v58 }
 0xa4c   : > { %7050 = vmatmul.mubr.msk.bf16.vlgmr.msra.gmra.mrb[92].mxu1 %vm1662_vm11, %v4027_v47 }
 0xa4d   : > { %7060 = vmatpush3.bf16.msra.mxu1 %v4278_v1  ;;  %7061 = vmatprep.mubr.msk.bf16.mxu1 %vm8019_vm10, %v8018_v20 }
 0xa4e   : > { %7071 = vmatprep.subr.bf16.mxu1 %v8018_v20 }
 0xa4f   : > { %v7502_v27 = vpop.eup %7501 }
 0xa50   : > { %7056 = vmatmul.mubr.msk.bf16.vlgmr.msra.gmra.mrb[88].mxu0 %vm1662_vm11, %v4028_v14  ;;  %v4021_v7 = vmul.f32 %v7502_v27, %v9805_v5  ;;  %v4484_v5 = vpop.permute.xlu1 %4483 }
 0xa51   : > { %7066 = vmatpush3.bf16.msra.mxu0 %v4326_v29  ;;  %7067 = vmatprep.mubr.msk.bf16.mxu0 %vm8019_vm10, %v8018_v20  ;;  %v4489_v56 = vsel %vm1662_vm11, %v4484_v5, 0 }
 0xa52   : > { %v4029_v22 = vpack.c.bf16 %v4021_v7, %v4021_v7  ;;  %7077 = vmatprep.subr.bf16.mxu0 %v8018_v20 }
 0xa54   : > { %7062 = vmatmul.mubr.msk.bf16.vlgmr.msra.gmra.mrb[96].mxu1 %vm1662_vm11, %v4029_v22 }
 0xa55   : > { %7072 = vmatpush3.bf16.msra.mxu1 %v4374_v21  ;;  %7073 = vmatprep.mubr.msk.bf16.mxu1 %vm8019_vm10, %v8018_v20 }
 0xa56   : > { %7083 = vmatprep.subr.bf16.mxu1 %v8018_v20 }
 0xa72   : > { %v4004_v45 = vpop.xlane.xlu0 %4003 }
 0xa73   : > { %7503 = vrcp.f32 %v4004_v45 }
 0xa76   : > { %v4534_v13 = vpop.permute.xlu0 %4533 }
 0xa77   : > { %v4539_v26 = vsel %vm1662_vm11, %v4534_v13, 0 }
 0xa79   : > { %v4007_v52 = vpop.xlane.xlu1 %4006 }
 0xa7a   : > { %7505 = vrcp.f32 %v4007_v52  ;;  %v4532_v57 = vpop.permute.xlu0 %4531 }
 0xa7d   : > { %v7504_v18 = vpop.eup %7503  ;;  %v4482_v2 = vpop.permute.xlu1 %4481 }
 0xa7e   : > { %v4022_v28 = vmul.f32 %v7504_v18, %v9813_v17  ;;  %v4634_v63 = vpop.permute.xlu0 %4633 }
 0xa7f   : > { %v4639_v11 = vsel %vm1662_vm11, %v4634_v63, 0 }
 0xa80   : > { %v4030_v36 = vpack.c.bf16 %v4022_v28, %v4022_v28 }
 0xa81   : > { %v4584_v6 = vpop.permute.xlu1 %4583 }
 0xa82   : > { %7068 = vmatmul.mubr.msk.bf16.vlgmr.msra.gmra.mrb[92].mxu0 %vm1662_vm11, %v4030_v36  ;;  %v4632_v46 = vpop.permute.xlu0 %4631  ;;  %v4589_v0 = vsel %vm1662_vm11, %v4584_v6, 0 }
 0xa83   : > { %7078 = vmatpush3.bf16.xpose.msra.mxu0 %v4489_v56  ;;  %7079 = vmatprep.mubr.msk.bf16.mxu0 %vm8019_vm10, %v8018_v20 }
 0xa84   : > { %v7506_v51 = vpop.eup %7505  ;;  %7089 = vmatprep.subr.bf16.mxu0 %v8018_v20 }
 0xa85   : > { %v4023_v33 = vmul.f32 %v7506_v51, %v9817_v3  ;;  %v4582_v60 = vpop.permute.xlu1 %4581 }
 0xa86   : > { %v4734_v41 = vpop.permute.xlu0 %4733 }
 0xa87   : > { %v4031_v17 = vpack.c.bf16 %v4023_v33, %v4023_v33  ;;  %v4739_v27 = vsel %vm1662_vm11, %v4734_v41, 0 }
 0xa89   : > { %7074 = vmatmul.mubr.msk.bf16.vlgmr.msra.gmra.mrb[100].mxu1 %vm1662_vm11, %v4031_v17  ;;  %v4684_v61 = vpop.permute.xlu1 %4683 }
 0xa8a   : > { %7080 = vmatmul.mubr.msk.bf16.vlgmr.msra.gmra.mrb[96].mxu0 %vm1662_vm11, %v4482_v2  ;;  %7084 = vmatpush3.bf16.xpose.msra.mxu1 %v4539_v26  ;;  %v4732_v3 = vpop.permute.xlu0 %4731  ;;  %v4689_v58 = vsel %vm1662_vm11, %v4684_v61, 0 }
 0xa8b   : > { %7090 = vmatpush3.bf16.xpose.msra.mxu0 %v4589_v0  ;;  %7085 = vmatprep.mubr.msk.bf16.mxu1 %vm8019_vm10, %v8018_v20 }
 0xa8c   : > { %7091 = vmatprep.mubr.msk.bf16.mxu0 %vm8019_vm10, %v8018_v20  ;;  %7095 = vmatprep.subr.bf16.mxu1 %v8018_v20 }
 0xa8d   : > { %7101 = vmatprep.subr.bf16.mxu0 %v8018_v20  ;;  %v4682_v47 = vpop.permute.xlu1 %4681 }
 0xa8e   : > { %v4834_v1 = vpop.permute.xlu0 %4833 }
 0xa8f   : > { %v4839_v21 = vsel %vm1662_vm11, %v4834_v1, 0 }
 0xa91   : > { %7086 = vmatmul.mubr.msk.bf16.vlgmr.msra.gmra.mrb[104].mxu1 %vm1662_vm11, %v4532_v57  ;;  %v4784_v14 = vpop.permute.xlu1 %4783 }
 0xa92   : > { %7092 = vmatmul.mubr.msk.bf16.vlgmr.msra.gmra.mrb[100].mxu0 %vm1662_vm11, %v4582_v60  ;;  %7096 = vmatpush3.bf16.xpose.msra.mxu1 %v4639_v11  ;;  %v4832_v29 = vpop.permute.xlu0 %4831  ;;  %v4789_v7 = vsel %vm1662_vm11, %v4784_v14, 0 }
 0xa93   : > { %7102 = vmatpush3.bf16.xpose.msra.mxu0 %v4689_v58  ;;  %7097 = vmatprep.mubr.msk.bf16.mxu1 %vm8019_vm10, %v8018_v20 }
 0xa94   : > { %7103 = vmatprep.mubr.msk.bf16.mxu0 %vm8019_vm10, %v8018_v20  ;;  %7107 = vmatprep.subr.bf16.mxu1 %v8018_v20 }
 0xa95   : > { %7113 = vmatprep.subr.bf16.mxu0 %v8018_v20  ;;  %v4782_v22 = vpop.permute.xlu1 %4781 }
 0xa96   : > { %v4994_v42 = vpop.permute.xlu0 %4993 }
 0xa97   : > { %v4999_v45 = vsel %vm2162_vm12, %v4994_v42, 0 }
 0xa99   : > { %7098 = vmatmul.mubr.msk.bf16.vlgmr.msra.gmra.mrb[108].mxu1 %vm1662_vm11, %v4632_v46  ;;  %v5042_v5 = vpop.permute.xlu1 %5041 }
 0xa9a   : > { %7104 = vmatmul.mubr.msk.bf16.vlgmr.msra.gmra.mrb[104].mxu0 %vm1662_vm11, %v4682_v47  ;;  %7108 = vmatpush3.bf16.xpose.msra.mxu1 %v4739_v27  ;;  %v5047_v13 = vsel %vm2162_vm12, %v5042_v5, 0 }
 0xa9b   : > { %7114 = vmatpush3.bf16.xpose.msra.mxu0 %v4789_v7  ;;  %7109 = vmatprep.mubr.msk.bf16.mxu1 %vm8019_vm10, %v8018_v20 }
 0xa9c   : > { %7115 = vmatprep.mubr.msk.bf16.mxu0 %vm8019_vm10, %v8018_v20  ;;  %7119 = vmatprep.subr.bf16.mxu1 %v8018_v20 }
 0xa9d   : > { %7125 = vmatprep.subr.bf16.mxu0 %v8018_v20 }
 0xaa1   : > { %7110 = vmatmul.mubr.msk.bf16.vlgmr.msra.gmra.mrb[112].mxu1 %vm1662_vm11, %v4732_v3 }
 0xaa2   : > { %7116 = vmatmul.mubr.msk.bf16.vlgmr.msra.gmra.mrb[108].mxu0 %vm1662_vm11, %v4782_v22  ;;  %7120 = vmatpush3.bf16.xpose.msra.mxu1 %v4839_v21 }
 0xaa3   : > { %7126 = vmatpush3.bf16.msra.mxu0 %v4999_v45  ;;  %7121 = vmatprep.mubr.msk.bf16.mxu1 %vm8019_vm10, %v8018_v20 }
 0xaa4   : > { %7131 = vmatprep.subr.bf16.mxu1 %v8018_v20  ;;  %7127 = vmatprep.mubr.msk.bf16.mxu0 %vm8019_vm10, %v8018_v20 }
 0xaa5   : > { %7137 = vmatprep.subr.bf16.mxu0 %v8018_v20 }
 0xaa9   : > { %7122 = vmatmul.mubr.msk.bf16.vlgmr.msra.gmra.mrb[116].mxu1 %vm1662_vm11, %v4832_v29 }
 0xaaa   : > { %7132 = vmatpush3.bf16.msra.mxu1 %v5047_v13  ;;  %7133 = vmatprep.mubr.msk.bf16.mxu1 %vm8019_vm10, %v8018_v20 }
 0xaab   : > { %7143 = vmatprep.subr.bf16.mxu1 %v8018_v20 }
 0xb10   : > { %v9931_v52 = vpop.f32.mrb[80].mxu0 }
 0xb11   : > { %v7033_v57 = vpop.f32.mrb[81].mxu0 }
 0xb12   : > { %v4077_v18 = vpop.f32.mrb[82].mxu0 }
 0xb13   : > { %v7034_v2 = vpop.f32.mrb[83].mxu0 }
 0xb17   : > { %v9933_v28 = vpop.f32.mrb[88].mxu1 }
 0xb18   : > { %v7039_v63 = vpop.f32.mrb[89].mxu1 }
 0xb19   : > { %v4125_v36 = vpop.f32.mrb[90].mxu1 }
 0xb1a   : > { %v7040_v6 = vpop.f32.mrb[91].mxu1 }
 0xb1b   : > { %v9935_v56 = vpop.f32.mrb[84].mxu0 }
 0xb1c   : > { %v7045_v46 = vpop.f32.mrb[85].mxu0 }
 0xb1d   : > { %v4173_v51 = vpop.f32.mrb[86].mxu0 }
 0xb1e   : > { %v7046_v33 = vpop.f32.mrb[87].mxu0 }
 0xb1f   : > { %v9937_v60 = vpop.f32.mrb[92].mxu1 }
 0xb20   : > { %v7051_v41 = vpop.f32.mrb[93].mxu1 }
 0xb21   : > { %v4221_v17 = vpop.f32.mrb[94].mxu1 }
 0xb22   : > { %v7052_v26 = vpop.f32.mrb[95].mxu1 }
 0xb23   : > { %v9939_v0 = vpop.f32.mrb[88].mxu0 }
 0xb24   : > { %v7057_v61 = vpop.f32.mrb[89].mxu0 }
 0xb25   : > { %v4269_v3 = vpop.f32.mrb[90].mxu0 }
 0xb26   : > { %v7058_v11 = vpop.f32.mrb[91].mxu0 }
 0xb27   : > { %v9941_v47 = vpop.f32.mrb[96].mxu1 }
 0xb28   : > { %v7063_v58 = vpop.f32.mrb[97].mxu1 }
 0xb29   : > { %v4317_v1 = vpop.f32.mrb[98].mxu1 }
 0xb2a   : > { %v7064_v14 = vpop.f32.mrb[99].mxu1 }
 0xb55   : > { %v9943_v27 = vpop.f32.mrb[92].mxu0 }
 0xb56   : > { %v7069_v29 = vpop.f32.mrb[93].mxu0 }
 0xb57   : > { %v4365_v7 = vpop.f32.mrb[94].mxu0 }
 0xb58   : > { %v7070_v42 = vpop.f32.mrb[95].mxu0 }
 0xb5c   : > { %v9945_v22 = vpop.f32.mrb[100].mxu1 }
 0xb5d   : > { %v4525_v21 = vpop.f32.mrb[96].mxu0  ;;  %v7075_v45 = vpop.f32.mrb[101].mxu1 }
 0xb5e   : > { %v4881_v5 = vmul.f32 0.35355338, %v4525_v21  ;;  %v7081_v13 = vpop.f32.mrb[97].mxu0  ;;  %v4413_v57 = vpop.f32.mrb[102].mxu1 }
 0xb5f   : > { %v4528_v18 = vpop.f32.mrb[98].mxu0  ;;  %v7076_v2 = vpop.f32.mrb[103].mxu1 }
 0xb60   : > { %v9948_v63 = vadd.f32 %v4881_v5, %v9334_v50  ;;  %v7082_v36 = vpop.f32.mrb[99].mxu0 }
 0xb62   : > { %v4897_v6 = vsel %vm1662_vm11, %v9948_v63, -inf }
 0xb63   : > { %4898 = vmax.xlane.f32.xlu1 %v4897_v6 }
 0xb64   : > { %v4575_v46 = vpop.f32.mrb[104].mxu1 }
 0xb65   : > { %v4882_v51 = vmul.f32 0.35355338, %v4575_v46  ;;  %v4625_v33 = vpop.f32.mrb[100].mxu0  ;;  %v7087_v41 = vpop.f32.mrb[105].mxu1 }
 0xb66   : > { %v4883_v17 = vmul.f32 0.35355338, %v4625_v33  ;;  %v7093_v26 = vpop.f32.mrb[101].mxu0  ;;  %v4578_v61 = vpop.f32.mrb[106].mxu1 }
 0xb67   : > { %v4890_v3 = vadd.f32 %v4882_v51, %v9352_v16  ;;  %v4628_v11 = vpop.f32.mrb[102].mxu0  ;;  %v7088_v58 = vpop.f32.mrb[107].mxu1 }
 0xb68   : > { %v7094_v1 = vpop.f32.mrb[103].mxu0  ;;  %v4891_v50 = vadd.f32 %v4883_v17, %v9332_v4 }
 0xb69   : > { %v4900_v14 = vsel %vm1662_vm11, %v4890_v3, -inf }
 0xb6a   : > { %4901 = vmax.xlane.f32.xlu0 %v4900_v14  ;;  %v4903_v45 = vsel %vm1662_vm11, %v4891_v50, -inf }
 0xb6c   : > { %v4675_v29 = vpop.f32.mrb[108].mxu1 }
 0xb6d   : > { %v4884_v7 = vmul.f32 0.35355338, %v4675_v29  ;;  %v4725_v42 = vpop.f32.mrb[104].mxu0  ;;  %v7099_v21 = vpop.f32.mrb[109].mxu1 }
 0xb6e   : > { %v4885_v5 = vmul.f32 0.35355338, %v4725_v42  ;;  %v7105_v13 = vpop.f32.mrb[105].mxu0  ;;  %4904 = vmax.xlane.f32.xlu0 %v4903_v45  ;;  %v4678_v57 = vpop.f32.mrb[110].mxu1 }
 0xb6f   : > { %v9957_v16 = vadd.f32 %v4884_v7, %v9359_v37  ;;  %v4728_v18 = vpop.f32.mrb[106].mxu0  ;;  %v7100_v2 = vpop.f32.mrb[111].mxu1 }
 0xb70   : > { %v9960_v4 = vadd.f32 %v4885_v5, %v9349_v40  ;;  %v7106_v36 = vpop.f32.mrb[107].mxu0 }
 0xb71   : > { %v4906_v6 = vsel %vm1662_vm11, %v9957_v16, -inf }
 0xb72   : > { %v4909_v46 = vsel %vm1662_vm11, %v9960_v4, -inf  ;;  %4907 = vmax.xlane.f32.xlu1 %v4906_v6 }
 0xb73   : > { %4910 = vmax.xlane.f32.xlu0 %v4909_v46 }
 0xb74   : > { %v4775_v51 = vpop.f32.mrb[112].mxu1 }
 0xb75   : > { %v4886_v33 = vmul.f32 0.35355338, %v4775_v51  ;;  %v4825_v41 = vpop.f32.mrb[108].mxu0  ;;  %v7111_v17 = vpop.f32.mrb[113].mxu1 }
 0xb76   : > { %v4887_v37 = vmul.f32 0.35355338, %v4825_v41  ;;  %v7117_v26 = vpop.f32.mrb[109].mxu0  ;;  %v4778_v61 = vpop.f32.mrb[114].mxu1 }
 0xb77   : > { %v4894_v11 = vadd.f32 %v4886_v33, %v9373_v10  ;;  %v4828_v40 = vpop.f32.mrb[110].mxu0  ;;  %v7112_v58 = vpop.f32.mrb[115].mxu1 }
 0xb78   : > { %v4895_v1 = vadd.f32 %v4887_v37, %v9361_v49  ;;  %v7118_v14 = vpop.f32.mrb[111].mxu0 }
 0xb79   : > { %v4912_v29 = vsel %vm1662_vm11, %v4894_v11, -inf }
 0xb7a   : > { %v4915_v7 = vsel %vm1662_vm11, %v4895_v1, -inf  ;;  %4913 = vmax.xlane.f32.xlu1 %v4912_v29 }
 0xb7b   : > { %4916 = vmax.xlane.f32.xlu0 %v4915_v7 }
 0xb7c   : > { %v4875_v42 = vpop.f32.mrb[116].mxu1 }
 0xb7d   : > { %v4888_v21 = vmul.f32 0.35355338, %v4875_v42  ;;  %v7123_v45 = vpop.f32.mrb[117].mxu1 }
 0xb7e   : > { %v4878_v5 = vpop.f32.mrb[118].mxu1 }
 0xb7f   : > { %v4896_v13 = vadd.f32 %v4888_v21, %v9378_v43  ;;  %v7124_v57 = vpop.f32.mrb[119].mxu1 }
 0xb81   : > { %v4918_v10 = vsel %vm1662_vm11, %v4896_v13, -inf }
 0xb82   : > { %4919 = vmax.xlane.f32.xlu1 %v4918_v10 }
 0xb91   : > { %5137 = vrot.lane.b32.xlu0 %v9230_v31, %s8030_s23 }
 0xb93   : > { %5089 = vrot.lane.b32.xlu1 %v9224_v19, %s8030_s23 }
 0xbf0   : > { %v4899_v49 = vpop.xlane.xlu1 %4898 }
 0xbf1   : > { %v4921_v18 = vsub.f32 %v9948_v63, %v4899_v49 }
 0xbf3   : > { %v4929_v2 = vmul.f32 1.442695, %v4921_v18 }
 0xbf5   : > { %7507 = vpow2.f32 %v4929_v2 }
 0xbf7   : > { %v4902_v36 = vpop.xlane.xlu0 %4901 }
 0xbf8   : > { %v4922_v6 = vsub.f32 %v4890_v3, %v4902_v36  ;;  %v6596_v36 = vpack.c.bf16 %v9736_v12, %v9736_v12  ;;  %v6605_v12 = vpack.c.bf16 %v9933_v28, %v9933_v28  ;;  %v6608_v28 = vpack.c.bf16 %v9939_v0, %v9939_v0 }
 0xbfa   : > { %v4931_v46 = vmul.f32 1.442695, %v4922_v6  ;;  %v6598_v6 = vpack.c.bf16 %v9740_v9, %v9740_v9  ;;  %v6607_v9 = vpack.c.bf16 %v9937_v60, %v9937_v60 }
 0xbfb   : > { %v4905_v51 = vpop.xlane.xlu0 %4904 }
 0xbfc   : > { %7509 = vpow2.f32 %v4931_v46  ;;  %v4923_v43 = vsub.f32 %v4891_v50, %v4905_v51  ;;  %v6597_v46 = vpack.c.bf16 %v9738_v55, %v9738_v55  ;;  %v6604_v51 = vpack.c.bf16 %v9931_v52, %v9931_v52 }
 0xbfd   : > { %v6600_v55 = vpack.c.bf16 %v9744_v24, %v9744_v24  ;;  %v6601_v52 = vpack.c.bf16 %v9746_v8, %v9746_v8  ;;  %v6603_v24 = vpack.c.bf16 %v9750_v30, %v9750_v30  ;;  %v6611_v8 = vpack.c.bf16 %v9945_v22, %v9945_v22 }
 0xbfe   : > { %v4933_v33 = vmul.f32 1.442695, %v4923_v43 }
 0xbff   : > { %v9977_v41 = vpop.eup %7507  ;;  %v4908_v50 = vpop.xlane.xlu1 %4907 }
 0xc00   : > { %7511 = vpow2.f32 %v4933_v33  ;;  %v4945_v31 = vsel %vm1662_vm11, %v9977_v41, 0.0  ;;  %v4924_v37 = vsub.f32 %v9957_v16, %v4908_v50  ;;  %v4911_v26 = vpop.xlane.xlu0 %4910 }
 0xc01   : > { %4946 = vadd.xlane.f32.xlu0 %v4945_v31  ;;  %v4925_v40 = vsub.f32 %v9960_v4, %v4911_v26 }
 0xc02   : > { %v4935_v58 = vmul.f32 1.442695, %v4924_v37 }
 0xc03   : > { %v4937_v42 = vmul.f32 1.442695, %v4925_v40 }
 0xc04   : > { %7513 = vpow2.f32 %v4935_v58 }
 0xc05   : > { %7515 = vpow2.f32 %v4937_v42 }
 0xc06   : > { %v9981_v19 = vpop.eup %7509 }
 0xc07   : > { %v4948_v63 = vsel %vm1662_vm11, %v9981_v19, 0.0  ;;  %v4914_v61 = vpop.xlane.xlu1 %4913 }
 0xc08   : > { %4949 = vadd.xlane.f32.xlu1 %v4948_v63  ;;  %v4926_v14 = vsub.f32 %v4894_v11, %v4914_v61  ;;  %v4917_v29 = vpop.xlane.xlu0 %4916 }
 0xc09   : > { %v4927_v21 = vsub.f32 %v4895_v1, %v4917_v29 }
 0xc0a   : > { %v9985_v17 = vpop.eup %7511  ;;  %v4939_v45 = vmul.f32 1.442695, %v4926_v14 }
 0xc0b   : > { %v4951_v3 = vsel %vm1662_vm11, %v9985_v17, 0.0 }
 0xc0c   : > { %4952 = vadd.xlane.f32.xlu0 %v4951_v3  ;;  %7517 = vpow2.f32 %v4939_v45  ;;  %v5138_v60 = vpop.permute.xlu0 %5137 }
 0xc0d   : > { %v5143_v26 = vsel %vm2162_vm12, %v5138_v60, 0 }
 0xc0e   : > { %v9995_v16 = vpop.eup %7513 }
 0xc0f   : > { %v4920_v7 = vpop.xlane.xlu1 %4919  ;;  %v9997_v57 = vpop.eup %7515  ;;  %v4954_v4 = vsel %vm1662_vm11, %v9995_v16, 0.0 }
 0xc10   : > { %v4928_v5 = vsub.f32 %v4896_v13, %v4920_v7  ;;  %v4957_v10 = vsel %vm1662_vm11, %v9997_v57, 0.0 }
 0xc13   : > { %v5090_v0 = vpop.permute.xlu1 %5089 }
 0xc14   : > { %v5095_v63 = vsel %vm2162_vm12, %v5090_v0, 0 }
 0xc16   : > { %v10001_v11 = vpop.eup %7517 }
 0xc17   : > { %v4960_v13 = vsel %vm1662_vm11, %v10001_v11, 0.0 }
 0xc19   : > { %5185 = vrot.lane.b32.xlu1 %v9237_v32, %s8030_s23  ;;  %v4941_v32 = vmul.f32 1.442695, %v4927_v21 }
 0xc1b   : > { %7519 = vpow2.f32 %v4941_v32 }
 0xc22   : > { %5233 = vrot.lane.b32.xlu0 %v9234_v38, %s8030_s23  ;;  %v4943_v38 = vmul.f32 1.442695, %v4928_v5 }
 0xc24   : > { %7521 = vpow2.f32 %v4943_v38 }
 0xc25   : > { %v10003_v1 = vpop.eup %7519 }
 0xc26   : > { %v4963_v2 = vsel %vm1662_vm11, %v10003_v1, 0.0 }
 0xc2e   : > { %v10009_v49 = vpop.eup %7521 }
 0xc2f   : > { %v4966_v18 = vsel %vm1662_vm11, %v10009_v49, 0.0 }
 0xc3d   : > { %4955 = vadd.xlane.f32.xlu1 %v4954_v4 }
 0xc41   : > { %4961 = vadd.xlane.f32.xlu1 %v4960_v13  ;;  %4958 = vadd.xlane.f32.xlu0 %v4957_v10 }
 0xc45   : > { %4967 = vadd.xlane.f32.xlu1 %v4966_v18  ;;  %4964 = vadd.xlane.f32.xlu0 %v4963_v2 }
 0xc56   : > { %5281 = vrot.lane.b32.xlu1 %v9243_v39, %s8030_s23  ;;  %v6599_v39 = vpack.c.bf16 %v9742_v23, %v9742_v23  ;;  %v6602_v23 = vpack.c.bf16 %v9748_v54, %v9748_v54  ;;  %v6609_v54 = vpack.c.bf16 %v9941_v47, %v9941_v47 }
 0xc5a   : > { %3487 = vrot.lane.b32.xlu1 %v6596_v36, %s8031_s1 }
 0xc5b   : > { %5329 = vrot.lane.b32.xlu0 %v9240_v34, %s8030_s23  ;;  %v6606_v34 = vpack.c.bf16 %v9935_v56, %v9935_v56  ;;  %v6610_v56 = vpack.c.bf16 %v9943_v27, %v9943_v27 }
 0xc5e   : > { %3491 = vrot.lane.b32.xlu1 %v6598_v6, %s8031_s1 }
 0xc5f   : > { %3489 = vrot.lane.b32.xlu0 %v6597_v46, %s8031_s1 }
 0xc62   : > { %4448 = vrot.lane.b32.xlu1 %v6604_v51, %s8032_s19 }
 0xc63   : > { %3493 = vrot.lane.b32.xlu0 %v6599_v39, %s8031_s1 }
 0xc66   : > { %4452 = vrot.lane.b32.xlu1 %v6606_v34, %s8032_s19 }
 0xc67   : > { %4450 = vrot.lane.b32.xlu0 %v6605_v12, %s8032_s19 }
 0xc6a   : > { %3495 = vrot.lane.b32.xlu1 %v6600_v55, %s8031_s1 }
 0xc6b   : > { %4454 = vrot.lane.b32.xlu0 %v6607_v9, %s8032_s19 }
 0xc6e   : > { %3499 = vrot.lane.b32.xlu1 %v6602_v23, %s8031_s1 }
 0xc6f   : > { %3497 = vrot.lane.b32.xlu0 %v6601_v52, %s8031_s1 }
 0xc72   : > { %4456 = vrot.lane.b32.xlu1 %v6608_v28, %s8032_s19 }
 0xc73   : > { %3501 = vrot.lane.b32.xlu0 %v6603_v24, %s8031_s1 }
 0xc76   : > { %4460 = vrot.lane.b32.xlu1 %v6610_v56, %s8032_s19 }
 0xc77   : > { %4458 = vrot.lane.b32.xlu0 %v6609_v54, %s8032_s19 }
 0xc7b   : > { %4462 = vrot.lane.b32.xlu0 %v6611_v8, %s8032_s19 }
 0xc8e   : > { %v4947_v30 = vpop.xlane.xlu0 %4946 }
 0xc8f   : > { %7523 = vrcp.f32 %v4947_v30 }
 0xc95   : > { %v4950_v43 = vpop.xlane.xlu1 %4949 }
 0xc96   : > { %7525 = vrcp.f32 %v4950_v43 }
 0xc99   : > { %v7524_v33 = vpop.eup %7523  ;;  %v4953_v27 = vpop.xlane.xlu0 %4952 }
 0xc9a   : > { %v4977_v31 = vmul.f32 %v7524_v33, %v9977_v41  ;;  %7527 = vrcp.f32 %v4953_v27  ;;  %v5186_v61 = vpop.permute.xlu1 %5185 }
 0xc9b   : > { %v5191_v58 = vsel %vm2162_vm12, %v5186_v61, 0 }
 0xc9c   : > { %v4985_v47 = vpack.c.bf16 %v4977_v31, %v4977_v31 }
 0xc9e   : > { %7128 = vmatmul.mubr.msk.bf16.vlgmr.msra.gmra.mrb[112].mxu0 %vm1662_vm11, %v4985_v47 }
 0xc9f   : > { %7138 = vmatpush3.bf16.msra.mxu0 %v5095_v63  ;;  %7139 = vmatprep.mubr.msk.bf16.mxu0 %vm8019_vm10, %v8018_v20 }
 0xca0   : > { %v7526_v22 = vpop.eup %7525  ;;  %7149 = vmatprep.subr.bf16.mxu0 %v8018_v20 }
 0xca1   : > { %v4978_v3 = vmul.f32 %v7526_v22, %v9981_v19  ;;  %v5234_v19 = vpop.permute.xlu0 %5233 }
 0xca2   : > { %v5239_v10 = vsel %vm2162_vm12, %v5234_v19, 0 }
 0xca3   : > { %v4986_v50 = vpack.c.bf16 %v4978_v3, %v4978_v3 }
 0xca4   : > { %v7528_v37 = vpop.eup %7527 }
 0xca5   : > { %v4979_v41 = vmul.f32 %v7528_v37, %v9985_v17  ;;  %7134 = vmatmul.mubr.msk.bf16.vlgmr.msra.gmra.mrb[120].mxu1 %vm1662_vm11, %v4986_v50 }
 0xca6   : > { %7144 = vmatpush3.bf16.msra.mxu1 %v5143_v26  ;;  %7145 = vmatprep.mubr.msk.bf16.mxu1 %vm8019_vm10, %v8018_v20 }
 0xca7   : > { %v4987_v40 = vpack.c.bf16 %v4979_v41, %v4979_v41  ;;  %7155 = vmatprep.subr.bf16.mxu1 %v8018_v20 }
 0xca9   : > { %7140 = vmatmul.mubr.msk.bf16.vlgmr.msra.gmra.mrb[116].mxu0 %vm1662_vm11, %v4987_v40 }
 0xcaa   : > { %7150 = vmatpush3.bf16.msra.mxu0 %v5191_v58  ;;  %7151 = vmatprep.mubr.msk.bf16.mxu0 %vm8019_vm10, %v8018_v20 }
 0xcab   : > { %7161 = vmatprep.subr.bf16.mxu0 %v8018_v20 }
 0xcca   : > { %v4956_v17 = vpop.xlane.xlu1 %4955 }
 0xccb   : > { %7529 = vrcp.f32 %v4956_v17  ;;  %v7400_v17 = vld [vmem:[%s5451_s24] sm:$0xff]  }
 0xcce   : > { %v4962_v14 = vpop.xlane.xlu1 %4961  ;;  %v4959_v29 = vpop.xlane.xlu0 %4958 }
 0xccf   : > { %7531 = vrcp.f32 %v4962_v14  ;;  %v7401_v14 = vld [vmem:[%s5451_s24 + $0x8] sm:$0xff]  }
 0xcd0   : > { %7533 = vrcp.f32 %v4959_v29 }
 0xcd2   : > { %v4968_v7 = vpop.xlane.xlu1 %4967  ;;  %v4965_v42 = vpop.xlane.xlu0 %4964 }
 0xcd3   : > { %7535 = vrcp.f32 %v4965_v42 }
 0xcd4   : > { %7537 = vrcp.f32 %v4968_v7 }
 0xcd5   : > { %v7530_v21 = vpop.eup %7529 }
 0xcd6   : > { %v4980_v45 = vmul.f32 %v7530_v21, %v9995_v16  ;;  %v5282_v5 = vpop.permute.xlu1 %5281  ;;  %v5330_v32 = vpop.permute.xlu0 %5329 }
 0xcd7   : > { %v5287_v34 = vsel %vm2162_vm12, %v5282_v5, 0  ;;  %v5335_v55 = vsel %vm2162_vm12, %v5330_v32, 0 }
 0xcd8   : > { %v4988_v38 = vpack.c.bf16 %v4980_v45, %v4980_v45 }
 0xcd9   : > { %v7532_v4 = vpop.eup %7531 }
 0xcda   : > { %v7534_v13 = vpop.eup %7533  ;;  %v3488_v18 = vpop.permute.xlu1 %3487  ;;  %7146 = vmatmul.mubr.msk.bf16.vlgmr.msra.gmra.mrb[124].mxu1 %vm1662_vm11, %v4988_v38  ;;  %v4982_v16 = vmul.f32 %v7532_v4, %v10001_v11 }
 0xcdb   : > { %v3490_v2 = vpop.permute.xlu0 %3489  ;;  %v4981_v36 = vmul.f32 %v7534_v13, %v9997_v57  ;;  %3512 = vst.msk [vmem:[#allocation3] sm:$0xf] %vm3511_vm14, %v3488_v18  ;;  %7156 = vmatpush3.bf16.msra.mxu1 %v5239_v10  ;;  %7157 = vmatprep.mubr.msk.bf16.mxu1 %vm8019_vm10, %v8018_v20 }
 0xcdc   : > { %3513 = vst.msk [vmem:[#allocation3 + $0x4] sm:$0xf] %vm3511_vm14, %v3490_v2  ;;  %7167 = vmatprep.subr.bf16.mxu1 %v8018_v20  ;;  %v4990_v57 = vpack.c.bf16 %v4982_v16, %v4982_v16 }
 0xcdd   : > { %v4989_v6 = vpack.c.bf16 %v4981_v36, %v4981_v36  ;;  %v7536_v46 = vpop.eup %7535 }
 0xcde   : > { %v3492_v51 = vpop.permute.xlu1 %3491  ;;  %v7538_v11 = vpop.eup %7537  ;;  %v4983_v12 = vmul.f32 %v7536_v46, %v10003_v1 }
 0xcdf   : > { %v3494_v39 = vpop.permute.xlu0 %3493  ;;  %3514 = vst.msk [vmem:[#allocation3 + $0x8] sm:$0xf] %vm3511_vm14, %v3492_v51  ;;  %7152 = vmatmul.mubr.msk.bf16.vlgmr.msra.gmra.mrb[120].mxu0 %vm1662_vm11, %v4989_v6  ;;  %v4984_v52 = vmul.f32 %v7538_v11, %v10009_v49 }
 0xce0   : > { %3515 = vst.msk [vmem:[#allocation3 + $0xc] sm:$0xf] %vm3511_vm14, %v3494_v39  ;;  %7162 = vmatpush3.bf16.msra.mxu0 %v5287_v34  ;;  %7163 = vmatprep.mubr.msk.bf16.mxu0 %vm8019_vm10, %v8018_v20  ;;  %v4991_v28 = vpack.c.bf16 %v4983_v12, %v4983_v12 }
 0xce1   : > { %v4992_v1 = vpack.c.bf16 %v4984_v52, %v4984_v52  ;;  %7173 = vmatprep.subr.bf16.mxu0 %v7400_v17 }
 0xce2   : > { %v4449_v9 = vpop.permute.xlu1 %4448  ;;  %7158 = vmatmul.mubr.msk.bf16.vlgmr.msra.gmra.mrb[128].mxu1 %vm1662_vm11, %v4990_v57 }
 0xce3   : > { %v4451_v23 = vpop.permute.xlu0 %4450  ;;  %4473 = vst.msk [vmem:[#allocation3] sm:$0xf] %vm4472_vm15, %v4449_v9  ;;  %7168 = vmatpush3.bf16.msra.mxu1 %v5335_v55  ;;  %7169 = vmatprep.mubr.msk.bf16.mxu1 %vm8019_vm10, %v8018_v20 }
 0xce4   : > { %4474 = vst.msk [vmem:[#allocation3 + $0x4] sm:$0xf] %vm4472_vm15, %v4451_v23 }
 0xce6   : > { %v4453_v24 = vpop.permute.xlu1 %4452 }
 0xce7   : > { %v4455_v56 = vpop.permute.xlu0 %4454  ;;  %4475 = vst.msk [vmem:[#allocation3 + $0x8] sm:$0xf] %vm4472_vm15, %v4453_v24  ;;  %7164 = vmatmul.mubr.msk.bf16.vlgmr.msra.gmra.mrb[124].mxu0 %vm1662_vm11, %v4991_v28 }
 0xce8   : > { %4476 = vst.msk [vmem:[#allocation3 + $0xc] sm:$0xf] %vm4472_vm15, %v4455_v56  ;;  %7174 = vmatpush3.bf16.msra.mxu0 %v7400_v17 }
 0xce9   : > { %7175 = vmatprep.subr.bf16.mxu0 %v7401_v14 }
 0xcea   : > { %v3496_v54 = vpop.permute.xlu1 %3495  ;;  %7170 = vmatmul.mubr.msk.bf16.vlgmr.msra.gmra.mrb[132].mxu1 %vm1662_vm11, %v4992_v1 }
 0xceb   : > { %v3498_v8 = vpop.permute.xlu0 %3497  ;;  %3516 = vst.msk [vmem:[#allocation3 + $0x10] sm:$0xf] %vm3511_vm14, %v3496_v54 }
 0xcec   : > { %3517 = vst.msk [vmem:[#allocation3 + $0x14] sm:$0xf] %vm3511_vm14, %v3498_v8  ;;  %7176 = vmatpush3.bf16.msra.mxu0 %v7401_v14 }
 0xcee   : > { %v3500_v20 = vpop.permute.xlu1 %3499 }
 0xcef   : > { %v3502_v49 = vpop.permute.xlu0 %3501  ;;  %3518 = vst.msk [vmem:[#allocation3 + $0x18] sm:$0xf] %vm3511_vm14, %v3500_v20 }
 0xcf0   : > { %3519 = vst.msk [vmem:[#allocation3 + $0x1c] sm:$0xf] %vm3511_vm14, %v3502_v49 }
 0xcf2   : > { %v4457_v60 = vpop.permute.xlu1 %4456 }
 0xcf3   : > { %v4459_v30 = vpop.permute.xlu0 %4458  ;;  %4477 = vst.msk [vmem:[#allocation3 + $0x10] sm:$0xf] %vm4472_vm15, %v4457_v60 }
 0xcf4   : > { %4478 = vst.msk [vmem:[#allocation3 + $0x14] sm:$0xf] %vm4472_vm15, %v4459_v30 }
 0xcf6   : > { %v4461_v0 = vpop.permute.xlu1 %4460 }
 0xcf7   : > { %v4463_v43 = vpop.permute.xlu0 %4462  ;;  %4479 = vst.msk [vmem:[#allocation3 + $0x18] sm:$0xf] %vm4472_vm15, %v4461_v0  ;;  %v6552_v0 = vld [vmem:[%s5456_s16] ss:$0 sm:$0xff] }
 0xcf8   : > { %4480 = vst.msk [vmem:[#allocation3 + $0x1c] sm:$0xf] %vm4472_vm15, %v4463_v43 }
 0xd71   : > { %v5035_v33 = vpop.f32.mrb[112].mxu0 }
 0xd72   : > { %v6612_v27 = vpack.c.bf16 %v5035_v33, %v5035_v33  ;;  %v7129_v31 = vpop.f32.mrb[113].mxu0 }
 0xd73   : > { %v5038_v47 = vpop.f32.mrb[114].mxu0 }
 0xd74   : > { %5409 = vrot.lane.b32.xlu1 %v6612_v27, %s8033_s28  ;;  %v7130_v63 = vpop.f32.mrb[115].mxu0 }
 0xd78   : > { %v5083_v22 = vpop.f32.mrb[120].mxu1 }
 0xd79   : > { %v6613_v3 = vpack.c.bf16 %v5083_v22, %v5083_v22  ;;  %v7135_v50 = vpop.f32.mrb[121].mxu1 }
 0xd7a   : > { %v5086_v37 = vpop.f32.mrb[122].mxu1 }
 0xd7b   : > { %v7136_v26 = vpop.f32.mrb[123].mxu1  ;;  %5411 = vrot.lane.b32.xlu0 %v6613_v3, %s8033_s28  ;;  %v7571_v3 = vld [vmem:[#allocation2] sm:$0xff] }
 0xd7c   : > { %v5131_v41 = vpop.f32.mrb[116].mxu0  ;;  %v7572_v26 = vld [vmem:[#allocation2 + $0x18] sm:$0xff] }
 0xd7d   : > { %v6614_v61 = vpack.c.bf16 %v5131_v41, %v5131_v41  ;;  %v7141_v40 = vpop.f32.mrb[117].mxu0 }
 0xd7e   : > { %v5134_v58 = vpop.f32.mrb[118].mxu0 }
 0xd7f   : > { %5413 = vrot.lane.b32.xlu1 %v6614_v61, %s8033_s28  ;;  %v7142_v19 = vpop.f32.mrb[119].mxu0  ;;  %v7573_v61 = vld [vmem:[#allocation2 + $0x8] sm:$0xff] }
 0xd80   : > { %v7574_v19 = vld [vmem:[#allocation2 + $0x10] sm:$0xff] }
 0xdad   : > { %v5179_v29 = vpop.f32.mrb[124].mxu1 }
 0xdae   : > { %v6615_v7 = vpack.c.bf16 %v5179_v29, %v5179_v29  ;;  %v7147_v42 = vpop.f32.mrb[125].mxu1 }
 0xdaf   : > { %v5182_v21 = vpop.f32.mrb[126].mxu1 }
 0xdb0   : > { %5415 = vrot.lane.b32.xlu0 %v6615_v7, %s8033_s28  ;;  %v7148_v45 = vpop.f32.mrb[127].mxu1 }
 0xdb2   : > { %v5227_v5 = vpop.f32.mrb[120].mxu0 }
 0xdb3   : > { %v6616_v32 = vpack.c.bf16 %v5227_v5, %v5227_v5  ;;  %v7153_v38 = vpop.f32.mrb[121].mxu0 }
 0xdb4   : > { %v5230_v4 = vpop.f32.mrb[122].mxu0 }
 0xdb5   : > { %5417 = vrot.lane.b32.xlu1 %v6616_v32, %s8033_s28  ;;  %v7154_v13 = vpop.f32.mrb[123].mxu0  ;;  %v5275_v10 = vpop.f32.mrb[128].mxu1  ;;  %v7575_v4 = vld [vmem:[#allocation2 + $0x20] sm:$0xff] }
 0xdb6   : > { %v6617_v18 = vpack.c.bf16 %v5275_v10, %v5275_v10  ;;  %v7159_v2 = vpop.f32.mrb[129].mxu1 }
 0xdb7   : > { %v5278_v36 = vpop.f32.mrb[130].mxu1  ;;  %v7576_v2 = vld [vmem:[#allocation2 + $0x30] sm:$0xff] }
 0xdb8   : > { %5419 = vrot.lane.b32.xlu0 %v6617_v18, %s8033_s28  ;;  %v7160_v16 = vpop.f32.mrb[131].mxu1 }
 0xdb9   : > { %v7577_v16 = vld [vmem:[#allocation2 + $0x28] sm:$0xff] }
 0xdba   : > { %v5323_v6 = vpop.f32.mrb[124].mxu0 }
 0xdbb   : > { %v6618_v46 = vpack.c.bf16 %v5323_v6, %v5323_v6  ;;  %v7165_v51 = vpop.f32.mrb[125].mxu0 }
 0xdbc   : > { %v5326_v39 = vpop.f32.mrb[126].mxu0  ;;  %v7578_v51 = vld [vmem:[#allocation2 + $0x38] sm:$0xff] }
 0xdbd   : > { %5421 = vrot.lane.b32.xlu1 %v6618_v46, %s8033_s28  ;;  %v7166_v34 = vpop.f32.mrb[127].mxu0  ;;  %v5371_v57 = vpop.f32.mrb[132].mxu1 }
 0xdbe   : > { %v6619_v11 = vpack.c.bf16 %v5371_v57, %v5371_v57  ;;  %v7171_v12 = vpop.f32.mrb[133].mxu1 }
 0xdbf   : > { %v5374_v55 = vpop.f32.mrb[134].mxu1 }
 0xdc0   : > { %5423 = vrot.lane.b32.xlu0 %v6619_v11, %s8033_s28  ;;  %v7172_v9 = vpop.f32.mrb[135].mxu1 }
 0xde6   : > { %v5410_v23 = vpop.permute.xlu1 %5409 }
 0xde7   : > { %5434 = vst.msk [vmem:[#allocation3] sm:$0xf] %vm5433_vm0, %v5410_v23 }
 0xded   : > { %v5412_v52 = vpop.permute.xlu0 %5411 }
 0xdee   : > { %5435 = vst.msk [vmem:[#allocation3 + $0x4] sm:$0xf] %vm5433_vm0, %v5412_v52 }
 0xdf1   : > { %v5414_v28 = vpop.permute.xlu1 %5413 }
 0xdf2   : > { %5436 = vst.msk [vmem:[#allocation3 + $0x8] sm:$0xf] %vm5433_vm0, %v5414_v28 }
 0xdf5   : > { %v7399_v24 = vld [vmem:[#allocation3] sm:$0xff]  }
 0xdf6   : > { %7177 = vmatprep.mubr.msk.bf16.mxu0 %vm1558_vm9, %v7399_v24 }
 0xe22   : > { %v5416_v56 = vpop.permute.xlu0 %5415 }
 0xe23   : > { %5437 = vst.msk [vmem:[#allocation3 + $0xc] sm:$0xf] %vm5433_vm0, %v5416_v56 }
 0xe27   : > { %v5418_v1 = vpop.permute.xlu1 %5417 }
 0xe28   : > { %5438 = vst.msk [vmem:[#allocation3 + $0x10] sm:$0xf] %vm5433_vm0, %v5418_v1 }
 0xe2a   : > { %v5420_v54 = vpop.permute.xlu0 %5419  ;;  %v7402_v8 = vld [vmem:[#allocation3 + $0x8] sm:$0xff]  }
 0xe2b   : > { %5439 = vst.msk [vmem:[#allocation3 + $0x14] sm:$0xf] %vm5433_vm0, %v5420_v54  ;;  %7178 = vmatmul.mubr.msk.bf16.vlgmr.msra.gmra.mrb[128].mxu0 %vm1558_vm9, %v7402_v8 }
 0xe2f   : > { %v5422_v20 = vpop.permute.xlu1 %5421 }
 0xe30   : > { %5440 = vst.msk [vmem:[#allocation3 + $0x18] sm:$0xf] %vm5433_vm0, %v5422_v20 }
 0xe32   : > { %v5424_v49 = vpop.permute.xlu0 %5423  ;;  %v7403_v60 = vld [vmem:[#allocation3 + $0x10] sm:$0xff]  }
 0xe33   : > { %5441 = vst.msk [vmem:[#allocation3 + $0x1c] sm:$0xf] %vm5433_vm0, %v5424_v49  ;;  %7181 = vmatprep.mubr.msk.bf16.mxu0 %vm1558_vm9, %v7403_v60 }
 0xe3a   : > { %v7404_v30 = vld [vmem:[#allocation3 + $0x18] sm:$0xff]  }
 0xe3b   : > { %7182 = vmatmul.mubr.msk.bf16.gmra.mrb[132].mxu0 %vm1558_vm9, %v7404_v30 }
 0xefe   : > { %v7179_v43 = vpop.f32.mrb[128].mxu0 }
 0xeff   : > { %v5542_v33 = vpop.f32.mrb[129].mxu0  ;;  %v5551_v22 = vadd.f32 %v7179_v43, %v6552_v0 }
 0xf00   : > { %v5543_v27 = vadd.f32 %v6552_v0, %v5542_v33  ;;  %v7180_v31 = vpop.f32.mrb[130].mxu0 }
 0xf01   : > { %v5554_v47 = vadd.f32 %v7180_v31, %v6552_v0  ;;  %v5545_v63 = vpop.f32.mrb[131].mxu0  ;;  %v5577_v17 = vadd.f32 %v7574_v19, %v5551_v22 }
 0xf02   : > { %v5575_v50 = vadd.f32 %v7571_v3, %v5543_v27  ;;  %v5546_v37 = vadd.f32 %v6552_v0, %v5545_v63 }
 0xf03   : > { %v5578_v41 = vadd.f32 %v7572_v26, %v5554_v47  ;;  %v5589_v7 = vsel %vm1558_vm9, %v5577_v17, 0.0 }
 0xf04   : > { %v5576_v40 = vadd.f32 %v7573_v61, %v5546_v37  ;;  %v5583_v58 = vsel %vm1558_vm9, %v5575_v50, 0.0 }
 0xf05   : > { %5584 = vadd.xlane.f32.xlu1 %v5583_v58  ;;  %v5592_v29 = vsel %vm1558_vm9, %v5578_v41, 0.0 }
 0xf06   : > { %v5586_v14 = vsel %vm1558_vm9, %v5576_v40, 0.0 }
 0xf07   : > { %5587 = vadd.xlane.f32.xlu0 %v5586_v14 }
 0xf09   : > { %5593 = vadd.xlane.f32.xlu1 %v5592_v29 }
 0xf0b   : > { %5590 = vadd.xlane.f32.xlu0 %v5589_v7 }
 0xf0e   : > { %v7183_v42 = vpop.f32.mrb[132].mxu0 }
 0xf0f   : > { %v5558_v21 = vpop.f32.mrb[133].mxu0  ;;  %v5567_v45 = vadd.f32 %v7183_v42, %v6552_v0 }
 0xf10   : > { %v5559_v5 = vadd.f32 %v6552_v0, %v5558_v21  ;;  %v7184_v32 = vpop.f32.mrb[134].mxu0 }
 0xf11   : > { %v5561_v38 = vpop.f32.mrb[135].mxu0  ;;  %v5570_v10 = vadd.f32 %v7184_v32, %v6552_v0  ;;  %v5581_v36 = vadd.f32 %v7576_v2, %v5567_v45  ;;  %v7405_v32 = vld [vmem:[%s5717_s18] sm:$0xff]  }
 0xf12   : > { %v5579_v13 = vadd.f32 %v7575_v4, %v5559_v5  ;;  %v5562_v18 = vadd.f32 %v6552_v0, %v5561_v38  ;;  %7185 = vmatprep.subr.bf16.mxu1 %v7405_v32  ;;  %v7406_v38 = vld [vmem:[%s5717_s18 + $0x8] sm:$0xff]   ;;  %v7407_v4 = vld [vmem:[%s10185_s12] sm:$0xff]  }
 0xf13   : > { %v5582_v39 = vadd.f32 %v7578_v51, %v5570_v10  ;;  %v5601_v57 = vsel %vm1558_vm9, %v5581_v36, 0.0  ;;  %7186 = vmatpush3.bf16.msra.mxu1 %v7405_v32  ;;  %7197 = vmatprep.subr.bf16.mxu0 %v7407_v4 }
 0xf14   : > { %v5580_v6 = vadd.f32 %v7577_v16, %v5562_v18  ;;  %v5595_v46 = vsel %vm1558_vm9, %v5579_v13, 0.0  ;;  %7187 = vmatprep.subr.bf16.mxu1 %v7406_v38  ;;  %7198 = vmatpush3.bf16.msra.mxu0 %v7407_v4 }
 0xf15   : > { %5596 = vadd.xlane.f32.xlu0 %v5595_v46  ;;  %v5604_v11 = vsel %vm1558_vm9, %v5582_v39, 0.0 }
 0xf16   : > { %v5598_v34 = vsel %vm1558_vm9, %v5580_v6, 0.0 }
 0xf17   : > { %5599 = vadd.xlane.f32.xlu1 %v5598_v34  ;;  %7188 = vmatpush3.bf16.msra.mxu1 %v7406_v38 }
 0xf19   : > { %5602 = vadd.xlane.f32.xlu0 %v5601_v57 }
 0xf1b   : > { %5605 = vadd.xlane.f32.xlu1 %v5604_v11 }
 0xf92   : > { %v5585_v12 = vpop.xlane.xlu1 %5584 }
 0xf93   : > { %v5608_v55 = vmul.f32 0.03125, %v5585_v12 }
 0xf94   : > { %v5588_v9 = vpop.xlane.xlu0 %5587 }
 0xf95   : > { %v10143_v23 = vsub.f32 %v5575_v50, %v5608_v55  ;;  %v5609_v52 = vmul.f32 0.03125, %v5588_v9 }
 0xf96   : > { %v5594_v28 = vpop.xlane.xlu1 %5593 }
 0xf97   : > { %v10145_v24 = vsub.f32 %v5576_v40, %v5609_v52  ;;  %v5611_v56 = vmul.f32 0.03125, %v5594_v28  ;;  %v5624_v1 = vmul.f32 %v10143_v23, %v10143_v23  ;;  %v10193_v52 = vld [vmem:[%s5573_s20] sm:$0xf] }
 0xf98   : > { %v5591_v54 = vpop.xlane.xlu0 %5590 }
 0xf99   : > { %v10149_v8 = vsub.f32 %v5578_v41, %v5611_v56  ;;  %v5610_v20 = vmul.f32 0.03125, %v5591_v54  ;;  %v5632_v49 = vsel %vm1558_vm9, %v5624_v1, 0.0  ;;  %v5625_v60 = vmul.f32 %v10145_v24, %v10145_v24 }
 0xf9a   : > { %5633 = vadd.xlane.f32.xlu0 %v5632_v49 }
 0xf9b   : > { %v10154_v30 = vsub.f32 %v5577_v17, %v5610_v20  ;;  %v5635_v0 = vsel %vm1558_vm9, %v5625_v60, 0.0  ;;  %v5627_v43 = vmul.f32 %v10149_v8, %v10149_v8 }
 0xf9c   : > { %5636 = vadd.xlane.f32.xlu1 %v5635_v0 }
 0xf9d   : > { %v5626_v33 = vmul.f32 %v10154_v30, %v10154_v30  ;;  %v5641_v27 = vsel %vm1558_vm9, %v5627_v43, 0.0 }
 0xf9f   : > { %v5638_v31 = vsel %vm1558_vm9, %v5626_v33, 0.0 }
 0xfa0   : > { %5642 = vadd.xlane.f32.xlu1 %v5641_v27  ;;  %5639 = vadd.xlane.f32.xlu0 %v5638_v31 }
 0xfa2   : > { %v5597_v47 = vpop.xlane.xlu0 %5596 }
 0xfa3   : > { %v5612_v63 = vmul.f32 0.03125, %v5597_v47 }
 0xfa4   : > { %v5600_v22 = vpop.xlane.xlu1 %5599 }
 0xfa5   : > { %v10163_v3 = vsub.f32 %v5579_v13, %v5612_v63  ;;  %v5613_v50 = vmul.f32 0.03125, %v5600_v22  ;;  %v7408_v13 = vld [vmem:[%s10185_s12 + $0x8] sm:$0xff]  }
 0xfa6   : > { %v5603_v37 = vpop.xlane.xlu0 %5602  ;;  %7199 = vmatprep.subr.bf16.mxu0 %v7408_v13 }
 0xfa7   : > { %v10165_v26 = vsub.f32 %v5580_v6, %v5613_v50  ;;  %v5614_v41 = vmul.f32 0.03125, %v5603_v37  ;;  %v5628_v61 = vmul.f32 %v10163_v3, %v10163_v3  ;;  %7200 = vmatpush3.bf16.msra.mxu0 %v7408_v13 }
 0xfa8   : > { %v5606_v40 = vpop.xlane.xlu1 %5605 }
 0xfa9   : > { %v10169_v58 = vsub.f32 %v5581_v36, %v5614_v41  ;;  %v5615_v19 = vmul.f32 0.03125, %v5606_v40  ;;  %v5644_v17 = vsel %vm1558_vm9, %v5628_v61, 0.0  ;;  %v5629_v14 = vmul.f32 %v10165_v26, %v10165_v26 }
 0xfaa   : > { %5645 = vadd.xlane.f32.xlu0 %v5644_v17  ;;  %v5688_v36 = vlaneseq }
 0xfab   : > { %v10174_v29 = vsub.f32 %v5582_v39, %v5615_v19  ;;  %v5647_v7 = vsel %vm1558_vm9, %v5629_v14, 0.0  ;;  %v5630_v42 = vmul.f32 %v10169_v58, %v10169_v58 }
 0xfac   : > { %5648 = vadd.xlane.f32.xlu1 %v5647_v7  ;;  %v10190_v51 = vshrl.u32 %v5688_v36, 7 }
 0xfad   : > { %v5650_v21 = vsel %vm1558_vm9, %v5630_v42, 0.0  ;;  %v5631_v45 = vmul.f32 %v10174_v29, %v10174_v29 }
 0xfae   : > { %5651 = vadd.xlane.f32.xlu0 %v5650_v21  ;;  %v5690_v9 = vsub.s32 0, %v10190_v51  ;;  %v5702_v56 = vsub.s32 1, %v10190_v51 }
 0xfaf   : > { %v5653_v5 = vsel %vm1558_vm9, %v5631_v45, 0.0 }
 0xfb0   : > { %5654 = vadd.xlane.f32.xlu1 %v5653_v5  ;;  %v5691_v28 = vrot.slane %v10193_v52, %v5690_v9  ;;  %v5703_v27 = vrot.slane %v10193_v52, %v5702_v56  ;;  %v6564_v9 = vld [vmem:[%s5722_s17] ss:$0 sm:$0xff] }
0x1027   : > { %v5634_v10 = vpop.xlane.xlu0 %5633 }
0x1028   : > { %v5656_v18 = vmul.f32 0.03125, %v5634_v10 }
0x1029   : > { %v5637_v2 = vpop.xlane.xlu1 %5636 }
0x102a   : > { %v5664_v16 = vadd.f32 1e-06, %v5656_v18  ;;  %v5657_v6 = vmul.f32 0.03125, %v5637_v2 }
0x102c   : > { %7539 = vrsqrt.f32 %v5664_v16  ;;  %v5665_v46 = vadd.f32 1e-06, %v5657_v6 }
0x102d   : > { %v5643_v39 = vpop.xlane.xlu1 %5642  ;;  %v5640_v34 = vpop.xlane.xlu0 %5639 }
0x102e   : > { %7541 = vrsqrt.f32 %v5665_v46  ;;  %v5659_v57 = vmul.f32 0.03125, %v5643_v39  ;;  %v5658_v11 = vmul.f32 0.03125, %v5640_v34 }
0x1030   : > { %v5667_v12 = vadd.f32 1e-06, %v5659_v57  ;;  %v5666_v55 = vadd.f32 1e-06, %v5658_v11 }
0x1032   : > { %7543 = vrsqrt.f32 %v5667_v12 }
0x1033   : > { %7545 = vrsqrt.f32 %v5666_v55  ;;  %v7410_v55 = vld [vmem:[%s10185_s12 + $0x18] sm:$0xff]  }
0x1036   : > { %v7540_v1 = vpop.eup %7539 }
0x1037   : > { %v5680_v54 = vmul.f32 %v7540_v1, %v10143_v23  ;;  %v5646_v20 = vpop.xlane.xlu0 %5645 }
0x1038   : > { %v7542_v49 = vpop.eup %7541  ;;  %v5660_v60 = vmul.f32 0.03125, %v5646_v20 }
0x1039   : > { %v5681_v0 = vmul.f32 %v7542_v49, %v10145_v24  ;;  %v5649_v43 = vpop.xlane.xlu1 %5648  ;;  %v5692_v33 = vmul.f32 %v5691_v28, %v5680_v54 }
0x103a   : > { %v5668_v31 = vadd.f32 1e-06, %v5660_v60  ;;  %v5661_v47 = vmul.f32 0.03125, %v5649_v43 }
0x103b   : > { %v5652_v63 = vpop.xlane.xlu0 %5651  ;;  %v5693_v22 = vmul.f32 %v5691_v28, %v5681_v0  ;;  %v10201_v19 = vadd.f32 %v5703_v27, %v5692_v33 }
0x103c   : > { %v7544_v50 = vpop.eup %7543  ;;  %7547 = vrsqrt.f32 %v5668_v31  ;;  %v5669_v37 = vadd.f32 1e-06, %v5661_v47  ;;  %v5662_v41 = vmul.f32 0.03125, %v5652_v63 }
0x103d   : > { %v7546_v61 = vpop.eup %7545  ;;  %v5683_v23 = vmul.f32 %v7544_v50, %v10149_v8  ;;  %v5655_v40 = vpop.xlane.xlu1 %5654  ;;  %v10203_v17 = vadd.f32 %v5703_v27, %v5693_v22 }
0x103e   : > { %v5682_v24 = vmul.f32 %v7546_v61, %v10154_v30  ;;  %7549 = vrsqrt.f32 %v5669_v37  ;;  %v5670_v14 = vadd.f32 1e-06, %v5662_v41  ;;  %v5663_v7 = vmul.f32 0.03125, %v5655_v40 }
0x103f   : > { %v5695_v42 = vmul.f32 %v5691_v28, %v5683_v23  ;;  %v5712_v21 = vpack.c.bf16 %v10203_v17, %v10201_v19 }
0x1040   : > { %v5694_v45 = vmul.f32 %v5691_v28, %v5682_v24  ;;  %7551 = vrsqrt.f32 %v5670_v14  ;;  %v5671_v5 = vadd.f32 1e-06, %v5663_v7 }
0x1041   : > { %7189 = vmatprep.mubr.msk.bf16.mxu1 %vm1558_vm9, %v5712_v21  ;;  %v10209_v8 = vadd.f32 %v5703_v27, %v5695_v42 }
0x1042   : > { %7553 = vrsqrt.f32 %v5671_v5  ;;  %v10211_v32 = vadd.f32 %v5703_v27, %v5694_v45 }
0x1044   : > { %v5713_v30 = vpack.c.bf16 %v10209_v8, %v10211_v32 }
0x1046   : > { %v7548_v38 = vpop.eup %7547  ;;  %7190 = vmatmul.mubr.msk.bf16.vlgmr.msra.gmra.mrb[136].mxu1 %vm1558_vm9, %v5713_v30  ;;  %v6573_v30 = vld [vmem:[%s5842_s21] ss:$0 sm:$0xff] }
0x1047   : > { %v5684_v4 = vmul.f32 %v7548_v38, %v10163_v3 }
0x1048   : > { %v7550_v13 = vpop.eup %7549 }
0x1049   : > { %v5685_v10 = vmul.f32 %v7550_v13, %v10165_v26  ;;  %v5696_v18 = vmul.f32 %v5691_v28, %v5684_v4 }
0x104a   : > { %v7552_v2 = vpop.eup %7551 }
0x104b   : > { %v5686_v36 = vmul.f32 %v7552_v2, %v10169_v58  ;;  %v5697_v16 = vmul.f32 %v5691_v28, %v5685_v10  ;;  %v10220_v39 = vadd.f32 %v5703_v27, %v5696_v18 }
0x104c   : > { %v7554_v6 = vpop.eup %7553 }
0x104d   : > { %v5687_v46 = vmul.f32 %v7554_v6, %v10174_v29  ;;  %v10222_v34 = vadd.f32 %v5703_v27, %v5697_v16  ;;  %v5698_v57 = vmul.f32 %v5691_v28, %v5686_v36  ;;  %v7409_v29 = vld [vmem:[%s10185_s12 + $0x10] sm:$0xff]  }
0x104e   : > { %7201 = vmatprep.subr.bf16.mxu0 %v7409_v29 }
0x104f   : > { %v5714_v3 = vpack.c.bf16 %v10222_v34, %v10220_v39  ;;  %v5699_v26 = vmul.f32 %v5691_v28, %v5687_v46  ;;  %v10227_v11 = vadd.f32 %v5703_v27, %v5698_v57  ;;  %7202 = vmatpush3.bf16.msra.mxu0 %v7409_v29 }
0x1050   : > { %7203 = vmatprep.subr.bf16.mxu0 %v7410_v55 }
0x1051   : > { %7193 = vmatprep.mubr.msk.bf16.mxu1 %vm1558_vm9, %v5714_v3  ;;  %v10229_v58 = vadd.f32 %v5703_v27, %v5699_v26 }
0x1053   : > { %v5715_v12 = vpack.c.bf16 %v10229_v58, %v10227_v11  ;;  %7204 = vmatpush3.bf16.msra.mxu0 %v7410_v55 }
0x1055   : > { %7194 = vmatmul.mubr.msk.bf16.gmra.mrb[140].mxu1 %vm1558_vm9, %v5715_v12 }
0x1119   : > { %v7191_v28 = vpop.f32.mrb[136].mxu1 }
0x111a   : > { %v5797_v56 = vadd.f32 %v7191_v28, %v6564_v9  ;;  %v5788_v1 = vpop.f32.mrb[137].mxu1 }
0x111b   : > { %v5789_v54 = vadd.f32 %v6564_v9, %v5788_v1  ;;  %v7192_v20 = vpop.f32.mrb[138].mxu1 }
0x111c   : > { %v5800_v49 = vadd.f32 %v7192_v20, %v6564_v9  ;;  %v5791_v60 = vpop.f32.mrb[139].mxu1  ;;  %v5821_v43 = vmax.f32 %v5797_v56, 0.0 }
0x111d   : > { %v5792_v0 = vadd.f32 %v6564_v9, %v5791_v60  ;;  %v5819_v27 = vmax.f32 %v5789_v54, 0.0 }
0x111e   : > { %v5822_v33 = vmax.f32 %v5800_v49, 0.0 }
0x111f   : > { %v5820_v31 = vmax.f32 %v5792_v0, 0.0 }
0x1120   : > { %v5828_v47 = vpack.c.bf16 %v5822_v33, %v5821_v43 }
0x1121   : > { %v5827_v63 = vpack.c.bf16 %v5820_v31, %v5819_v27 }
0x1123   : > { %7205 = vmatprep.mubr.msk.bf16.mxu0 %vm5874_vm1, %v5827_v63 }
0x1124   : > { %7206 = vmatmul.mubr.msk.bf16.vlgmr.msra.gmra.mrb[136].mxu0 %vm5874_vm1, %v5828_v47 }
0x1128   : > { %v7195_v22 = vpop.f32.mrb[140].mxu1 }
0x1129   : > { %v5813_v50 = vadd.f32 %v7195_v22, %v6564_v9  ;;  %v5804_v37 = vpop.f32.mrb[141].mxu1 }
0x112a   : > { %v5805_v41 = vadd.f32 %v6564_v9, %v5804_v37  ;;  %v7196_v61 = vpop.f32.mrb[142].mxu1 }
0x112b   : > { %v5816_v23 = vadd.f32 %v7196_v61, %v6564_v9  ;;  %v5807_v40 = vpop.f32.mrb[143].mxu1  ;;  %v5825_v14 = vmax.f32 %v5813_v50, 0.0 }
0x112c   : > { %v5808_v24 = vadd.f32 %v6564_v9, %v5807_v40  ;;  %v5823_v42 = vmax.f32 %v5805_v41, 0.0 }
0x112d   : > { %v5826_v7 = vmax.f32 %v5816_v23, 0.0 }
0x112e   : > { %v5824_v21 = vmax.f32 %v5808_v24, 0.0 }
0x112f   : > { %v5830_v45 = vpack.c.bf16 %v5826_v7, %v5825_v14 }
0x1130   : > { %v5829_v5 = vpack.c.bf16 %v5824_v21, %v5823_v42 }
0x1132   : > { %7209 = vmatprep.mubr.msk.bf16.mxu0 %vm5874_vm1, %v5829_v5 }
0x1133   : > { %7210 = vmatmul.mubr.msk.bf16.gmra.mrb[140].mxu0 %vm5874_vm1, %v5830_v45 }
0x11f7   : > { %v7207_v38 = vpop.f32.mrb[136].mxu0 }
0x11f8   : > { %v5930_v4 = vadd.f32 %v7207_v38, %v6573_v30  ;;  %v5921_v13 = vpop.f32.mrb[137].mxu0 }
0x11f9   : > { %v5922_v10 = vadd.f32 %v6573_v30, %v5921_v13  ;;  %v7208_v18 = vpop.f32.mrb[138].mxu0 }
0x11fa   : > { %v5954_v2 = vadd.f32 %v5930_v4, %v10211_v32  ;;  %v5933_v36 = vadd.f32 %v7208_v18, %v6573_v30  ;;  %v5924_v16 = vpop.f32.mrb[139].mxu0 }
0x11fb   : > { %v5925_v6 = vadd.f32 %v6573_v30, %v5924_v16  ;;  %v5952_v46 = vadd.f32 %v5922_v10, %v10201_v19 }
0x11fc   : > { %v5955_v57 = vadd.f32 %v5933_v36, %v10209_v8  ;;  %v5966_v3 = vsel %vm1558_vm9, %v5954_v2, 0.0 }
0x11fd   : > { %5967 = vadd.xlane.f32.xlu0 %v5966_v3  ;;  %v5953_v26 = vadd.f32 %v5925_v6, %v10203_v17  ;;  %v5960_v29 = vsel %vm1558_vm9, %v5952_v46, 0.0 }
0x11fe   : > { %v5969_v12 = vsel %vm1558_vm9, %v5955_v57, 0.0 }
0x11ff   : > { %5970 = vadd.xlane.f32.xlu1 %v5969_v12  ;;  %v5963_v32 = vsel %vm1558_vm9, %v5953_v26, 0.0 }
0x1201   : > { %5961 = vadd.xlane.f32.xlu0 %v5960_v29 }
0x1203   : > { %5964 = vadd.xlane.f32.xlu1 %v5963_v32 }
0x1206   : > { %v7211_v55 = vpop.f32.mrb[140].mxu0 }
0x1207   : > { %v5937_v9 = vpop.f32.mrb[141].mxu0  ;;  %v5946_v28 = vadd.f32 %v7211_v55, %v6573_v30 }
0x1208   : > { %v5938_v19 = vadd.f32 %v6573_v30, %v5937_v9  ;;  %v7212_v56 = vpop.f32.mrb[142].mxu0 }
0x1209   : > { %v5940_v8 = vpop.f32.mrb[143].mxu0  ;;  %v5949_v54 = vadd.f32 %v7212_v56, %v6573_v30  ;;  %v5958_v17 = vadd.f32 %v5946_v28, %v10227_v11 }
0x120a   : > { %v5956_v1 = vadd.f32 %v5938_v19, %v10220_v39  ;;  %v5941_v20 = vadd.f32 %v6573_v30, %v5940_v8 }
0x120b   : > { %v5959_v0 = vadd.f32 %v5949_v54, %v10229_v58  ;;  %v5978_v33 = vsel %vm1558_vm9, %v5958_v17, 0.0 }
0x120c   : > { %v5957_v49 = vadd.f32 %v5941_v20, %v10222_v34  ;;  %v5972_v60 = vsel %vm1558_vm9, %v5956_v1, 0.0 }
0x120d   : > { %5973 = vadd.xlane.f32.xlu0 %v5972_v60  ;;  %v5981_v27 = vsel %vm1558_vm9, %v5959_v0, 0.0 }
0x120e   : > { %v5975_v43 = vsel %vm1558_vm9, %v5957_v49, 0.0 }
0x120f   : > { %5976 = vadd.xlane.f32.xlu1 %v5975_v43 }
0x1211   : > { %5979 = vadd.xlane.f32.xlu0 %v5978_v33  ;;  %v6066_v33 = vsub.s32 2, %v10190_v51 }
0x1213   : > { %5982 = vadd.xlane.f32.xlu1 %v5981_v27  ;;  %v6078_v27 = vsub.s32 3, %v10190_v51 }
0x128a   : > { %v5968_v39 = vpop.xlane.xlu0 %5967 }
0x128b   : > { %v5986_v31 = vmul.f32 0.03125, %v5968_v39  ;;  %v6067_v39 = vrot.slane %v10193_v52, %v6066_v33 }
0x128c   : > { %v5971_v47 = vpop.xlane.xlu1 %5970 }
0x128d   : > { %v10258_v11 = vsub.f32 %v5954_v2, %v5986_v31  ;;  %v5987_v34 = vmul.f32 0.03125, %v5971_v47  ;;  %v6079_v47 = vrot.slane %v10193_v52, %v6078_v27 }
0x128e   : > { %v5962_v63 = vpop.xlane.xlu0 %5961 }
0x128f   : > { %v10260_v22 = vsub.f32 %v5955_v57, %v5987_v34  ;;  %v5984_v50 = vmul.f32 0.03125, %v5962_v63  ;;  %v6002_v58 = vmul.f32 %v10258_v11, %v10258_v11 }
0x1290   : > { %v5965_v37 = vpop.xlane.xlu1 %5964 }
0x1291   : > { %v10264_v41 = vsub.f32 %v5952_v46, %v5984_v50  ;;  %v5985_v61 = vmul.f32 0.03125, %v5965_v37  ;;  %v6014_v23 = vsel %vm1558_vm9, %v6002_v58, 0.0  ;;  %v6003_v40 = vmul.f32 %v10260_v22, %v10260_v22 }
0x1292   : > { %6015 = vadd.xlane.f32.xlu0 %v6014_v23 }
0x1293   : > { %v10269_v24 = vsub.f32 %v5953_v26, %v5985_v61  ;;  %v6017_v14 = vsel %vm1558_vm9, %v6003_v40, 0.0  ;;  %v6000_v7 = vmul.f32 %v10264_v41, %v10264_v41 }
0x1294   : > { %6018 = vadd.xlane.f32.xlu1 %v6017_v14 }
0x1295   : > { %v6008_v42 = vsel %vm1558_vm9, %v6000_v7, 0.0  ;;  %v6001_v21 = vmul.f32 %v10269_v24, %v10269_v24 }
0x1296   : > { %6009 = vadd.xlane.f32.xlu0 %v6008_v42 }
0x1297   : > { %v6011_v45 = vsel %vm1558_vm9, %v6001_v21, 0.0 }
0x1298   : > { %6012 = vadd.xlane.f32.xlu1 %v6011_v45 }
0x129a   : > { %v5974_v5 = vpop.xlane.xlu0 %5973 }
0x129b   : > { %v5988_v30 = vmul.f32 0.03125, %v5974_v5 }
0x129c   : > { %v5977_v38 = vpop.xlane.xlu1 %5976 }
0x129d   : > { %v10278_v4 = vsub.f32 %v5956_v1, %v5988_v30  ;;  %v5989_v13 = vmul.f32 0.03125, %v5977_v38 }
0x129e   : > { %v5980_v10 = vpop.xlane.xlu0 %5979 }
0x129f   : > { %v10280_v18 = vsub.f32 %v5957_v49, %v5989_v13  ;;  %v5990_v2 = vmul.f32 0.03125, %v5980_v10  ;;  %v6004_v36 = vmul.f32 %v10278_v4, %v10278_v4 }
0x12a0   : > { %v5983_v16 = vpop.xlane.xlu1 %5982 }
0x12a1   : > { %v10284_v6 = vsub.f32 %v5958_v17, %v5990_v2  ;;  %v5991_v46 = vmul.f32 0.03125, %v5983_v16  ;;  %v6020_v57 = vsel %vm1558_vm9, %v6004_v36, 0.0  ;;  %v6005_v3 = vmul.f32 %v10280_v18, %v10280_v18 }
0x12a2   : > { %6021 = vadd.xlane.f32.xlu0 %v6020_v57 }
0x12a3   : > { %v10289_v26 = vsub.f32 %v5959_v0, %v5991_v46  ;;  %v6023_v12 = vsel %vm1558_vm9, %v6005_v3, 0.0  ;;  %v6006_v29 = vmul.f32 %v10284_v6, %v10284_v6 }
0x12a4   : > { %6024 = vadd.xlane.f32.xlu1 %v6023_v12 }
0x12a5   : > { %v6026_v32 = vsel %vm1558_vm9, %v6006_v29, 0.0  ;;  %v6007_v55 = vmul.f32 %v10289_v26, %v10289_v26 }
0x12a6   : > { %6027 = vadd.xlane.f32.xlu0 %v6026_v32 }
0x12a7   : > { %v6029_v9 = vsel %vm1558_vm9, %v6007_v55, 0.0 }
0x12a8   : > { %6030 = vadd.xlane.f32.xlu1 %v6029_v9 }
0x131f   : > { %v6016_v28 = vpop.xlane.xlu0 %6015 }
0x1320   : > { %v6034_v19 = vmul.f32 0.03125, %v6016_v28 }
0x1321   : > { %v6019_v56 = vpop.xlane.xlu1 %6018 }
0x1322   : > { %v6042_v8 = vadd.f32 1e-06, %v6034_v19  ;;  %v6035_v1 = vmul.f32 0.03125, %v6019_v56 }
0x1323   : > { %v6010_v54 = vpop.xlane.xlu0 %6009 }
0x1324   : > { %7555 = vrsqrt.f32 %v6042_v8  ;;  %v6043_v20 = vadd.f32 1e-06, %v6035_v1  ;;  %v6032_v17 = vmul.f32 0.03125, %v6010_v54 }
0x1325   : > { %v6013_v49 = vpop.xlane.xlu1 %6012 }
0x1326   : > { %7557 = vrsqrt.f32 %v6043_v20  ;;  %v6040_v60 = vadd.f32 1e-06, %v6032_v17  ;;  %v6033_v0 = vmul.f32 0.03125, %v6013_v49 }
0x1328   : > { %7559 = vrsqrt.f32 %v6040_v60  ;;  %v6041_v43 = vadd.f32 1e-06, %v6033_v0 }
0x132a   : > { %7561 = vrsqrt.f32 %v6041_v43 }
0x132e   : > { %v7556_v31 = vpop.eup %7555 }
0x132f   : > { %v6058_v34 = vmul.f32 %v7556_v31, %v10258_v11  ;;  %v6022_v63 = vpop.xlane.xlu0 %6021 }
0x1330   : > { %v7558_v50 = vpop.eup %7557  ;;  %v6036_v58 = vmul.f32 0.03125, %v6022_v63 }
0x1331   : > { %v6070_v37 = vmul.f32 %v6067_v39, %v6058_v34  ;;  %v6059_v61 = vmul.f32 %v7558_v50, %v10260_v22  ;;  %v6025_v23 = vpop.xlane.xlu1 %6024 }
0x1332   : > { %v7560_v40 = vpop.eup %7559  ;;  %v6044_v14 = vadd.f32 1e-06, %v6036_v58  ;;  %v6037_v7 = vmul.f32 0.03125, %v6025_v23 }
0x1333   : > { %v6082_v42 = vadd.f32 %v6079_v47, %v6070_v37  ;;  %v6071_v21 = vmul.f32 %v6067_v39, %v6059_v61  ;;  %v6056_v51 = vmul.f32 %v7560_v40, %v10264_v41  ;;  %v6028_v45 = vpop.xlane.xlu0 %6027 }
0x1334   : > { %v7562_v5 = vpop.eup %7561  ;;  %7563 = vrsqrt.f32 %v6044_v14  ;;  %v6045_v52 = vadd.f32 1e-06, %v6037_v7  ;;  %v6038_v30 = vmul.f32 0.03125, %v6028_v45 }
0x1335   : > { %6090 = vst.msk [vmem:[#allocation2 + $0x10] sm:$0xff] %vm1558_vm9, %v6082_v42  ;;  %v6083_v11 = vadd.f32 %v6079_v47, %v6071_v21  ;;  %v6068_v38 = vmul.f32 %v6067_v39, %v6056_v51  ;;  %v6057_v13 = vmul.f32 %v7562_v5, %v10269_v24  ;;  %v6031_v22 = vpop.xlane.xlu1 %6030 }
0x1336   : > { %7565 = vrsqrt.f32 %v6045_v52  ;;  %v6046_v10 = vadd.f32 1e-06, %v6038_v30  ;;  %v6039_v2 = vmul.f32 0.03125, %v6031_v22 }
0x1337   : > { %6091 = vst.msk [vmem:[#allocation2 + $0x18] sm:$0xff] %vm1558_vm9, %v6083_v11  ;;  %v6080_v36 = vadd.f32 %v6079_v47, %v6068_v38  ;;  %v6069_v16 = vmul.f32 %v6067_v39, %v6057_v13 }
0x1338   : > { %7567 = vrsqrt.f32 %v6046_v10  ;;  %v6047_v41 = vadd.f32 1e-06, %v6039_v2 }
0x1339   : > { %6088 = vst.msk [vmem:[#allocation2] sm:$0xff] %vm1558_vm9, %v6080_v36  ;;  %v6081_v46 = vadd.f32 %v6079_v47, %v6069_v16 }
0x133a   : > { %7569 = vrsqrt.f32 %v6047_v41 }
0x133b   : > { %6089 = vst.msk [vmem:[#allocation2 + $0x8] sm:$0xff] %vm1558_vm9, %v6081_v46 }
0x133c   : > { %v6102_v60 = vld [vmem:[#allocation2 + $0x10] sm:$0xff] (!%p6582_p11) }
0x133d   : > { %v6110_v43 = vmul.f32 (!%p6582_p11), %v6102_v60, %v9300_v48 }
0x133e   : > { %v7564_v57 = vpop.eup %7563 }
0x133f   : > { %v6060_v3 = vmul.f32 %v7564_v57, %v10278_v4  ;;  %v6130_v50 = vsel (!%p6582_p11), %vm1558_vm9, %v6110_v43, 0.0  ;;  %v6194_v43 = vld [vmem:[#allocation24 + $0x1] sm:$0x1] (!%p6582_p11) }
0x1340   : > { %v7566_v24 = vpop.eup %7565  ;;  %v6131_v48 = vrot.slane (!%p6582_p11), %v6130_v50, 4 }
0x1341   : > { %v6072_v12 = vmul.f32 %v6067_v39, %v6060_v3  ;;  %v6061_v29 = vmul.f32 %v7566_v24, %v10280_v18  ;;  %v6100_v18 = vld [vmem:[#allocation2] sm:$0xff] (!%p6582_p11) }
0x1342   : > { %v7568_v32 = vpop.eup %7567  ;;  %v6101_v17 = vld [vmem:[#allocation2 + $0x8] sm:$0xff] (!%p6582_p11)  ;;  %v6132_v21 = vadd.f32 (!%p6582_p11), %v6131_v48, %v6130_v50  ;;  %v6203_v48 = vld [vmem:[#allocation24 + $0x4] sm:$0x1] (!%p6582_p11) }
0x1343   : > { %v6084_v55 = vadd.f32 %v6079_v47, %v6072_v12  ;;  %v6073_v9 = vmul.f32 %v6067_v39, %v6061_v29  ;;  %v6062_v28 = vmul.f32 %v7568_v32, %v10284_v6  ;;  %v6108_v6 = vmul.f32 (!%p6582_p11), %v6100_v18, %v9298_v53 }
0x1344   : > { %v7570_v19 = vpop.eup %7569  ;;  %v6109_v49 = vmul.f32 (!%p6582_p11), %v6101_v17, %v9296_v35  ;;  %v6133_v38 = vrot.slane (!%p6582_p11), %v6132_v21, 2 }
0x1345   : > { %6092 = vst.msk [vmem:[#allocation2 + $0x20] sm:$0xff] %vm1558_vm9, %v6084_v55  ;;  %v6085_v56 = vadd.f32 %v6079_v47, %v6073_v9  ;;  %v6074_v8 = vmul.f32 %v6067_v39, %v6062_v28  ;;  %v6063_v1 = vmul.f32 %v7570_v19, %v10289_v26  ;;  %6099 = sbr.rel (%p6582_p11) target bundleno = 4968 (0x1368), region = 124  ;;  %v6103_v26 = vld [vmem:[#allocation2 + $0x18] sm:$0xff] (!%p6582_p11)  ;;  %v6116_v0 = vsel (!%p6582_p11), %vm1558_vm9, %v6108_v6, 0.0 }
0x1346   : > { %v6111_v33 = vmul.f32 (!%p6582_p11), %v6103_v26, %v9305_v44  ;;  %v6123_v31 = vsel (!%p6582_p11), %vm1558_vm9, %v6109_v49, 0.0  ;;  %v6134_v41 = vadd.f32 (!%p6582_p11), %v6133_v38, %v6132_v21  ;;  %v6191_v6 = vld [vmem:[#allocation24] sm:$0x1] (!%p6582_p11)  ;;  %v6212_v38 = vld [vmem:[#allocation24 + $0x7] sm:$0x1] (!%p6582_p11) }
0x1347   : > { %6093 = vst.msk [vmem:[#allocation2 + $0x28] sm:$0xff] %vm1558_vm9, %v6085_v56  ;;  %v6086_v54 = vadd.f32 %v6079_v47, %v6074_v8  ;;  %v6075_v4 = vmul.f32 %v6067_v39, %v6063_v1  ;;  %v6117_v39 = vrot.slane (!%p6582_p11), %v6116_v0, 4  ;;  %v6124_v53 = vrot.slane (!%p6582_p11), %v6123_v31, 4 }
0x1348   : > { %v6137_v35 = vsel (!%p6582_p11), %vm1558_vm9, %v6111_v33, 0.0  ;;  %v6135_v55 = vrot.slane (!%p6582_p11), %v6134_v41, 1 }
0x1349   : > { %6094 = vst.msk [vmem:[#allocation2 + $0x30] sm:$0xff] %vm1558_vm9, %v6086_v54  ;;  %v6087_v20 = vadd.f32 %v6079_v47, %v6075_v4  ;;  %v6118_v37 = vadd.f32 (!%p6582_p11), %v6117_v39, %v6116_v0  ;;  %v6138_v44 = vrot.slane (!%p6582_p11), %v6137_v35, 4  ;;  %v6125_v40 = vadd.f32 (!%p6582_p11), %v6124_v53, %v6123_v31 }
0x134a   : > { %v6136_v54 = vadd.f32 (!%p6582_p11), %v6135_v55, %v6134_v41 }
0x134b   : > { %6095 = vst.msk [vmem:[#allocation2 + $0x38] sm:$0xff] %vm1558_vm9, %v6087_v20  ;;  %v6119_v42 = vrot.slane (!%p6582_p11), %v6118_v37, 2  ;;  %v6139_v51 = vadd.f32 (!%p6582_p11), %v6138_v44, %v6137_v35  ;;  %v6126_v5 = vrot.slane (!%p6582_p11), %v6125_v40, 2 }
0x134c   : > { %v6104_v27 = vld [vmem:[#allocation2 + $0x20] sm:$0xff]  ;;  %v6174_v33 = vmul.f32 0.125, %v6136_v54 }
0x134d   : > { %v6112_v47 = vmul.f32 %v6104_v27, %v9310_v15  ;;  %v6120_v11 = vadd.f32 %v6119_v42, %v6118_v37  ;;  %v6140_v13 = vrot.slane %v6139_v51, 2  ;;  %v6127_v10 = vadd.f32 %v6126_v5, %v6125_v40  ;;  %v6206_v40 = vld [vmem:[#allocation24 + $0x5] sm:$0x1] }
0x134e   : > { %v6105_v34 = vld [vmem:[#allocation2 + $0x28] sm:$0xff] }
0x134f   : > { %v6113_v58 = vmul.f32 %v6105_v34, %v9312_v62  ;;  %v6144_v61 = vsel %vm1558_vm9, %v6112_v47, 0.0  ;;  %v6141_v46 = vadd.f32 %v6140_v13, %v6139_v51  ;;  %v6128_v3 = vrot.slane %v6127_v10, 1  ;;  %v6197_v47 = vld [vmem:[#allocation24 + $0x2] sm:$0x1]  ;;  %v6200_v34 = vld [vmem:[#allocation24 + $0x3] sm:$0x1] }
0x1350   : > { %v6106_v63 = vld [vmem:[#allocation2 + $0x30] sm:$0xff]  ;;  %v6145_v14 = vrot.slane %v6144_v61, 4 }
0x1351   : > { %v6151_v15 = vsel %vm1558_vm9, %v6113_v58, 0.0  ;;  %v6114_v7 = vmul.f32 %v6106_v63, %v9314_v25  ;;  %v6121_v25 = vrot.slane %v6120_v11, 1  ;;  %v6129_v28 = vadd.f32 %v6128_v3, %v6127_v10 }
0x1352   : > { %v6107_v23 = vld [vmem:[#allocation2 + $0x38] sm:$0xff]  ;;  %v6152_v45 = vrot.slane %v6151_v15, 4  ;;  %v6146_v62 = vadd.f32 %v6145_v14, %v6144_v61  ;;  %v6182_v58 = vpack.c.bf16 %v6174_v33, %v6174_v33 }
0x1353   : > { %v6158_v52 = vsel %vm1558_vm9, %v6114_v7, 0.0  ;;  %v6115_v30 = vmul.f32 %v6107_v23, %v9318_v59  ;;  %v6122_v32 = vadd.f32 %v6121_v25, %v6120_v11  ;;  %v6142_v59 = vrot.slane %v6141_v46, 1 }
0x1354   : > { %v6153_v22 = vadd.f32 %v6152_v45, %v6151_v15  ;;  %v6147_v2 = vrot.slane %v6146_v62, 2  ;;  %v6159_v36 = vrot.slane %v6158_v52, 4  ;;  %v6173_v17 = vmul.f32 0.125, %v6129_v28 }
0x1355   : > { %v6165_v16 = vsel %vm1558_vm9, %v6115_v30, 0.0  ;;  %v6172_v1 = vmul.f32 0.125, %v6122_v32  ;;  %v6143_v4 = vadd.f32 %v6142_v59, %v6141_v46  ;;  %v6198_v7 = vsel %vm10337_vm4, %v6182_v58, %v6197_v47 }
0x1356   : > { %v6154_v57 = vrot.slane %v6153_v22, 2  ;;  %v6148_v24 = vadd.f32 %v6147_v2, %v6146_v62  ;;  %v6160_v12 = vadd.f32 %v6159_v36, %v6158_v52  ;;  %v6166_v29 = vrot.slane %v6165_v16, 4  ;;  %6199 = vst [vmem:[#allocation24 + $0x2] sm:$0x1] %v6198_v7  ;;  %v6209_v52 = vld [vmem:[#allocation24 + $0x6] sm:$0x1] }
0x1357   : > { %v6180_v0 = vpack.c.bf16 %v6172_v1, %v6172_v1  ;;  %v6175_v27 = vmul.f32 0.125, %v6143_v4  ;;  %v6181_v31 = vpack.c.bf16 %v6173_v17, %v6173_v17 }
0x1358   : > { %v6155_v9 = vadd.f32 %v6154_v57, %v6153_v22  ;;  %v6149_v19 = vrot.slane %v6148_v24, 1  ;;  %v6161_v56 = vrot.slane %v6160_v12, 2  ;;  %v6167_v8 = vadd.f32 %v6166_v29, %v6165_v16 }
0x1359   : > { %v6192_v35 = vsel %vm10337_vm4, %v6180_v0, %v6191_v6  ;;  %v6183_v37 = vpack.c.bf16 %v6175_v27, %v6175_v27  ;;  %v6195_v61 = vsel %vm10337_vm4, %v6181_v31, %v6194_v43 }
0x135a   : > { %v6156_v20 = vrot.slane %v6155_v9, 1  ;;  %v6150_v49 = vadd.f32 %v6149_v19, %v6148_v24  ;;  %v6162_v60 = vadd.f32 %v6161_v56, %v6160_v12  ;;  %v6168_v26 = vrot.slane %v6167_v8, 2  ;;  %6193 = vst [vmem:[#allocation24] sm:$0x1] %v6192_v35  ;;  %6196 = vst [vmem:[#allocation24 + $0x1] sm:$0x1] %v6195_v61 }
0x135b   : > { %v6201_v42 = vsel %vm10337_vm4, %v6183_v37, %v6200_v34 }
0x135c   : > { %v6157_v39 = vadd.f32 %v6156_v20, %v6155_v9  ;;  %v6176_v63 = vmul.f32 0.125, %v6150_v49  ;;  %v6163_v53 = vrot.slane %v6162_v60, 1  ;;  %v6169_v50 = vadd.f32 %v6168_v26, %v6167_v8  ;;  %6202 = vst [vmem:[#allocation24 + $0x3] sm:$0x1] %v6201_v42 }
0x135e   : > { %v6177_v44 = vmul.f32 0.125, %v6157_v39  ;;  %v6184_v23 = vpack.c.bf16 %v6176_v63, %v6176_v63  ;;  %v6164_v14 = vadd.f32 %v6163_v53, %v6162_v60  ;;  %v6170_v15 = vrot.slane %v6169_v50, 1 }
0x1360   : > { %v6185_v21 = vpack.c.bf16 %v6177_v44, %v6177_v44  ;;  %v6204_v51 = vsel %vm10337_vm4, %v6184_v23, %v6203_v48  ;;  %v6178_v45 = vmul.f32 0.125, %v6164_v14  ;;  %v6171_v5 = vadd.f32 %v6170_v15, %v6169_v50 }
0x1361   : > { %6205 = vst [vmem:[#allocation24 + $0x4] sm:$0x1] %v6204_v51 }
0x1362   : > { %v6207_v62 = vsel %vm10337_vm4, %v6185_v21, %v6206_v40  ;;  %v6186_v30 = vpack.c.bf16 %v6178_v45, %v6178_v45  ;;  %v6179_v11 = vmul.f32 0.125, %v6171_v5 }
0x1363   : > { %6208 = vst [vmem:[#allocation24 + $0x5] sm:$0x1] %v6207_v62 }
0x1364   : > { %v6210_v13 = vsel %vm10337_vm4, %v6186_v30, %v6209_v52  ;;  %v6187_v22 = vpack.c.bf16 %v6179_v11, %v6179_v11 }
0x1365   : > { %6211 = vst [vmem:[#allocation24 + $0x6] sm:$0x1] %v6210_v13 }
0x1366   : > { %v6213_v10 = vsel %vm10337_vm4, %v6187_v22, %v6212_v38 }
0x1367   : > { %6214 = vst [vmem:[#allocation24 + $0x7] sm:$0x1] %v6213_v10 }
0x1368 PF: > { %s10637_s27 = sld [smem:[#allocation34_spill]]  ;;  %s8034_s25 = smov [#allocation24]  }
0x1369   : > { %s6224_s15 = sshll.u32 %s8034_s25, 4  ;;  %s6225_s15 = int_to_ptr.vmem [resolvable:$true] %s6224_s15 }
0x136a   : > { %s7915_s23 = scalar_lea.vmem %s6225_s15, 128  ;;  %p7922_p4 = scmp.lt.s32.totalorder %s6225_s15, %s6225_s15 }
0x136b   : > { %p7916_p13 = scmp.ne.s32.totalorder %s6225_s15, %s7915_s23  ;;  %p7923_p6 = scmp.lt.s32.totalorder %s7915_s23, %s7915_s23 }
0x136d   : > { %p7924_p8 = por %p7923_p6, %p7922_p4 }
0x136e   : > { %s10638_s29 = sadd.s32 4294967295, %s10637_s27  }
0x136f   : > { %p10359_p12 = scmp.eq.s32.totalorder %s10638_s29, 1 }
0x1371   : > { %p7917_p0 = pnand %p7916_p13, %p10359_p12 }
0x1373   : > { %p7918_p1 = pneg %p7917_p0 }
0x1375   : > { %p7925_p9 = pnand %p7924_p8, %p7918_p1 }
0x1377   : > { %7928 = shalt.err (!%p7925_p9)
}
0x1378   : > { %s10640_s24 = sld [smem:[#allocation62_spill]] }
0x137e   : > { %s7929_s16 = scalar_lea.hbm %s10640_s24, 128 }
0x137f   : > { %p7930_p10 = scmp.ne.s32.totalorder %s10640_s24, %s7929_s16  ;;  %p7935_p7 = scmp.lt.u32.totalorder %s7929_s16, %s10640_s24 }
0x1381   : > { %p7931_p2 = pnand %p7930_p10, %p10359_p12 }
0x1383   : > { %p7932_p3 = pneg %p7931_p2 }
0x1385   : > { %p7937_p5 = pnand %p7935_p7, %p7932_p3 }
0x1387   : > { %7940 = shalt.err (!%p7937_p5)
}
0x1388   : > { %s8035_s20 = smov 1  }
0x1389   : > { %7266 = dma.vmem_to_hbm [thread:$0]  (%p10359_p12), %s6225_s15, 128, %s10640_s24, [#allocation6], %s8032_s19, %s8032_s19, %s8035_s20  }
0x138a   : > { %7982 = dma.done.wait (%p10359_p12), [#allocation6], 128  }
0x138b   : > { %7984 = vsyncadd (%p10359_p12), [#allocation6], 4294967168 }
0x138c PF: > { %s10641_s27 = sld [smem:[#allocation34_spill]]  ;;  %s10642_s21 = smov %s7991_s22 }
0x138d   : > { %s10643_s22 = smov %s10645_s30 }
0x1392   : > { %s30_s23 = sadd.s32 1, %s10641_s27  }
0x1393   : > { %p27_p11 = scmp.ge.s32.totalorder %s30_s23, 4  }
0x1395   :  { %29 = sbr.rel (!%p27_p11) target bundleno = 12 (0xc), region = 162 }
0x139c   :  { %6240 = vsyncpa [#allocation5], 1 }
0x139d   :  { %6242 = vsyncpa [#allocation5 + $0x1], 1 }
0x139e   :  { %6243 = vsyncpa [#allocation8], 1 }
0x139f   :  { %6244 = vsyncpa [#allocation11], 1 }
0x13a0   :  { %6245 = vsyncpa [#allocation14], 1 }
0x13a1   :  { %6246 = vsyncpa [#allocation17], 1 }
0x13a2   :  { %6247 = vsyncpa [#allocation20], 1 }
0x13a3   :  { %6248 = vsyncpa [#allocation23], 1 }
0x13a4   :  { %6249 = vsyncpa [#allocation6], 1 }
0x13a5   :  { %6251 = vsyncpa [#allocation6 + $0x1], 1 }

</bundles_post_ra>
